<compile_context>
chip_gen: v7x
topology: tpu7x:2x2x1
jax: 0.10.0
libtpu: 0.0.40
codegen_flags: <defaults>
</compile_context>

<pallas_src>
import functools

import jax
import jax.numpy as jnp
from jax import lax
from jax.experimental import pallas as pl
from jax.experimental.pallas import tpu as pltpu

EPS = 1e-5


# ---------------------------------------------------------------- utilities
def _vmem_limit_bytes():
    """Generation-dependent VMEM limit (~3/4 of physical, capped), with a safe fallback."""
    cap = 64 * 1024 * 1024
    try:
        info = pltpu.get_tpu_info()
        cap = int(getattr(info, "vmem_capacity_bytes", cap)) or cap
    except Exception:
        pass
    return int(max(32 * 1024 * 1024, min(cap * 3 // 4, 112 * 1024 * 1024)))


def _divisors(n):
    ds = set()
    i = 1
    while i * i <= n:
        if n % i == 0:
            ds.add(i)
            ds.add(n // i)
        i += 1
    return sorted(ds)


def _pick_tile(total, bytes_per_unit, budget, quantum=1):
    """Largest divisor of `total` (multiple of `quantum`, or == total) that fits `budget`."""
    cand = [d for d in _divisors(total) if d % quantum == 0 or d == total]
    fit = [d for d in cand if d * bytes_per_unit <= budget]
    return max(fit) if fit else min(cand)


def _partial_stats(t):
    """Per-channel [sum ; sum-of-squares] of an f32 (rows, C) tile -> (1, 2, C). Single pass."""
    s = jnp.sum(t, axis=0, keepdims=True)
    q = jnp.sum(t * t, axis=0, keepdims=True)
    return jnp.concatenate([s, q], axis=0)[None]


def _scale_shift(partial, gamma, beta, count, fold):
    """Tiny glue: reduce per-tile [sum;sumsq] partials -> per-channel BN scale/shift."""
    # NOTE: single-pass E[x^2]-E[x]^2 in f32; fine at these activation scales / batch sizes.
    tot = jnp.sum(partial, axis=0)                 # (2, fold*C)
    tot = tot.reshape(2, fold, -1).sum(axis=1)     # (2, C)   (also reduces packed parities)
    mean = tot[0] / count
    var = jnp.maximum(tot[1] / count - mean * mean, 0.0)
    scale = gamma.reshape(-1) * lax.rsqrt(var + EPS)
    shift = beta.reshape(-1) - mean * scale
    return scale[None, :].astype(jnp.float32), shift[None, :].astype(jnp.float32)


# ---------------- K1: conv1 (1x1) + BN1 partial statistics ----------------
def _k1_conv1(x_ref, w1_ref, hp_ref, st_ref):
    h = jnp.dot(x_ref[...], w1_ref[...], preferred_element_type=jnp.float32)
    hp_ref[...] = h.astype(jnp.bfloat16)
    st_ref[...] = _partial_stats(h)


# ------ K2: BN1+ReLU -> 3 kh-group deconv matmuls -> parity assembly ------
def _k2_deconv(hp_ref, hh_ref, mcol_ref, s1_ref, t1_ref,
               w0_ref, w1g_ref, w2_ref, y_ref, st_ref, *, C, W, nTH):
    R = hp_ref.shape[0]                       # TH * W rows (input-resolution pixels)
    s1 = s1_ref[...]
    t1 = t1_ref[...]

    # BN1 + ReLU in f32 on the bf16-stored conv1 output.
    h = jnp.maximum(hp_ref[...].astype(jnp.float32) * s1 + t1, 0.0)
    hh = jnp.maximum(hh_ref[...].astype(jnp.float32) * s1 + t1, 0.0)

    # Halo row = first image row of the next tile (image row a+1 for this tile's last row).
    # It is only valid when this is NOT the last tile of its image; at image row a = H-1 the
    # kh=0 tap has no source row, so zero the halo contribution (exactly equivalent to masking).
    keep_halo = jnp.where((pl.program_id(0) + 1) % nTH == 0, 0.0, 1.0)
    hh = hh * keep_halo

    hb = h.astype(jnp.bfloat16)                                            # rows at image row a
    hsb = jnp.concatenate([hb[W:, :], hh.astype(jnp.bfloat16)], axis=0)    # rows at image row a+1

    # One MXU matmul per kh tap-group ((R, C) @ (C, 3C)); inside a group, lanes [kw*C:(kw+1)*C].
    S_even = jnp.dot(hb, w1g_ref[...], preferred_element_type=jnp.float32)   # kh=1 -> even out rows
    G2 = jnp.dot(hb, w2_ref[...], preferred_element_type=jnp.float32)        # kh=2 at row a
    G0 = jnp.dot(hsb, w0_ref[...], preferred_element_type=jnp.float32)       # kh=0 at row a+1
    S_odd = G0 + G2                                                          # -> odd out rows

    m_col = mcol_ref[...]                      # (R, 1): 0.0 where col b == W-1 (roll wrap mask)

    def _cols(S):
        # pw=0: kw=1 at col b ; pw=1: kw=0 at col b+1 (rolled, edge-masked) + kw=2 at col b.
        left = pltpu.roll(S[:, 0:C], R - 1, 0) * m_col
        return S[:, C:2 * C], left + S[:, 2 * C:3 * C]

    y00, y01 = _cols(S_even)
    y10, y11 = _cols(S_odd)

    # Parity-packed lanes, written as slabs (no full-width concat copy).
    y_ref[:, 0 * C:1 * C] = y00.astype(jnp.bfloat16)
    y_ref[:, 1 * C:2 * C] = y01.astype(jnp.bfloat16)
    y_ref[:, 2 * C:3 * C] = y10.astype(jnp.bfloat16)
    y_ref[:, 3 * C:4 * C] = y11.astype(jnp.bfloat16)

    # BN2 partial stats (f32, parities reduced in-kernel).
    s = jnp.sum(y00 + y01 + y10 + y11, axis=0, keepdims=True)
    q = jnp.sum(y00 * y00 + y01 * y01 + y10 * y10 + y11 * y11, axis=0, keepdims=True)
    st_ref[...] = jnp.concatenate([s, q], axis=0)[None]


# -------- K3: BN2+ReLU + conv3 (1x1) as one block-diagonal matmul --------
def _k3_conv3(y_ref, s2_ref, t2_ref, w3_ref, z_ref, st_ref):
    d = jnp.maximum(y_ref[...].astype(jnp.float32) * s2_ref[...] + t2_ref[...], 0.0)
    z = jnp.dot(d.astype(jnp.bfloat16), w3_ref[...], preferred_element_type=jnp.float32)
    z_ref[...] = z.astype(jnp.bfloat16)
    st_ref[...] = _partial_stats(z)


# ---------------- K4: BN3 + ReLU ----------------
def _k4_bn_relu(z_ref, s3_ref, t3_ref, o_ref):
    o = jnp.maximum(z_ref[...].astype(jnp.float32) * s3_ref[...] + t3_ref[...], 0.0)
    o_ref[...] = o.astype(o_ref.dtype)


# ---------------- wrapper ----------------
def decoder_block(x_nchw, params):
    # b1/b2/b3 accepted for API parity but unused: each conv bias is cancelled exactly by the
    # following batch-statistic BatchNorm.
    w1, b1, g1, be1, wt, b2, g2, be2, w3, b3, g3, be3 = params
    del b1, b2, b3
    B, Cin, H, W = x_nchw.shape
    Cmid = w1.shape[1]
    Cout = w3.shape[1]
    N = B * H * W
    assert W % 8 == 0, "row-tiled deconv kernel requires W to be a multiple of 8"

    vmem_limit = _vmem_limit_bytes()
    budget = min(vmem_limit // 4, 16 * 1024 * 1024)
    cparams = pltpu.CompilerParams(dimension_semantics=("parallel",),
                                   vmem_limit_bytes=vmem_limit)

    # VMEM-budget-driven tiles (rough per-row byte costs incl. double buffering + temporaries).
    TH = _pick_tile(H, W * (80 * Cmid + 8), budget, quantum=1)     # K2: image rows per tile
    nTH = H // TH
    R = TH * W
    TN1 = _pick_tile(N, 4 * Cin + 12 * Cmid, budget, quantum=8)
    TN3 = _pick_tile(N, 48 * (Cmid + Cout), budget, quantum=8)
    TN4 = _pick_tile(N, 56 * Cout, budget, quantum=8)

    # Layout / weight prep (tiny XLA glue; bf16 cast is fused into the input transpose pass).
    x_flat = jnp.transpose(x_nchw, (0, 2, 3, 1)).reshape(N, Cin).astype(jnp.bfloat16)
    w1_b = w1.astype(jnp.bfloat16)
    # ConvTranspose2d weight (Cin, Cout, kh, kw) -> per-kh group (Cin, 3*Cout), kw-major co-minor.
    wt_r = jnp.transpose(wt, (0, 2, 3, 1)).reshape(Cmid, 3, 3 * Cmid)
    w_kh0 = wt_r[:, 0, :].astype(jnp.bfloat16)
    w_kh1 = wt_r[:, 1, :].astype(jnp.bfloat16)
    w_kh2 = wt_r[:, 2, :].astype(jnp.bfloat16)
    # Block-diagonal conv3 weight: one lane-dense (4*Cmid, 4*Cout) matmul handles all 4 parities.
    w3_bd = jnp.kron(jnp.eye(4, dtype=w3.dtype), w3).astype(jnp.bfloat16)
    # Column edge mask (0.0 at col == W-1), same for every tile -> fetched once, stays resident.
    m_col = (jnp.tile(jnp.arange(W), TH) < (W - 1)).astype(jnp.float32).reshape(R, 1)

    # ---- K1: conv1 + BN1 partial stats ----
    nt1 = N // TN1
    hp, st1 = pl.pallas_call(
        _k1_conv1,
        out_shape=(jax.ShapeDtypeStruct((N, Cmid), jnp.bfloat16),
                   jax.ShapeDtypeStruct((nt1, 2, Cmid), jnp.float32)),
        grid=(nt1,),
        in_specs=[pl.BlockSpec((TN1, Cin), lambda i: (i, 0)),
                  pl.BlockSpec((Cin, Cmid), lambda i: (0, 0))],
        out_specs=(pl.BlockSpec((TN1, Cmid), lambda i: (i, 0)),
                   pl.BlockSpec((1, 2, Cmid), lambda i: (i, 0, 0))),
        compiler_params=cparams,
    )(x_flat, w1_b)
    s1, t1 = _scale_shift(st1, g1, be1, N, 1)

    # ---- K2: BN1+ReLU + 3-group deconv matmuls + parity assembly (row-tiled, haloed) ----
    ntiles2 = B * nTH
    y, st2 = pl.pallas_call(
        functools.partial(_k2_deconv, C=Cmid, W=W, nTH=nTH),
        out_shape=(jax.ShapeDtypeStruct((N, 4 * Cmid), jnp.bfloat16),
                   jax.ShapeDtypeStruct((ntiles2, 2, Cmid), jnp.float32)),
        grid=(ntiles2,),
        in_specs=[pl.BlockSpec((R, Cmid), lambda i: (i, 0)),
                  # halo: first image row of the next tile (clamped; masked in-kernel when invalid)
                  pl.BlockSpec((W, Cmid),
                               lambda i: (jnp.minimum((i + 1) * TH, B * H - 1), 0)),
                  pl.BlockSpec((R, 1), lambda i: (0, 0)),
                  pl.BlockSpec((1, Cmid), lambda i: (0, 0)),
                  pl.BlockSpec((1, Cmid), lambda i: (0, 0)),
                  pl.BlockSpec((Cmid, 3 * Cmid), lambda i: (0, 0)),
                  pl.BlockSpec((Cmid, 3 * Cmid), lambda i: (0, 0)),
                  pl.BlockSpec((Cmid, 3 * Cmid), lambda i: (0, 0))],
        out_specs=(pl.BlockSpec((R, 4 * Cmid), lambda i: (i, 0)),
                   pl.BlockSpec((1, 2, Cmid), lambda i: (i, 0, 0))),
        compiler_params=cparams,
    )(hp, hp, m_col, s1, t1, w_kh0, w_kh1, w_kh2)
    s2, t2 = _scale_shift(st2, g2, be2, 4 * N, 1)
    s2t, t2t = jnp.tile(s2, (1, 4)), jnp.tile(t2, (1, 4))    # broadcast to parity-packed lanes

    # ---- K3: BN2+ReLU + conv3 (block-diagonal, lane-dense) ----
    nt3 = N // TN3
    z, st3 = pl.pallas_call(
        _k3_conv3,
        out_shape=(jax.ShapeDtypeStruct((N, 4 * Cout), jnp.bfloat16),
                   jax.ShapeDtypeStruct((nt3, 2, 4 * Cout), jnp.float32)),
        grid=(nt3,),
        in_specs=[pl.BlockSpec((TN3, 4 * Cmid), lambda i: (i, 0)),
                  pl.BlockSpec((1, 4 * Cmid), lambda i: (0, 0)),
                  pl.BlockSpec((1, 4 * Cmid), lambda i: (0, 0)),
                  pl.BlockSpec((4 * Cmid, 4 * Cout), lambda i: (0, 0))],
        out_specs=(pl.BlockSpec((TN3, 4 * Cout), lambda i: (i, 0)),
                   pl.BlockSpec((1, 2, 4 * Cout), lambda i: (i, 0, 0))),
        compiler_params=cparams,
    )(y, s2t, t2t, w3_bd)
    s3, t3 = _scale_shift(st3, g3, be3, 4 * N, 4)
    s3t, t3t = jnp.tile(s3, (1, 4)), jnp.tile(t3, (1, 4))

    # ---- K4: BN3 + ReLU (lane-dense (N, 4*Cout) output slab) ----
    nt4 = N // TN4
    out_packed = pl.pallas_call(
        _k4_bn_relu,
        out_shape=jax.ShapeDtypeStruct((N, 4 * Cout), x_nchw.dtype),
        grid=(nt4,),
        in_specs=[pl.BlockSpec((TN4, 4 * Cout), lambda i: (i, 0)),
                  pl.BlockSpec((1, 4 * Cout), lambda i: (0, 0)),
                  pl.BlockSpec((1, 4 * Cout), lambda i: (0, 0))],
        out_specs=pl.BlockSpec((TN4, 4 * Cout), lambda i: (i, 0)),
        compiler_params=cparams,
    )(z, s3t, t3t)

    # Layout glue: parity interleave + NCHW in a SINGLE transpose pass.
    # TODO(synk): fuse this (and the input NCHW flatten) into K4/K1 via in-kernel relayout.
    out = out_packed.reshape(B, H, W, 2, 2, Cout)
    out = jnp.transpose(out, (0, 5, 1, 3, 2, 4)).reshape(B, Cout, 2 * H, 2 * W)
    return out


def init_params(key, in_channels, n_filters):
    cmid = in_channels // 4
    ks = jax.random.split(key, 12)

    def rn(k, shape, scale=0.1):
        return (scale * jax.random.normal(k, shape)).astype(jnp.float32)

    w1 = rn(ks[0], (in_channels, cmid))          # conv1 weight (Cin x Cout)
    b1 = rn(ks[1], (1, cmid))
    g1 = 1.0 + rn(ks[2], (1, cmid))
    be1 = rn(ks[3], (1, cmid))
    wt = rn(ks[4], (cmid, cmid, 3, 3))           # PyTorch ConvTranspose2d layout
    b2 = rn(ks[5], (1, cmid))
    g2 = 1.0 + rn(ks[6], (1, cmid))
    be2 = rn(ks[7], (1, cmid))
    w3 = rn(ks[8], (cmid, n_filters))            # conv3 weight (Cin x Cout)
    b3 = rn(ks[9], (1, n_filters))
    g3 = 1.0 + rn(ks[10], (1, n_filters))
    be3 = rn(ks[11], (1, n_filters))
    return (w1, b1, g1, be1, wt, b2, g2, be2, w3, b3, g3, be3)


def reference(x_nchw, params):
    # Pure-JAX (f32) reference mirroring the PyTorch forward (training-mode BN).
    w1, b1, g1, be1, wt, b2, g2, be2, w3, b3, g3, be3 = params

    def bn_relu(t, gamma, beta):
        mean = jnp.mean(t, axis=(0, 2, 3), keepdims=True)
        var = jnp.mean((t - mean) ** 2, axis=(0, 2, 3), keepdims=True)
        y = ((t - mean) * lax.rsqrt(var + EPS) * gamma.reshape(1, -1, 1, 1)
             + beta.reshape(1, -1, 1, 1))
        return jnp.maximum(y, 0.0)

    h = jnp.einsum('bchw,cd->bdhw', x_nchw, w1) + b1.reshape(1, -1, 1, 1)
    h = bn_relu(h, g1, be1)
    wt_conv = jnp.transpose(wt, (1, 0, 2, 3))[:, :, ::-1, ::-1]   # (Cout,Cin,kh,kw)
    d = lax.conv_general_dilated(
        h, wt_conv, window_strides=(1, 1), padding=((1, 2), (1, 2)),
        lhs_dilation=(2, 2), dimension_numbers=('NCHW', 'OIHW', 'NCHW'))
    d = d + b2.reshape(1, -1, 1, 1)
    d = bn_relu(d, g2, be2)
    z = jnp.einsum('bchw,cd->bdhw', d, w3) + b3.reshape(1, -1, 1, 1)
    z = bn_relu(z, g3, be3)
    return z


if __name__ == "__main__":
    key = jax.random.PRNGKey(0)
    kx, kp = jax.random.split(key)
    in_channels, n_filters = 16, 8
    B, H, W = 4, 16, 16

    x = jax.random.normal(kx, (B, in_channels, H, W), jnp.float32)
    params = init_params(kp, in_channels, n_filters)

    out = jax.jit(decoder_block)(x, params)
    out = jax.block_until_ready(out)

    assert out.shape == (B, n_filters, 2 * H, 2 * W), out.shape
    ref = reference(x, params)
    # bf16 MXU operands AND bf16 inter-stage storage across three cascaded batch-stat BNs
    # re-amplify rounding noise (typical |err| ~1e-2 after the final normalization).
    if not jnp.allclose(out, ref, atol=1e-1, rtol=1e-1):
        raise AssertionError(
            f"mismatch vs reference, max abs err = {jnp.max(jnp.abs(out - ref))}")
    print("KERNEL_OK")
</pallas_src>

<mosaic_0001>
module attributes {stable_mosaic.version = 11 : i64} {
  func.func @_k1_conv1(%arg0: i32, %arg1: memref<1024x16xbf16, #tpu.memory_space<vmem>>, %arg2: memref<16x4xbf16, #tpu.memory_space<vmem>>, %arg3: memref<1024x4xbf16, #tpu.memory_space<vmem>>, %arg4: memref<1x2x4xf32, #tpu.memory_space<vmem>>) attributes {dimension_semantics = [#tpu.dimension_semantics<parallel>], iteration_bounds = array<i64: 1>, scalar_prefetch = 0 : i64, scratch_operands = 0 : i64, tpu.core_type = #tpu.core_type<tc>, window_params = [{transform_indices = @transform_0, window_bounds = array<i64: 1024, 16>}, {pipeline_mode = #tpu.pipeline_mode<synchronous>, transform_indices = @transform_1, window_bounds = array<i64: 16, 4>}, {transform_indices = @transform_2, window_bounds = array<i64: 1024, 4>}, {transform_indices = @transform_3, window_bounds = array<i64: 1, 2, 4>}]} {
    %c0 = arith.constant 0 : index
    %c0_0 = arith.constant 0 : index
    %0 = vector.load %arg1[%c0, %c0_0] : memref<1024x16xbf16, #tpu.memory_space<vmem>>, vector<1024x16xbf16>
    %c0_1 = arith.constant 0 : index
    %c0_2 = arith.constant 0 : index
    %1 = vector.load %arg2[%c0_1, %c0_2] : memref<16x4xbf16, #tpu.memory_space<vmem>>, vector<16x4xbf16>
    %cst = arith.constant dense<0.000000e+00> : vector<1024x4xf32>
    %2 = tpu.matmul %0, %1, %cst {dimension_numbers = #tpu.dot_dimension_numbers<[1], [0], [0], [1], [0, 0, 1, 1], [], []>} : vector<1024x16xbf16>, vector<16x4xbf16>, vector<1024x4xf32> -> vector<1024x4xf32>
    %3 = arith.truncf %2 : vector<1024x4xf32> to vector<1024x4xbf16>
    %c0_3 = arith.constant 0 : index
    %c0_4 = arith.constant 0 : index
    %4 = vector.load %arg3[%c0_3, %c0_4] : memref<1024x4xbf16, #tpu.memory_space<vmem>>, vector<1024x4xbf16>
    tpu.vector_store %arg3[%c0_3, %c0_4], %3 {strides = array<i32>} : memref<1024x4xbf16, #tpu.memory_space<vmem>>, vector<1024x4xbf16>,
    %cst_5 = arith.constant dense<0.000000e+00> : vector<4xf32>
    %5 = vector.multi_reduction <add>, %2, %cst_5 [0] : vector<1024x4xf32> to vector<4xf32>
    %6 = vector.shape_cast %5 : vector<4xf32> to vector<1x4xf32>
    %7 = arith.mulf %2, %2 : vector<1024x4xf32>
    %cst_6 = arith.constant dense<0.000000e+00> : vector<4xf32>
    %8 = vector.multi_reduction <add>, %7, %cst_6 [0] : vector<1024x4xf32> to vector<4xf32>
    %9 = vector.shape_cast %8 : vector<4xf32> to vector<1x4xf32>
    %10 = tpu.concatenate %6, %9 in 0 : vector<1x4xf32>, vector<1x4xf32> -> vector<2x4xf32>
    %11 = vector.shape_cast %10 : vector<2x4xf32> to vector<1x2x4xf32>
    %c0_7 = arith.constant 0 : index
    %c0_8 = arith.constant 0 : index
    %c0_9 = arith.constant 0 : index
    %12 = vector.load %arg4[%c0_7, %c0_8, %c0_9] : memref<1x2x4xf32, #tpu.memory_space<vmem>>, vector<1x2x4xf32>
    tpu.vector_store %arg4[%c0_7, %c0_8, %c0_9], %11 {strides = array<i32>} : memref<1x2x4xf32, #tpu.memory_space<vmem>>, vector<1x2x4xf32>,
    return
  }
  func.func @transform_0(%arg0: i32) -> (i32, i32) {
    %c0_i32 = arith.constant 0 : i32
    %c0_i32_0 = arith.constant 0 : i32
    return %arg0, %c0_i32 : i32, i32
  }
  func.func @transform_1(%arg0: i32) -> (i32, i32) {
    %c0_i32 = arith.constant 0 : i32
    %c0_i32_0 = arith.constant 0 : i32
    %c0_i32_1 = arith.constant 0 : i32
    return %c0_i32, %c0_i32_0 : i32, i32
  }
  func.func @transform_2(%arg0: i32) -> (i32, i32) {
    %c0_i32 = arith.constant 0 : i32
    %c0_i32_0 = arith.constant 0 : i32
    return %arg0, %c0_i32 : i32, i32
  }
  func.func @transform_3(%arg0: i32) -> (i32, i32, i32) {
    %c0_i32 = arith.constant 0 : i32
    %c0_i32_0 = arith.constant 0 : i32
    %c0_i32_1 = arith.constant 0 : i32
    return %arg0, %c0_i32, %c0_i32_0 : i32, i32, i32
  }
}

module attributes {stable_mosaic.version = 11 : i64} {
  func.func @_k2_deconv(%arg0: i32, %arg1: memref<256x4xbf16, #tpu.memory_space<vmem>>, %arg2: memref<16x4xbf16, #tpu.memory_space<vmem>>, %arg3: memref<256x1xf32, #tpu.memory_space<vmem>>, %arg4: memref<1x4xf32, #tpu.memory_space<vmem>>, %arg5: memref<1x4xf32, #tpu.memory_space<vmem>>, %arg6: memref<4x12xbf16, #tpu.memory_space<vmem>>, %arg7: memref<4x12xbf16, #tpu.memory_space<vmem>>, %arg8: memref<4x12xbf16, #tpu.memory_space<vmem>>, %arg9: memref<256x16xbf16, #tpu.memory_space<vmem>>, %arg10: memref<1x2x4xf32, #tpu.memory_space<vmem>>) attributes {dimension_semantics = [#tpu.dimension_semantics<parallel>], iteration_bounds = array<i64: 4>, scalar_prefetch = 0 : i64, scratch_operands = 0 : i64, tpu.core_type = #tpu.core_type<tc>, window_params = [{transform_indices = @transform_0, window_bounds = array<i64: 256, 4>}, {transform_indices = @transform_1, window_bounds = array<i64: 16, 4>}, {pipeline_mode = #tpu.pipeline_mode<synchronous>, transform_indices = @transform_2, window_bounds = array<i64: 256, 1>}, {pipeline_mode = #tpu.pipeline_mode<synchronous>, transform_indices = @transform_3, window_bounds = array<i64: 1, 4>}, {pipeline_mode = #tpu.pipeline_mode<synchronous>, transform_indices = @transform_4, window_bounds = array<i64: 1, 4>}, {pipeline_mode = #tpu.pipeline_mode<synchronous>, transform_indices = @transform_5, window_bounds = array<i64: 4, 12>}, {pipeline_mode = #tpu.pipeline_mode<synchronous>, transform_indices = @transform_6, window_bounds = array<i64: 4, 12>}, {pipeline_mode = #tpu.pipeline_mode<synchronous>, transform_indices = @transform_7, window_bounds = array<i64: 4, 12>}, {transform_indices = @transform_8, window_bounds = array<i64: 256, 16>}, {transform_indices = @transform_9, window_bounds = array<i64: 1, 2, 4>}]} {
    %c0 = arith.constant 0 : index
    %c0_0 = arith.constant 0 : index
    %0 = vector.load %arg4[%c0, %c0_0] : memref<1x4xf32, #tpu.memory_space<vmem>>, vector<1x4xf32>
    %c0_1 = arith.constant 0 : index
    %c0_2 = arith.constant 0 : index
    %1 = vector.load %arg5[%c0_1, %c0_2] : memref<1x4xf32, #tpu.memory_space<vmem>>, vector<1x4xf32>
    %c0_3 = arith.constant 0 : index
    %c0_4 = arith.constant 0 : index
    %2 = vector.load %arg1[%c0_3, %c0_4] : memref<256x4xbf16, #tpu.memory_space<vmem>>, vector<256x4xbf16>
    %3 = arith.extf %2 : vector<256x4xbf16> to vector<256x4xf32>
    %4 = vector.broadcast %0 : vector<1x4xf32> to vector<256x4xf32>
    %5 = arith.mulf %3, %4 : vector<256x4xf32>
    %6 = vector.broadcast %1 : vector<1x4xf32> to vector<256x4xf32>
    %7 = arith.addf %5, %6 : vector<256x4xf32>
    %cst = arith.constant 0.000000e+00 : f32
    %8 = vector.broadcast %cst : f32 to vector<256x4xf32>
    %9 = arith.maximumf %7, %8 : vector<256x4xf32>
    %c0_5 = arith.constant 0 : index
    %c0_6 = arith.constant 0 : index
    %10 = vector.load %arg2[%c0_5, %c0_6] : memref<16x4xbf16, #tpu.memory_space<vmem>>, vector<16x4xbf16>
    %11 = arith.extf %10 : vector<16x4xbf16> to vector<16x4xf32>
    %12 = vector.broadcast %0 : vector<1x4xf32> to vector<16x4xf32>
    %13 = arith.mulf %11, %12 : vector<16x4xf32>
    %14 = vector.broadcast %1 : vector<1x4xf32> to vector<16x4xf32>
    %15 = arith.addf %13, %14 : vector<16x4xf32>
    %cst_7 = arith.constant 0.000000e+00 : f32
    %16 = vector.broadcast %cst_7 : f32 to vector<16x4xf32>
    %17 = arith.maximumf %15, %16 : vector<16x4xf32>
    %c1_i32 = arith.constant 1 : i32
    %18 = arith.addi %arg0, %c1_i32 : i32
    %c1_i32_8 = arith.constant 1 : i32
    %c0_i32 = arith.constant 0 : i32
    %19 = arith.cmpi eq, %c1_i32_8, %c0_i32 : i32
    %c1_i32_9 = arith.constant 1 : i32
    %20 = arith.select %19, %c1_i32_9, %c1_i32_8 : i32
    %21 = arith.remsi %18, %20 : i32
    %c0_i32_10 = arith.constant 0 : i32
    %22 = arith.cmpi ne, %21, %c0_i32_10 : i32
    %c0_i32_11 = arith.constant 0 : i32
    %23 = arith.cmpi slt, %21, %c0_i32_11 : i32
    %c0_i32_12 = arith.constant 0 : i32
    %24 = arith.cmpi slt, %20, %c0_i32_12 : i32
    %25 = arith.xori %23, %24 : i1
    %26 = arith.andi %25, %22 : i1
    %27 = arith.addi %21, %20 : i32
    %28 = arith.select %26, %27, %21 : i32
    %c0_i32_13 = arith.constant 0 : i32
    %29 = arith.cmpi eq, %28, %c0_i32_13 : i32
    %cst_14 = arith.constant 0.000000e+00 : f32
    %cst_15 = arith.constant 1.000000e+00 : f32
    %30 = arith.select %29, %cst_14, %cst_15 : f32
    %31 = vector.broadcast %30 : f32 to vector<16x4xf32>
    %32 = arith.mulf %17, %31 : vector<16x4xf32>
    %33 = arith.truncf %9 : vector<256x4xf32> to vector<256x4xbf16>
    %34 = vector.extract_strided_slice %33 {offsets = [16, 0], sizes = [240, 4], strides = [1, 1]} : vector<256x4xbf16> to vector<240x4xbf16>
    %35 = arith.truncf %32 : vector<16x4xf32> to vector<16x4xbf16>
    %36 = tpu.concatenate %34, %35 in 0 : vector<240x4xbf16>, vector<16x4xbf16> -> vector<256x4xbf16>
    %c0_16 = arith.constant 0 : index
    %c0_17 = arith.constant 0 : index
    %37 = vector.load %arg7[%c0_16, %c0_17] : memref<4x12xbf16, #tpu.memory_space<vmem>>, vector<4x12xbf16>
    %cst_18 = arith.constant dense<0.000000e+00> : vector<256x12xf32>
    %38 = tpu.matmul %33, %37, %cst_18 {dimension_numbers = #tpu.dot_dimension_numbers<[1], [0], [0], [1], [0, 0, 1, 1], [], []>} : vector<256x4xbf16>, vector<4x12xbf16>, vector<256x12xf32> -> vector<256x12xf32>
    %c0_19 = arith.constant 0 : index
    %c0_20 = arith.constant 0 : index
    %39 = vector.load %arg8[%c0_19, %c0_20] : memref<4x12xbf16, #tpu.memory_space<vmem>>, vector<4x12xbf16>
    %cst_21 = arith.constant dense<0.000000e+00> : vector<256x12xf32>
    %40 = tpu.matmul %33, %39, %cst_21 {dimension_numbers = #tpu.dot_dimension_numbers<[1], [0], [0], [1], [0, 0, 1, 1], [], []>} : vector<256x4xbf16>, vector<4x12xbf16>, vector<256x12xf32> -> vector<256x12xf32>
    %c0_22 = arith.constant 0 : index
    %c0_23 = arith.constant 0 : index
    %41 = vector.load %arg6[%c0_22, %c0_23] : memref<4x12xbf16, #tpu.memory_space<vmem>>, vector<4x12xbf16>
    %cst_24 = arith.constant dense<0.000000e+00> : vector<256x12xf32>
    %42 = tpu.matmul %36, %41, %cst_24 {dimension_numbers = #tpu.dot_dimension_numbers<[1], [0], [0], [1], [0, 0, 1, 1], [], []>} : vector<256x4xbf16>, vector<4x12xbf16>, vector<256x12xf32> -> vector<256x12xf32>
    %43 = arith.addf %42, %40 : vector<256x12xf32>
    %c0_25 = arith.constant 0 : index
    %c0_26 = arith.constant 0 : index
    %44 = vector.load %arg3[%c0_25, %c0_26] : memref<256x1xf32, #tpu.memory_space<vmem>>, vector<256x1xf32>
    %45 = vector.extract_strided_slice %38 {offsets = [0, 0], sizes = [256, 4], strides = [1, 1]} : vector<256x12xf32> to vector<256x4xf32>
    %c255_i32 = arith.constant 255 : i32
    %46 = tpu.dynamic_rotate %45 by %c255_i32 dim 0 : vector<256x4xf32>, i32 -> vector<256x4xf32>
    %47 = vector.broadcast %44 : vector<256x1xf32> to vector<256x4xf32>
    %48 = arith.mulf %46, %47 : vector<256x4xf32>
    %49 = vector.extract_strided_slice %38 {offsets = [0, 4], sizes = [256, 4], strides = [1, 1]} : vector<256x12xf32> to vector<256x4xf32>
    %50 = vector.extract_strided_slice %38 {offsets = [0, 8], sizes = [256, 4], strides = [1, 1]} : vector<256x12xf32> to vector<256x4xf32>
    %51 = arith.addf %48, %50 : vector<256x4xf32>
    %52 = vector.extract_strided_slice %43 {offsets = [0, 0], sizes = [256, 4], strides = [1, 1]} : vector<256x12xf32> to vector<256x4xf32>
    %c255_i32_27 = arith.constant 255 : i32
    %53 = tpu.dynamic_rotate %52 by %c255_i32_27 dim 0 : vector<256x4xf32>, i32 -> vector<256x4xf32>
    %54 = vector.broadcast %44 : vector<256x1xf32> to vector<256x4xf32>
    %55 = arith.mulf %53, %54 : vector<256x4xf32>
    %56 = vector.extract_strided_slice %43 {offsets = [0, 4], sizes = [256, 4], strides = [1, 1]} : vector<256x12xf32> to vector<256x4xf32>
    %57 = vector.extract_strided_slice %43 {offsets = [0, 8], sizes = [256, 4], strides = [1, 1]} : vector<256x12xf32> to vector<256x4xf32>
    %58 = arith.addf %55, %57 : vector<256x4xf32>
    %59 = arith.truncf %49 : vector<256x4xf32> to vector<256x4xbf16>
    %c0_28 = arith.constant 0 : index
    %c0_29 = arith.constant 0 : index
    %60 = vector.load %arg9[%c0_28, %c0_29] : memref<256x16xbf16, #tpu.memory_space<vmem>>, vector<256x4xbf16>
    tpu.vector_store %arg9[%c0_28, %c0_29], %59 {strides = array<i32>} : memref<256x16xbf16, #tpu.memory_space<vmem>>, vector<256x4xbf16>,
    %61 = arith.truncf %51 : vector<256x4xf32> to vector<256x4xbf16>
    %c0_30 = arith.constant 0 : index
    %c4 = arith.constant 4 : index
    %62 = vector.load %arg9[%c0_30, %c4] : memref<256x16xbf16, #tpu.memory_space<vmem>>, vector<256x4xbf16>
    tpu.vector_store %arg9[%c0_30, %c4], %61 {strides = array<i32>} : memref<256x16xbf16, #tpu.memory_space<vmem>>, vector<256x4xbf16>,
    %63 = arith.truncf %56 : vector<256x4xf32> to vector<256x4xbf16>
    %c0_31 = arith.constant 0 : index
    %c8 = arith.constant 8 : index
    %64 = vector.load %arg9[%c0_31, %c8] : memref<256x16xbf16, #tpu.memory_space<vmem>>, vector<256x4xbf16>
    tpu.vector_store %arg9[%c0_31, %c8], %63 {strides = array<i32>} : memref<256x16xbf16, #tpu.memory_space<vmem>>, vector<256x4xbf16>,
    %65 = arith.truncf %58 : vector<256x4xf32> to vector<256x4xbf16>
    %c0_32 = arith.constant 0 : index
    %c12 = arith.constant 12 : index
    %66 = vector.load %arg9[%c0_32, %c12] : memref<256x16xbf16, #tpu.memory_space<vmem>>, vector<256x4xbf16>
    tpu.vector_store %arg9[%c0_32, %c12], %65 {strides = array<i32>} : memref<256x16xbf16, #tpu.memory_space<vmem>>, vector<256x4xbf16>,
    %67 = arith.addf %49, %51 : vector<256x4xf32>
    %68 = arith.addf %67, %56 : vector<256x4xf32>
    %69 = arith.addf %68, %58 : vector<256x4xf32>
    %cst_33 = arith.constant dense<0.000000e+00> : vector<4xf32>
    %70 = vector.multi_reduction <add>, %69, %cst_33 [0] : vector<256x4xf32> to vector<4xf32>
    %71 = vector.shape_cast %70 : vector<4xf32> to vector<1x4xf32>
    %72 = arith.mulf %49, %49 : vector<256x4xf32>
    %73 = arith.mulf %51, %51 : vector<256x4xf32>
    %74 = arith.addf %72, %73 : vector<256x4xf32>
    %75 = arith.mulf %56, %56 : vector<256x4xf32>
    %76 = arith.addf %74, %75 : vector<256x4xf32>
    %77 = arith.mulf %58, %58 : vector<256x4xf32>
    %78 = arith.addf %76, %77 : vector<256x4xf32>
    %cst_34 = arith.constant dense<0.000000e+00> : vector<4xf32>
    %79 = vector.multi_reduction <add>, %78, %cst_34 [0] : vector<256x4xf32> to vector<4xf32>
    %80 = vector.shape_cast %79 : vector<4xf32> to vector<1x4xf32>
    %81 = tpu.concatenate %71, %80 in 0 : vector<1x4xf32>, vector<1x4xf32> -> vector<2x4xf32>
    %82 = vector.shape_cast %81 : vector<2x4xf32> to vector<1x2x4xf32>
    %c0_35 = arith.constant 0 : index
    %c0_36 = arith.constant 0 : index
    %c0_37 = arith.constant 0 : index
    %83 = vector.load %arg10[%c0_35, %c0_36, %c0_37] : memref<1x2x4xf32, #tpu.memory_space<vmem>>, vector<1x2x4xf32>
    tpu.vector_store %arg10[%c0_35, %c0_36, %c0_37], %82 {strides = array<i32>} : memref<1x2x4xf32, #tpu.memory_space<vmem>>, vector<1x2x4xf32>,
    return
  }
  func.func @transform_0(%arg0: i32) -> (i32, i32) {
    %c0_i32 = arith.constant 0 : i32
    %c0_i32_0 = arith.constant 0 : i32
    return %arg0, %c0_i32 : i32, i32
  }
  func.func @transform_1(%arg0: i32) -> (i32, i32) {
    %c1_i32 = arith.constant 1 : i32
    %0 = arith.addi %arg0, %c1_i32 : i32
    %c16_i32 = arith.constant 16 : i32
    %1 = arith.muli %0, %c16_i32 : i32
    %c63_i32 = arith.constant 63 : i32
    %2 = arith.minsi %1, %c63_i32 : i32
    %c0_i32 = arith.constant 0 : i32
    %c0_i32_0 = arith.constant 0 : i32
    return %2, %c0_i32 : i32, i32
  }
  func.func @transform_2(%arg0: i32) -> (i32, i32) {
    %c0_i32 = arith.constant 0 : i32
    %c0_i32_0 = arith.constant 0 : i32
    %c0_i32_1 = arith.constant 0 : i32
    return %c0_i32, %c0_i32_0 : i32, i32
  }
  func.func @transform_3(%arg0: i32) -> (i32, i32) {
    %c0_i32 = arith.constant 0 : i32
    %c0_i32_0 = arith.constant 0 : i32
    %c0_i32_1 = arith.constant 0 : i32
    return %c0_i32, %c0_i32_0 : i32, i32
  }
  func.func @transform_4(%arg0: i32) -> (i32, i32) {
    %c0_i32 = arith.constant 0 : i32
    %c0_i32_0 = arith.constant 0 : i32
    %c0_i32_1 = arith.constant 0 : i32
    return %c0_i32, %c0_i32_0 : i32, i32
  }
  func.func @transform_5(%arg0: i32) -> (i32, i32) {
    %c0_i32 = arith.constant 0 : i32
    %c0_i32_0 = arith.constant 0 : i32
    %c0_i32_1 = arith.constant 0 : i32
    return %c0_i32, %c0_i32_0 : i32, i32
  }
  func.func @transform_6(%arg0: i32) -> (i32, i32) {
    %c0_i32 = arith.constant 0 : i32
    %c0_i32_0 = arith.constant 0 : i32
    %c0_i32_1 = arith.constant 0 : i32
    return %c0_i32, %c0_i32_0 : i32, i32
  }
  func.func @transform_7(%arg0: i32) -> (i32, i32) {
    %c0_i32 = arith.constant 0 : i32
    %c0_i32_0 = arith.constant 0 : i32
    %c0_i32_1 = arith.constant 0 : i32
    return %c0_i32, %c0_i32_0 : i32, i32
  }
  func.func @transform_8(%arg0: i32) -> (i32, i32) {
    %c0_i32 = arith.constant 0 : i32
    %c0_i32_0 = arith.constant 0 : i32
    return %arg0, %c0_i32 : i32, i32
  }
  func.func @transform_9(%arg0: i32) -> (i32, i32, i32) {
    %c0_i32 = arith.constant 0 : i32
    %c0_i32_0 = arith.constant 0 : i32
    %c0_i32_1 = arith.constant 0 : i32
    return %arg0, %c0_i32, %c0_i32_0 : i32, i32, i32
  }
}

module attributes {stable_mosaic.version = 11 : i64} {
  func.func @_k3_conv3(%arg0: i32, %arg1: memref<1024x16xbf16, #tpu.memory_space<vmem>>, %arg2: memref<1x16xf32, #tpu.memory_space<vmem>>, %arg3: memref<1x16xf32, #tpu.memory_space<vmem>>, %arg4: memref<16x32xbf16, #tpu.memory_space<vmem>>, %arg5: memref<1024x32xbf16, #tpu.memory_space<vmem>>, %arg6: memref<1x2x32xf32, #tpu.memory_space<vmem>>) attributes {dimension_semantics = [#tpu.dimension_semantics<parallel>], iteration_bounds = array<i64: 1>, scalar_prefetch = 0 : i64, scratch_operands = 0 : i64, tpu.core_type = #tpu.core_type<tc>, window_params = [{transform_indices = @transform_0, window_bounds = array<i64: 1024, 16>}, {pipeline_mode = #tpu.pipeline_mode<synchronous>, transform_indices = @transform_1, window_bounds = array<i64: 1, 16>}, {pipeline_mode = #tpu.pipeline_mode<synchronous>, transform_indices = @transform_2, window_bounds = array<i64: 1, 16>}, {pipeline_mode = #tpu.pipeline_mode<synchronous>, transform_indices = @transform_3, window_bounds = array<i64: 16, 32>}, {transform_indices = @transform_4, window_bounds = array<i64: 1024, 32>}, {transform_indices = @transform_5, window_bounds = array<i64: 1, 2, 32>}]} {
    %c0 = arith.constant 0 : index
    %c0_0 = arith.constant 0 : index
    %0 = vector.load %arg1[%c0, %c0_0] : memref<1024x16xbf16, #tpu.memory_space<vmem>>, vector<1024x16xbf16>
    %1 = arith.extf %0 : vector<1024x16xbf16> to vector<1024x16xf32>
    %c0_1 = arith.constant 0 : index
    %c0_2 = arith.constant 0 : index
    %2 = vector.load %arg2[%c0_1, %c0_2] : memref<1x16xf32, #tpu.memory_space<vmem>>, vector<1x16xf32>
    %3 = vector.broadcast %2 : vector<1x16xf32> to vector<1024x16xf32>
    %4 = arith.mulf %1, %3 : vector<1024x16xf32>
    %c0_3 = arith.constant 0 : index
    %c0_4 = arith.constant 0 : index
    %5 = vector.load %arg3[%c0_3, %c0_4] : memref<1x16xf32, #tpu.memory_space<vmem>>, vector<1x16xf32>
    %6 = vector.broadcast %5 : vector<1x16xf32> to vector<1024x16xf32>
    %7 = arith.addf %4, %6 : vector<1024x16xf32>
    %cst = arith.constant 0.000000e+00 : f32
    %8 = vector.broadcast %cst : f32 to vector<1024x16xf32>
    %9 = arith.maximumf %7, %8 : vector<1024x16xf32>
    %10 = arith.truncf %9 : vector<1024x16xf32> to vector<1024x16xbf16>
    %c0_5 = arith.constant 0 : index
    %c0_6 = arith.constant 0 : index
    %11 = vector.load %arg4[%c0_5, %c0_6] : memref<16x32xbf16, #tpu.memory_space<vmem>>, vector<16x32xbf16>
    %cst_7 = arith.constant dense<0.000000e+00> : vector<1024x32xf32>
    %12 = tpu.matmul %10, %11, %cst_7 {dimension_numbers = #tpu.dot_dimension_numbers<[1], [0], [0], [1], [0, 0, 1, 1], [], []>} : vector<1024x16xbf16>, vector<16x32xbf16>, vector<1024x32xf32> -> vector<1024x32xf32>
    %13 = arith.truncf %12 : vector<1024x32xf32> to vector<1024x32xbf16>
    %c0_8 = arith.constant 0 : index
    %c0_9 = arith.constant 0 : index
    %14 = vector.load %arg5[%c0_8, %c0_9] : memref<1024x32xbf16, #tpu.memory_space<vmem>>, vector<1024x32xbf16>
    tpu.vector_store %arg5[%c0_8, %c0_9], %13 {strides = array<i32>} : memref<1024x32xbf16, #tpu.memory_space<vmem>>, vector<1024x32xbf16>,
    %cst_10 = arith.constant dense<0.000000e+00> : vector<32xf32>
    %15 = vector.multi_reduction <add>, %12, %cst_10 [0] : vector<1024x32xf32> to vector<32xf32>
    %16 = vector.shape_cast %15 : vector<32xf32> to vector<1x32xf32>
    %17 = arith.mulf %12, %12 : vector<1024x32xf32>
    %cst_11 = arith.constant dense<0.000000e+00> : vector<32xf32>
    %18 = vector.multi_reduction <add>, %17, %cst_11 [0] : vector<1024x32xf32> to vector<32xf32>
    %19 = vector.shape_cast %18 : vector<32xf32> to vector<1x32xf32>
    %20 = tpu.concatenate %16, %19 in 0 : vector<1x32xf32>, vector<1x32xf32> -> vector<2x32xf32>
    %21 = vector.shape_cast %20 : vector<2x32xf32> to vector<1x2x32xf32>
    %c0_12 = arith.constant 0 : index
    %c0_13 = arith.constant 0 : index
    %c0_14 = arith.constant 0 : index
    %22 = vector.load %arg6[%c0_12, %c0_13, %c0_14] : memref<1x2x32xf32, #tpu.memory_space<vmem>>, vector<1x2x32xf32>
    tpu.vector_store %arg6[%c0_12, %c0_13, %c0_14], %21 {strides = array<i32>} : memref<1x2x32xf32, #tpu.memory_space<vmem>>, vector<1x2x32xf32>,
    return
  }
  func.func @transform_0(%arg0: i32) -> (i32, i32) {
    %c0_i32 = arith.constant 0 : i32
    %c0_i32_0 = arith.constant 0 : i32
    return %arg0, %c0_i32 : i32, i32
  }
  func.func @transform_1(%arg0: i32) -> (i32, i32) {
    %c0_i32 = arith.constant 0 : i32
    %c0_i32_0 = arith.constant 0 : i32
    %c0_i32_1 = arith.constant 0 : i32
    return %c0_i32, %c0_i32_0 : i32, i32
  }
  func.func @transform_2(%arg0: i32) -> (i32, i32) {
    %c0_i32 = arith.constant 0 : i32
    %c0_i32_0 = arith.constant 0 : i32
    %c0_i32_1 = arith.constant 0 : i32
    return %c0_i32, %c0_i32_0 : i32, i32
  }
  func.func @transform_3(%arg0: i32) -> (i32, i32) {
    %c0_i32 = arith.constant 0 : i32
    %c0_i32_0 = arith.constant 0 : i32
    %c0_i32_1 = arith.constant 0 : i32
    return %c0_i32, %c0_i32_0 : i32, i32
  }
  func.func @transform_4(%arg0: i32) -> (i32, i32) {
    %c0_i32 = arith.constant 0 : i32
    %c0_i32_0 = arith.constant 0 : i32
    return %arg0, %c0_i32 : i32, i32
  }
  func.func @transform_5(%arg0: i32) -> (i32, i32, i32) {
    %c0_i32 = arith.constant 0 : i32
    %c0_i32_0 = arith.constant 0 : i32
    %c0_i32_1 = arith.constant 0 : i32
    return %arg0, %c0_i32, %c0_i32_0 : i32, i32, i32
  }
}

module attributes {stable_mosaic.version = 11 : i64} {
  func.func @_k4_bn_relu(%arg0: i32, %arg1: memref<1024x32xbf16, #tpu.memory_space<vmem>>, %arg2: memref<1x32xf32, #tpu.memory_space<vmem>>, %arg3: memref<1x32xf32, #tpu.memory_space<vmem>>, %arg4: memref<1024x32xf32, #tpu.memory_space<vmem>>) attributes {dimension_semantics = [#tpu.dimension_semantics<parallel>], iteration_bounds = array<i64: 1>, scalar_prefetch = 0 : i64, scratch_operands = 0 : i64, tpu.core_type = #tpu.core_type<tc>, window_params = [{transform_indices = @transform_0, window_bounds = array<i64: 1024, 32>}, {pipeline_mode = #tpu.pipeline_mode<synchronous>, transform_indices = @transform_1, window_bounds = array<i64: 1, 32>}, {pipeline_mode = #tpu.pipeline_mode<synchronous>, transform_indices = @transform_2, window_bounds = array<i64: 1, 32>}, {transform_indices = @transform_3, window_bounds = array<i64: 1024, 32>}]} {
    %c0 = arith.constant 0 : index
    %c0_0 = arith.constant 0 : index
    %0 = vector.load %arg1[%c0, %c0_0] : memref<1024x32xbf16, #tpu.memory_space<vmem>>, vector<1024x32xbf16>
    %1 = arith.extf %0 : vector<1024x32xbf16> to vector<1024x32xf32>
    %c0_1 = arith.constant 0 : index
    %c0_2 = arith.constant 0 : index
    %2 = vector.load %arg2[%c0_1, %c0_2] : memref<1x32xf32, #tpu.memory_space<vmem>>, vector<1x32xf32>
    %3 = vector.broadcast %2 : vector<1x32xf32> to vector<1024x32xf32>
    %4 = arith.mulf %1, %3 : vector<1024x32xf32>
    %c0_3 = arith.constant 0 : index
    %c0_4 = arith.constant 0 : index
    %5 = vector.load %arg3[%c0_3, %c0_4] : memref<1x32xf32, #tpu.memory_space<vmem>>, vector<1x32xf32>
    %6 = vector.broadcast %5 : vector<1x32xf32> to vector<1024x32xf32>
    %7 = arith.addf %4, %6 : vector<1024x32xf32>
    %cst = arith.constant 0.000000e+00 : f32
    %8 = vector.broadcast %cst : f32 to vector<1024x32xf32>
    %9 = arith.maximumf %7, %8 : vector<1024x32xf32>
    %c0_5 = arith.constant 0 : index
    %c0_6 = arith.constant 0 : index
    %10 = vector.load %arg4[%c0_5, %c0_6] : memref<1024x32xf32, #tpu.memory_space<vmem>>, vector<1024x32xf32>
    tpu.vector_store %arg4[%c0_5, %c0_6], %9 {strides = array<i32>} : memref<1024x32xf32, #tpu.memory_space<vmem>>, vector<1024x32xf32>,
    return
  }
  func.func @transform_0(%arg0: i32) -> (i32, i32) {
    %c0_i32 = arith.constant 0 : i32
    %c0_i32_0 = arith.constant 0 : i32
    return %arg0, %c0_i32 : i32, i32
  }
  func.func @transform_1(%arg0: i32) -> (i32, i32) {
    %c0_i32 = arith.constant 0 : i32
    %c0_i32_0 = arith.constant 0 : i32
    %c0_i32_1 = arith.constant 0 : i32
    return %c0_i32, %c0_i32_0 : i32, i32
  }
  func.func @transform_2(%arg0: i32) -> (i32, i32) {
    %c0_i32 = arith.constant 0 : i32
    %c0_i32_0 = arith.constant 0 : i32
    %c0_i32_1 = arith.constant 0 : i32
    return %c0_i32, %c0_i32_0 : i32, i32
  }
  func.func @transform_3(%arg0: i32) -> (i32, i32) {
    %c0_i32 = arith.constant 0 : i32
    %c0_i32_0 = arith.constant 0 : i32
    return %arg0, %c0_i32 : i32, i32
  }
}

</mosaic_0001>

<bundles_post_ra>
// kernel: decoder_block.4
= control target key start
LH: loop header
LB: loop body
LE: loop exit
PB: predicated region body
PF: predicated region fallthrough
CT: control target
= control target key end

     0   :  { %vm470_vm0 = vcmask 130048   ;;  %vm1720_vm1 = vcmask 27648   ;;  %vm1849_vm2 = vcmask 31744   ;;  %vm2500_vm3 = vcmask 1040384   ;;  %s4657_s1 = inlined_call_operand.vmem [shape: bf16[16,4], index: 1, kind: input, shape index: {}]   ;;  %s4658_s0 = inlined_call_operand.vmem [shape: bf16[1024,16], index: 0, kind: input, shape index: {}]   ;;  %s4659_s2 = inlined_call_operand.vmem [shape: bf16[1024,4], index: 2, kind: output, shape index: {0}]   ;;  %s4660_s3 = inlined_call_operand.vmem [shape: f32[1,2,4], index: 3, kind: output, shape index: {1}]  }
   0x1   :  { %v3094_v0 = vld [vmem:[%s4657_s1] sm:$0xff]   ;;  %v3096_v2 = vld [vmem:[%s4658_s0 + $0x8] sm:$0xff]   ;;  %v3097_v3 = vld [vmem:[%s4658_s0 + $0x10] sm:$0xff]   ;;  %vm2502_vm4 = vcmask 25600  }
   0x2   :  { %v3095_v1 = vld [vmem:[%s4658_s0] sm:$0xff]   ;;  %2962 = vmatprep.subr.bf16.mxu0 %v3094_v0  ;;  %3092 = vmatprep.subr.bf16.mxu1 %v3094_v0  ;;  %v3098_v4 = vld [vmem:[%s4658_s0 + $0x18] sm:$0xff]   ;;  %v3100_v6 = vld [vmem:[%s4658_s0 + $0x28] sm:$0xff]  }
   0x3   :  { %2963 = vmatpush3.bf16.msra.mxu0 %v3094_v0  ;;  %2964 = vmatprep.mubr.msk.bf16.mxu0 %vm470_vm0, %v3095_v1  ;;  %v3099_v5 = vld [vmem:[%s4658_s0 + $0x20] sm:$0xff]   ;;  %v3101_v7 = vld [vmem:[%s4658_s0 + $0x30] sm:$0xff]   ;;  %v3102_v8 = vld [vmem:[%s4658_s0 + $0x38] sm:$0xff]  }
   0x4   :  { %3093 = vmatpush3.bf16.msra.mxu1 %v3094_v0  ;;  %v3103_v9 = vld [vmem:[%s4658_s0 + $0x40] sm:$0xff]   ;;  %v3104_v10 = vld [vmem:[%s4658_s0 + $0x48] sm:$0xff]   ;;  %v3105_v11 = vld [vmem:[%s4658_s0 + $0x50] sm:$0xff]  }
   0x5   :  { %v3127_v12 = vld [vmem:[%s4658_s0 + $0x100] sm:$0xff]   ;;  %v3128_v13 = vld [vmem:[%s4658_s0 + $0x108] sm:$0xff]   ;;  %v3129_v14 = vld [vmem:[%s4658_s0 + $0x110] sm:$0xff]  }
   0x6   :  { %2965 = vmatmul.mubr.msk.bf16.vlgmr.msra.gmra.mrb[0].mxu0 %vm470_vm0, %v3096_v2  ;;  %3028 = vmatprep.mubr.msk.bf16.mxu1 %vm470_vm0, %v3127_v12  ;;  %v3130_v15 = vld [vmem:[%s4658_s0 + $0x118] sm:$0xff]   ;;  %v3131_v16 = vld [vmem:[%s4658_s0 + $0x120] sm:$0xff]   ;;  %v3132_v19 = vld [vmem:[%s4658_s0 + $0x128] sm:$0xff]  }
   0x7   :  { %2968 = vmatprep.mubr.msk.bf16.mxu0 %vm470_vm0, %v3097_v3  ;;  %3029 = vmatmul.mubr.msk.bf16.vlgmr.msra.gmra.mrb[0].mxu1 %vm470_vm0, %v3128_v13  ;;  %v3106_v17 = vld [vmem:[%s4658_s0 + $0x58] sm:$0xff]   ;;  %v3107_v18 = vld [vmem:[%s4658_s0 + $0x60] sm:$0xff]   ;;  %v3133_v20 = vld [vmem:[%s4658_s0 + $0x130] sm:$0xff]  }
   0x8   :  { %3032 = vmatprep.mubr.msk.bf16.mxu1 %vm470_vm0, %v3129_v14  ;;  %v3108_v21 = vld [vmem:[%s4658_s0 + $0x68] sm:$0xff]   ;;  %v3109_v22 = vld [vmem:[%s4658_s0 + $0x70] sm:$0xff]   ;;  %v3134_v23 = vld [vmem:[%s4658_s0 + $0x138] sm:$0xff]  }
   0x9   :  { %v3135_v24 = vld [vmem:[%s4658_s0 + $0x140] sm:$0xff]   ;;  %v3110_v25 = vld [vmem:[%s4658_s0 + $0x78] sm:$0xff]   ;;  %v3136_v27 = vld [vmem:[%s4658_s0 + $0x148] sm:$0xff]  }
   0xa   :  { %v3111_v26 = vld [vmem:[%s4658_s0 + $0x80] sm:$0xff]   ;;  %v3137_v28 = vld [vmem:[%s4658_s0 + $0x150] sm:$0xff]   ;;  %v3112_v29 = vld [vmem:[%s4658_s0 + $0x88] sm:$0xff]  }
   0xb   :  { %v3113_v30 = vld [vmem:[%s4658_s0 + $0x90] sm:$0xff]   ;;  %v3138_v31 = vld [vmem:[%s4658_s0 + $0x158] sm:$0xff]   ;;  %v3139_v32 = vld [vmem:[%s4658_s0 + $0x160] sm:$0xff]  }
   0xc   :  { %v3114_v33 = vld [vmem:[%s4658_s0 + $0x98] sm:$0xff]   ;;  %v3115_v34 = vld [vmem:[%s4658_s0 + $0xa0] sm:$0xff]   ;;  %v3140_v35 = vld [vmem:[%s4658_s0 + $0x168] sm:$0xff]  }
   0xd   :  { %v3141_v36 = vld [vmem:[%s4658_s0 + $0x170] sm:$0xff]   ;;  %v3116_v37 = vld [vmem:[%s4658_s0 + $0xa8] sm:$0xff]   ;;  %v3142_v39 = vld [vmem:[%s4658_s0 + $0x178] sm:$0xff]  }
   0xe   :  { %2969 = vmatmul.mubr.msk.bf16.gmra.mrb[4].mxu0 %vm470_vm0, %v3098_v4  ;;  %v3117_v38 = vld [vmem:[%s4658_s0 + $0xb0] sm:$0xff]   ;;  %v3143_v40 = vld [vmem:[%s4658_s0 + $0x180] sm:$0xff]   ;;  %v3118_v41 = vld [vmem:[%s4658_s0 + $0xb8] sm:$0xff]  }
   0xf   :  { %2972 = vmatprep.mubr.msk.bf16.mxu0 %vm470_vm0, %v3099_v5  ;;  %3033 = vmatmul.mubr.msk.bf16.gmra.mrb[4].mxu1 %vm470_vm0, %v3130_v15  ;;  %v3119_v42 = vld [vmem:[%s4658_s0 + $0xc0] sm:$0xff]   ;;  %v3144_v43 = vld [vmem:[%s4658_s0 + $0x188] sm:$0xff]   ;;  %v3145_v44 = vld [vmem:[%s4658_s0 + $0x190] sm:$0xff]  }
  0x10   :  { %3036 = vmatprep.mubr.msk.bf16.mxu1 %vm470_vm0, %v3131_v16  ;;  %v3120_v45 = vld [vmem:[%s4658_s0 + $0xc8] sm:$0xff]   ;;  %v3121_v46 = vld [vmem:[%s4658_s0 + $0xd0] sm:$0xff]   ;;  %v3146_v47 = vld [vmem:[%s4658_s0 + $0x198] sm:$0xff]  }
  0x11   :  { %v3147_v48 = vld [vmem:[%s4658_s0 + $0x1a0] sm:$0xff]   ;;  %v3122_v49 = vld [vmem:[%s4658_s0 + $0xd8] sm:$0xff]   ;;  %v3148_v51 = vld [vmem:[%s4658_s0 + $0x1a8] sm:$0xff]  }
  0x12   :  { %v3123_v50 = vld [vmem:[%s4658_s0 + $0xe0] sm:$0xff]   ;;  %v3149_v52 = vld [vmem:[%s4658_s0 + $0x1b0] sm:$0xff]   ;;  %v3124_v53 = vld [vmem:[%s4658_s0 + $0xe8] sm:$0xff]  }
  0x13   :  { %v3125_v54 = vld [vmem:[%s4658_s0 + $0xf0] sm:$0xff]   ;;  %v3150_v55 = vld [vmem:[%s4658_s0 + $0x1b8] sm:$0xff]   ;;  %v3151_v56 = vld [vmem:[%s4658_s0 + $0x1c0] sm:$0xff]  }
  0x14   :  { %v3126_v57 = vld [vmem:[%s4658_s0 + $0xf8] sm:$0xff]   ;;  %v3152_v58 = vld [vmem:[%s4658_s0 + $0x1c8] sm:$0xff]   ;;  %v3153_v59 = vld [vmem:[%s4658_s0 + $0x1d0] sm:$0xff]  }
  0x15   :  { %v3154_v60 = vld [vmem:[%s4658_s0 + $0x1d8] sm:$0xff]   ;;  %v3155_v61 = vld [vmem:[%s4658_s0 + $0x1e0] sm:$0xff]   ;;  %v3156_v62 = vld [vmem:[%s4658_s0 + $0x1e8] sm:$0xff]  }
  0x16   :  { %2973 = vmatmul.mubr.msk.bf16.gmra.mrb[8].mxu0 %vm470_vm0, %v3100_v6  ;;  %v3157_v63 = vld [vmem:[%s4658_s0 + $0x1f0] sm:$0xff]   ;;  %v3158_v0 = vld [vmem:[%s4658_s0 + $0x1f8] sm:$0xff]  }
  0x17   :  { %2976 = vmatprep.mubr.msk.bf16.mxu0 %vm470_vm0, %v3101_v7  ;;  %3037 = vmatmul.mubr.msk.bf16.gmra.mrb[8].mxu1 %vm470_vm0, %v3132_v19 }
  0x18   :  { %3040 = vmatprep.mubr.msk.bf16.mxu1 %vm470_vm0, %v3133_v20 }
  0x1e   :  { %2977 = vmatmul.mubr.msk.bf16.gmra.mrb[12].mxu0 %vm470_vm0, %v3102_v8 }
  0x1f   :  { %2980 = vmatprep.mubr.msk.bf16.mxu0 %vm470_vm0, %v3103_v9  ;;  %3041 = vmatmul.mubr.msk.bf16.gmra.mrb[12].mxu1 %vm470_vm0, %v3134_v23 }
  0x20   :  { %3044 = vmatprep.mubr.msk.bf16.mxu1 %vm470_vm0, %v3135_v24 }
  0x26   :  { %2981 = vmatmul.mubr.msk.bf16.gmra.mrb[16].mxu0 %vm470_vm0, %v3104_v10 }
  0x27   :  { %2984 = vmatprep.mubr.msk.bf16.mxu0 %vm470_vm0, %v3105_v11  ;;  %3045 = vmatmul.mubr.msk.bf16.gmra.mrb[16].mxu1 %vm470_vm0, %v3136_v27 }
  0x28   :  { %3048 = vmatprep.mubr.msk.bf16.mxu1 %vm470_vm0, %v3137_v28 }
  0x2e   :  { %2985 = vmatmul.mubr.msk.bf16.gmra.mrb[20].mxu0 %vm470_vm0, %v3106_v17 }
  0x2f   :  { %2988 = vmatprep.mubr.msk.bf16.mxu0 %vm470_vm0, %v3107_v18  ;;  %3049 = vmatmul.mubr.msk.bf16.gmra.mrb[20].mxu1 %vm470_vm0, %v3138_v31 }
  0x30   :  { %3052 = vmatprep.mubr.msk.bf16.mxu1 %vm470_vm0, %v3139_v32 }
  0x36   :  { %2989 = vmatmul.mubr.msk.bf16.gmra.mrb[24].mxu0 %vm470_vm0, %v3108_v21 }
  0x37   :  { %2992 = vmatprep.mubr.msk.bf16.mxu0 %vm470_vm0, %v3109_v22  ;;  %3053 = vmatmul.mubr.msk.bf16.gmra.mrb[24].mxu1 %vm470_vm0, %v3140_v35 }
  0x38   :  { %3056 = vmatprep.mubr.msk.bf16.mxu1 %vm470_vm0, %v3141_v36 }
  0x3e   :  { %2993 = vmatmul.mubr.msk.bf16.gmra.mrb[28].mxu0 %vm470_vm0, %v3110_v25 }
  0x3f   :  { %2996 = vmatprep.mubr.msk.bf16.mxu0 %vm470_vm0, %v3111_v26  ;;  %3057 = vmatmul.mubr.msk.bf16.gmra.mrb[28].mxu1 %vm470_vm0, %v3142_v39 }
  0x40   :  { %3060 = vmatprep.mubr.msk.bf16.mxu1 %vm470_vm0, %v3143_v40 }
  0x46   :  { %2997 = vmatmul.mubr.msk.bf16.gmra.mrb[32].mxu0 %vm470_vm0, %v3112_v29 }
  0x47   :  { %3000 = vmatprep.mubr.msk.bf16.mxu0 %vm470_vm0, %v3113_v30  ;;  %3061 = vmatmul.mubr.msk.bf16.gmra.mrb[32].mxu1 %vm470_vm0, %v3144_v43 }
  0x48   :  { %3064 = vmatprep.mubr.msk.bf16.mxu1 %vm470_vm0, %v3145_v44 }
  0x4e   :  { %3001 = vmatmul.mubr.msk.bf16.gmra.mrb[36].mxu0 %vm470_vm0, %v3114_v33 }
  0x4f   :  { %3004 = vmatprep.mubr.msk.bf16.mxu0 %vm470_vm0, %v3115_v34  ;;  %3065 = vmatmul.mubr.msk.bf16.gmra.mrb[36].mxu1 %vm470_vm0, %v3146_v47 }
  0x50   :  { %3068 = vmatprep.mubr.msk.bf16.mxu1 %vm470_vm0, %v3147_v48 }
  0x56   :  { %3005 = vmatmul.mubr.msk.bf16.gmra.mrb[40].mxu0 %vm470_vm0, %v3116_v37 }
  0x57   :  { %3008 = vmatprep.mubr.msk.bf16.mxu0 %vm470_vm0, %v3117_v38  ;;  %3069 = vmatmul.mubr.msk.bf16.gmra.mrb[40].mxu1 %vm470_vm0, %v3148_v51 }
  0x58   :  { %3072 = vmatprep.mubr.msk.bf16.mxu1 %vm470_vm0, %v3149_v52 }
  0x5e   :  { %3009 = vmatmul.mubr.msk.bf16.gmra.mrb[44].mxu0 %vm470_vm0, %v3118_v41 }
  0x5f   :  { %3012 = vmatprep.mubr.msk.bf16.mxu0 %vm470_vm0, %v3119_v42  ;;  %3073 = vmatmul.mubr.msk.bf16.gmra.mrb[44].mxu1 %vm470_vm0, %v3150_v55 }
  0x60   :  { %3076 = vmatprep.mubr.msk.bf16.mxu1 %vm470_vm0, %v3151_v56 }
  0x66   :  { %3013 = vmatmul.mubr.msk.bf16.gmra.mrb[48].mxu0 %vm470_vm0, %v3120_v45 }
  0x67   :  { %3016 = vmatprep.mubr.msk.bf16.mxu0 %vm470_vm0, %v3121_v46  ;;  %3077 = vmatmul.mubr.msk.bf16.gmra.mrb[48].mxu1 %vm470_vm0, %v3152_v58 }
  0x68   :  { %3080 = vmatprep.mubr.msk.bf16.mxu1 %vm470_vm0, %v3153_v59 }
  0x6e   :  { %3017 = vmatmul.mubr.msk.bf16.gmra.mrb[52].mxu0 %vm470_vm0, %v3122_v49 }
  0x6f   :  { %3020 = vmatprep.mubr.msk.bf16.mxu0 %vm470_vm0, %v3123_v50  ;;  %3081 = vmatmul.mubr.msk.bf16.gmra.mrb[52].mxu1 %vm470_vm0, %v3154_v60 }
  0x70   :  { %3084 = vmatprep.mubr.msk.bf16.mxu1 %vm470_vm0, %v3155_v61 }
  0x76   :  { %3021 = vmatmul.mubr.msk.bf16.gmra.mrb[56].mxu0 %vm470_vm0, %v3124_v53 }
  0x77   :  { %3024 = vmatprep.mubr.msk.bf16.mxu0 %vm470_vm0, %v3125_v54  ;;  %3085 = vmatmul.mubr.msk.bf16.gmra.mrb[56].mxu1 %vm470_vm0, %v3156_v62 }
  0x78   :  { %3088 = vmatprep.mubr.msk.bf16.mxu1 %vm470_vm0, %v3157_v63 }
  0x7e   :  { %3025 = vmatmul.mubr.msk.bf16.gmra.mrb[60].mxu0 %vm470_vm0, %v3126_v57 }
  0x7f   :  { %3089 = vmatmul.mubr.msk.bf16.gmra.mrb[60].mxu1 %vm470_vm0, %v3158_v0 }
  0xd9   :  { %v2966_v1 = vpop.f32.mrb[0].mxu0 }
  0xda   :  { %v2771_v2 = vpack.c.bf16 %v2966_v1, %v2966_v1  ;;  %v697_v3 = vpop.f32.mrb[1].mxu0  ;;  %v2113_v7 = vmul.f32 %v2966_v1, %v2966_v1  ;;  %v1853_v16 = vsel %vm1849_vm2, %v2966_v1, 0.0 }
  0xdb   :  { %v2769_v4 = vpack.c.bf16 %v697_v3, %v697_v3  ;;  %v2111_v5 = vmul.f32 %v697_v3, %v697_v3  ;;  %v2967_v6 = vpop.f32.mrb[2].mxu0  ;;  %v1850_v10 = vsel %vm1849_vm2, %v697_v3, 0.0 }
  0xdc   :  { %1723 = vst.msk [vmem:[%s4659_s2 + $0x8] sm:$0xf] %vm1720_vm1, %v2771_v2  ;;  %v2772_v8 = vpack.c.bf16 %v2967_v6, %v2967_v6  ;;  %v700_v9 = vpop.f32.mrb[3].mxu0  ;;  %v2114_v14 = vmul.f32 %v2967_v6, %v2967_v6  ;;  %v2242_v21 = vsel %vm1849_vm2, %v2113_v7, 0.0  ;;  %v1855_v23 = vsel %vm1849_vm2, %v2967_v6, 0.0 }
  0xdd   :  { %1721 = vst.msk [vmem:[%s4659_s2] sm:$0xf] %vm1720_vm1, %v2769_v4  ;;  %v2770_v11 = vpack.c.bf16 %v700_v9, %v700_v9  ;;  %v1851_v12 = vsel %vm1849_vm2, %v700_v9, 0.0  ;;  %v2112_v13 = vmul.f32 %v700_v9, %v700_v9  ;;  %v2239_v17 = vsel %vm1849_vm2, %v2111_v5, 0.0 }
  0xde   :  { %1724 = vst.msk [vmem:[%s4659_s2 + $0xc] sm:$0xf] %vm1720_vm1, %v2772_v8  ;;  %v1852_v15 = vadd.f32 %v1851_v12, %v1850_v10  ;;  %v2244_v24 = vsel %vm1849_vm2, %v2114_v14, 0.0 }
  0xdf   :  { %1722 = vst.msk [vmem:[%s4659_s2 + $0x4] sm:$0xf] %vm1720_vm1, %v2770_v11  ;;  %v2240_v18 = vsel %vm1849_vm2, %v2112_v13, 0.0 }
  0xe0   :  { %v1854_v19 = vadd.f32 %v1853_v16, %v1852_v15  ;;  %v2241_v20 = vadd.f32 %v2240_v18, %v2239_v17 }
  0xe1   :  { %v2970_v22 = vpop.f32.mrb[4].mxu0 }
  0xe2   :  { %v2243_v25 = vadd.f32 %v2242_v21, %v2241_v20  ;;  %v2775_v26 = vpack.c.bf16 %v2970_v22, %v2970_v22  ;;  %v713_v27 = vpop.f32.mrb[5].mxu0  ;;  %v1856_v29 = vadd.f32 %v1855_v23, %v1854_v19  ;;  %v2117_v39 = vmul.f32 %v2970_v22, %v2970_v22 }
  0xe3   :  { %v2773_v28 = vpack.c.bf16 %v713_v27, %v713_v27  ;;  %v1857_v30 = vsel %vm1849_vm2, %v713_v27, 0.0  ;;  %v2115_v31 = vmul.f32 %v713_v27, %v713_v27  ;;  %v2971_v32 = vpop.f32.mrb[6].mxu0  ;;  %v1861_v44 = vsel %vm1849_vm2, %v2970_v22, 0.0 }
  0xe4   :  { %1727 = vst.msk [vmem:[%s4659_s2 + $0x18] sm:$0xf] %vm1720_vm1, %v2775_v26  ;;  %v2245_v33 = vadd.f32 %v2244_v24, %v2243_v25  ;;  %v2776_v34 = vpack.c.bf16 %v2971_v32, %v2971_v32  ;;  %v716_v35 = vpop.f32.mrb[7].mxu0  ;;  %v1858_v36 = vadd.f32 %v1857_v30, %v1856_v29  ;;  %v2118_v45 = vmul.f32 %v2971_v32, %v2971_v32 }
  0xe5   :  { %1725 = vst.msk [vmem:[%s4659_s2 + $0x10] sm:$0xf] %vm1720_vm1, %v2773_v28  ;;  %v2246_v37 = vsel %vm1849_vm2, %v2115_v31, 0.0  ;;  %v2774_v38 = vpack.c.bf16 %v716_v35, %v716_v35  ;;  %v1859_v41 = vsel %vm1849_vm2, %v716_v35, 0.0  ;;  %v2116_v42 = vmul.f32 %v716_v35, %v716_v35 }
  0xe6   :  { %v2247_v40 = vadd.f32 %v2246_v37, %v2245_v33  ;;  %1728 = vst.msk [vmem:[%s4659_s2 + $0x1c] sm:$0xf] %vm1720_vm1, %v2776_v34  ;;  %v1860_v43 = vadd.f32 %v1859_v41, %v1858_v36  ;;  %v2250_v50 = vsel %vm1849_vm2, %v2117_v39, 0.0  ;;  %v1863_v51 = vsel %vm1849_vm2, %v2971_v32, 0.0  ;;  %v3529_v36 = vpop.f32.mrb[0].mxu1 }
  0xe7   :  { %1726 = vst.msk [vmem:[%s4659_s2 + $0x14] sm:$0xf] %vm1720_vm1, %v2774_v38  ;;  %v2248_v46 = vsel %vm1849_vm2, %v2116_v42, 0.0  ;;  %v2252_v59 = vsel %vm1849_vm2, %v2118_v45, 0.0  ;;  %v3535_v41 = vpop.f32.mrb[1].mxu1 }
  0xe8   :  { %v1862_v47 = vadd.f32 %v1861_v44, %v1860_v43  ;;  %v2249_v48 = vadd.f32 %v2248_v46, %v2247_v40  ;;  %v2835_v40 = vpack.c.bf16 %v3529_v36, %v3529_v36  ;;  %v2833_v45 = vpack.c.bf16 %v3535_v41, %v3535_v41  ;;  %v3539_v46 = vpop.f32.mrb[2].mxu1 }
  0xe9   :  { %v2974_v49 = vpop.f32.mrb[8].mxu0 }
  0xea   :  { %v2779_v52 = vpack.c.bf16 %v2974_v49, %v2974_v49  ;;  %v729_v53 = vpop.f32.mrb[9].mxu0  ;;  %v2251_v54 = vadd.f32 %v2250_v50, %v2249_v48  ;;  %v1864_v56 = vadd.f32 %v1863_v51, %v1862_v47  ;;  %v2121_v2 = vmul.f32 %v2974_v49, %v2974_v49  ;;  %1787 = vst.msk [vmem:[%s4659_s2 + $0x108] sm:$0xf] %vm1720_vm1, %v2835_v40  ;;  %v3547_v51 = vpop.f32.mrb[3].mxu1 }
  0xeb   :  { %v2777_v55 = vpack.c.bf16 %v729_v53, %v729_v53  ;;  %v1865_v57 = vsel %vm1849_vm2, %v729_v53, 0.0  ;;  %v2975_v58 = vpop.f32.mrb[10].mxu0  ;;  %v2119_v60 = vmul.f32 %v729_v53, %v729_v53  ;;  %v1869_v8 = vsel %vm1849_vm2, %v2974_v49, 0.0  ;;  %1785 = vst.msk [vmem:[%s4659_s2 + $0x100] sm:$0xf] %vm1720_vm1, %v2833_v45 }
  0xec   :  { %1731 = vst.msk [vmem:[%s4659_s2 + $0x28] sm:$0xf] %vm1720_vm1, %v2779_v52  ;;  %v2780_v61 = vpack.c.bf16 %v2975_v58, %v2975_v58  ;;  %v732_v62 = vpop.f32.mrb[11].mxu0  ;;  %v1866_v63 = vadd.f32 %v1865_v57, %v1864_v56  ;;  %v2253_v0 = vadd.f32 %v2252_v59, %v2251_v54  ;;  %v2122_v9 = vmul.f32 %v2975_v58, %v2975_v58 }
  0xed   :  { %1729 = vst.msk [vmem:[%s4659_s2 + $0x20] sm:$0xf] %vm1720_vm1, %v2777_v55  ;;  %v2778_v1 = vpack.c.bf16 %v732_v62, %v732_v62  ;;  %v2254_v3 = vsel %vm1849_vm2, %v2119_v60, 0.0  ;;  %v1867_v4 = vsel %vm1849_vm2, %v732_v62, 0.0  ;;  %v2120_v5 = vmul.f32 %v732_v62, %v732_v62 }
  0xee   :  { %1732 = vst.msk [vmem:[%s4659_s2 + $0x2c] sm:$0xf] %vm1720_vm1, %v2780_v61  ;;  %v2255_v6 = vadd.f32 %v2254_v3, %v2253_v0  ;;  %v1868_v7 = vadd.f32 %v1867_v4, %v1866_v63  ;;  %v2258_v14 = vsel %vm1849_vm2, %v2121_v2, 0.0  ;;  %v1871_v15 = vsel %vm1849_vm2, %v2975_v58, 0.0 }
  0xef   :  { %1730 = vst.msk [vmem:[%s4659_s2 + $0x24] sm:$0xf] %vm1720_vm1, %v2778_v1  ;;  %v2256_v10 = vsel %vm1849_vm2, %v2120_v5, 0.0  ;;  %v2260_v23 = vsel %vm1849_vm2, %v2122_v9, 0.0 }
  0xf0   :  { %v1870_v11 = vadd.f32 %v1869_v8, %v1868_v7  ;;  %v2257_v12 = vadd.f32 %v2256_v10, %v2255_v6  ;;  %v2836_v6 = vpack.c.bf16 %v3539_v46, %v3539_v46  ;;  %v3575_v7 = vpop.f32.mrb[4].mxu1 }
  0xf1   :  { %v2978_v13 = vpop.f32.mrb[12].mxu0 }
  0xf2   :  { %v2783_v16 = vpack.c.bf16 %v2978_v13, %v2978_v13  ;;  %v745_v17 = vpop.f32.mrb[13].mxu0  ;;  %v2259_v18 = vadd.f32 %v2258_v14, %v2257_v12  ;;  %v1872_v20 = vadd.f32 %v1871_v15, %v1870_v11  ;;  %v2125_v30 = vmul.f32 %v2978_v13, %v2978_v13  ;;  %v3579_v11 = vpop.f32.mrb[5].mxu1  ;;  %1788 = vst.msk [vmem:[%s4659_s2 + $0x10c] sm:$0xf] %vm1720_vm1, %v2836_v6 }
  0xf3   :  { %v2781_v19 = vpack.c.bf16 %v745_v17, %v745_v17  ;;  %v1873_v21 = vsel %vm1849_vm2, %v745_v17, 0.0  ;;  %v2979_v22 = vpop.f32.mrb[14].mxu0  ;;  %v2123_v24 = vmul.f32 %v745_v17, %v745_v17  ;;  %v1877_v37 = vsel %vm1849_vm2, %v2978_v13, 0.0 }
  0xf4   :  { %1735 = vst.msk [vmem:[%s4659_s2 + $0x38] sm:$0xf] %vm1720_vm1, %v2783_v16  ;;  %v2784_v25 = vpack.c.bf16 %v2979_v22, %v2979_v22  ;;  %v748_v26 = vpop.f32.mrb[15].mxu0  ;;  %v1874_v27 = vadd.f32 %v1873_v21, %v1872_v20  ;;  %v2261_v28 = vadd.f32 %v2260_v23, %v2259_v18  ;;  %v2126_v38 = vmul.f32 %v2979_v22, %v2979_v22  ;;  %v3587_v16 = vpop.f32.mrb[6].mxu1 }
  0xf5   :  { %1733 = vst.msk [vmem:[%s4659_s2 + $0x30] sm:$0xf] %vm1720_vm1, %v2781_v19  ;;  %v2782_v29 = vpack.c.bf16 %v748_v26, %v748_v26  ;;  %v2262_v31 = vsel %vm1849_vm2, %v2123_v24, 0.0  ;;  %v1875_v32 = vsel %vm1849_vm2, %v748_v26, 0.0  ;;  %v2124_v33 = vmul.f32 %v748_v26, %v748_v26  ;;  %v3591_v21 = vpop.f32.mrb[7].mxu1 }
  0xf6   :  { %1736 = vst.msk [vmem:[%s4659_s2 + $0x3c] sm:$0xf] %vm1720_vm1, %v2784_v25  ;;  %v2263_v34 = vadd.f32 %v2262_v31, %v2261_v28  ;;  %v1876_v35 = vadd.f32 %v1875_v32, %v1874_v27  ;;  %v2266_v47 = vsel %vm1849_vm2, %v2125_v30, 0.0  ;;  %v1879_v48 = vsel %vm1849_vm2, %v2979_v22, 0.0 }
  0xf7   :  { %1734 = vst.msk [vmem:[%s4659_s2 + $0x34] sm:$0xf] %vm1720_vm1, %v2782_v29  ;;  %v2264_v39 = vsel %vm1849_vm2, %v2124_v33, 0.0  ;;  %v2268_v57 = vsel %vm1849_vm2, %v2126_v38, 0.0  ;;  %v2834_v15 = vpack.c.bf16 %v3547_v51, %v3547_v51 }
  0xf8   :  { %v1878_v42 = vadd.f32 %v1877_v37, %v1876_v35  ;;  %v2265_v43 = vadd.f32 %v2264_v39, %v2263_v34 }
  0xf9   :  { %v2982_v44 = vpop.f32.mrb[16].mxu0  ;;  %1786 = vst.msk [vmem:[%s4659_s2 + $0x104] sm:$0xf] %vm1720_vm1, %v2834_v15 }
  0xfa   :  { %v2787_v49 = vpack.c.bf16 %v2982_v44, %v2982_v44  ;;  %v761_v50 = vpop.f32.mrb[17].mxu0  ;;  %v2267_v52 = vadd.f32 %v2266_v47, %v2265_v43  ;;  %v1880_v54 = vadd.f32 %v1879_v48, %v1878_v42  ;;  %v2129_v0 = vmul.f32 %v2982_v44, %v2982_v44  ;;  %v3619_v43 = vpop.f32.mrb[8].mxu1 }
  0xfb   :  { %v2785_v53 = vpack.c.bf16 %v761_v50, %v761_v50  ;;  %v1881_v55 = vsel %vm1849_vm2, %v761_v50, 0.0  ;;  %v2983_v56 = vpop.f32.mrb[18].mxu0  ;;  %v2127_v58 = vmul.f32 %v761_v50, %v761_v50  ;;  %v1885_v8 = vsel %vm1849_vm2, %v2982_v44, 0.0  ;;  %v3623_v48 = vpop.f32.mrb[9].mxu1 }
  0xfc   :  { %1739 = vst.msk [vmem:[%s4659_s2 + $0x48] sm:$0xf] %vm1720_vm1, %v2787_v49  ;;  %v2788_v59 = vpack.c.bf16 %v2983_v56, %v2983_v56  ;;  %v764_v60 = vpop.f32.mrb[19].mxu0  ;;  %v1882_v61 = vadd.f32 %v1881_v55, %v1880_v54  ;;  %v2269_v62 = vadd.f32 %v2268_v57, %v2267_v52  ;;  %v2130_v9 = vmul.f32 %v2983_v56, %v2983_v56  ;;  %v3631_v54 = vpop.f32.mrb[10].mxu1 }
  0xfd   :  { %1737 = vst.msk [vmem:[%s4659_s2 + $0x40] sm:$0xf] %vm1720_vm1, %v2785_v53  ;;  %v2786_v63 = vpack.c.bf16 %v764_v60, %v764_v60  ;;  %v2270_v1 = vsel %vm1849_vm2, %v2127_v58, 0.0  ;;  %v1883_v2 = vsel %vm1849_vm2, %v764_v60, 0.0  ;;  %v2128_v3 = vmul.f32 %v764_v60, %v764_v60 }
  0xfe   :  { %1740 = vst.msk [vmem:[%s4659_s2 + $0x4c] sm:$0xf] %vm1720_vm1, %v2788_v59  ;;  %v2271_v4 = vadd.f32 %v2270_v1, %v2269_v62  ;;  %v1884_v5 = vadd.f32 %v1883_v2, %v1882_v61  ;;  %v2274_v17 = vsel %vm1849_vm2, %v2129_v0, 0.0  ;;  %v1887_v18 = vsel %vm1849_vm2, %v2983_v56, 0.0  ;;  %v3635_v59 = vpop.f32.mrb[11].mxu1 }
  0xff   :  { %1738 = vst.msk [vmem:[%s4659_s2 + $0x44] sm:$0xf] %vm1720_vm1, %v2786_v63  ;;  %v2272_v10 = vsel %vm1849_vm2, %v2128_v3, 0.0  ;;  %v2276_v27 = vsel %vm1849_vm2, %v2130_v9, 0.0  ;;  %v2839_v42 = vpack.c.bf16 %v3575_v7, %v3575_v7  ;;  %v2837_v53 = vpack.c.bf16 %v3579_v11, %v3579_v11 }
 0x100   :  { %v1886_v12 = vadd.f32 %v1885_v8, %v1884_v5  ;;  %v2273_v13 = vadd.f32 %v2272_v10, %v2271_v4 }
 0x101   :  { %v2986_v14 = vpop.f32.mrb[20].mxu0  ;;  %1791 = vst.msk [vmem:[%s4659_s2 + $0x118] sm:$0xf] %vm1720_vm1, %v2839_v42  ;;  %1789 = vst.msk [vmem:[%s4659_s2 + $0x110] sm:$0xf] %vm1720_vm1, %v2837_v53 }
 0x102   :  { %v2791_v19 = vpack.c.bf16 %v2986_v14, %v2986_v14  ;;  %v777_v20 = vpop.f32.mrb[21].mxu0  ;;  %v2275_v22 = vadd.f32 %v2274_v17, %v2273_v13  ;;  %v1888_v24 = vadd.f32 %v1887_v18, %v1886_v12  ;;  %v2133_v34 = vmul.f32 %v2986_v14, %v2986_v14  ;;  %v3663_v18 = vpop.f32.mrb[12].mxu1 }
 0x103   :  { %v2789_v23 = vpack.c.bf16 %v777_v20, %v777_v20  ;;  %v1889_v25 = vsel %vm1849_vm2, %v777_v20, 0.0  ;;  %v2987_v26 = vpop.f32.mrb[22].mxu0  ;;  %v2131_v28 = vmul.f32 %v777_v20, %v777_v20  ;;  %v1893_v44 = vsel %vm1849_vm2, %v2986_v14, 0.0 }
 0x104   :  { %1743 = vst.msk [vmem:[%s4659_s2 + $0x58] sm:$0xf] %vm1720_vm1, %v2791_v19  ;;  %v2792_v29 = vpack.c.bf16 %v2987_v26, %v2987_v26  ;;  %v780_v30 = vpop.f32.mrb[23].mxu0  ;;  %v1890_v31 = vadd.f32 %v1889_v25, %v1888_v24  ;;  %v2277_v32 = vadd.f32 %v2276_v27, %v2275_v22  ;;  %v2134_v45 = vmul.f32 %v2987_v26, %v2987_v26 }
 0x105   :  { %1741 = vst.msk [vmem:[%s4659_s2 + $0x50] sm:$0xf] %vm1720_vm1, %v2789_v23  ;;  %v2790_v33 = vpack.c.bf16 %v780_v30, %v780_v30  ;;  %v2278_v35 = vsel %vm1849_vm2, %v2131_v28, 0.0  ;;  %v1891_v37 = vsel %vm1849_vm2, %v780_v30, 0.0  ;;  %v2132_v38 = vmul.f32 %v780_v30, %v780_v30  ;;  %v3667_v23 = vpop.f32.mrb[13].mxu1 }
 0x106   :  { %1744 = vst.msk [vmem:[%s4659_s2 + $0x5c] sm:$0xf] %vm1720_vm1, %v2792_v29  ;;  %v2279_v39 = vadd.f32 %v2278_v35, %v2277_v32  ;;  %v1892_v40 = vadd.f32 %v1891_v37, %v1890_v31  ;;  %v2282_v55 = vsel %vm1849_vm2, %v2133_v34, 0.0  ;;  %v1895_v56 = vsel %vm1849_vm2, %v2987_v26, 0.0  ;;  %v3675_v28 = vpop.f32.mrb[14].mxu1 }
 0x107   :  { %1742 = vst.msk [vmem:[%s4659_s2 + $0x54] sm:$0xf] %vm1720_vm1, %v2790_v33  ;;  %v2280_v47 = vsel %vm1849_vm2, %v2132_v38, 0.0  ;;  %v2284_v1 = vsel %vm1849_vm2, %v2134_v45, 0.0  ;;  %v2840_v17 = vpack.c.bf16 %v3587_v16, %v3587_v16  ;;  %v2838_v27 = vpack.c.bf16 %v3591_v21, %v3591_v21  ;;  %v3679_v33 = vpop.f32.mrb[15].mxu1 }
 0x108   :  { %v1894_v49 = vadd.f32 %v1893_v44, %v1892_v40  ;;  %v2281_v50 = vadd.f32 %v2280_v47, %v2279_v39 }
 0x109   :  { %v2990_v52 = vpop.f32.mrb[24].mxu0  ;;  %1792 = vst.msk [vmem:[%s4659_s2 + $0x11c] sm:$0xf] %vm1720_vm1, %v2840_v17  ;;  %1790 = vst.msk [vmem:[%s4659_s2 + $0x114] sm:$0xf] %vm1720_vm1, %v2838_v27 }
 0x10a   :  { %v2795_v57 = vpack.c.bf16 %v2990_v52, %v2990_v52  ;;  %v793_v58 = vpop.f32.mrb[25].mxu0  ;;  %v2283_v60 = vadd.f32 %v2282_v55, %v2281_v50  ;;  %v1896_v62 = vadd.f32 %v1895_v56, %v1894_v49  ;;  %v2137_v9 = vmul.f32 %v2990_v52, %v2990_v52 }
 0x10b   :  { %v2793_v61 = vpack.c.bf16 %v793_v58, %v793_v58  ;;  %v1897_v63 = vsel %vm1849_vm2, %v793_v58, 0.0  ;;  %v2991_v0 = vpop.f32.mrb[26].mxu0  ;;  %v2135_v2 = vmul.f32 %v793_v58, %v793_v58  ;;  %v1901_v19 = vsel %vm1849_vm2, %v2990_v52, 0.0 }
 0x10c   :  { %1747 = vst.msk [vmem:[%s4659_s2 + $0x68] sm:$0xf] %vm1720_vm1, %v2795_v57  ;;  %v2796_v3 = vpack.c.bf16 %v2991_v0, %v2991_v0  ;;  %v796_v4 = vpop.f32.mrb[27].mxu0  ;;  %v1898_v5 = vadd.f32 %v1897_v63, %v1896_v62  ;;  %v2285_v6 = vadd.f32 %v2284_v1, %v2283_v60  ;;  %v2138_v20 = vmul.f32 %v2991_v0, %v2991_v0 }
 0x10d   :  { %1745 = vst.msk [vmem:[%s4659_s2 + $0x60] sm:$0xf] %vm1720_vm1, %v2793_v61  ;;  %v2794_v8 = vpack.c.bf16 %v796_v4, %v796_v4  ;;  %v2286_v10 = vsel %vm1849_vm2, %v2135_v2, 0.0  ;;  %v1899_v12 = vsel %vm1849_vm2, %v796_v4, 0.0  ;;  %v2136_v13 = vmul.f32 %v796_v4, %v796_v4  ;;  %v3707_v61 = vpop.f32.mrb[16].mxu1 }
 0x10e   :  { %1748 = vst.msk [vmem:[%s4659_s2 + $0x6c] sm:$0xf] %vm1720_vm1, %v2796_v3  ;;  %v2287_v14 = vadd.f32 %v2286_v10, %v2285_v6  ;;  %v1900_v15 = vadd.f32 %v1899_v12, %v1898_v5  ;;  %v2290_v29 = vsel %vm1849_vm2, %v2137_v9, 0.0  ;;  %v1903_v30 = vsel %vm1849_vm2, %v2991_v0, 0.0  ;;  %v3711_v1 = vpop.f32.mrb[17].mxu1 }
 0x10f   :  { %1746 = vst.msk [vmem:[%s4659_s2 + $0x64] sm:$0xf] %vm1720_vm1, %v2794_v8  ;;  %v2288_v22 = vsel %vm1849_vm2, %v2136_v13, 0.0  ;;  %v2292_v40 = vsel %vm1849_vm2, %v2138_v20, 0.0  ;;  %v2843_v60 = vpack.c.bf16 %v3619_v43, %v3619_v43  ;;  %v2841_v5 = vpack.c.bf16 %v3623_v48, %v3623_v48  ;;  %v3719_v6 = vpop.f32.mrb[18].mxu1 }
 0x110   :  { %v1902_v24 = vadd.f32 %v1901_v19, %v1900_v15  ;;  %v2289_v25 = vadd.f32 %v2288_v22, %v2287_v14  ;;  %v3723_v13 = vpop.f32.mrb[19].mxu1 }
 0x111   :  { %v2994_v26 = vpop.f32.mrb[28].mxu0  ;;  %1795 = vst.msk [vmem:[%s4659_s2 + $0x128] sm:$0xf] %vm1720_vm1, %v2843_v60  ;;  %1793 = vst.msk [vmem:[%s4659_s2 + $0x120] sm:$0xf] %vm1720_vm1, %v2841_v5 }
 0x112   :  { %v2799_v31 = vpack.c.bf16 %v2994_v26, %v2994_v26  ;;  %v809_v32 = vpop.f32.mrb[29].mxu0  ;;  %v2291_v34 = vadd.f32 %v2290_v29, %v2289_v25  ;;  %v1904_v37 = vadd.f32 %v1903_v30, %v1902_v24  ;;  %v2141_v52 = vmul.f32 %v2994_v26, %v2994_v26 }
 0x113   :  { %v2797_v35 = vpack.c.bf16 %v809_v32, %v809_v32  ;;  %v1905_v38 = vsel %vm1849_vm2, %v809_v32, 0.0  ;;  %v2995_v39 = vpop.f32.mrb[30].mxu0  ;;  %v2139_v42 = vmul.f32 %v809_v32, %v809_v32  ;;  %v1909_v62 = vsel %vm1849_vm2, %v2994_v26, 0.0 }
 0x114   :  { %1751 = vst.msk [vmem:[%s4659_s2 + $0x78] sm:$0xf] %vm1720_vm1, %v2799_v31  ;;  %v2800_v44 = vpack.c.bf16 %v2995_v39, %v2995_v39  ;;  %v812_v45 = vpop.f32.mrb[31].mxu0  ;;  %v1906_v47 = vadd.f32 %v1905_v38, %v1904_v37  ;;  %v2293_v49 = vadd.f32 %v2292_v40, %v2291_v34  ;;  %v2142_v63 = vmul.f32 %v2995_v39, %v2995_v39  ;;  %v3751_v40 = vpop.f32.mrb[20].mxu1 }
 0x115   :  { %1749 = vst.msk [vmem:[%s4659_s2 + $0x70] sm:$0xf] %vm1720_vm1, %v2797_v35  ;;  %v2798_v50 = vpack.c.bf16 %v812_v45, %v812_v45  ;;  %v2294_v53 = vsel %vm1849_vm2, %v2139_v42, 0.0  ;;  %v1907_v55 = vsel %vm1849_vm2, %v812_v45, 0.0  ;;  %v2140_v56 = vmul.f32 %v812_v45, %v812_v45  ;;  %4665 = vst [vmem:[#allocation2_spill] sm:$0xff] %v3751_v40 }
 0x116   :  { %1752 = vst.msk [vmem:[%s4659_s2 + $0x7c] sm:$0xf] %vm1720_vm1, %v2800_v44  ;;  %v2295_v57 = vadd.f32 %v2294_v53, %v2293_v49  ;;  %v1908_v58 = vadd.f32 %v1907_v55, %v1906_v47  ;;  %v2298_v8 = vsel %vm1849_vm2, %v2141_v52, 0.0  ;;  %v1911_v9 = vsel %vm1849_vm2, %v2995_v39, 0.0  ;;  %v3755_v47 = vpop.f32.mrb[21].mxu1 }
 0x117   :  { %1750 = vst.msk [vmem:[%s4659_s2 + $0x74] sm:$0xf] %vm1720_vm1, %v2798_v50  ;;  %v2296_v0 = vsel %vm1849_vm2, %v2140_v56, 0.0  ;;  %v2300_v22 = vsel %vm1849_vm2, %v2142_v63, 0.0  ;;  %v2844_v39 = vpack.c.bf16 %v3631_v54, %v3631_v54  ;;  %v2842_v53 = vpack.c.bf16 %v3635_v59, %v3635_v59  ;;  %v3763_v55 = vpop.f32.mrb[22].mxu1 }
 0x118   :  { %v1910_v2 = vadd.f32 %v1909_v62, %v1908_v58  ;;  %v2297_v3 = vadd.f32 %v2296_v0, %v2295_v57  ;;  %4666 = vst [vmem:[#allocation3_spill] sm:$0xff] %v3763_v55  ;;  %v3767_v62 = vpop.f32.mrb[23].mxu1 }
 0x119   :  { %v2998_v4 = vpop.f32.mrb[32].mxu0  ;;  %1796 = vst.msk [vmem:[%s4659_s2 + $0x12c] sm:$0xf] %vm1720_vm1, %v2844_v39  ;;  %1794 = vst.msk [vmem:[%s4659_s2 + $0x124] sm:$0xf] %vm1720_vm1, %v2842_v53 }
 0x11a   :  { %v2803_v10 = vpack.c.bf16 %v2998_v4, %v2998_v4  ;;  %v825_v12 = vpop.f32.mrb[33].mxu0  ;;  %v2299_v14 = vadd.f32 %v2298_v8, %v2297_v3  ;;  %v1912_v17 = vadd.f32 %v1911_v9, %v1910_v2  ;;  %v2145_v31 = vmul.f32 %v2998_v4, %v2998_v4 }
 0x11b   :  { %v2801_v15 = vpack.c.bf16 %v825_v12, %v825_v12  ;;  %v1913_v19 = vsel %vm1849_vm2, %v825_v12, 0.0  ;;  %v2999_v20 = vpop.f32.mrb[34].mxu0  ;;  %v2143_v24 = vmul.f32 %v825_v12, %v825_v12  ;;  %v1917_v42 = vsel %vm1849_vm2, %v2998_v4, 0.0 }
 0x11c   :  { %1755 = vst.msk [vmem:[%s4659_s2 + $0x88] sm:$0xf] %vm1720_vm1, %v2803_v10  ;;  %v2804_v25 = vpack.c.bf16 %v2999_v20, %v2999_v20  ;;  %v828_v26 = vpop.f32.mrb[35].mxu0  ;;  %v1914_v27 = vadd.f32 %v1913_v19, %v1912_v17  ;;  %v2301_v29 = vadd.f32 %v2300_v22, %v2299_v14  ;;  %v2146_v44 = vmul.f32 %v2999_v20, %v2999_v20 }
 0x11d   :  { %1753 = vst.msk [vmem:[%s4659_s2 + $0x80] sm:$0xf] %vm1720_vm1, %v2801_v15  ;;  %v2802_v30 = vpack.c.bf16 %v828_v26, %v828_v26  ;;  %v2302_v32 = vsel %vm1849_vm2, %v2143_v24, 0.0  ;;  %v1915_v34 = vsel %vm1849_vm2, %v828_v26, 0.0  ;;  %v2144_v35 = vmul.f32 %v828_v26, %v828_v26 }
 0x11e   :  { %1756 = vst.msk [vmem:[%s4659_s2 + $0x8c] sm:$0xf] %vm1720_vm1, %v2804_v25  ;;  %v2303_v37 = vadd.f32 %v2302_v32, %v2301_v29  ;;  %v1916_v38 = vadd.f32 %v1915_v34, %v1914_v27  ;;  %v2306_v56 = vsel %vm1849_vm2, %v2145_v31, 0.0  ;;  %v1919_v57 = vsel %vm1849_vm2, %v2999_v20, 0.0  ;;  %v3795_v27 = vpop.f32.mrb[24].mxu1 }
 0x11f   :  { %1754 = vst.msk [vmem:[%s4659_s2 + $0x84] sm:$0xf] %vm1720_vm1, %v2802_v30  ;;  %v2304_v45 = vsel %vm1849_vm2, %v2144_v35, 0.0  ;;  %v2308_v5 = vsel %vm1849_vm2, %v2146_v44, 0.0  ;;  %v2847_v26 = vpack.c.bf16 %v3663_v18, %v3663_v18  ;;  %v3799_v32 = vpop.f32.mrb[25].mxu1 }
 0x120   :  { %v1918_v49 = vadd.f32 %v1917_v42, %v1916_v38  ;;  %v2305_v50 = vadd.f32 %v2304_v45, %v2303_v37  ;;  %v2845_v38 = vpack.c.bf16 %v3667_v23, %v3667_v23  ;;  %v3807_v39 = vpop.f32.mrb[26].mxu1 }
 0x121   :  { %v3002_v52 = vpop.f32.mrb[36].mxu0  ;;  %1799 = vst.msk [vmem:[%s4659_s2 + $0x138] sm:$0xf] %vm1720_vm1, %v2847_v26 }
 0x122   :  { %v2807_v58 = vpack.c.bf16 %v3002_v52, %v3002_v52  ;;  %v841_v60 = vpop.f32.mrb[37].mxu0  ;;  %v2307_v63 = vadd.f32 %v2306_v56, %v2305_v50  ;;  %v1920_v2 = vadd.f32 %v1919_v57, %v1918_v49  ;;  %v2149_v17 = vmul.f32 %v3002_v52, %v3002_v52  ;;  %v3811_v50 = vpop.f32.mrb[27].mxu1  ;;  %1797 = vst.msk [vmem:[%s4659_s2 + $0x130] sm:$0xf] %vm1720_vm1, %v2845_v38 }
 0x123   :  { %v2805_v0 = vpack.c.bf16 %v841_v60, %v841_v60  ;;  %v1921_v3 = vsel %vm1849_vm2, %v841_v60, 0.0  ;;  %v3003_v4 = vpop.f32.mrb[38].mxu0  ;;  %v2147_v8 = vmul.f32 %v841_v60, %v841_v60  ;;  %v1925_v29 = vsel %vm1849_vm2, %v3002_v52, 0.0 }
 0x124   :  { %1759 = vst.msk [vmem:[%s4659_s2 + $0x98] sm:$0xf] %vm1720_vm1, %v2807_v58  ;;  %v2808_v9 = vpack.c.bf16 %v3003_v4, %v3003_v4  ;;  %v844_v10 = vpop.f32.mrb[39].mxu0  ;;  %v1922_v12 = vadd.f32 %v1921_v3, %v1920_v2  ;;  %v2309_v14 = vadd.f32 %v2308_v5, %v2307_v63  ;;  %v2150_v30 = vmul.f32 %v3003_v4, %v3003_v4 }
 0x125   :  { %1757 = vst.msk [vmem:[%s4659_s2 + $0x90] sm:$0xf] %vm1720_vm1, %v2805_v0  ;;  %v2806_v15 = vpack.c.bf16 %v844_v10, %v844_v10  ;;  %v2310_v19 = vsel %vm1849_vm2, %v2147_v8, 0.0  ;;  %v1923_v20 = vsel %vm1849_vm2, %v844_v10, 0.0  ;;  %v2148_v22 = vmul.f32 %v844_v10, %v844_v10 }
 0x126   :  { %1760 = vst.msk [vmem:[%s4659_s2 + $0x9c] sm:$0xf] %vm1720_vm1, %v2808_v9  ;;  %v2311_v24 = vadd.f32 %v2310_v19, %v2309_v14  ;;  %v1924_v25 = vadd.f32 %v1923_v20, %v1922_v12  ;;  %v2314_v42 = vsel %vm1849_vm2, %v2149_v17, 0.0  ;;  %v1927_v44 = vsel %vm1849_vm2, %v3003_v4, 0.0  ;;  %v3839_v19 = vpop.f32.mrb[28].mxu1 }
 0x127   :  { %1758 = vst.msk [vmem:[%s4659_s2 + $0x94] sm:$0xf] %vm1720_vm1, %v2806_v15  ;;  %v2312_v31 = vsel %vm1849_vm2, %v2148_v22, 0.0  ;;  %v2316_v60 = vsel %vm1849_vm2, %v2150_v30, 0.0  ;;  %v2848_v17 = vpack.c.bf16 %v3675_v28, %v3675_v28 }
 0x128   :  { %v1926_v34 = vadd.f32 %v1925_v29, %v1924_v25  ;;  %v2313_v35 = vadd.f32 %v2312_v31, %v2311_v24  ;;  %v3843_v25 = vpop.f32.mrb[29].mxu1  ;;  %v2846_v31 = vpack.c.bf16 %v3679_v33, %v3679_v33 }
 0x129   :  { %v3006_v37 = vpop.f32.mrb[40].mxu0  ;;  %1800 = vst.msk [vmem:[%s4659_s2 + $0x13c] sm:$0xf] %vm1720_vm1, %v2848_v17 }
 0x12a   :  { %v2811_v45 = vpack.c.bf16 %v3006_v37, %v3006_v37  ;;  %v857_v49 = vpop.f32.mrb[41].mxu0  ;;  %v2315_v52 = vadd.f32 %v2314_v42, %v2313_v35  ;;  %v1928_v56 = vadd.f32 %v1927_v44, %v1926_v34  ;;  %v2153_v8 = vmul.f32 %v3006_v37, %v3006_v37  ;;  %v3851_v34 = vpop.f32.mrb[30].mxu1  ;;  %1798 = vst.msk [vmem:[%s4659_s2 + $0x134] sm:$0xf] %vm1720_vm1, %v2846_v31 }
 0x12b   :  { %v2809_v53 = vpack.c.bf16 %v857_v49, %v857_v49  ;;  %v1929_v57 = vsel %vm1849_vm2, %v857_v49, 0.0  ;;  %v3007_v58 = vpop.f32.mrb[42].mxu0  ;;  %v2151_v63 = vmul.f32 %v857_v49, %v857_v49  ;;  %v1933_v20 = vsel %vm1849_vm2, %v3006_v37, 0.0  ;;  %v3855_v44 = vpop.f32.mrb[31].mxu1 }
 0x12c   :  { %1763 = vst.msk [vmem:[%s4659_s2 + $0xa8] sm:$0xf] %vm1720_vm1, %v2811_v45  ;;  %v2812_v0 = vpack.c.bf16 %v3007_v58, %v3007_v58  ;;  %v860_v2 = vpop.f32.mrb[43].mxu0  ;;  %v1930_v3 = vadd.f32 %v1929_v57, %v1928_v56  ;;  %v2317_v4 = vadd.f32 %v2316_v60, %v2315_v52  ;;  %v2154_v22 = vmul.f32 %v3007_v58, %v3007_v58 }
 0x12d   :  { %1761 = vst.msk [vmem:[%s4659_s2 + $0xa0] sm:$0xf] %vm1720_vm1, %v2809_v53  ;;  %v2810_v5 = vpack.c.bf16 %v860_v2, %v860_v2  ;;  %v2318_v9 = vsel %vm1849_vm2, %v2151_v63, 0.0  ;;  %v1931_v10 = vsel %vm1849_vm2, %v860_v2, 0.0  ;;  %v2152_v12 = vmul.f32 %v860_v2, %v860_v2 }
 0x12e   :  { %1764 = vst.msk [vmem:[%s4659_s2 + $0xac] sm:$0xf] %vm1720_vm1, %v2812_v0  ;;  %v2319_v14 = vadd.f32 %v2318_v9, %v2317_v4  ;;  %v1932_v15 = vadd.f32 %v1931_v10, %v1930_v3  ;;  %v2322_v35 = vsel %vm1849_vm2, %v2153_v8, 0.0  ;;  %v1935_v37 = vsel %vm1849_vm2, %v3007_v58, 0.0 }
 0x12f   :  { %1762 = vst.msk [vmem:[%s4659_s2 + $0xa4] sm:$0xf] %vm1720_vm1, %v2810_v5  ;;  %v2320_v24 = vsel %vm1849_vm2, %v2152_v12, 0.0  ;;  %v2324_v57 = vsel %vm1849_vm2, %v2154_v22, 0.0 }
 0x130   :  { %v1934_v26 = vadd.f32 %v1933_v20, %v1932_v15  ;;  %v2321_v29 = vadd.f32 %v2320_v24, %v2319_v14  ;;  %v2851_v14 = vpack.c.bf16 %v3707_v61, %v3707_v61  ;;  %v3883_v15 = vpop.f32.mrb[32].mxu1 }
 0x131   :  { %v3010_v30 = vpop.f32.mrb[44].mxu0  ;;  %v3887_v24 = vpop.f32.mrb[33].mxu1 }
 0x132   :  { %v2815_v38 = vpack.c.bf16 %v3010_v30, %v3010_v30  ;;  %v873_v42 = vpop.f32.mrb[45].mxu0  ;;  %v2323_v45 = vadd.f32 %v2322_v35, %v2321_v29  ;;  %v1936_v52 = vadd.f32 %v1935_v37, %v1934_v26  ;;  %v2157_v4 = vmul.f32 %v3010_v30, %v3010_v30  ;;  %1803 = vst.msk [vmem:[%s4659_s2 + $0x148] sm:$0xf] %vm1720_vm1, %v2851_v14  ;;  %v3895_v37 = vpop.f32.mrb[34].mxu1 }
 0x133   :  { %v2813_v49 = vpack.c.bf16 %v873_v42, %v873_v42  ;;  %v1937_v53 = vsel %vm1849_vm2, %v873_v42, 0.0  ;;  %v3011_v56 = vpop.f32.mrb[46].mxu0  ;;  %v2155_v58 = vmul.f32 %v873_v42, %v873_v42  ;;  %v1941_v17 = vsel %vm1849_vm2, %v3010_v30, 0.0 }
 0x134   :  { %1767 = vst.msk [vmem:[%s4659_s2 + $0xb8] sm:$0xf] %vm1720_vm1, %v2815_v38  ;;  %v2816_v60 = vpack.c.bf16 %v3011_v56, %v3011_v56  ;;  %v876_v63 = vpop.f32.mrb[47].mxu0  ;;  %v1938_v0 = vadd.f32 %v1937_v53, %v1936_v52  ;;  %v2325_v2 = vadd.f32 %v2324_v57, %v2323_v45  ;;  %v2158_v20 = vmul.f32 %v3011_v56, %v3011_v56 }
 0x135   :  { %1765 = vst.msk [vmem:[%s4659_s2 + $0xb0] sm:$0xf] %vm1720_vm1, %v2813_v49  ;;  %v2814_v3 = vpack.c.bf16 %v876_v63, %v876_v63  ;;  %v2326_v5 = vsel %vm1849_vm2, %v2155_v58, 0.0  ;;  %v1939_v8 = vsel %vm1849_vm2, %v876_v63, 0.0  ;;  %v2156_v9 = vmul.f32 %v876_v63, %v876_v63  ;;  %v3899_v49 = vpop.f32.mrb[35].mxu1 }
 0x136   :  { %1768 = vst.msk [vmem:[%s4659_s2 + $0xbc] sm:$0xf] %vm1720_vm1, %v2816_v60  ;;  %v2327_v10 = vadd.f32 %v2326_v5, %v2325_v2  ;;  %v1940_v12 = vadd.f32 %v1939_v8, %v1938_v0  ;;  %v2849_v35 = vpack.c.bf16 %v3711_v1, %v3711_v1  ;;  %v2330_v30 = vsel %vm1849_vm2, %v2157_v4, 0.0 }
 0x137   :  { %1766 = vst.msk [vmem:[%s4659_s2 + $0xb4] sm:$0xf] %vm1720_vm1, %v2814_v3  ;;  %v2328_v22 = vsel %vm1849_vm2, %v2156_v9, 0.0  ;;  %v1943_v38 = vsel %vm1849_vm2, %v3011_v56, 0.0  ;;  %v2332_v63 = vsel %vm1849_vm2, %v2158_v20, 0.0  ;;  %v2852_v20 = vpack.c.bf16 %v3719_v6, %v3719_v6 }
 0x138   :  { %v1942_v26 = vadd.f32 %v1941_v17, %v1940_v12  ;;  %v2329_v29 = vadd.f32 %v2328_v22, %v2327_v10  ;;  %1801 = vst.msk [vmem:[%s4659_s2 + $0x140] sm:$0xf] %vm1720_vm1, %v2849_v35  ;;  %v3927_v22 = vpop.f32.mrb[36].mxu1 }
 0x139   :  { %v3014_v31 = vpop.f32.mrb[48].mxu0  ;;  %1804 = vst.msk [vmem:[%s4659_s2 + $0x14c] sm:$0xf] %vm1720_vm1, %v2852_v20 }
 0x13a   :  { %v2819_v42 = vpack.c.bf16 %v3014_v31, %v3014_v31  ;;  %v889_v45 = vpop.f32.mrb[49].mxu0  ;;  %v2331_v52 = vadd.f32 %v2330_v30, %v2329_v29  ;;  %v1944_v57 = vadd.f32 %v1943_v38, %v1942_v26  ;;  %v2161_v8 = vmul.f32 %v3014_v31, %v3014_v31  ;;  %v3931_v30 = vpop.f32.mrb[37].mxu1 }
 0x13b   :  { %v2817_v53 = vpack.c.bf16 %v889_v45, %v889_v45  ;;  %v1945_v58 = vsel %vm1849_vm2, %v889_v45, 0.0  ;;  %v3015_v60 = vpop.f32.mrb[50].mxu0  ;;  %v2159_v56 = vmul.f32 %v889_v45, %v889_v45  ;;  %v1949_v26 = vsel %vm1849_vm2, %v3014_v31, 0.0 }
 0x13c   :  { %1771 = vst.msk [vmem:[%s4659_s2 + $0xc8] sm:$0xf] %vm1720_vm1, %v2819_v42  ;;  %v2820_v0 = vpack.c.bf16 %v3015_v60, %v3015_v60  ;;  %v892_v2 = vpop.f32.mrb[51].mxu0  ;;  %v1946_v3 = vadd.f32 %v1945_v58, %v1944_v57  ;;  %v2333_v4 = vadd.f32 %v2332_v63, %v2331_v52  ;;  %v2162_v29 = vmul.f32 %v3015_v60, %v3015_v60 }
 0x13d   :  { %1769 = vst.msk [vmem:[%s4659_s2 + $0xc0] sm:$0xf] %vm1720_vm1, %v2817_v53  ;;  %v2818_v5 = vpack.c.bf16 %v892_v2, %v892_v2  ;;  %v2334_v9 = vsel %vm1849_vm2, %v2159_v56, 0.0  ;;  %v1947_v10 = vsel %vm1849_vm2, %v892_v2, 0.0  ;;  %v2160_v12 = vmul.f32 %v892_v2, %v892_v2  ;;  %v3939_v53 = vpop.f32.mrb[38].mxu1 }
 0x13e   :  { %1772 = vst.msk [vmem:[%s4659_s2 + $0xcc] sm:$0xf] %vm1720_vm1, %v2820_v0  ;;  %v2335_v14 = vadd.f32 %v2334_v9, %v2333_v4  ;;  %v1948_v17 = vadd.f32 %v1947_v10, %v1946_v3  ;;  %v2850_v52 = vpack.c.bf16 %v3723_v13, %v3723_v13  ;;  %v2338_v31 = vsel %vm1849_vm2, %v2161_v8, 0.0  ;;  %v3943_v56 = vpop.f32.mrb[39].mxu1 }
 0x13f   :  { %1770 = vst.msk [vmem:[%s4659_s2 + $0xc4] sm:$0xf] %vm1720_vm1, %v2818_v5  ;;  %v2336_v35 = vsel %vm1849_vm2, %v2160_v12, 0.0  ;;  %v1951_v57 = vsel %vm1849_vm2, %v3015_v60, 0.0  ;;  %v2340_v9 = vsel %vm1849_vm2, %v2162_v29, 0.0 }
 0x140   :  { %v1950_v38 = vadd.f32 %v1949_v26, %v1948_v17  ;;  %v2337_v42 = vadd.f32 %v2336_v35, %v2335_v14  ;;  %1802 = vst.msk [vmem:[%s4659_s2 + $0x144] sm:$0xf] %vm1720_vm1, %v2850_v52  ;;  %v2855_v52 = vpack.c.bf16 %v3751_v40, %v3751_v40 }
 0x141   :  { %v3018_v45 = vpop.f32.mrb[52].mxu0 }
 0x142   :  { %v2823_v58 = vpack.c.bf16 %v3018_v45, %v3018_v45  ;;  %v905_v63 = vpop.f32.mrb[53].mxu0  ;;  %v2339_v0 = vadd.f32 %v2338_v31, %v2337_v42  ;;  %v1952_v3 = vadd.f32 %v1951_v57, %v1950_v38  ;;  %v2165_v20 = vmul.f32 %v3018_v45, %v3018_v45  ;;  %v3971_v31 = vpop.f32.mrb[40].mxu1  ;;  %1807 = vst.msk [vmem:[%s4659_s2 + $0x158] sm:$0xf] %vm1720_vm1, %v2855_v52 }
 0x143   :  { %v2821_v2 = vpack.c.bf16 %v905_v63, %v905_v63  ;;  %v1953_v4 = vsel %vm1849_vm2, %v905_v63, 0.0  ;;  %v3019_v5 = vpop.f32.mrb[54].mxu0  ;;  %v2163_v60 = vmul.f32 %v905_v63, %v905_v63  ;;  %v1957_v57 = vsel %vm1849_vm2, %v3018_v45, 0.0 }
 0x144   :  { %1775 = vst.msk [vmem:[%s4659_s2 + $0xd8] sm:$0xf] %vm1720_vm1, %v2823_v58  ;;  %v2824_v8 = vpack.c.bf16 %v3019_v5, %v3019_v5  ;;  %v908_v10 = vpop.f32.mrb[55].mxu0  ;;  %v1954_v12 = vadd.f32 %v1953_v4, %v1952_v3  ;;  %v2341_v14 = vadd.f32 %v2340_v9, %v2339_v0  ;;  %v2166_v58 = vmul.f32 %v3019_v5, %v3019_v5  ;;  %v3975_v0 = vpop.f32.mrb[41].mxu1 }
 0x145   :  { %1773 = vst.msk [vmem:[%s4659_s2 + $0xd0] sm:$0xf] %vm1720_vm1, %v2821_v2  ;;  %v2822_v17 = vpack.c.bf16 %v908_v10, %v908_v10  ;;  %v2342_v26 = vsel %vm1849_vm2, %v2163_v60, 0.0  ;;  %v1955_v29 = vsel %vm1849_vm2, %v908_v10, 0.0  ;;  %v2164_v35 = vmul.f32 %v908_v10, %v908_v10  ;;  %v3983_v60 = vpop.f32.mrb[42].mxu1 }
 0x146   :  { %1776 = vst.msk [vmem:[%s4659_s2 + $0xdc] sm:$0xf] %vm1720_vm1, %v2824_v8  ;;  %v2343_v38 = vadd.f32 %v2342_v26, %v2341_v14  ;;  %v1956_v42 = vadd.f32 %v1955_v29, %v1954_v12  ;;  %v2853_v9 = vpack.c.bf16 %v3755_v47, %v3755_v47  ;;  %v2346_v45 = vsel %vm1849_vm2, %v2165_v20, 0.0  ;;  %v3987_v14 = vpop.f32.mrb[43].mxu1 }
 0x147   :  { %1774 = vst.msk [vmem:[%s4659_s2 + $0xd4] sm:$0xf] %vm1720_vm1, %v2822_v17  ;;  %v2344_v63 = vsel %vm1849_vm2, %v2164_v35, 0.0  ;;  %v1959_v8 = vsel %vm1849_vm2, %v3019_v5, 0.0 }
 0x148   :  { %v1958_v2 = vadd.f32 %v1957_v57, %v1956_v42  ;;  %v2345_v3 = vadd.f32 %v2344_v63, %v2343_v38  ;;  %1805 = vst.msk [vmem:[%s4659_s2 + $0x150] sm:$0xf] %vm1720_vm1, %v2853_v9  ;;  %v2348_v42 = vsel %vm1849_vm2, %v2166_v58, 0.0 }
 0x149   :  { %v3022_v4 = vpop.f32.mrb[56].mxu0 }
 0x14a   :  { %v2827_v10 = vpack.c.bf16 %v3022_v4, %v3022_v4  ;;  %v921_v12 = vpop.f32.mrb[57].mxu0  ;;  %v2347_v17 = vadd.f32 %v2346_v45, %v2345_v3  ;;  %v1960_v29 = vadd.f32 %v1959_v8, %v1958_v2  ;;  %v2169_v3 = vmul.f32 %v3022_v4, %v3022_v4 }
 0x14b   :  { %v2825_v26 = vpack.c.bf16 %v921_v12, %v921_v12  ;;  %v1961_v35 = vsel %vm1849_vm2, %v921_v12, 0.0  ;;  %v3023_v38 = vpop.f32.mrb[58].mxu0  ;;  %v2167_v5 = vmul.f32 %v921_v12, %v921_v12  ;;  %v2856_v12 = vpack.c.bf16 %v3763_v55, %v3763_v55 }
 0x14c   :  { %1779 = vst.msk [vmem:[%s4659_s2 + $0xe8] sm:$0xf] %vm1720_vm1, %v2827_v10  ;;  %v2828_v20 = vpack.c.bf16 %v3023_v38, %v3023_v38  ;;  %v924_v52 = vpop.f32.mrb[59].mxu0  ;;  %v1962_v57 = vadd.f32 %v1961_v35, %v1960_v29  ;;  %v2349_v63 = vadd.f32 %v2348_v42, %v2347_v17  ;;  %v4015_v17 = vpop.f32.mrb[44].mxu1  ;;  %v2170_v29 = vmul.f32 %v3023_v38, %v3023_v38 }
 0x14d   :  { %1777 = vst.msk [vmem:[%s4659_s2 + $0xe0] sm:$0xf] %vm1720_vm1, %v2825_v26  ;;  %v2826_v2 = vpack.c.bf16 %v924_v52, %v924_v52  ;;  %v2350_v9 = vsel %vm1849_vm2, %v2167_v5, 0.0  ;;  %v1963_v58 = vsel %vm1849_vm2, %v924_v52, 0.0  ;;  %v2168_v45 = vmul.f32 %v924_v52, %v924_v52  ;;  %v4019_v42 = vpop.f32.mrb[45].mxu1 }
 0x14e   :  { %1780 = vst.msk [vmem:[%s4659_s2 + $0xec] sm:$0xf] %vm1720_vm1, %v2828_v20  ;;  %v2351_v8 = vadd.f32 %v2350_v9, %v2349_v63  ;;  %v1964_v10 = vadd.f32 %v1963_v58, %v1962_v57  ;;  %v1965_v26 = vsel %vm1849_vm2, %v3022_v4, 0.0  ;;  %1808 = vst.msk [vmem:[%s4659_s2 + $0x15c] sm:$0xf] %vm1720_vm1, %v2856_v12  ;;  %v2854_v57 = vpack.c.bf16 %v3767_v62, %v3767_v62  ;;  %v4027_v63 = vpop.f32.mrb[46].mxu1 }
 0x14f   :  { %1778 = vst.msk [vmem:[%s4659_s2 + $0xe4] sm:$0xf] %vm1720_vm1, %v2826_v2  ;;  %v2352_v35 = vsel %vm1849_vm2, %v2168_v45, 0.0  ;;  %v2354_v4 = vsel %vm1849_vm2, %v2169_v3, 0.0  ;;  %v1967_v2 = vsel %vm1849_vm2, %v3023_v38, 0.0  ;;  %v4031_v45 = vpop.f32.mrb[47].mxu1 }
 0x150   :  { %v1966_v5 = vadd.f32 %v1965_v26, %v1964_v10  ;;  %v2353_v20 = vadd.f32 %v2352_v35, %v2351_v8  ;;  %1806 = vst.msk [vmem:[%s4659_s2 + $0x154] sm:$0xf] %vm1720_vm1, %v2854_v57  ;;  %v2356_v12 = vsel %vm1849_vm2, %v2170_v29, 0.0 }
 0x151   :  { %v3026_v52 = vpop.f32.mrb[60].mxu0 }
 0x152   :  { %v2831_v9 = vpack.c.bf16 %v3026_v52, %v3026_v52  ;;  %v937_v58 = vpop.f32.mrb[61].mxu0  ;;  %v2355_v8 = vadd.f32 %v2354_v4, %v2353_v20  ;;  %v1968_v26 = vadd.f32 %v1967_v2, %v1966_v5  ;;  %v2173_v40 = vmul.f32 %v3026_v52, %v3026_v52 }
 0x153   :  { %v2829_v10 = vpack.c.bf16 %v937_v58, %v937_v58  ;;  %v1969_v35 = vsel %vm1849_vm2, %v937_v58, 0.0  ;;  %v3027_v55 = vpop.f32.mrb[62].mxu0  ;;  %v2171_v38 = vmul.f32 %v937_v58, %v937_v58 }
 0x154   :  { %1783 = vst.msk [vmem:[%s4659_s2 + $0xf8] sm:$0xf] %vm1720_vm1, %v2831_v9  ;;  %v2832_v3 = vpack.c.bf16 %v3027_v55, %v3027_v55  ;;  %v940_v20 = vpop.f32.mrb[63].mxu0  ;;  %v1970_v5 = vadd.f32 %v1969_v35, %v1968_v26  ;;  %v2357_v4 = vadd.f32 %v2356_v12, %v2355_v8  ;;  %v2859_v8 = vpack.c.bf16 %v3795_v27, %v3795_v27  ;;  %v4059_v26 = vpop.f32.mrb[48].mxu1 }
 0x155   :  { %1781 = vst.msk [vmem:[%s4659_s2 + $0xf0] sm:$0xf] %vm1720_vm1, %v2829_v10  ;;  %v2830_v2 = vpack.c.bf16 %v940_v20, %v940_v20  ;;  %v2358_v57 = vsel %vm1849_vm2, %v2171_v38, 0.0  ;;  %v1971_v29 = vsel %vm1849_vm2, %v940_v20, 0.0  ;;  %v2172_v9 = vmul.f32 %v940_v20, %v940_v20  ;;  %v4065_v20 = vpop.f32.mrb[49].mxu1 }
 0x156   :  { %1784 = vst.msk [vmem:[%s4659_s2 + $0xfc] sm:$0xf] %vm1720_vm1, %v2832_v3  ;;  %v2359_v58 = vadd.f32 %v2358_v57, %v2357_v4  ;;  %v1972_v10 = vadd.f32 %v1971_v29, %v1970_v5  ;;  %v1973_v35 = vsel %vm1849_vm2, %v3026_v52, 0.0  ;;  %v2174_v12 = vmul.f32 %v3027_v55, %v3027_v55  ;;  %1811 = vst.msk [vmem:[%s4659_s2 + $0x168] sm:$0xf] %vm1720_vm1, %v2859_v8 }
 0x157   :  { %1782 = vst.msk [vmem:[%s4659_s2 + $0xf4] sm:$0xf] %vm1720_vm1, %v2830_v2  ;;  %v2360_v38 = vsel %vm1849_vm2, %v2172_v9, 0.0  ;;  %v2175_v3 = vmul.f32 %v3535_v41, %v3535_v41  ;;  %v2857_v5 = vpack.c.bf16 %v3799_v32, %v3799_v32  ;;  %v4073_v2 = vpop.f32.mrb[50].mxu1  ;;  %v2362_v52 = vsel %vm1849_vm2, %v2173_v40, 0.0 }
 0x158   :  { %v1974_v4 = vadd.f32 %v1973_v35, %v1972_v10  ;;  %v2361_v57 = vadd.f32 %v2360_v38, %v2359_v58  ;;  %v1975_v29 = vsel %vm1849_vm2, %v3027_v55, 0.0  ;;  %v1977_v9 = vsel %vm1849_vm2, %v3535_v41, 0.0  ;;  %v4081_v10 = vpop.f32.mrb[51].mxu1 }
 0x159   :  { %v2860_v58 = vpack.c.bf16 %v3807_v39, %v3807_v39  ;;  %1809 = vst.msk [vmem:[%s4659_s2 + $0x160] sm:$0xf] %vm1720_vm1, %v2857_v5  ;;  %v2858_v40 = vpack.c.bf16 %v3811_v50, %v3811_v50  ;;  %v2364_v55 = vsel %vm1849_vm2, %v2174_v12, 0.0  ;;  %v2366_v8 = vsel %vm1849_vm2, %v2175_v3, 0.0 }
 0x15a   :  { %v1976_v35 = vadd.f32 %v1975_v29, %v1974_v4  ;;  %v2363_v38 = vadd.f32 %v2362_v52, %v2361_v57  ;;  %v2176_v41 = vmul.f32 %v3547_v51, %v3547_v51  ;;  %v2863_v4 = vpack.c.bf16 %v3839_v19, %v3839_v19 }
 0x15b   :  { %1812 = vst.msk [vmem:[%s4659_s2 + $0x16c] sm:$0xf] %vm1720_vm1, %v2860_v58  ;;  %1810 = vst.msk [vmem:[%s4659_s2 + $0x164] sm:$0xf] %vm1720_vm1, %v2858_v40  ;;  %v2177_v12 = vmul.f32 %v3529_v36, %v3529_v36  ;;  %v1979_v3 = vsel %vm1849_vm2, %v3547_v51, 0.0  ;;  %v2861_v52 = vpack.c.bf16 %v3843_v25, %v3843_v25  ;;  %v1981_v29 = vsel %vm1849_vm2, %v3529_v36, 0.0 }
 0x15c   :  { %v2365_v57 = vadd.f32 %v2364_v55, %v2363_v38  ;;  %v1978_v5 = vadd.f32 %v1977_v9, %v1976_v35  ;;  %1815 = vst.msk [vmem:[%s4659_s2 + $0x178] sm:$0xf] %vm1720_vm1, %v2863_v4  ;;  %v2864_v35 = vpack.c.bf16 %v3851_v34, %v3851_v34  ;;  %v4117_v38 = vpop.f32.mrb[52].mxu1  ;;  %v2178_v51 = vmul.f32 %v3539_v46, %v3539_v46 }
 0x15d   :  { %v2368_v40 = vsel %vm1849_vm2, %v2176_v41, 0.0  ;;  %v2179_v55 = vmul.f32 %v3579_v11, %v3579_v11  ;;  %1813 = vst.msk [vmem:[%s4659_s2 + $0x170] sm:$0xf] %vm1720_vm1, %v2861_v52  ;;  %v2862_v36 = vpack.c.bf16 %v3855_v44, %v3855_v44  ;;  %v1985_v52 = vsel %vm1849_vm2, %v3579_v11, 0.0 }
 0x15e   :  { %v2367_v9 = vadd.f32 %v2366_v8, %v2365_v57  ;;  %v1980_v58 = vadd.f32 %v1979_v3, %v1978_v5  ;;  %v4130_v8 = vpop.f32.mrb[53].mxu1  ;;  %1816 = vst.msk [vmem:[%s4659_s2 + $0x17c] sm:$0xf] %vm1720_vm1, %v2864_v35  ;;  %v2370_v5 = vsel %vm1849_vm2, %v2177_v12, 0.0  ;;  %v1983_v3 = vsel %vm1849_vm2, %v3539_v46, 0.0 }
 0x15f   :  { %v4136_v41 = vpop.f32.mrb[54].mxu1  ;;  %1814 = vst.msk [vmem:[%s4659_s2 + $0x174] sm:$0xf] %vm1720_vm1, %v2862_v36  ;;  %v2865_v12 = vpack.c.bf16 %v3887_v24, %v3887_v24  ;;  %v2372_v46 = vsel %vm1849_vm2, %v2178_v51, 0.0  ;;  %v2180_v11 = vmul.f32 %v3591_v21, %v3591_v21  ;;  %v2868_v36 = vpack.c.bf16 %v3895_v37, %v3895_v37 }
 0x160   :  { %v1982_v4 = vadd.f32 %v1981_v29, %v1980_v58  ;;  %v2369_v57 = vadd.f32 %v2368_v40, %v2367_v9  ;;  %v2867_v29 = vpack.c.bf16 %v3883_v15, %v3883_v15  ;;  %v4149_v9 = vpop.f32.mrb[55].mxu1  ;;  %v2374_v40 = vsel %vm1849_vm2, %v2179_v55, 0.0 }
 0x161   :  { %1817 = vst.msk [vmem:[%s4659_s2 + $0x180] sm:$0xf] %vm1720_vm1, %v2865_v12  ;;  %v2181_v51 = vmul.f32 %v3575_v7, %v3575_v7  ;;  %v1987_v55 = vsel %vm1849_vm2, %v3591_v21, 0.0  ;;  %1820 = vst.msk [vmem:[%s4659_s2 + $0x18c] sm:$0xf] %vm1720_vm1, %v2868_v36  ;;  %v2182_v21 = vmul.f32 %v3587_v16, %v3587_v16  ;;  %v2376_v12 = vsel %vm1849_vm2, %v2180_v11, 0.0 }
 0x162   :  { %v2371_v58 = vadd.f32 %v2370_v5, %v2369_v57  ;;  %v1984_v35 = vadd.f32 %v1983_v3, %v1982_v4  ;;  %1819 = vst.msk [vmem:[%s4659_s2 + $0x188] sm:$0xf] %vm1720_vm1, %v2867_v29  ;;  %v2866_v5 = vpack.c.bf16 %v3899_v49, %v3899_v49  ;;  %v1989_v3 = vsel %vm1849_vm2, %v3575_v7, 0.0 }
 0x163   :  { %v2869_v7 = vpack.c.bf16 %v3931_v30, %v3931_v30 }
 0x164   :  { %v1986_v57 = vadd.f32 %v1985_v52, %v1984_v35  ;;  %v2373_v4 = vadd.f32 %v2372_v46, %v2371_v58  ;;  %v2871_v58 = vpack.c.bf16 %v3927_v22, %v3927_v22  ;;  %v4181_v35 = vpop.f32.mrb[56].mxu1  ;;  %v2183_v46 = vmul.f32 %v3623_v48, %v3623_v48  ;;  %1818 = vst.msk [vmem:[%s4659_s2 + $0x184] sm:$0xf] %vm1720_vm1, %v2866_v5 }
 0x165   :  { %v1993_v5 = vsel %vm1849_vm2, %v3623_v48, 0.0  ;;  %1821 = vst.msk [vmem:[%s4659_s2 + $0x190] sm:$0xf] %vm1720_vm1, %v2869_v7  ;;  %v2184_v48 = vmul.f32 %v3635_v59, %v3635_v59  ;;  %v2875_v7 = vpack.c.bf16 %v3971_v31, %v3971_v31 }
 0x166   :  { %v2375_v52 = vadd.f32 %v2374_v40, %v2373_v4  ;;  %v1988_v29 = vadd.f32 %v1987_v55, %v1986_v57  ;;  %v4194_v40 = vpop.f32.mrb[57].mxu1  ;;  %1823 = vst.msk [vmem:[%s4659_s2 + $0x198] sm:$0xf] %vm1720_vm1, %v2871_v58  ;;  %v2378_v4 = vsel %vm1849_vm2, %v2181_v51, 0.0  ;;  %v1991_v55 = vsel %vm1849_vm2, %v3587_v16, 0.0 }
 0x167   :  { %v4200_v11 = vpop.f32.mrb[58].mxu1  ;;  %v2870_v51 = vpack.c.bf16 %v3943_v56, %v3943_v56  ;;  %v2380_v16 = vsel %vm1849_vm2, %v2182_v21, 0.0  ;;  %v2185_v21 = vmul.f32 %v3619_v43, %v3619_v43  ;;  %1827 = vst.msk [vmem:[%s4659_s2 + $0x1a8] sm:$0xf] %vm1720_vm1, %v2875_v7 }
 0x168   :  { %v1990_v36 = vadd.f32 %v1989_v3, %v1988_v29  ;;  %v2377_v57 = vadd.f32 %v2376_v12, %v2375_v52  ;;  %v2872_v3 = vpack.c.bf16 %v3939_v53, %v3939_v53  ;;  %v4213_v52 = vpop.f32.mrb[59].mxu1  ;;  %v2382_v12 = vsel %vm1849_vm2, %v2183_v46, 0.0 }
 0x169   :  { %1822 = vst.msk [vmem:[%s4659_s2 + $0x194] sm:$0xf] %vm1720_vm1, %v2870_v51  ;;  %v1995_v46 = vsel %vm1849_vm2, %v3635_v59, 0.0  ;;  %v2186_v59 = vmul.f32 %v3631_v54, %v3631_v54  ;;  %v2384_v51 = vsel %vm1849_vm2, %v2184_v48, 0.0 }
 0x16a   :  { %v2379_v29 = vadd.f32 %v2378_v4, %v2377_v57  ;;  %v1992_v58 = vadd.f32 %v1991_v55, %v1990_v36  ;;  %1824 = vst.msk [vmem:[%s4659_s2 + $0x19c] sm:$0xf] %vm1720_vm1, %v2872_v3  ;;  %v2873_v4 = vpack.c.bf16 %v3975_v0, %v3975_v0  ;;  %v1997_v55 = vsel %vm1849_vm2, %v3619_v43, 0.0 }
 0x16b   :  { %v2874_v43 = vpack.c.bf16 %v3987_v14, %v3987_v14 }
 0x16c   :  { %v1994_v57 = vadd.f32 %v1993_v5, %v1992_v58  ;;  %v2381_v36 = vadd.f32 %v2380_v16, %v2379_v29  ;;  %v2876_v29 = vpack.c.bf16 %v3983_v60, %v3983_v60  ;;  %v4245_v58 = vpop.f32.mrb[60].mxu1  ;;  %v2187_v16 = vmul.f32 %v3667_v23, %v3667_v23  ;;  %1825 = vst.msk [vmem:[%s4659_s2 + $0x1a0] sm:$0xf] %vm1720_vm1, %v2873_v4 }
 0x16d   :  { %v2001_v4 = vsel %vm1849_vm2, %v3667_v23, 0.0  ;;  %1826 = vst.msk [vmem:[%s4659_s2 + $0x1a4] sm:$0xf] %vm1720_vm1, %v2874_v43  ;;  %v2188_v23 = vmul.f32 %v3679_v33, %v3679_v33  ;;  %v2880_v43 = vpack.c.bf16 %v4027_v63, %v4027_v63 }
 0x16e   :  { %v2383_v5 = vadd.f32 %v2382_v12, %v2381_v36  ;;  %v1996_v3 = vadd.f32 %v1995_v46, %v1994_v57  ;;  %v4258_v12 = vpop.f32.mrb[61].mxu1  ;;  %1828 = vst.msk [vmem:[%s4659_s2 + $0x1ac] sm:$0xf] %vm1720_vm1, %v2876_v29  ;;  %v2386_v36 = vsel %vm1849_vm2, %v2185_v21, 0.0  ;;  %v1999_v46 = vsel %vm1849_vm2, %v3631_v54, 0.0 }
 0x16f   :  { %v4264_v48 = vpop.f32.mrb[62].mxu1  ;;  %v2877_v21 = vpack.c.bf16 %v4019_v42, %v4019_v42  ;;  %v2388_v54 = vsel %vm1849_vm2, %v2186_v59, 0.0  ;;  %v2189_v59 = vmul.f32 %v3663_v18, %v3663_v18  ;;  %1832 = vst.msk [vmem:[%s4659_s2 + $0x1bc] sm:$0xf] %vm1720_vm1, %v2880_v43  ;;  %v2007_v43 = vsel %vm1849_vm2, %v3675_v28, 0.0 }
 0x170   :  { %v1998_v7 = vadd.f32 %v1997_v55, %v1996_v3  ;;  %v2385_v57 = vadd.f32 %v2384_v51, %v2383_v5  ;;  %v2879_v55 = vpack.c.bf16 %v4015_v17, %v4015_v17  ;;  %v4277_v5 = vpop.f32.mrb[63].mxu1  ;;  %v2390_v51 = vsel %vm1849_vm2, %v2187_v16, 0.0 }
 0x171   :  { %1829 = vst.msk [vmem:[%s4659_s2 + $0x1b0] sm:$0xf] %vm1720_vm1, %v2877_v21  ;;  %v2003_v16 = vsel %vm1849_vm2, %v3679_v33, 0.0  ;;  %v2392_v33 = vsel %vm1849_vm2, %v2188_v23, 0.0  ;;  %v2191_v21 = vmul.f32 %v3711_v1, %v3711_v1  ;;  %v2394_v23 = vsel %vm1849_vm2, %v2189_v59, 0.0 }
 0x172   :  { %v2387_v3 = vadd.f32 %v2386_v36, %v2385_v57  ;;  %v2000_v29 = vadd.f32 %v1999_v46, %v1998_v7  ;;  %1831 = vst.msk [vmem:[%s4659_s2 + $0x1b8] sm:$0xf] %vm1720_vm1, %v2879_v55  ;;  %v2878_v36 = vpack.c.bf16 %v4031_v45, %v4031_v45  ;;  %v2005_v46 = vsel %vm1849_vm2, %v3663_v18, 0.0 }
 0x173   :  { %v2881_v18 = vpack.c.bf16 %v4065_v20, %v4065_v20 }
 0x174   :  { %v2002_v57 = vadd.f32 %v2001_v4, %v2000_v29  ;;  %v2389_v7 = vadd.f32 %v2388_v54, %v2387_v3  ;;  %v2883_v3 = vpack.c.bf16 %v4059_v26, %v4059_v26  ;;  %v2190_v29 = vmul.f32 %v3675_v28, %v3675_v28  ;;  %1830 = vst.msk [vmem:[%s4659_s2 + $0x1b4] sm:$0xf] %vm1720_vm1, %v2878_v36 }
 0x175   :  { %1833 = vst.msk [vmem:[%s4659_s2 + $0x1c0] sm:$0xf] %vm1720_vm1, %v2881_v18  ;;  %v2398_v28 = vsel %vm1849_vm2, %v2191_v21, 0.0  ;;  %v2885_v21 = vpack.c.bf16 %v4130_v8, %v4130_v8  ;;  %v2013_v18 = vsel %vm1849_vm2, %v3707_v61, 0.0 }
 0x176   :  { %v2391_v4 = vadd.f32 %v2390_v51, %v2389_v7  ;;  %v2004_v55 = vadd.f32 %v2003_v16, %v2002_v57  ;;  %1835 = vst.msk [vmem:[%s4659_s2 + $0x1c8] sm:$0xf] %vm1720_vm1, %v2883_v3  ;;  %v2009_v57 = vsel %vm1849_vm2, %v3711_v1, 0.0  ;;  %v2884_v7 = vpack.c.bf16 %v4073_v2, %v4073_v2 }
 0x177   :  { %v2396_v59 = vsel %vm1849_vm2, %v2190_v29, 0.0  ;;  %v2192_v1 = vmul.f32 %v3723_v13, %v3723_v13  ;;  %v2193_v29 = vmul.f32 %v3707_v61, %v3707_v61  ;;  %1837 = vst.msk [vmem:[%s4659_s2 + $0x1d0] sm:$0xf] %vm1720_vm1, %v2885_v21  ;;  %v2886_v61 = vpack.c.bf16 %v4149_v9, %v4149_v9 }
 0x178   :  { %v2006_v54 = vadd.f32 %v2005_v46, %v2004_v55  ;;  %v2393_v51 = vadd.f32 %v2392_v33, %v2391_v4  ;;  %v2882_v46 = vpack.c.bf16 %v4081_v10, %v4081_v10  ;;  %1836 = vst.msk [vmem:[%s4659_s2 + $0x1cc] sm:$0xf] %vm1720_vm1, %v2884_v7  ;;  %v2887_v4 = vpack.c.bf16 %v4117_v38, %v4117_v38 }
 0x179   :  { %v2011_v33 = vsel %vm1849_vm2, %v3723_v13, 0.0  ;;  %v2400_v13 = vsel %vm1849_vm2, %v2192_v1, 0.0  ;;  %1838 = vst.msk [vmem:[%s4659_s2 + $0x1d4] sm:$0xf] %vm1720_vm1, %v2886_v61  ;;  %v2895_v61 = vpack.c.bf16 %v4245_v58, %v4245_v58 }
 0x17a   :  { %v2395_v16 = vadd.f32 %v2394_v23, %v2393_v51  ;;  %v2008_v36 = vadd.f32 %v2007_v43, %v2006_v54  ;;  %1834 = vst.msk [vmem:[%s4659_s2 + $0x1c4] sm:$0xf] %vm1720_vm1, %v2882_v46  ;;  %1839 = vst.msk [vmem:[%s4659_s2 + $0x1d8] sm:$0xf] %vm1720_vm1, %v2887_v4  ;;  %v2888_v23 = vpack.c.bf16 %v4136_v41, %v4136_v41  ;;  %v2015_v46 = vsel %vm1849_vm2, %v3719_v6, 0.0 }
 0x17b   :  { %v2194_v43 = vmul.f32 %v3719_v6, %v3719_v6  ;;  %1847 = vst.msk [vmem:[%s4659_s2 + $0x1f8] sm:$0xf] %vm1720_vm1, %v2895_v61  ;;  %v2202_v61 = vmul.f32 %v3807_v39, %v3807_v39 }
 0x17c   :  { %v2010_v55 = vadd.f32 %v2009_v57, %v2008_v36  ;;  %v2397_v3 = vadd.f32 %v2396_v59, %v2395_v16  ;;  %v2195_v57 = vmul.f32 %v3755_v47, %v3755_v47  ;;  %1840 = vst.msk [vmem:[%s4659_s2 + $0x1dc] sm:$0xf] %vm1720_vm1, %v2888_v23  ;;  %v2402_v36 = vsel %vm1849_vm2, %v2193_v29, 0.0 }
 0x17d   :  { %v2017_v59 = vsel %vm1849_vm2, %v3755_v47, 0.0  ;;  %v2196_v47 = vmul.f32 %v3767_v62, %v3767_v62  ;;  %v2892_v29 = vpack.c.bf16 %v4200_v11, %v4200_v11  ;;  %v2890_v23 = vpack.c.bf16 %v4213_v52, %v4213_v52 }
 0x17e   :  { %v2399_v54 = vadd.f32 %v2398_v28, %v2397_v3  ;;  %v2012_v51 = vadd.f32 %v2011_v33, %v2010_v55  ;;  %v2891_v28 = vpack.c.bf16 %v4181_v35, %v4181_v35  ;;  %v2889_v55 = vpack.c.bf16 %v4194_v40, %v4194_v40 }
 0x17f   :  { %v2404_v3 = vsel %vm1849_vm2, %v2194_v43, 0.0  ;;  %v2406_v6 = vsel %vm1849_vm2, %v2195_v57, 0.0  ;;  %1844 = vst.msk [vmem:[%s4659_s2 + $0x1ec] sm:$0xf] %vm1720_vm1, %v2892_v29  ;;  %1842 = vst.msk [vmem:[%s4659_s2 + $0x1e4] sm:$0xf] %vm1720_vm1, %v2890_v23  ;;  %v2894_v29 = vpack.c.bf16 %v4277_v5, %v4277_v5 }
 0x180   :  { %v2014_v7 = vadd.f32 %v2013_v18, %v2012_v51  ;;  %v2401_v16 = vadd.f32 %v2400_v13, %v2399_v54  ;;  %1843 = vst.msk [vmem:[%s4659_s2 + $0x1e8] sm:$0xf] %vm1720_vm1, %v2891_v28  ;;  %1841 = vst.msk [vmem:[%s4659_s2 + $0x1e0] sm:$0xf] %vm1720_vm1, %v2889_v55  ;;  %v4667_v18 = vld [vmem:[#allocation2_spill] sm:$0xff]  ;;  %v2019_v51 = vsel %vm1849_vm2, %v3767_v62, 0.0 }
 0x181   :  { %v2197_v54 = vmul.f32 %v4667_v18, %v4667_v18  ;;  %v2021_v43 = vsel %vm1849_vm2, %v4667_v18, 0.0  ;;  %v2408_v62 = vsel %vm1849_vm2, %v2196_v47, 0.0  ;;  %v2025_v55 = vsel %vm1849_vm2, %v3799_v32, 0.0  ;;  %1846 = vst.msk [vmem:[%s4659_s2 + $0x1f4] sm:$0xf] %vm1720_vm1, %v2894_v29 }
 0x182   :  { %v2403_v1 = vadd.f32 %v2402_v36, %v2401_v16  ;;  %v2016_v4 = vadd.f32 %v2015_v46, %v2014_v7  ;;  %v4668_v7 = vld [vmem:[#allocation3_spill] sm:$0xff]  ;;  %v2199_v36 = vmul.f32 %v3799_v32, %v3799_v32  ;;  %v2893_v46 = vpack.c.bf16 %v4258_v12, %v4258_v12 }
 0x183   :  { %v2198_v16 = vmul.f32 %v4668_v7, %v4668_v7  ;;  %v2200_v32 = vmul.f32 %v3811_v50, %v3811_v50  ;;  %v2027_v23 = vsel %vm1849_vm2, %v3811_v50, 0.0  ;;  %v2031_v50 = vsel %vm1849_vm2, %v3807_v39, 0.0 }
 0x184   :  { %v2018_v33 = vadd.f32 %v2017_v59, %v2016_v4  ;;  %v2405_v21 = vadd.f32 %v2404_v3, %v2403_v1  ;;  %v2410_v1 = vsel %vm1849_vm2, %v2197_v54, 0.0  ;;  %v2023_v4 = vsel %vm1849_vm2, %v4668_v7, 0.0  ;;  %1845 = vst.msk [vmem:[%s4659_s2 + $0x1f0] sm:$0xf] %vm1720_vm1, %v2893_v46 }
 0x185   :  { %v2896_v3 = vpack.c.bf16 %v4264_v48, %v4264_v48  ;;  %v2416_v7 = vsel %vm1849_vm2, %v2200_v32, 0.0  ;;  %v2035_v39 = vsel %vm1849_vm2, %v3855_v44, 0.0 }
 0x186   :  { %v2407_v13 = vadd.f32 %v2406_v6, %v2405_v21  ;;  %v2020_v57 = vadd.f32 %v2019_v51, %v2018_v33  ;;  %v2412_v33 = vsel %vm1849_vm2, %v2198_v16, 0.0  ;;  %v2414_v21 = vsel %vm1849_vm2, %v2199_v36, 0.0 }
 0x187   :  { %1848 = vst.msk [vmem:[%s4659_s2 + $0x1fc] sm:$0xf] %vm1720_vm1, %v2896_v3  ;;  %v2201_v51 = vmul.f32 %v3795_v27, %v3795_v27  ;;  %v2203_v16 = vmul.f32 %v3843_v25, %v3843_v25 }
 0x188   :  { %v2022_v59 = vadd.f32 %v2021_v43, %v2020_v57  ;;  %v2409_v28 = vadd.f32 %v2408_v62, %v2407_v13  ;;  %v2029_v57 = vsel %vm1849_vm2, %v3795_v27, 0.0 }
 0x189   :  { %v2418_v46 = vsel %vm1849_vm2, %v2201_v51, 0.0 }
 0x18a   :  { %v2411_v6 = vadd.f32 %v2410_v1, %v2409_v28  ;;  %v2024_v47 = vadd.f32 %v2023_v4, %v2022_v59  ;;  %v2033_v59 = vsel %vm1849_vm2, %v3843_v25, 0.0  ;;  %v2420_v1 = vsel %vm1849_vm2, %v2202_v61, 0.0 }
 0x18b   :  { %v2422_v4 = vsel %vm1849_vm2, %v2203_v16, 0.0  ;;  %v2037_v25 = vsel %vm1849_vm2, %v3839_v19, 0.0 }
 0x18c   :  { %v2026_v18 = vadd.f32 %v2025_v55, %v2024_v47  ;;  %v2413_v54 = vadd.f32 %v2412_v33, %v2411_v6  ;;  %v2204_v55 = vmul.f32 %v3855_v44, %v3855_v44  ;;  %v2205_v47 = vmul.f32 %v3839_v19, %v3839_v19 }
 0x18d   :  { %v2039_v44 = vsel %vm1849_vm2, %v3851_v34, 0.0 }
 0x18e   :  { %v2415_v43 = vadd.f32 %v2414_v21, %v2413_v54  ;;  %v2028_v13 = vadd.f32 %v2027_v23, %v2026_v18  ;;  %v2206_v21 = vmul.f32 %v3851_v34, %v3851_v34  ;;  %v2424_v32 = vsel %vm1849_vm2, %v2204_v55, 0.0 }
 0x18f   :  { %v2207_v18 = vmul.f32 %v3887_v24, %v3887_v24  ;;  %v2426_v23 = vsel %vm1849_vm2, %v2205_v47, 0.0  ;;  %v2043_v34 = vsel %vm1849_vm2, %v3899_v49, 0.0 }
 0x190   :  { %v2030_v62 = vadd.f32 %v2029_v57, %v2028_v13  ;;  %v2417_v36 = vadd.f32 %v2416_v7, %v2415_v43  ;;  %v2041_v43 = vsel %vm1849_vm2, %v3887_v24, 0.0  ;;  %v2428_v57 = vsel %vm1849_vm2, %v2206_v21, 0.0 }
 0x191   :  { %v2430_v61 = vsel %vm1849_vm2, %v2207_v18, 0.0  ;;  %v2208_v7 = vmul.f32 %v3899_v49, %v3899_v49  ;;  %v2045_v24 = vsel %vm1849_vm2, %v3883_v15, 0.0  ;;  %v2047_v49 = vsel %vm1849_vm2, %v3895_v37, 0.0 }
 0x192   :  { %v2419_v28 = vadd.f32 %v2418_v46, %v2417_v36  ;;  %v2032_v27 = vadd.f32 %v2031_v50, %v2030_v62  ;;  %v2209_v36 = vmul.f32 %v3883_v15, %v3883_v15  ;;  %v2213_v21 = vmul.f32 %v3927_v22, %v3927_v22 }
 0x194   :  { %v2034_v3 = vadd.f32 %v2033_v59, %v2032_v27  ;;  %v2421_v6 = vadd.f32 %v2420_v1, %v2419_v28  ;;  %v2210_v59 = vmul.f32 %v3895_v37, %v3895_v37  ;;  %v2432_v28 = vsel %vm1849_vm2, %v2208_v7, 0.0 }
 0x195   :  { %v2211_v27 = vmul.f32 %v3931_v30, %v3931_v30  ;;  %v2434_v55 = vsel %vm1849_vm2, %v2209_v36, 0.0  ;;  %v2051_v37 = vsel %vm1849_vm2, %v3943_v56, 0.0 }
 0x196   :  { %v2423_v29 = vadd.f32 %v2422_v4, %v2421_v6  ;;  %v2036_v33 = vadd.f32 %v2035_v39, %v2034_v3  ;;  %v2049_v3 = vsel %vm1849_vm2, %v3931_v30, 0.0  ;;  %v2436_v47 = vsel %vm1849_vm2, %v2210_v59, 0.0 }
 0x197   :  { %v2438_v39 = vsel %vm1849_vm2, %v2211_v27, 0.0  ;;  %v2053_v30 = vsel %vm1849_vm2, %v3927_v22, 0.0 }
 0x198   :  { %v2038_v54 = vadd.f32 %v2037_v25, %v2036_v33  ;;  %v2425_v51 = vadd.f32 %v2424_v32, %v2423_v29  ;;  %v2212_v29 = vmul.f32 %v3943_v56, %v3943_v56  ;;  %v2055_v56 = vsel %vm1849_vm2, %v3939_v53, 0.0 }
 0x19a   :  { %v2427_v13 = vadd.f32 %v2426_v23, %v2425_v51  ;;  %v2040_v19 = vadd.f32 %v2039_v44, %v2038_v54  ;;  %v2214_v54 = vmul.f32 %v3939_v53, %v3939_v53  ;;  %v2440_v51 = vsel %vm1849_vm2, %v2212_v29, 0.0 }
 0x19b   :  { %v2215_v23 = vmul.f32 %v3975_v0, %v3975_v0  ;;  %v2059_v53 = vsel %vm1849_vm2, %v3987_v14, 0.0  ;;  %v2221_v29 = vmul.f32 %v4015_v17, %v4015_v17 }
 0x19c   :  { %v2042_v16 = vadd.f32 %v2041_v43, %v2040_v19  ;;  %v2429_v62 = vadd.f32 %v2428_v57, %v2427_v13  ;;  %v2442_v13 = vsel %vm1849_vm2, %v2213_v21, 0.0  ;;  %v2057_v19 = vsel %vm1849_vm2, %v3975_v0, 0.0 }
 0x19d   :  { %v2446_v7 = vsel %vm1849_vm2, %v2215_v23, 0.0  ;;  %v2061_v0 = vsel %vm1849_vm2, %v3971_v31, 0.0  ;;  %v2222_v21 = vmul.f32 %v4027_v63, %v4027_v63 }
 0x19e   :  { %v2431_v46 = vadd.f32 %v2430_v61, %v2429_v62  ;;  %v2044_v50 = vadd.f32 %v2043_v34, %v2042_v16  ;;  %v2444_v61 = vsel %vm1849_vm2, %v2214_v54, 0.0  ;;  %v2216_v16 = vmul.f32 %v3987_v14, %v3987_v14 }
 0x19f   :  { %v2217_v34 = vmul.f32 %v3971_v31, %v3971_v31  ;;  %v2063_v14 = vsel %vm1849_vm2, %v3983_v60, 0.0  ;;  %v2458_v54 = vsel %vm1849_vm2, %v2221_v29, 0.0 }
 0x1a0   :  { %v2046_v1 = vadd.f32 %v2045_v24, %v2044_v50  ;;  %v2433_v4 = vadd.f32 %v2432_v28, %v2431_v46  ;;  %v2218_v24 = vmul.f32 %v3983_v60, %v3983_v60  ;;  %v2448_v59 = vsel %vm1849_vm2, %v2216_v16, 0.0 }
 0x1a1   :  { %v2219_v28 = vmul.f32 %v4019_v42, %v4019_v42  ;;  %v2067_v60 = vsel %vm1849_vm2, %v4031_v45, 0.0 }
 0x1a2   :  { %v2435_v6 = vadd.f32 %v2434_v55, %v2433_v4  ;;  %v2048_v15 = vadd.f32 %v2047_v49, %v2046_v1  ;;  %v2450_v4 = vsel %vm1849_vm2, %v2217_v34, 0.0  ;;  %v2065_v55 = vsel %vm1849_vm2, %v4019_v42, 0.0 }
 0x1a3   :  { %v2069_v42 = vsel %vm1849_vm2, %v4015_v17, 0.0 }
 0x1a4   :  { %v2050_v33 = vadd.f32 %v2049_v3, %v2048_v15  ;;  %v2437_v25 = vadd.f32 %v2436_v47, %v2435_v6  ;;  %v2452_v3 = vsel %vm1849_vm2, %v2218_v24, 0.0  ;;  %v2454_v6 = vsel %vm1849_vm2, %v2219_v28, 0.0 }
 0x1a5   :  { %v2220_v15 = vmul.f32 %v4031_v45, %v4031_v45  ;;  %v2071_v45 = vsel %vm1849_vm2, %v4027_v63, 0.0  ;;  %v2075_v63 = vsel %vm1849_vm2, %v4081_v10, 0.0 }
 0x1a6   :  { %v2439_v32 = vadd.f32 %v2438_v39, %v2437_v25  ;;  %v2052_v18 = vadd.f32 %v2051_v37, %v2050_v33 }
 0x1a7   :  { %v2456_v37 = vsel %vm1849_vm2, %v2220_v15, 0.0 }
 0x1a8   :  { %v2054_v44 = vadd.f32 %v2053_v30, %v2052_v18  ;;  %v2441_v43 = vadd.f32 %v2440_v51, %v2439_v32  ;;  %v2223_v32 = vmul.f32 %v4065_v20, %v4065_v20  ;;  %v2073_v51 = vsel %vm1849_vm2, %v4065_v20, 0.0 }
 0x1a9   :  { %v2077_v20 = vsel %vm1849_vm2, %v4059_v26, 0.0 }
 0x1aa   :  { %v2443_v57 = vadd.f32 %v2442_v13, %v2441_v43  ;;  %v2056_v22 = vadd.f32 %v2055_v56, %v2054_v44  ;;  %v2460_v44 = vsel %vm1849_vm2, %v2222_v21, 0.0  ;;  %v2462_v43 = vsel %vm1849_vm2, %v2223_v32, 0.0 }
 0x1ab   :  { %v2224_v13 = vmul.f32 %v4081_v10, %v4081_v10  ;;  %v2079_v10 = vsel %vm1849_vm2, %v4073_v2, 0.0  ;;  %v2233_v21 = vmul.f32 %v4181_v35, %v4181_v35 }
 0x1ac   :  { %v2058_v62 = vadd.f32 %v2057_v19, %v2056_v22  ;;  %v2445_v36 = vadd.f32 %v2444_v61, %v2443_v57  ;;  %v2225_v57 = vmul.f32 %v4059_v26, %v4059_v26 }
 0x1ad   :  { %v2464_v16 = vsel %vm1849_vm2, %v2224_v13, 0.0 }
 0x1ae   :  { %v2447_v46 = vadd.f32 %v2446_v7, %v2445_v36  ;;  %v2060_v50 = vadd.f32 %v2059_v53, %v2058_v62  ;;  %v2226_v7 = vmul.f32 %v4073_v2, %v4073_v2  ;;  %v2227_v62 = vmul.f32 %v4130_v8, %v4130_v8 }
 0x1af   :  { %v2466_v53 = vsel %vm1849_vm2, %v2225_v57, 0.0  ;;  %v2083_v2 = vsel %vm1849_vm2, %v4149_v9, 0.0 }
 0x1b0   :  { %v2062_v27 = vadd.f32 %v2061_v0, %v2060_v50  ;;  %v2449_v1 = vadd.f32 %v2448_v59, %v2447_v46  ;;  %v2081_v46 = vsel %vm1849_vm2, %v4130_v8, 0.0  ;;  %v2468_v0 = vsel %vm1849_vm2, %v2226_v7, 0.0 }
 0x1b1   :  { %v2470_v24 = vsel %vm1849_vm2, %v2227_v62, 0.0  ;;  %v2228_v59 = vmul.f32 %v4149_v9, %v4149_v9  ;;  %v2085_v8 = vsel %vm1849_vm2, %v4117_v38, 0.0  ;;  %v2087_v9 = vsel %vm1849_vm2, %v4136_v41, 0.0 }
 0x1b2   :  { %v2451_v49 = vadd.f32 %v2450_v4, %v2449_v1  ;;  %v2064_v31 = vadd.f32 %v2063_v14, %v2062_v27  ;;  %v2229_v1 = vmul.f32 %v4117_v38, %v4117_v38 }
 0x1b4   :  { %v2066_v47 = vadd.f32 %v2065_v55, %v2064_v31  ;;  %v2453_v39 = vadd.f32 %v2452_v3, %v2451_v49  ;;  %v2230_v55 = vmul.f32 %v4136_v41, %v4136_v41  ;;  %v2472_v49 = vsel %vm1849_vm2, %v2228_v59, 0.0 }
 0x1b5   :  { %v2231_v31 = vmul.f32 %v4194_v40, %v4194_v40  ;;  %v2474_v15 = vsel %vm1849_vm2, %v2229_v1, 0.0  ;;  %v2091_v41 = vsel %vm1849_vm2, %v4213_v52, 0.0 }
 0x1b6   :  { %v2455_v33 = vadd.f32 %v2454_v6, %v2453_v39  ;;  %v2068_v25 = vadd.f32 %v2067_v60, %v2066_v47  ;;  %v2089_v47 = vsel %vm1849_vm2, %v4194_v40, 0.0  ;;  %v2476_v29 = vsel %vm1849_vm2, %v2230_v55, 0.0 }
 0x1b7   :  { %v2478_v60 = vsel %vm1849_vm2, %v2231_v31, 0.0  ;;  %v2093_v40 = vsel %vm1849_vm2, %v4181_v35, 0.0 }
 0x1b8   :  { %v2070_v18 = vadd.f32 %v2069_v42, %v2068_v25  ;;  %v2457_v30 = vadd.f32 %v2456_v37, %v2455_v33  ;;  %v2232_v33 = vmul.f32 %v4213_v52, %v4213_v52  ;;  %v2095_v52 = vsel %vm1849_vm2, %v4200_v11, 0.0 }
 0x1ba   :  { %v2459_v23 = vadd.f32 %v2458_v54, %v2457_v30  ;;  %v2072_v17 = vadd.f32 %v2071_v45, %v2070_v18  ;;  %v2234_v18 = vmul.f32 %v4200_v11, %v4200_v11  ;;  %v2480_v30 = vsel %vm1849_vm2, %v2232_v33, 0.0 }
 0x1bb   :  { %v2235_v54 = vmul.f32 %v4258_v12, %v4258_v12  ;;  %v2099_v11 = vsel %vm1849_vm2, %v4277_v5, 0.0 }
 0x1bc   :  { %v2074_v56 = vadd.f32 %v2073_v51, %v2072_v17  ;;  %v2461_v19 = vadd.f32 %v2460_v44, %v2459_v23  ;;  %v2482_v23 = vsel %vm1849_vm2, %v2233_v21, 0.0  ;;  %v2097_v17 = vsel %vm1849_vm2, %v4258_v12, 0.0 }
 0x1bd   :  { %v2486_v13 = vsel %vm1849_vm2, %v2235_v54, 0.0  ;;  %v2101_v12 = vsel %vm1849_vm2, %v4245_v58, 0.0 }
 0x1be   :  { %v2463_v22 = vadd.f32 %v2462_v43, %v2461_v19  ;;  %v2076_v61 = vadd.f32 %v2075_v63, %v2074_v56  ;;  %v2484_v43 = vsel %vm1849_vm2, %v2234_v18, 0.0  ;;  %v2236_v56 = vmul.f32 %v4277_v5, %v4277_v5 }
 0x1bf   :  { %v2237_v63 = vmul.f32 %v4245_v58, %v4245_v58 }
 0x1c0   :  { %v2078_v36 = vadd.f32 %v2077_v20, %v2076_v61  ;;  %v2465_v34 = vadd.f32 %v2464_v16, %v2463_v22  ;;  %v2238_v20 = vmul.f32 %v4264_v48, %v4264_v48  ;;  %v2488_v7 = vsel %vm1849_vm2, %v2236_v56, 0.0 }
 0x1c2   :  { %v2467_v50 = vadd.f32 %v2466_v53, %v2465_v34  ;;  %v2080_v26 = vadd.f32 %v2079_v10, %v2078_v36  ;;  %v2490_v36 = vsel %vm1849_vm2, %v2237_v63, 0.0  ;;  %v2103_v34 = vsel %vm1849_vm2, %v4264_v48, 0.0 }
 0x1c3   :  { %v2492_v5 = vsel %vm1849_vm2, %v2238_v20, 0.0 }
 0x1c4   :  { %v2082_v28 = vadd.f32 %v2081_v46, %v2080_v26  ;;  %v2469_v27 = vadd.f32 %v2468_v0, %v2467_v50 }
 0x1c6   :  { %v2471_v4 = vadd.f32 %v2470_v24, %v2469_v27  ;;  %v2084_v14 = vadd.f32 %v2083_v2, %v2082_v28 }
 0x1c8   :  { %v2086_v3 = vadd.f32 %v2085_v8, %v2084_v14  ;;  %v2473_v6 = vadd.f32 %v2472_v49, %v2471_v4 }
 0x1ca   :  { %v2475_v39 = vadd.f32 %v2474_v15, %v2473_v6  ;;  %v2088_v38 = vadd.f32 %v2087_v9, %v2086_v3 }
 0x1cc   :  { %v2090_v25 = vadd.f32 %v2089_v47, %v2088_v38  ;;  %v2477_v42 = vadd.f32 %v2476_v29, %v2475_v39 }
 0x1ce   :  { %v2479_v37 = vadd.f32 %v2478_v60, %v2477_v42  ;;  %v2092_v32 = vadd.f32 %v2091_v41, %v2090_v25 }
 0x1d0   :  { %v2094_v45 = vadd.f32 %v2093_v40, %v2092_v32  ;;  %v2481_v51 = vadd.f32 %v2480_v30, %v2479_v37 }
 0x1d2   :  { %v2483_v44 = vadd.f32 %v2482_v23, %v2481_v51  ;;  %v2096_v35 = vadd.f32 %v2095_v52, %v2094_v45 }
 0x1d4   :  { %v2098_v19 = vadd.f32 %v2097_v17, %v2096_v35  ;;  %v2485_v57 = vadd.f32 %v2484_v43, %v2483_v44 }
 0x1d6   :  { %v2487_v22 = vadd.f32 %v2486_v13, %v2485_v57  ;;  %v2100_v61 = vadd.f32 %v2099_v11, %v2098_v19 }
 0x1d8   :  { %v2102_v16 = vadd.f32 %v2101_v12, %v2100_v61  ;;  %v2489_v62 = vadd.f32 %v2488_v7, %v2487_v22 }
 0x1da   :  { %v2104_v53 = vadd.f32 %v2103_v34, %v2102_v16  ;;  %v2491_v10 = vadd.f32 %v2490_v36, %v2489_v62 }
 0x1dc   :  { %v2105_v46 = vrot.slane %v2104_v53, 4  ;;  %v2493_v50 = vadd.f32 %v2492_v5, %v2491_v10 }
 0x1de   :  { %v2106_v26 = vadd.f32 %v2105_v46, %v2104_v53  ;;  %v2494_v58 = vrot.slane %v2493_v50, 4 }
 0x1e0   :  { %v2107_v0 = vrot.slane %v2106_v26, 2  ;;  %v2495_v24 = vadd.f32 %v2494_v58, %v2493_v50 }
 0x1e2   :  { %v2108_v59 = vadd.f32 %v2107_v0, %v2106_v26  ;;  %v2496_v28 = vrot.slane %v2495_v24, 2 }
 0x1e4   :  { %v2109_v27 = vrot.slane %v2108_v59, 1  ;;  %v2497_v1 = vadd.f32 %v2496_v28, %v2495_v24 }
 0x1e6   :  { %v2498_v2 = vrot.slane %v2497_v1, 1  ;;  %v2110_v4 = vadd.f32 %v2109_v27, %v2108_v59 }
 0x1e8   :  { %v2499_v14 = vadd.f32 %v2498_v2, %v2497_v1 }
 0x1ea   :  { %v2501_v48 = vsel %vm2500_vm3, %v2110_v4, %v2499_v14 }
 0x1eb   :  { %2503 = vst.msk [vmem:[%s4660_s3] sm:$0x3] %vm2502_vm4, %v2501_v48 }

// kernel: decoder_block.5
= control target key start
LH: loop header
LB: loop body
LE: loop exit
PB: predicated region body
PF: predicated region fallthrough
CT: control target
= control target key end

     0   :  { %s4515_s30 = smov 0   ;;  %s7409_s0 = inlined_call_operand.vmem [shape: bf16[1024,4], index: 0, kind: input, shape index: {}, may-alias: {0,1}]   ;;  %s7410_s1 = inlined_call_operand.vmem [shape: bf16[1024,4], index: 1, kind: input, shape index: {}, may-alias: {0,1}]   ;;  %s7411_s2 = inlined_call_operand.vmem [shape: f32[256,1], index: 2, kind: input, shape index: {}]   ;;  %s7412_s3 = inlined_call_operand.vmem [shape: f32[1,4], index: 3, kind: input, shape index: {}]   ;;  %s7413_s4 = inlined_call_operand.vmem [shape: f32[1,4], index: 4, kind: input, shape index: {}]   ;;  %s7414_s5 = inlined_call_operand.vmem [shape: bf16[4,12], index: 5, kind: input, shape index: {}]   ;;  %s7415_s6 = inlined_call_operand.vmem [shape: bf16[4,12], index: 6, kind: input, shape index: {}]   ;;  %s7416_s7 = inlined_call_operand.vmem [shape: bf16[4,12], index: 7, kind: input, shape index: {}]   ;;  %s7417_s8 = inlined_call_operand.vmem [shape: bf16[1024,16], index: 8, kind: output, shape index: {0}]   ;;  %s7418_s9 = inlined_call_operand.vmem [shape: f32[4,2,4], index: 9, kind: output, shape index: {1}]  }
   0x1 LB: > { %s4521_s10 = sadd.s32 4294967295, %s4458_s30   ;;  %p3840_p0 = scmp.ge.s32.totalorder %s4458_s30, 1  ;;  %s4458_s30 = sphi %s4515_s30, %s20_s30  }
   0x2   : > { %p318_p1 = scmp.lt.s32.totalorder %s4458_s30, 5 }
   0x4   : > { %p319_p2 = pnand %p3840_p0, %p318_p1 }
   0x6   : > { %322 = sbr.rel (%p319_p2) target bundleno = 1130 (0x46a), region = 52 }
   0xd   : > { %v601_v0 = vld [vmem:[%s7415_s6] sm:$0x3]  ;;  %vm651_vm0 = vcmask 1041408   ;;  %s3841_s15 = sshll.u32 %s4521_s10, 5  ;;  %v1151_v5 = vld [vmem:[%s7411_s2 + $0x10] sm:$0xff]  ;;  %v4460_v7 = vmov 0  }
   0xe   : > { %v816_v1 = vld [vmem:[%s7416_s7] sm:$0x3]  ;;  %4433 = vmatprep.subr.msk.bf16.mxu0 %vm651_vm0, %v601_v0  ;;  %v653_v2 = vsel %vm651_vm0, %v601_v0, 0  ;;  %p368_p3 = scmp.lt.s32.totalorder %s3841_s15, 127  ;;  %4451 = vset.pattern.permute.xlu1 %v4460_v7  ;;  %v1152_v9 = vld [vmem:[%s7411_s2 + $0x18] sm:$0xff]  ;;  %v1150_v10 = vld [vmem:[%s7411_s2 + $0x8] sm:$0xff] }
   0xf   : > { %4435 = vmatprep.subr.msk.bf16.mxu1 %vm651_vm0, %v816_v1  ;;  %v4536_v3 = vsel %vm651_vm0, %v816_v1, 0  ;;  %4298 = vmatpush3.bf16.msra.mxu0 %v653_v2  ;;  %v981_v4 = vld [vmem:[%s7414_s5] sm:$0x3]  ;;  %s4033_s13 = sshll.u32 %s4521_s10, 4  ;;  %vm602_vm1 = vcmask 31744   ;;  %v1154_v29 = vld [vmem:[%s7411_s2 + $0x28] sm:$0xff] }
  0x10   : > { %4400 = vmatpush3.bf16.msra.mxu1 %v4536_v3  ;;  %s8084_s15 = smov (!%p368_p3, %s3841_s15), 127  ;;  %4434 = vmatprep.subr.msk.bf16.mxu0 %vm651_vm0, %v816_v1  ;;  %v1149_v6 = vld [vmem:[%s7411_s2] sm:$0xff]  ;;  %v4576_v14 = vsel %vm651_vm0, %v981_v4, 0  ;;  %s4584_s17 = sadd.s32 16, %s4033_s13  ;;  %v1156_v49 = vld [vmem:[%s7411_s2 + $0x38] sm:$0xff]  ;;  %vm2048_vm3 = vcmask 27648  }
  0x11   : > { %4436 = vmatprep.subr.msk.bf16.mxu1 %vm651_vm0, %v981_v4  ;;  %4450 = vset.pattern.permute.xlu0 %v4460_v7  ;;  %s3842_s22 = sshll.u32 %s8084_s15, 2  ;;  %v4563_v8 = vld [vmem:[%s7412_s3] ss:$0 sm:$0xff]  ;;  %p375_p4 = scmp.lt.s32.totalorder %s4584_s17, 63  ;;  %vm2273_vm4 = vcmask 60448   ;;  %vm2498_vm5 = vcmask 93248  }
  0x12   : > { %1260 = vperm.xlu1 %4451, %v1151_v5   ;;  %1250 = vperm.xlu0 %4450, %v1149_v6   ;;  %s4558_s25 = scalar_lea.vmem %s7409_s0, %s3842_s22  ;;  %v4582_v20 = vld [vmem:[%s7413_s4] ss:$0 sm:$0xff]  ;;  %s4461_s13 = smov 120   ;;  %vm2723_vm6 = vcmask 126048   ;;  %vm3108_vm7 = vcmask 64544   ;;  %vm3727_vm8 = vcmask 1040384  }
  0x13   : > { %v4164_v11 = vld [vmem:[%s4558_s25] sm:$0xff]   ;;  %v4231_v13 = vld [vmem:[%s4558_s25 + $0x8] sm:$0xff]   ;;  %v4232_v43 = vld [vmem:[%s4558_s25 + $0x10] sm:$0xff]   ;;  %s8086_s17 = smov (!%p375_p4, %s4584_s17), 63  ;;  %s4462_s14 = smov 124   ;;  %vm3733_vm9 = vcmask 25600  }
  0x14   : > { %v4238_v12 = vld [vmem:[%s4558_s25 + $0x40] sm:$0xff]   ;;  %v4165_v15 = vunpack.c.l.bf16 %v4164_v11  ;;  %v4166_v16 = vunpack.c.h.bf16 %v4164_v11  ;;  %v4239_v19 = vld [vmem:[%s4558_s25 + $0x48] sm:$0xff]   ;;  %v4169_v21 = vunpack.c.l.bf16 %v4231_v13  ;;  %v4170_v22 = vunpack.c.h.bf16 %v4231_v13  ;;  %v4240_v48 = vld [vmem:[%s4558_s25 + $0x50] sm:$0xff]   ;;  %s3844_s11 = sshll.u32 %s8086_s17, 1  ;;  %s5545_s18 = scalar_lea.vmem %s7417_s8, %s3842_s22 }
  0x15   : > { %v4197_v17 = vunpack.c.l.bf16 %v4238_v12  ;;  %v4198_v18 = vunpack.c.h.bf16 %v4238_v12  ;;  %v4201_v23 = vunpack.c.l.bf16 %v4239_v19  ;;  %v4202_v24 = vunpack.c.h.bf16 %v4239_v19  ;;  %v1153_v34 = vld [vmem:[%s7411_s2 + $0x20] sm:$0xff]  ;;  %v4233_v54 = vld [vmem:[%s4558_s25 + $0x18] sm:$0xff]   ;;  %v1158_v11 = vld [vmem:[%s7411_s2 + $0x48] sm:$0xff]  ;;  %p4666_p5 = scmp.lt.s32.totalorder %s3844_s11, 127  ;;  %s4463_s15 = smov 4  }
  0x16   : > { %1265 = vperm.xlu1 %4451, %v1152_v9   ;;  %1255 = vperm.xlu0 %4450, %v1150_v10   ;;  %v470_v25 = vmul.f32 %v4165_v15, %v4563_v8  ;;  %v471_v26 = vmul.f32 %v4166_v16, %v4563_v8  ;;  %v472_v30 = vmul.f32 %v4169_v21, %v4563_v8  ;;  %v4173_v57 = vunpack.c.l.bf16 %v4232_v43  ;;  %v4241_v59 = vld [vmem:[%s4558_s25 + $0x58] sm:$0xff]   ;;  %v1155_v10 = vld [vmem:[%s7411_s2 + $0x30] sm:$0xff]  ;;  %s4464_s22 = smov 12   ;;  %p393_p6 = scmp.lt.s32.totalorder %s4521_s10, 3 }
  0x17   : > { %v486_v27 = vmul.f32 %v4197_v17, %v4563_v8  ;;  %v487_v28 = vmul.f32 %v4198_v18, %v4563_v8  ;;  %v473_v31 = vmul.f32 %v4170_v22, %v4563_v8  ;;  %v488_v32 = vmul.f32 %v4201_v23, %v4563_v8  ;;  %v4234_v22 = vld [vmem:[%s4558_s25 + $0x20] sm:$0xff]   ;;  %s8088_s11 = smov (!%p4666_p5, %s3844_s11), 127 }
  0x18   : > { %v489_v33 = vmul.f32 %v4202_v24, %v4563_v8  ;;  %v508_v35 = vadd.f32 %v4582_v20, %v470_v25  ;;  %v509_v36 = vadd.f32 %v4582_v20, %v471_v26  ;;  %v510_v39 = vadd.f32 %v4582_v20, %v472_v30  ;;  %v4242_v30 = vld [vmem:[%s4558_s25 + $0x60] sm:$0xff]   ;;  %s3845_s23 = sshll.u32 %s8088_s11, 2  ;;  %s8090_s10 = smov (!%p393_p6, %s4521_s10), 3 }
  0x19   : > { %v524_v37 = vadd.f32 %v4582_v20, %v486_v27  ;;  %v525_v38 = vadd.f32 %v4582_v20, %v487_v28  ;;  %v511_v40 = vadd.f32 %v4582_v20, %v473_v31  ;;  %v526_v41 = vadd.f32 %v4582_v20, %v488_v32  ;;  %s381_s12 = scalar_lea.vmem %s7410_s1, %s3845_s23  ;;  %s3848_s19 = sshll.u32 %s8090_s10, 1 }
  0x1a   : > { %v527_v42 = vadd.f32 %v4582_v20, %v489_v33  ;;  %1275 = vperm.xlu1 %4451, %v1154_v29   ;;  %v540_v44 = vmax.f32 %v508_v35, 0.0  ;;  %v541_v45 = vmax.f32 %v509_v36, 0.0  ;;  %1270 = vperm.xlu0 %4450, %v1153_v34   ;;  %v542_v50 = vmax.f32 %v510_v39, 0.0  ;;  %v4235_v35 = vld [vmem:[%s4558_s25 + $0x28] sm:$0xff]   ;;  %v1160_v36 = vld [vmem:[%s7411_s2 + $0x58] sm:$0xff]  ;;  %s396_s17 = scalar_lea.vmem %s7418_s9, %s3848_s19 }
  0x1b   : > { %v556_v46 = vmax.f32 %v524_v37, 0.0  ;;  %v557_v47 = vmax.f32 %v525_v38, 0.0  ;;  %v543_v51 = vmax.f32 %v511_v40, 0.0  ;;  %v558_v52 = vmax.f32 %v526_v41, 0.0  ;;  %v4243_v41 = vld [vmem:[%s4558_s25 + $0x68] sm:$0xff]  }
  0x1c   : > { %v559_v53 = vmax.f32 %v527_v42, 0.0  ;;  %v4615_v55 = vpack.c.bf16 %v541_v45, %v540_v44  ;;  %v4174_v58 = vunpack.c.h.bf16 %v4232_v43  ;;  %v4205_v62 = vunpack.c.l.bf16 %v4240_v48 }
  0x1d   : > { %v4617_v56 = vpack.c.bf16 %v557_v47, %v556_v46  ;;  %v4625_v60 = vpack.c.bf16 %v543_v51, %v542_v50  ;;  %v4206_v63 = vunpack.c.h.bf16 %v4240_v48  ;;  %v474_v0 = vmul.f32 %v4173_v57, %v4563_v8  ;;  %v1159_v50 = vld [vmem:[%s7411_s2 + $0x50] sm:$0xff]  ;;  %v1162_v57 = vld [vmem:[%s7411_s2 + $0x68] sm:$0xff] }
  0x1e   : > { %v4627_v61 = vpack.c.bf16 %v559_v53, %v558_v52  ;;  %1285 = vperm.xlu1 %4451, %v1156_v49   ;;  %4299 = vmatprep.mubr.msk.bf16.mxu0 %vm602_vm1, %v4615_v55  ;;  %v475_v1 = vmul.f32 %v4174_v58, %v4563_v8  ;;  %v4177_v2 = vunpack.c.l.bf16 %v4233_v54  ;;  %v4178_v4 = vunpack.c.h.bf16 %v4233_v54 }
  0x1f   : > { %4349 = vmatprep.mubr.msk.bf16.mxu1 %vm602_vm1, %v4617_v56  ;;  %4300 = vmatmul.mubr.msk.bf16.vlgmr.msra.gmra.mrb[0].mxu0 %vm602_vm1, %v4625_v60  ;;  %v490_v5 = vmul.f32 %v4205_v62, %v4563_v8  ;;  %v491_v6 = vmul.f32 %v4206_v63, %v4563_v8  ;;  %v4209_v7 = vunpack.c.l.bf16 %v4241_v59  ;;  %v4210_v9 = vunpack.c.h.bf16 %v4241_v59 }
  0x20   : > { %4350 = vmatmul.mubr.msk.bf16.vlgmr.msra.gmra.mrb[0].mxu1 %vm602_vm1, %v4627_v61  ;;  %v512_v12 = vadd.f32 %v4582_v20, %v474_v0  ;;  %v513_v13 = vadd.f32 %v4582_v20, %v475_v1  ;;  %v476_v15 = vmul.f32 %v4177_v2, %v4563_v8  ;;  %v477_v16 = vmul.f32 %v4178_v4, %v4563_v8  ;;  %v4236_v0 = vld [vmem:[%s4558_s25 + $0x30] sm:$0xff]  }
  0x21   : > { %4366 = vmatpush3.bf16.msra.mxu1 %v4576_v14  ;;  %v528_v17 = vadd.f32 %v4582_v20, %v490_v5  ;;  %v529_v18 = vadd.f32 %v4582_v20, %v491_v6  ;;  %v492_v19 = vmul.f32 %v4209_v7, %v4563_v8  ;;  %v493_v21 = vmul.f32 %v4210_v9, %v4563_v8 }
  0x22   : > { %4332 = vmatpush3.bf16.msra.mxu0 %v4536_v3  ;;  %v544_v23 = vmax.f32 %v512_v12, 0.0  ;;  %v545_v24 = vmax.f32 %v513_v13, 0.0  ;;  %v514_v25 = vadd.f32 %v4582_v20, %v476_v15  ;;  %v515_v14 = vadd.f32 %v4582_v20, %v477_v16  ;;  %1280 = vperm.xlu0 %4450, %v1155_v10   ;;  %v1157_v3 = vld [vmem:[%s7411_s2 + $0x40] sm:$0xff] }
  0x23   : > { %1295 = vperm.xlu1 %4451, %v1158_v11   ;;  %v560_v26 = vmax.f32 %v528_v17, 0.0  ;;  %v561_v27 = vmax.f32 %v529_v18, 0.0  ;;  %v530_v28 = vadd.f32 %v4582_v20, %v492_v19  ;;  %v531_v29 = vadd.f32 %v4582_v20, %v493_v21  ;;  %v1161_v11 = vld [vmem:[%s7411_s2 + $0x60] sm:$0xff]  ;;  %v4244_v17 = vld [vmem:[%s4558_s25 + $0x70] sm:$0xff]   ;;  %v1164_v18 = vld [vmem:[%s7411_s2 + $0x78] sm:$0xff] }
  0x24   : > { %v4673_v31 = vpack.c.bf16 %v545_v24, %v544_v23  ;;  %v546_v32 = vmax.f32 %v514_v25, 0.0  ;;  %v547_v33 = vmax.f32 %v515_v14, 0.0  ;;  %v4181_v34 = vunpack.c.l.bf16 %v4234_v22  ;;  %v4237_v24 = vld [vmem:[%s4558_s25 + $0x38] sm:$0xff]  }
  0x25   : > { %v4679_v37 = vpack.c.bf16 %v561_v27, %v560_v26  ;;  %v562_v38 = vmax.f32 %v530_v28, 0.0  ;;  %v563_v39 = vmax.f32 %v531_v29, 0.0  ;;  %v4182_v40 = vunpack.c.h.bf16 %v4234_v22  ;;  %v4245_v28 = vld [vmem:[%s4558_s25 + $0x78] sm:$0xff]  }
  0x26   : > { %4303 = vmatprep.mubr.msk.bf16.mxu0 %vm602_vm1, %v4673_v31  ;;  %v4684_v42 = vpack.c.bf16 %v547_v33, %v546_v32  ;;  %v478_v43 = vmul.f32 %v4181_v34, %v4563_v8  ;;  %v4213_v44 = vunpack.c.l.bf16 %v4242_v30  ;;  %v4214_v45 = vunpack.c.h.bf16 %v4242_v30  ;;  %1290 = vperm.xlu0 %4450, %v1157_v3   ;;  %v1163_v33 = vld [vmem:[%s7411_s2 + $0x70] sm:$0xff] }
  0x27   : > { %4353 = vmatprep.mubr.msk.bf16.mxu1 %vm602_vm1, %v4679_v37  ;;  %v4689_v46 = vpack.c.bf16 %v563_v39, %v562_v38  ;;  %v479_v47 = vmul.f32 %v4182_v40, %v4563_v8  ;;  %v4185_v48 = vunpack.c.l.bf16 %v4235_v35  ;;  %v4186_v49 = vunpack.c.h.bf16 %v4235_v35  ;;  %1305 = vperm.xlu1 %4451, %v1160_v36   ;;  %v1166_v39 = vld [vmem:[%s7411_s2 + $0x88] sm:$0xff] }
  0x28   : > { %4304 = vmatmul.mubr.msk.bf16.gmra.mrb[4].mxu0 %vm602_vm1, %v4684_v42  ;;  %v516_v51 = vadd.f32 %v4582_v20, %v478_v43  ;;  %v494_v52 = vmul.f32 %v4213_v44, %v4563_v8  ;;  %v495_v53 = vmul.f32 %v4214_v45, %v4563_v8  ;;  %v4217_v54 = vunpack.c.l.bf16 %v4243_v41  ;;  %v4228_v45 = vld [vmem:[%s381_s12] sm:$0xff]  }
  0x29   : > { %4354 = vmatmul.mubr.msk.bf16.gmra.mrb[4].mxu1 %vm602_vm1, %v4689_v46  ;;  %v517_v58 = vadd.f32 %v4582_v20, %v479_v47  ;;  %v480_v59 = vmul.f32 %v4185_v48, %v4563_v8  ;;  %v481_v62 = vmul.f32 %v4186_v49, %v4563_v8  ;;  %v4218_v63 = vunpack.c.h.bf16 %v4243_v41 }
  0x2a   : > { %v548_v1 = vmax.f32 %v516_v51, 0.0  ;;  %v532_v2 = vadd.f32 %v4582_v20, %v494_v52  ;;  %v533_v4 = vadd.f32 %v4582_v20, %v495_v53  ;;  %v496_v5 = vmul.f32 %v4217_v54, %v4563_v8  ;;  %1300 = vperm.xlu0 %4450, %v1159_v50  }
  0x2b   : > { %v549_v6 = vmax.f32 %v517_v58, 0.0  ;;  %v518_v7 = vadd.f32 %v4582_v20, %v480_v59  ;;  %v519_v9 = vadd.f32 %v4582_v20, %v481_v62  ;;  %v497_v10 = vmul.f32 %v4218_v63, %v4563_v8  ;;  %1315 = vperm.xlu1 %4451, %v1162_v57   ;;  %v1165_v57 = vld [vmem:[%s7411_s2 + $0x80] sm:$0xff] }
  0x2c   : > { %v564_v12 = vmax.f32 %v532_v2, 0.0  ;;  %v565_v13 = vmax.f32 %v533_v4, 0.0  ;;  %v534_v15 = vadd.f32 %v4582_v20, %v496_v5  ;;  %v4189_v16 = vunpack.c.l.bf16 %v4236_v0 }
  0x2d   : > { %v4730_v19 = vpack.c.bf16 %v549_v6, %v548_v1  ;;  %v550_v21 = vmax.f32 %v518_v7, 0.0  ;;  %v551_v22 = vmax.f32 %v519_v9, 0.0  ;;  %v535_v23 = vadd.f32 %v4582_v20, %v497_v10 }
  0x2e   : > { %v4734_v25 = vpack.c.bf16 %v565_v13, %v564_v12  ;;  %v566_v14 = vmax.f32 %v534_v15, 0.0  ;;  %v4190_v26 = vunpack.c.h.bf16 %v4236_v0  ;;  %v482_v27 = vmul.f32 %v4189_v16, %v4563_v8  ;;  %1310 = vperm.xlu0 %4450, %v1161_v11   ;;  %v1168_v0 = vld [vmem:[%s7411_s2 + $0x98] sm:$0xff]  ;;  %v1167_v16 = vld [vmem:[%s7411_s2 + $0x90] sm:$0xff] }
  0x2f   : > { %4307 = vmatprep.mubr.msk.bf16.mxu0 %vm602_vm1, %v4730_v19  ;;  %v4743_v29 = vpack.c.bf16 %v551_v22, %v550_v21  ;;  %v567_v30 = vmax.f32 %v535_v23, 0.0  ;;  %v4221_v3 = vunpack.c.l.bf16 %v4244_v17  ;;  %v4222_v32 = vunpack.c.h.bf16 %v4244_v17  ;;  %1325 = vperm.xlu1 %4451, %v1164_v18   ;;  %v1170_v21 = vld [vmem:[%s7411_s2 + $0xa8] sm:$0xff] }
  0x30   : > { %4357 = vmatprep.mubr.msk.bf16.mxu1 %vm602_vm1, %v4734_v25  ;;  %v483_v34 = vmul.f32 %v4190_v26, %v4563_v8  ;;  %v520_v35 = vadd.f32 %v4582_v20, %v482_v27  ;;  %v4193_v36 = vunpack.c.l.bf16 %v4237_v24  ;;  %v4194_v38 = vunpack.c.h.bf16 %v4237_v24  ;;  %v1169_v26 = vld [vmem:[%s7411_s2 + $0xa0] sm:$0xff] }
  0x31   : > { %4308 = vmatmul.mubr.msk.bf16.gmra.mrb[8].mxu0 %vm602_vm1, %v4743_v29  ;;  %v4757_v40 = vpack.c.bf16 %v567_v30, %v566_v14  ;;  %v498_v41 = vmul.f32 %v4221_v3, %v4563_v8  ;;  %v499_v43 = vmul.f32 %v4222_v32, %v4563_v8  ;;  %v4225_v44 = vunpack.c.l.bf16 %v4245_v28  ;;  %v1171_v3 = vld [vmem:[%s7411_s2 + $0xb0] sm:$0xff] }
  0x32   : > { %v521_v47 = vadd.f32 %v4582_v20, %v483_v34  ;;  %v552_v48 = vmax.f32 %v520_v35, 0.0  ;;  %v484_v49 = vmul.f32 %v4193_v36, %v4563_v8  ;;  %v485_v50 = vmul.f32 %v4194_v38, %v4563_v8  ;;  %1320 = vperm.xlu0 %4450, %v1163_v33   ;;  %v1174_v33 = vld [vmem:[%s7411_s2 + $0xc8] sm:$0xff]  ;;  %v1173_v34 = vld [vmem:[%s7411_s2 + $0xc0] sm:$0xff]  ;;  %v1176_v35 = vld [vmem:[%s7411_s2 + $0xd8] sm:$0xff] }
  0x33   : > { %4358 = vmatmul.mubr.msk.bf16.gmra.mrb[8].mxu1 %vm602_vm1, %v4757_v40  ;;  %v536_v51 = vadd.f32 %v4582_v20, %v498_v41  ;;  %v537_v52 = vadd.f32 %v4582_v20, %v499_v43  ;;  %v4226_v53 = vunpack.c.h.bf16 %v4245_v28  ;;  %v500_v54 = vmul.f32 %v4225_v44, %v4563_v8  ;;  %1335 = vperm.xlu1 %4451, %v1166_v39   ;;  %v1172_v28 = vld [vmem:[%s7411_s2 + $0xb8] sm:$0xff]  ;;  %v1175_v36 = vld [vmem:[%s7411_s2 + $0xd0] sm:$0xff]  ;;  %v1178_v38 = vld [vmem:[%s7411_s2 + $0xe8] sm:$0xff] }
  0x34   : > { %v553_v58 = vmax.f32 %v521_v47, 0.0  ;;  %v522_v59 = vadd.f32 %v4582_v20, %v484_v49  ;;  %v523_v62 = vadd.f32 %v4582_v20, %v485_v50  ;;  %v4229_v63 = vunpack.c.l.bf16 %v4228_v45  ;;  %v1177_v39 = vld [vmem:[%s7411_s2 + $0xe0] sm:$0xff]  ;;  %v1180_v41 = vld [vmem:[%s7411_s2 + $0xf8] sm:$0xff]  ;;  %v1179_v43 = vld [vmem:[%s7411_s2 + $0xf0] sm:$0xff] }
  0x35   : > { %v568_v1 = vmax.f32 %v536_v51, 0.0  ;;  %v569_v2 = vmax.f32 %v537_v52, 0.0  ;;  %v501_v4 = vmul.f32 %v4226_v53, %v4563_v8  ;;  %v538_v5 = vadd.f32 %v4582_v20, %v500_v54 }
  0x36   : > { %v4779_v6 = vpack.c.bf16 %v553_v58, %v552_v48  ;;  %v554_v7 = vmax.f32 %v522_v59, 0.0  ;;  %v555_v9 = vmax.f32 %v523_v62, 0.0  ;;  %v4230_v10 = vunpack.c.h.bf16 %v4228_v45  ;;  %1330 = vperm.xlu0 %4450, %v1165_v57  }
  0x37   : > { %v4781_v11 = vpack.c.bf16 %v569_v2, %v568_v1  ;;  %v539_v12 = vadd.f32 %v4582_v20, %v501_v4  ;;  %v570_v13 = vmax.f32 %v538_v5, 0.0  ;;  %v576_v15 = vmul.f32 %v4229_v63, %v4563_v8  ;;  %1345 = vperm.xlu1 %4451, %v1168_v0  }
  0x38   : > { %4311 = vmatprep.mubr.msk.bf16.mxu0 %vm602_vm1, %v4779_v6  ;;  %v4790_v17 = vpack.c.bf16 %v555_v9, %v554_v7  ;;  %v577_v18 = vmul.f32 %v4230_v10, %v4563_v8 }
  0x39   : > { %4361 = vmatprep.mubr.msk.bf16.mxu1 %vm602_vm1, %v4781_v11  ;;  %v571_v22 = vmax.f32 %v539_v12, 0.0  ;;  %v578_v23 = vadd.f32 %v4582_v20, %v576_v15 }
  0x3a   : > { %4312 = vmatmul.mubr.msk.bf16.gmra.mrb[12].mxu0 %vm602_vm1, %v4790_v17  ;;  %v579_v24 = vadd.f32 %v4582_v20, %v577_v18  ;;  %1340 = vperm.xlu0 %4450, %v1167_v16  }
  0x3b   : > { %v599_v14 = vpack.c.bf16 %v571_v22, %v570_v13  ;;  %4315 = vmatprep.mubr.msk.bf16.mxu0 %vm602_vm1, %v4617_v56  ;;  %v580_v8 = vmax.f32 %v578_v23, 0.0  ;;  %1355 = vperm.xlu1 %4451, %v1170_v21  }
  0x3c   : > { %v581_v27 = vmax.f32 %v579_v24, 0.0 }
  0x3d   : > { %4362 = vmatmul.mubr.msk.bf16.gmra.mrb[12].mxu1 %vm602_vm1, %v599_v14  ;;  %v582_v30 = vmul.f32 0.0, %v580_v8 }
  0x3e   : > { %4367 = vmatprep.mubr.msk.bf16.mxu1 %vm602_vm1, %v4625_v60  ;;  %v583_v20 = vmul.f32 0.0, %v581_v27  ;;  %1350 = vperm.xlu0 %4450, %v1169_v26  }
  0x3f   : > { %1365 = vperm.xlu1 %4451, %v1172_v28  }
  0x40   : > { %v600_v32 = vpack.c.bf16 %v583_v20, %v582_v30 }
  0x42   : > { %4316 = vmatmul.mubr.msk.bf16.gmra.mrb[16].mxu0 %vm602_vm1, %v4627_v61  ;;  %1360 = vperm.xlu0 %4450, %v1171_v3  }
  0x43   : > { %4319 = vmatprep.mubr.msk.bf16.mxu0 %vm602_vm1, %v4679_v37  ;;  %1375 = vperm.xlu1 %4451, %v1174_v33  }
  0x45   : > { %4368 = vmatmul.mubr.msk.bf16.vlgmr.msra.gmra.mrb[16].mxu1 %vm602_vm1, %v4673_v31 }
  0x46   : > { %4371 = vmatprep.mubr.msk.bf16.mxu1 %vm602_vm1, %v4684_v42  ;;  %1370 = vperm.xlu0 %4450, %v1173_v34  }
  0x47   : > { %1385 = vperm.xlu1 %4451, %v1176_v35  }
  0x4a   : > { %4320 = vmatmul.mubr.msk.bf16.gmra.mrb[20].mxu0 %vm602_vm1, %v4689_v46  ;;  %1380 = vperm.xlu0 %4450, %v1175_v36  }
  0x4b   : > { %4323 = vmatprep.mubr.msk.bf16.mxu0 %vm602_vm1, %v4734_v25  ;;  %1395 = vperm.xlu1 %4451, %v1178_v38  }
  0x4d   : > { %4372 = vmatmul.mubr.msk.bf16.gmra.mrb[20].mxu1 %vm602_vm1, %v4730_v19 }
  0x4e   : > { %4375 = vmatprep.mubr.msk.bf16.mxu1 %vm602_vm1, %v4743_v29  ;;  %1390 = vperm.xlu0 %4450, %v1177_v39  }
  0x4f   : > { %1405 = vperm.xlu1 %4451, %v1180_v41  }
  0x52   : > { %4324 = vmatmul.mubr.msk.bf16.gmra.mrb[24].mxu0 %vm602_vm1, %v4757_v40  ;;  %1400 = vperm.xlu0 %4450, %v1179_v43  }
  0x53   : > { %4327 = vmatprep.mubr.msk.bf16.mxu0 %vm602_vm1, %v4781_v11 }
  0x55   : > { %4376 = vmatmul.mubr.msk.bf16.gmra.mrb[24].mxu1 %vm602_vm1, %v4779_v6 }
  0x56   : > { %4379 = vmatprep.mubr.msk.bf16.mxu1 %vm602_vm1, %v4790_v17 }
  0x5a   : > { %4328 = vmatmul.mubr.msk.bf16.gmra.mrb[28].mxu0 %vm602_vm1, %v599_v14 }
  0x5b   : > { %4333 = vmatprep.mubr.msk.bf16.mxu0 %vm602_vm1, %v4615_v55  ;;  %v1213_v55 = vlaneseq }
  0x5d   : > { %4380 = vmatmul.mubr.msk.bf16.gmra.mrb[28].mxu1 %vm602_vm1, %v4617_v56  ;;  %v4897_v56 = vshrl.u32 %v1213_v55, 7 }
  0x5e   : > { %4383 = vmatprep.mubr.msk.bf16.mxu1 %vm602_vm1, %v4627_v61 }
  0x5f   : > { %7652 = vst [vmem:[#allocation2_spill] sm:$0xff] %v4897_v56  ;;  %vm1215_vm2 = vcmp.lt.s32.totalorder %v4897_v56, 7 }
  0x62   : > { %4334 = vmatmul.mubr.msk.bf16.vlgmr.msra.gmra.mrb[32].mxu0 %vm602_vm1, %v4625_v60 }
  0x63   : > { %4337 = vmatprep.mubr.msk.bf16.mxu0 %vm602_vm1, %v4673_v31 }
  0x65   : > { %4384 = vmatmul.mubr.msk.bf16.gmra.mrb[0].mxu1 %vm602_vm1, %v4679_v37 }
  0x66   : > { %4387 = vmatprep.mubr.msk.bf16.mxu1 %vm602_vm1, %v4689_v46 }
  0x6a   : > { %4338 = vmatmul.mubr.msk.bf16.gmra.mrb[36].mxu0 %vm602_vm1, %v4684_v42 }
  0x6b   : > { %4341 = vmatprep.mubr.msk.bf16.mxu0 %vm602_vm1, %v4730_v19 }
  0x6d   : > { %4388 = vmatmul.mubr.msk.bf16.gmra.mrb[4].mxu1 %vm602_vm1, %v4734_v25 }
  0x6e   : > { %4391 = vmatprep.mubr.msk.bf16.mxu1 %vm602_vm1, %v4757_v40 }
  0x72   : > { %4342 = vmatmul.mubr.msk.bf16.gmra.mrb[40].mxu0 %vm602_vm1, %v4743_v29 }
  0x73   : > { %4345 = vmatprep.mubr.msk.bf16.mxu0 %vm602_vm1, %v4779_v6 }
  0x75   : > { %4392 = vmatmul.mubr.msk.bf16.gmra.mrb[8].mxu1 %vm602_vm1, %v4781_v11 }
  0x76   : > { %4395 = vmatprep.mubr.msk.bf16.mxu1 %vm602_vm1, %v599_v14 }
  0x7a   : > { %4346 = vmatmul.mubr.msk.bf16.gmra.mrb[44].mxu0 %vm602_vm1, %v4790_v17 }
  0x7d   : > { %4396 = vmatmul.mubr.msk.bf16.gmra.mrb[12].mxu1 %vm602_vm1, %v600_v32 }
  0x91   : > { %v4986_v9 = vpop.permute.xlu0 %1250  ;;  %v4998_v15 = vpop.permute.xlu1 %1260 }
  0x95   : > { %v5019_v23 = vpop.permute.xlu0 %1255  ;;  %v5029_v27 = vpop.permute.xlu1 %1265 }
  0x99   : > { %v5050_v36 = vpop.permute.xlu0 %1270  ;;  %v5062_v41 = vpop.permute.xlu1 %1275 }
  0x9a   : > { %7676 = vst [vmem:[#allocation26_spill] sm:$0xff] %v5050_v36  ;;  %7679 = vst [vmem:[#allocation29_spill] sm:$0xff] %v5062_v41 }
  0xf2   : > { %v4899_v60 = vpop.f32.mrb[0].mxu0 }
  0xf3   : > { %7653 = vst [vmem:[#allocation3_spill] sm:$0xff] %v4899_v60  ;;  %1476 = vrot.lane.b32.xlu0 %v4899_v60, %s4461_s13  ;;  %v4903_v61 = vpop.f32.mrb[1].mxu0  ;;  %v1183_v37 = vrot.slane %v4899_v60, 1  ;;  %v4037_v45 = vpack.c.bf16 %v4899_v60, %v4899_v60 }
  0xf4   : > { %7654 = vst [vmem:[#allocation4_spill] sm:$0xff] %v4903_v61  ;;  %v4905_v31 = vpop.f32.mrb[2].mxu0  ;;  %v7419_v19 = vrot.slane %v4903_v61, 1  ;;  %v4035_v52 = vpack.c.bf16 %v4903_v61, %v4903_v61 }
  0xf5   : > { %7655 = vst [vmem:[#allocation5_spill] sm:$0xff] %v4905_v31  ;;  %v1184_v42 = vrot.slane %v4905_v31, 1  ;;  %1478 = vrot.lane.b32.xlu1 %v4905_v31, %s4461_s13  ;;  %v4912_v46 = vpop.f32.mrb[3].mxu0  ;;  %v4038_v48 = vpack.c.bf16 %v4905_v31, %v4905_v31 }
  0xf6   : > { %7656 = vst [vmem:[#allocation6_spill] sm:$0xff] %v4912_v46  ;;  %v1182_v25 = vrot.slane %v4912_v46, 1  ;;  %v4036_v58 = vpack.c.bf16 %v4912_v46, %v4912_v46 }
  0xf7   : > { %1472 = vrot.lane.b32.xlu0 %v4903_v61, %s4461_s13  ;;  %v4920_v29 = vsel %vm1215_vm2, %v1183_v37, %v1184_v42 }
  0xf8   : > { %v4926_v40 = vsel %vm1215_vm2, %v7419_v19, %v1182_v25  ;;  %v4930_v44 = vsel %vm1215_vm2, %v1182_v25, %v1183_v37 }
  0xf9   : > { %1474 = vrot.lane.b32.xlu1 %v4912_v46, %s4461_s13 }
  0xfb   : > { %v4936_v47 = vpop.f32.mrb[4].mxu0  ;;  %1956 = vrot.lane.b32.xlu0 %v4037_v45, %s4462_s14 }
  0xfc   : > { %7657 = vst [vmem:[#allocation7_spill] sm:$0xff] %v4936_v47  ;;  %v1187_v49 = vrot.slane %v4936_v47, 1  ;;  %v4942_v50 = vpop.f32.mrb[5].mxu0  ;;  %v4041_v16 = vpack.c.bf16 %v4936_v47, %v4936_v47 }
  0xfd   : > { %7658 = vst [vmem:[#allocation8_spill] sm:$0xff] %v4942_v50  ;;  %v1185_v51 = vrot.slane %v4942_v50, 1  ;;  %1958 = vrot.lane.b32.xlu1 %v4038_v48, %s4462_s14  ;;  %v4948_v53 = vpop.f32.mrb[6].mxu0  ;;  %v4039_v24 = vpack.c.bf16 %v4942_v50, %v4942_v50 }
  0xfe   : > { %7659 = vst [vmem:[#allocation9_spill] sm:$0xff] %v4948_v53  ;;  %v1188_v54 = vrot.slane %v4948_v53, 1  ;;  %v4951_v57 = vpop.f32.mrb[7].mxu0  ;;  %v4042_v22 = vpack.c.bf16 %v4948_v53, %v4948_v53 }
  0xff   : > { %7660 = vst [vmem:[#allocation10_spill] sm:$0xff] %v4951_v57  ;;  %1952 = vrot.lane.b32.xlu0 %v4035_v52, %s4462_s14  ;;  %v1186_v59 = vrot.slane %v4951_v57, 1  ;;  %v4959_v62 = vsel %vm1215_vm2, %v1184_v42, %v1185_v51  ;;  %v4040_v28 = vpack.c.bf16 %v4951_v57, %v4951_v57 }
 0x100   : > { %v4963_v63 = vsel %vm1215_vm2, %v1187_v49, %v1188_v54 }
 0x101   : > { %1954 = vrot.lane.b32.xlu1 %v4036_v58, %s4462_s14  ;;  %v4968_v0 = vsel %vm1215_vm2, %v1185_v51, %v1186_v59  ;;  %v4972_v1 = vsel %vm1215_vm2, %v1186_v59, %v1187_v49  ;;  %v5081_v51 = vpop.permute.xlu0 %1280 }
 0x102   : > { %7661 = vst [vmem:[#allocation11_spill] sm:$0xff] %v4968_v0  ;;  %7662 = vst [vmem:[#allocation12_spill] sm:$0xff] %v4972_v1 }
 0x103   : > { %1484 = vrot.lane.b32.xlu0 %v4936_v47, %s4461_s13 }
 0x104   : > { %v4976_v2 = vpop.f32.mrb[8].mxu0 }
 0x105   : > { %7663 = vst [vmem:[#allocation13_spill] sm:$0xff] %v4976_v2  ;;  %v1191_v4 = vrot.slane %v4976_v2, 1  ;;  %v4979_v5 = vpop.f32.mrb[9].mxu0  ;;  %1486 = vrot.lane.b32.xlu1 %v4948_v53, %s4461_s13  ;;  %v4045_v52 = vpack.c.bf16 %v4976_v2, %v4976_v2 }
 0x106   : > { %7664 = vst [vmem:[#allocation14_spill] sm:$0xff] %v4979_v5  ;;  %v1189_v6 = vrot.slane %v4979_v5, 1  ;;  %v4984_v7 = vpop.f32.mrb[10].mxu0 }
 0x107   : > { %7665 = vst [vmem:[#allocation15_spill] sm:$0xff] %v4984_v7  ;;  %1480 = vrot.lane.b32.xlu0 %v4942_v50, %s4461_s13  ;;  %v1192_v10 = vrot.slane %v4984_v7, 1  ;;  %v4991_v11 = vpop.f32.mrb[11].mxu0 }
 0x108   : > { %7666 = vst [vmem:[#allocation16_spill] sm:$0xff] %v4991_v11  ;;  %v1190_v12 = vrot.slane %v4991_v11, 1  ;;  %v4996_v13 = vsel %vm1215_vm2, %v1188_v54, %v1189_v6 }
 0x109   : > { %1482 = vrot.lane.b32.xlu1 %v4951_v57, %s4461_s13  ;;  %v5006_v17 = vsel %vm1215_vm2, %v1191_v4, %v1192_v10 }
 0x10a   : > { %7667 = vst [vmem:[#allocation17_spill] sm:$0xff] %v5006_v17  ;;  %v5010_v18 = vsel %vm1215_vm2, %v1189_v6, %v1190_v12  ;;  %v5014_v21 = vsel %vm1215_vm2, %v1190_v12, %v1191_v4  ;;  %v4046_v12 = vpack.c.bf16 %v4984_v7, %v4984_v7 }
 0x10b   : > { %7668 = vst [vmem:[#allocation18_spill] sm:$0xff] %v5010_v18  ;;  %7669 = vst [vmem:[#allocation19_spill] sm:$0xff] %v5014_v21  ;;  %1964 = vrot.lane.b32.xlu0 %v4041_v16, %s4462_s14 }
 0x10d   : > { %1966 = vrot.lane.b32.xlu1 %v4042_v22, %s4462_s14  ;;  %v5024_v14 = vpop.f32.mrb[12].mxu0 }
 0x10e   : > { %7670 = vst [vmem:[#allocation20_spill] sm:$0xff] %v5024_v14  ;;  %v1195_v8 = vrot.slane %v5024_v14, 1  ;;  %v5027_v26 = vpop.f32.mrb[13].mxu0 }
 0x10f   : > { %7671 = vst [vmem:[#allocation21_spill] sm:$0xff] %v5027_v26  ;;  %1960 = vrot.lane.b32.xlu0 %v4039_v24, %s4462_s14  ;;  %v1193_v30 = vrot.slane %v5027_v26, 1  ;;  %v5035_v20 = vpop.f32.mrb[14].mxu0 }
 0x110   : > { %7672 = vst [vmem:[#allocation22_spill] sm:$0xff] %v5035_v20  ;;  %v1196_v3 = vrot.slane %v5035_v20, 1  ;;  %v5038_v32 = vpop.f32.mrb[15].mxu0 }
 0x111   : > { %7673 = vst [vmem:[#allocation23_spill] sm:$0xff] %v5038_v32  ;;  %1962 = vrot.lane.b32.xlu1 %v4040_v28, %s4462_s14  ;;  %v1194_v33 = vrot.slane %v5038_v32, 1  ;;  %v5044_v34 = vsel %vm1215_vm2, %v1192_v10, %v1193_v30  ;;  %v5100_v10 = vpop.permute.xlu1 %1285  ;;  %v4043_v28 = vpack.c.bf16 %v4979_v5, %v4979_v5 }
 0x112   : > { %7674 = vst [vmem:[#allocation24_spill] sm:$0xff] %v5044_v34  ;;  %v5048_v35 = vsel %vm1215_vm2, %v1195_v8, %v1196_v3  ;;  %7686 = vst [vmem:[#allocation36_spill] sm:$0xff] %v5100_v10 }
 0x113   : > { %7675 = vst [vmem:[#allocation25_spill] sm:$0xff] %v5048_v35  ;;  %1492 = vrot.lane.b32.xlu0 %v4976_v2, %s4461_s13  ;;  %v5056_v38 = vsel %vm1215_vm2, %v1193_v30, %v1194_v33  ;;  %v5060_v39 = vsel %vm1215_vm2, %v1194_v33, %v1195_v8  ;;  %v5123_v33 = vpop.permute.xlu0 %1290  ;;  %v4050_v35 = vpack.c.bf16 %v5035_v20, %v5035_v20 }
 0x114   : > { %7677 = vst [vmem:[#allocation27_spill] sm:$0xff] %v5056_v38  ;;  %7678 = vst [vmem:[#allocation28_spill] sm:$0xff] %v5060_v39 }
 0x115   : > { %1494 = vrot.lane.b32.xlu1 %v4984_v7, %s4461_s13  ;;  %v5066_v43 = vpop.f32.mrb[16].mxu0  ;;  %7691 = vst [vmem:[#allocation41_spill] sm:$0xff] %v5123_v33  ;;  %v5136_v7 = vpop.permute.xlu1 %1295  ;;  %v7718_v33 = vrot.slane %v4903_v61, 1 }
 0x116   : > { %7680 = vst [vmem:[#allocation30_spill] sm:$0xff] %v5066_v43  ;;  %v1199_v55 = vrot.slane %v5066_v43, 1  ;;  %v5069_v37 = vpop.f32.mrb[17].mxu0  ;;  %7694 = vst [vmem:[#allocation44_spill] sm:$0xff] %v5136_v7 }
 0x117   : > { %7681 = vst [vmem:[#allocation31_spill] sm:$0xff] %v5069_v37  ;;  %1488 = vrot.lane.b32.xlu0 %v4979_v5, %s4461_s13  ;;  %v1197_v42 = vrot.slane %v5069_v37, 1  ;;  %v5074_v25 = vpop.f32.mrb[18].mxu0 }
 0x118   : > { %7682 = vst [vmem:[#allocation32_spill] sm:$0xff] %v5074_v25  ;;  %v1200_v45 = vrot.slane %v5074_v25, 1  ;;  %v5077_v48 = vpop.f32.mrb[19].mxu0  ;;  %v5079_v49 = vpop.f32.mrb[16].mxu1 }
 0x119   : > { %7683 = vst [vmem:[#allocation33_spill] sm:$0xff] %v5077_v48  ;;  %1490 = vrot.lane.b32.xlu1 %v4991_v11, %s4461_s13  ;;  %v1198_v54 = vrot.slane %v5077_v48, 1  ;;  %v5088_v58 = vpop.f32.mrb[17].mxu1  ;;  %v5092_v59 = vsel %vm1215_vm2, %v1196_v3, %v1197_v42  ;;  %v5173_v46 = vpop.permute.xlu1 %1305 }
 0x11a   : > { %7684 = vst [vmem:[#allocation34_spill] sm:$0xff] %v5092_v59  ;;  %v5094_v4 = vpop.f32.mrb[18].mxu1  ;;  %v5098_v6 = vsel %vm1215_vm2, %v1199_v55, %v1200_v45  ;;  %7702 = vst [vmem:[#allocation52_spill] sm:$0xff] %v5173_v46 }
 0x11b   : > { %7685 = vst [vmem:[#allocation35_spill] sm:$0xff] %v5098_v6  ;;  %1972 = vrot.lane.b32.xlu0 %v4045_v52, %s4462_s14  ;;  %v5105_v16 = vpop.f32.mrb[19].mxu1  ;;  %v5109_v22 = vsel %vm1215_vm2, %v1197_v42, %v1198_v54  ;;  %v5113_v24 = vsel %vm1215_vm2, %v1198_v54, %v1199_v55  ;;  %v4044_v55 = vpack.c.bf16 %v4991_v11, %v4991_v11 }
 0x11c   : > { %7687 = vst [vmem:[#allocation37_spill] sm:$0xff] %v5109_v22  ;;  %7688 = vst [vmem:[#allocation38_spill] sm:$0xff] %v5113_v24  ;;  %v4049_v22 = vpack.c.bf16 %v5024_v14, %v5024_v14 }
 0x11d   : > { %1974 = vrot.lane.b32.xlu1 %v4046_v12, %s4462_s14  ;;  %v5116_v8 = vpop.f32.mrb[20].mxu0 }
 0x11e   : > { %7689 = vst [vmem:[#allocation39_spill] sm:$0xff] %v5116_v8  ;;  %v1203_v30 = vrot.slane %v5116_v8, 1  ;;  %v5121_v3 = vpop.f32.mrb[21].mxu0 }
 0x11f   : > { %7690 = vst [vmem:[#allocation40_spill] sm:$0xff] %v5121_v3  ;;  %1968 = vrot.lane.b32.xlu0 %v4043_v28, %s4462_s14  ;;  %v1201_v42 = vrot.slane %v5121_v3, 1  ;;  %v5127_v52 = vpop.f32.mrb[22].mxu0 }
 0x120   : > { %7692 = vst [vmem:[#allocation42_spill] sm:$0xff] %v5127_v52  ;;  %v1204_v54 = vrot.slane %v5127_v52, 1  ;;  %v5132_v12 = vpop.f32.mrb[23].mxu0  ;;  %v5134_v19 = vpop.f32.mrb[20].mxu1 }
 0x121   : > { %7693 = vst [vmem:[#allocation43_spill] sm:$0xff] %v5132_v12  ;;  %1970 = vrot.lane.b32.xlu1 %v4044_v55, %s4462_s14  ;;  %v1202_v2 = vrot.slane %v5132_v12, 1  ;;  %v5140_v28 = vpop.f32.mrb[21].mxu1  ;;  %v5144_v5 = vsel %vm1215_vm2, %v1200_v45, %v1201_v42  ;;  %v5164_v45 = vpop.permute.xlu0 %1300 }
 0x122   : > { %7695 = vst [vmem:[#allocation45_spill] sm:$0xff] %v5144_v5  ;;  %v5146_v53 = vpop.f32.mrb[22].mxu1  ;;  %v5150_v11 = vsel %vm1215_vm2, %v1203_v30, %v1204_v54  ;;  %7699 = vst [vmem:[#allocation49_spill] sm:$0xff] %v5164_v45 }
 0x123   : > { %7696 = vst [vmem:[#allocation46_spill] sm:$0xff] %v5150_v11  ;;  %1500 = vrot.lane.b32.xlu0 %v5024_v14, %s4461_s13  ;;  %v5154_v47 = vpop.f32.mrb[23].mxu1  ;;  %v5158_v55 = vsel %vm1215_vm2, %v1201_v42, %v1202_v2  ;;  %v5162_v57 = vsel %vm1215_vm2, %v1202_v2, %v1203_v30 }
 0x124   : > { %7697 = vst [vmem:[#allocation47_spill] sm:$0xff] %v5158_v55  ;;  %7698 = vst [vmem:[#allocation48_spill] sm:$0xff] %v5162_v57 }
 0x125   : > { %v5166_v50 = vpop.f32.mrb[24].mxu0  ;;  %1502 = vrot.lane.b32.xlu1 %v5035_v20, %s4461_s13  ;;  %v5202_v38 = vpop.permute.xlu0 %1310 }
 0x126   : > { %7700 = vst [vmem:[#allocation50_spill] sm:$0xff] %v5166_v50  ;;  %v1207_v31 = vrot.slane %v5166_v50, 1  ;;  %v5171_v60 = vpop.f32.mrb[25].mxu0  ;;  %7707 = vst [vmem:[#allocation57_spill] sm:$0xff] %v5202_v38 }
 0x127   : > { %7701 = vst [vmem:[#allocation51_spill] sm:$0xff] %v5171_v60  ;;  %v1205_v42 = vrot.slane %v5171_v60, 1  ;;  %v5176_v55 = vpop.f32.mrb[26].mxu0  ;;  %1496 = vrot.lane.b32.xlu0 %v5027_v26, %s4461_s13 }
 0x128   : > { %7703 = vst [vmem:[#allocation53_spill] sm:$0xff] %v5176_v55  ;;  %v1208_v2 = vrot.slane %v5176_v55, 1  ;;  %v5181_v30 = vpop.f32.mrb[27].mxu0  ;;  %v5183_v57 = vpop.f32.mrb[24].mxu1 }
 0x129   : > { %7704 = vst [vmem:[#allocation54_spill] sm:$0xff] %v5181_v30  ;;  %v1206_v11 = vrot.slane %v5181_v30, 1  ;;  %1498 = vrot.lane.b32.xlu1 %v5038_v32, %s4461_s13  ;;  %v5188_v24 = vpop.f32.mrb[25].mxu1  ;;  %v5194_v5 = vsel %vm1215_vm2, %v1204_v54, %v1205_v42 }
 0x12a   : > { %7705 = vst [vmem:[#allocation55_spill] sm:$0xff] %v5194_v5  ;;  %v5196_v6 = vpop.f32.mrb[26].mxu1  ;;  %v5200_v39 = vsel %vm1215_vm2, %v1207_v31, %v1208_v2  ;;  %v5217_v5 = vpop.permute.xlu1 %1315 }
 0x12b   : > { %7706 = vst [vmem:[#allocation56_spill] sm:$0xff] %v5200_v39  ;;  %1980 = vrot.lane.b32.xlu0 %v4049_v22, %s4462_s14  ;;  %v5205_v59 = vpop.f32.mrb[27].mxu1  ;;  %v5211_v14 = vsel %vm1215_vm2, %v1205_v42, %v1206_v11  ;;  %v5215_v54 = vsel %vm1215_vm2, %v1206_v11, %v1207_v31  ;;  %7710 = vst [vmem:[#allocation60_spill] sm:$0xff] %v5217_v5  ;;  %v4047_v22 = vpack.c.bf16 %v5027_v26, %v5027_v26  ;;  %v5238_v26 = vpop.permute.xlu0 %1320 }
 0x12c   : > { %7708 = vst [vmem:[#allocation58_spill] sm:$0xff] %v5211_v14  ;;  %7709 = vst [vmem:[#allocation59_spill] sm:$0xff] %v5215_v54  ;;  %v4048_v31 = vpack.c.bf16 %v5038_v32, %v5038_v32 }
 0x12d   : > { %v5219_v39 = vpop.f32.mrb[28].mxu0  ;;  %1982 = vrot.lane.b32.xlu1 %v4050_v35, %s4462_s14  ;;  %7715 = vst [vmem:[#allocation65_spill] sm:$0xff] %v5238_v26 }
 0x12e   : > { %7711 = vst [vmem:[#allocation61_spill] sm:$0xff] %v5219_v39  ;;  %v1211_v38 = vrot.slane %v5219_v39, 1  ;;  %v5225_v20 = vpop.f32.mrb[29].mxu0  ;;  %v5260_v18 = vpop.permute.xlu1 %1325 }
 0x12f   : > { %7712 = vst [vmem:[#allocation62_spill] sm:$0xff] %v5225_v20  ;;  %v1209_v42 = vrot.slane %v5225_v20, 1  ;;  %v5228_v14 = vpop.f32.mrb[30].mxu0  ;;  %1976 = vrot.lane.b32.xlu0 %v4047_v22, %s4462_s14  ;;  %7720 = vst [vmem:[#allocation69_spill] sm:$0xff] %v5260_v18  ;;  %v4051_v18 = vpack.c.bf16 %v5069_v37, %v5069_v37 }
 0x130   : > { %7713 = vst [vmem:[#allocation63_spill] sm:$0xff] %v5228_v14  ;;  %v1212_v11 = vrot.slane %v5228_v14, 1  ;;  %v5234_v54 = vpop.f32.mrb[31].mxu0  ;;  %v5236_v35 = vpop.f32.mrb[28].mxu1 }
 0x131   : > { %7714 = vst [vmem:[#allocation64_spill] sm:$0xff] %v5234_v54  ;;  %v1210_v5 = vrot.slane %v5234_v54, 1  ;;  %v5241_v7 = vpop.f32.mrb[29].mxu1  ;;  %1978 = vrot.lane.b32.xlu1 %v4048_v31, %s4462_s14  ;;  %v5246_v22 = vsel %vm1215_vm2, %v1208_v2, %v1209_v42 }
 0x132   : > { %7716 = vst [vmem:[#allocation66_spill] sm:$0xff] %v5246_v22  ;;  %v5248_v21 = vpop.f32.mrb[30].mxu1  ;;  %v5252_v32 = vsel %vm1215_vm2, %v1211_v38, %v1212_v11  ;;  %v5258_v26 = vsel %vm1215_vm2, %v1212_v11, %v7718_v33 }
 0x133   : > { %7717 = vst [vmem:[#allocation67_spill] sm:$0xff] %v5252_v32  ;;  %7719 = vst [vmem:[#allocation68_spill] sm:$0xff] %v5258_v26  ;;  %v5262_v46 = vpop.f32.mrb[31].mxu1  ;;  %1508 = vrot.lane.b32.xlu0 %v5066_v43, %s4461_s13  ;;  %v5268_v2 = vsel %vm1215_vm2, %v1209_v42, %v1210_v5  ;;  %v5272_v31 = vsel %vm1215_vm2, %v1210_v5, %v1211_v38  ;;  %v5279_v26 = vpop.permute.xlu0 %1330 }
 0x134   : > { %7721 = vst [vmem:[#allocation70_spill] sm:$0xff] %v5268_v2  ;;  %7722 = vst [vmem:[#allocation71_spill] sm:$0xff] %v5272_v31  ;;  %v5291_v31 = vpop.permute.xlu1 %1335 }
 0x135   : > { %v4335_v61 = vpop.f32.mrb[32].mxu0  ;;  %1510 = vrot.lane.b32.xlu1 %v5074_v25, %s4461_s13  ;;  %7724 = vst [vmem:[#allocation73_spill] sm:$0xff] %v5279_v26  ;;  %7728 = vst [vmem:[#allocation77_spill] sm:$0xff] %v5291_v31 }
 0x136   : > { %v5277_v33 = vadd.f32 %v5079_v49, %v4335_v61  ;;  %v854_v11 = vpop.f32.mrb[33].mxu0 }
 0x137   : > { %v5282_v32 = vadd.f32 %v5088_v58, %v854_v11  ;;  %v4336_v22 = vpop.f32.mrb[34].mxu0  ;;  %1504 = vrot.lane.b32.xlu0 %v5069_v37, %s4461_s13  ;;  %v4053_v58 = vpack.c.bf16 %v5066_v43, %v5066_v43  ;;  %v5313_v26 = vpop.permute.xlu0 %1340 }
 0x138   : > { %7723 = vst [vmem:[#allocation72_spill] sm:$0xff] %v5277_v33  ;;  %v5286_v42 = vpop.f32.mrb[0].mxu1  ;;  %v5289_v5 = vadd.f32 %v5094_v4, %v4336_v22  ;;  %v857_v38 = vpop.f32.mrb[35].mxu0  ;;  %7733 = vst [vmem:[#allocation82_spill] sm:$0xff] %v5313_v26 }
 0x139   : > { %7725 = vst [vmem:[#allocation74_spill] sm:$0xff] %v5282_v32  ;;  %7726 = vst [vmem:[#allocation75_spill] sm:$0xff] %v5286_v42  ;;  %v5293_v61 = vpop.f32.mrb[1].mxu1  ;;  %v5296_v49 = vadd.f32 %v5105_v16, %v857_v38  ;;  %1506 = vrot.lane.b32.xlu1 %v5077_v48, %s4461_s13  ;;  %v1618_v2 = vrot.slane %v5286_v42, 1  ;;  %v4054_v16 = vpack.c.bf16 %v5074_v25, %v5074_v25  ;;  %v5335_v26 = vpop.permute.xlu1 %1345 }
 0x13a   : > { %7727 = vst [vmem:[#allocation76_spill] sm:$0xff] %v5289_v5  ;;  %7729 = vst [vmem:[#allocation78_spill] sm:$0xff] %v5293_v61  ;;  %v5302_v11 = vpop.f32.mrb[2].mxu1  ;;  %v7469_v38 = vrot.slane %v5293_v61, 1 }
 0x13b   : > { %7730 = vst [vmem:[#allocation79_spill] sm:$0xff] %v5296_v49  ;;  %7731 = vst [vmem:[#allocation80_spill] sm:$0xff] %v5302_v11  ;;  %v1619_v4 = vrot.slane %v5302_v11, 1  ;;  %v5306_v22 = vpop.f32.mrb[3].mxu1  ;;  %1988 = vrot.lane.b32.xlu0 %v4053_v58, %s4462_s14 }
 0x13c   : > { %7732 = vst [vmem:[#allocation81_spill] sm:$0xff] %v5306_v22  ;;  %v1617_v31 = vrot.slane %v5306_v22, 1  ;;  %7738 = vst [vmem:[#allocation87_spill] sm:$0xff] %v5335_v26 }
 0x13d   : > { %v4339_v43 = vpop.f32.mrb[36].mxu0  ;;  %1990 = vrot.lane.b32.xlu1 %v4054_v16, %s4462_s14  ;;  %v5320_v34 = vsel %vm1215_vm2, %v1618_v2, %v1619_v4 }
 0x13e   : > { %7734 = vst [vmem:[#allocation83_spill] sm:$0xff] %v5320_v34  ;;  %v5323_v58 = vadd.f32 %v5134_v19, %v4339_v43  ;;  %v870_v25 = vpop.f32.mrb[37].mxu0  ;;  %v5329_v45 = vsel %vm1215_vm2, %v7469_v38, %v1617_v31  ;;  %v5333_v16 = vsel %vm1215_vm2, %v1617_v31, %v1618_v2  ;;  %v4052_v19 = vpack.c.bf16 %v5077_v48, %v5077_v48 }
 0x13f   : > { %7736 = vst [vmem:[#allocation85_spill] sm:$0xff] %v5329_v45  ;;  %7737 = vst [vmem:[#allocation86_spill] sm:$0xff] %v5333_v16  ;;  %v5338_v37 = vadd.f32 %v5140_v28, %v870_v25  ;;  %v4340_v34 = vpop.f32.mrb[38].mxu0  ;;  %1984 = vrot.lane.b32.xlu0 %v4051_v18, %s4462_s14  ;;  %v5357_v18 = vpop.permute.xlu0 %1350 }
 0x140   : > { %7735 = vst [vmem:[#allocation84_spill] sm:$0xff] %v5323_v58  ;;  %v5343_v43 = vpop.f32.mrb[4].mxu1  ;;  %v5346_v38 = vadd.f32 %v5146_v53, %v4340_v34  ;;  %v873_v45 = vpop.f32.mrb[39].mxu0  ;;  %7745 = vst [vmem:[#allocation94_spill] sm:$0xff] %v5357_v18 }
 0x141   : > { %7739 = vst [vmem:[#allocation88_spill] sm:$0xff] %v5338_v37  ;;  %7740 = vst [vmem:[#allocation89_spill] sm:$0xff] %v5343_v43  ;;  %v5348_v17 = vpop.f32.mrb[5].mxu1  ;;  %v5351_v2 = vadd.f32 %v5154_v47, %v873_v45  ;;  %1986 = vrot.lane.b32.xlu1 %v4052_v19, %s4462_s14  ;;  %v1622_v31 = vrot.slane %v5343_v43, 1  ;;  %v5370_v45 = vpop.permute.xlu1 %1355 }
 0x142   : > { %7741 = vst [vmem:[#allocation90_spill] sm:$0xff] %v5346_v38  ;;  %7742 = vst [vmem:[#allocation91_spill] sm:$0xff] %v5348_v17  ;;  %v1620_v25 = vrot.slane %v5348_v17, 1  ;;  %v5355_v28 = vpop.f32.mrb[6].mxu1 }
 0x143   : > { %7743 = vst [vmem:[#allocation92_spill] sm:$0xff] %v5351_v2  ;;  %7744 = vst [vmem:[#allocation93_spill] sm:$0xff] %v5355_v28  ;;  %v1623_v48 = vrot.slane %v5355_v28, 1  ;;  %v5361_v53 = vpop.f32.mrb[7].mxu1  ;;  %1516 = vrot.lane.b32.xlu0 %v5116_v8, %s4461_s13  ;;  %v5399_v1 = vpop.permute.xlu0 %1360 }
 0x144   : > { %7746 = vst [vmem:[#allocation95_spill] sm:$0xff] %v5361_v53  ;;  %v1621_v47 = vrot.slane %v5361_v53, 1  ;;  %v5368_v34 = vsel %vm1215_vm2, %v1619_v4, %v1620_v25  ;;  %7748 = vst [vmem:[#allocation97_spill] sm:$0xff] %v5370_v45 }
 0x145   : > { %7747 = vst [vmem:[#allocation96_spill] sm:$0xff] %v5368_v34  ;;  %v4343_v19 = vpop.f32.mrb[40].mxu0  ;;  %1518 = vrot.lane.b32.xlu1 %v5127_v52, %s4461_s13  ;;  %v5376_v16 = vsel %vm1215_vm2, %v1622_v31, %v1623_v48  ;;  %7756 = vst [vmem:[#allocation105_spill] sm:$0xff] %v5399_v1 }
 0x146   : > { %7749 = vst [vmem:[#allocation98_spill] sm:$0xff] %v5376_v16  ;;  %v5379_v18 = vadd.f32 %v5183_v57, %v4343_v19  ;;  %v886_v26 = vpop.f32.mrb[41].mxu0  ;;  %v5383_v41 = vsel %vm1215_vm2, %v1620_v25, %v1621_v47  ;;  %v5387_v4 = vsel %vm1215_vm2, %v1621_v47, %v1622_v31 }
 0x147   : > { %7751 = vst [vmem:[#allocation100_spill] sm:$0xff] %v5383_v41  ;;  %7752 = vst [vmem:[#allocation101_spill] sm:$0xff] %v5387_v4  ;;  %v5390_v34 = vadd.f32 %v5188_v24, %v886_v26  ;;  %v4344_v45 = vpop.f32.mrb[42].mxu0  ;;  %1512 = vrot.lane.b32.xlu0 %v5121_v3, %s4461_s13  ;;  %v4057_v26 = vpack.c.bf16 %v5116_v8, %v5116_v8  ;;  %v5437_v0 = vpop.permute.xlu0 %1370 }
 0x148   : > { %7750 = vst [vmem:[#allocation99_spill] sm:$0xff] %v5379_v18  ;;  %v5394_v16 = vpop.f32.mrb[8].mxu1  ;;  %v5397_v57 = vadd.f32 %v5196_v6, %v4344_v45  ;;  %v889_v19 = vpop.f32.mrb[43].mxu0 }
 0x149   : > { %7753 = vst [vmem:[#allocation102_spill] sm:$0xff] %v5390_v34  ;;  %7754 = vst [vmem:[#allocation103_spill] sm:$0xff] %v5394_v16  ;;  %v5401_v25 = vpop.f32.mrb[9].mxu1  ;;  %v5404_v31 = vadd.f32 %v5205_v59, %v889_v19  ;;  %1514 = vrot.lane.b32.xlu1 %v5132_v12, %s4461_s13  ;;  %v5413_v6 = vpop.permute.xlu1 %1365  ;;  %v1626_v45 = vrot.slane %v5394_v16, 1  ;;  %v4058_v59 = vpack.c.bf16 %v5127_v52, %v5127_v52 }
 0x14a   : > { %7755 = vst [vmem:[#allocation104_spill] sm:$0xff] %v5397_v57  ;;  %7757 = vst [vmem:[#allocation106_spill] sm:$0xff] %v5401_v25  ;;  %v1624_v24 = vrot.slane %v5401_v25, 1  ;;  %v5411_v47 = vpop.f32.mrb[10].mxu1 }
 0x14b   : > { %7758 = vst [vmem:[#allocation107_spill] sm:$0xff] %v5404_v31  ;;  %7759 = vst [vmem:[#allocation108_spill] sm:$0xff] %v5411_v47  ;;  %v1627_v4 = vrot.slane %v5411_v47, 1  ;;  %v5417_v41 = vpop.f32.mrb[11].mxu1  ;;  %1996 = vrot.lane.b32.xlu0 %v4057_v26, %s4462_s14 }
 0x14c   : > { %7760 = vst [vmem:[#allocation109_spill] sm:$0xff] %v5413_v6  ;;  %7761 = vst [vmem:[#allocation110_spill] sm:$0xff] %v5417_v41  ;;  %v1625_v19 = vrot.slane %v5417_v41, 1  ;;  %v5425_v8 = vsel %vm1215_vm2, %v1623_v48, %v1624_v24  ;;  %v4055_v6 = vpack.c.bf16 %v5121_v3, %v5121_v3 }
 0x14d   : > { %7762 = vst [vmem:[#allocation111_spill] sm:$0xff] %v5425_v8  ;;  %v4347_v1 = vpop.f32.mrb[44].mxu0  ;;  %1998 = vrot.lane.b32.xlu1 %v4058_v59, %s4462_s14  ;;  %v5432_v36 = vsel %vm1215_vm2, %v1626_v45, %v1627_v4  ;;  %v4056_v59 = vpack.c.bf16 %v5132_v12, %v5132_v12 }
 0x14e   : > { %7763 = vst [vmem:[#allocation112_spill] sm:$0xff] %v5432_v36  ;;  %v5435_v26 = vadd.f32 %v5236_v35, %v4347_v1  ;;  %v902_v52 = vpop.f32.mrb[45].mxu0  ;;  %v5447_v3 = vsel %vm1215_vm2, %v1624_v24, %v1625_v19 }
 0x14f   : > { %v5440_v10 = vadd.f32 %v5241_v7, %v902_v52  ;;  %v4348_v48 = vpop.f32.mrb[46].mxu0  ;;  %1992 = vrot.lane.b32.xlu0 %v4055_v6, %s4462_s14  ;;  %7766 = vst [vmem:[#allocation115_spill] sm:$0xff] %v5447_v3  ;;  %v5456_v7 = vsel %vm1215_vm2, %v1625_v19, %v1626_v45  ;;  %v5458_v52 = vpop.permute.xlu1 %1375 }
 0x150   : > { %7764 = vst [vmem:[#allocation113_spill] sm:$0xff] %v5435_v26  ;;  %v5449_v36 = vpop.f32.mrb[12].mxu1  ;;  %v5452_v1 = vadd.f32 %v5248_v21, %v4348_v48  ;;  %v905_v35 = vpop.f32.mrb[47].mxu0  ;;  %7769 = vst [vmem:[#allocation118_spill] sm:$0xff] %v5456_v7 }
 0x151   : > { %7765 = vst [vmem:[#allocation114_spill] sm:$0xff] %v5440_v10  ;;  %7767 = vst [vmem:[#allocation116_spill] sm:$0xff] %v5449_v36  ;;  %v5460_v6 = vpop.f32.mrb[13].mxu1  ;;  %v5463_v12 = vadd.f32 %v5262_v46, %v905_v35  ;;  %1994 = vrot.lane.b32.xlu1 %v4056_v59, %s4462_s14  ;;  %v1630_v21 = vrot.slane %v5449_v36, 1  ;;  %v5480_v19 = vpop.permute.xlu0 %1380 }
 0x152   : > { %7768 = vst [vmem:[#allocation117_spill] sm:$0xff] %v5452_v1  ;;  %7770 = vst [vmem:[#allocation119_spill] sm:$0xff] %v5458_v52  ;;  %v1628_v24 = vrot.slane %v5460_v6, 1  ;;  %v5467_v3 = vpop.f32.mrb[14].mxu1 }
 0x153   : > { %7771 = vst [vmem:[#allocation120_spill] sm:$0xff] %v5460_v6  ;;  %7772 = vst [vmem:[#allocation121_spill] sm:$0xff] %v5463_v12  ;;  %v7488_v48 = vrot.slane %v5467_v3, 1  ;;  %v5471_v8 = vpop.f32.mrb[15].mxu1  ;;  %1524 = vrot.lane.b32.xlu0 %v5166_v50, %s4461_s13  ;;  %v5490_v35 = vpop.permute.xlu1 %1385 }
 0x154   : > { %7773 = vst [vmem:[#allocation122_spill] sm:$0xff] %v5467_v3  ;;  %7774 = vst [vmem:[#allocation123_spill] sm:$0xff] %v5471_v8  ;;  %v1629_v45 = vrot.slane %v5471_v8, 1  ;;  %v5478_v46 = vsel %vm1215_vm2, %v1627_v4, %v1628_v24 }
 0x155   : > { %7775 = vst [vmem:[#allocation124_spill] sm:$0xff] %v5478_v46  ;;  %1526 = vrot.lane.b32.xlu1 %v5176_v55, %s4461_s13  ;;  %v5488_v59 = vsel %vm1215_vm2, %v1630_v21, %v7488_v48  ;;  %v4061_v48 = vpack.c.bf16 %v5166_v50, %v5166_v50  ;;  %v4062_v46 = vpack.c.bf16 %v5176_v55, %v5176_v55 }
 0x156   : > { %7776 = vst [vmem:[#allocation125_spill] sm:$0xff] %v5488_v59  ;;  %v5496_v4 = vsel %vm1215_vm2, %v1628_v24, %v1629_v45  ;;  %v5500_v7 = vsel %vm1215_vm2, %v1629_v45, %v1630_v21  ;;  %v5506_v59 = vpop.permute.xlu0 %1390  ;;  %v4059_v24 = vpack.c.bf16 %v5171_v60, %v5171_v60  ;;  %v4060_v21 = vpack.c.bf16 %v5181_v30, %v5181_v30 }
 0x157   : > { %1520 = vrot.lane.b32.xlu0 %v5171_v60, %s4461_s13  ;;  %7777 = vst [vmem:[#allocation126_spill] sm:$0xff] %v5496_v4  ;;  %7778 = vst [vmem:[#allocation127_spill] sm:$0xff] %v5500_v7  ;;  %v5511_v52 = vpop.permute.xlu1 %1395  ;;  %v4064_v4 = vpack.c.bf16 %v5234_v54, %v5234_v54 }
 0x159   : > { %1522 = vrot.lane.b32.xlu1 %v5181_v30, %s4461_s13  ;;  %v4066_v30 = vpack.c.bf16 %v5228_v14, %v5228_v14 }
 0x15a   : > { %v5519_v45 = vpop.permute.xlu0 %1400 }
 0x15b   : > { %2004 = vrot.lane.b32.xlu0 %v4061_v48, %s4462_s14  ;;  %v5522_v48 = vpop.permute.xlu1 %1405 }
 0x15d   : > { %2006 = vrot.lane.b32.xlu1 %v4062_v46, %s4462_s14 }
 0x15f   : > { %2000 = vrot.lane.b32.xlu0 %v4059_v24, %s4462_s14 }
 0x161   : > { %2002 = vrot.lane.b32.xlu1 %v4060_v21, %s4462_s14  ;;  %v4065_v21 = vpack.c.bf16 %v5219_v39, %v5219_v39 }
 0x163   : > { %1532 = vrot.lane.b32.xlu0 %v5219_v39, %s4461_s13  ;;  %v4063_v39 = vpack.c.bf16 %v5225_v20, %v5225_v20 }
 0x165   : > { %v5526_v55 = vpop.permute.xlu0 %1476  ;;  %1534 = vrot.lane.b32.xlu1 %v5228_v14, %s4461_s13 }
 0x167   : > { %v5530_v46 = vpop.permute.xlu1 %1478  ;;  %1528 = vrot.lane.b32.xlu0 %v5225_v20, %s4461_s13 }
 0x169   : > { %v5534_v24 = vpop.permute.xlu0 %1472  ;;  %1530 = vrot.lane.b32.xlu1 %v5234_v54, %s4461_s13  ;;  %v4118_v54 = vpack.c.bf16 %v5302_v11, %v5302_v11 }
 0x16b   : > { %v5547_v50 = vpop.permute.xlu1 %1474  ;;  %2012 = vrot.lane.b32.xlu0 %v4065_v21, %s4462_s14 }
 0x16d   : > { %v1957_v60 = vpop.permute.xlu0 %1956  ;;  %2014 = vrot.lane.b32.xlu1 %v4066_v30, %s4462_s14 }
 0x16e   : > { %2051 = vst.msk [vmem:[%s5545_s18 + $0x8] sm:$0xf] %vm2048_vm3, %v1957_v60 }
 0x16f   : > { %v1959_v7 = vpop.permute.xlu1 %1958  ;;  %2008 = vrot.lane.b32.xlu0 %v4063_v39, %s4462_s14 }
 0x170   : > { %2052 = vst.msk [vmem:[%s5545_s18 + $0xc] sm:$0xf] %vm2048_vm3, %v1959_v7 }
 0x171   : > { %v1953_v21 = vpop.permute.xlu0 %1952  ;;  %2010 = vrot.lane.b32.xlu1 %v4064_v4, %s4462_s14 }
 0x172   : > { %2049 = vst.msk [vmem:[%s5545_s18] sm:$0xf] %vm2048_vm3, %v1953_v21 }
 0x173   : > { %v1955_v30 = vpop.permute.xlu1 %1954  ;;  %1764 = vrot.lane.b32.xlu0 %v5286_v42, %s4461_s13 }
 0x174   : > { %2050 = vst.msk [vmem:[%s5545_s18 + $0x4] sm:$0xf] %vm2048_vm3, %v1955_v30  ;;  %v4117_v30 = vpack.c.bf16 %v5286_v42, %v5286_v42  ;;  %v4102_v42 = vpack.c.bf16 %v5289_v5, %v5289_v5 }
 0x175   : > { %v5569_v60 = vpop.permute.xlu0 %1484  ;;  %1766 = vrot.lane.b32.xlu1 %v5302_v11, %s4461_s13 }
 0x177   : > { %v5573_v39 = vpop.permute.xlu1 %1486  ;;  %1760 = vrot.lane.b32.xlu0 %v5293_v61, %s4461_s13 }
 0x179   : > { %v5577_v7 = vpop.permute.xlu0 %1480  ;;  %1762 = vrot.lane.b32.xlu1 %v5306_v22, %s4461_s13 }
 0x17b   : > { %v5581_v4 = vpop.permute.xlu1 %1482  ;;  %1732 = vrot.lane.b32.xlu0 %v5277_v33, %s4461_s13 }
 0x17d   : > { %v1965_v21 = vpop.permute.xlu0 %1964  ;;  %1734 = vrot.lane.b32.xlu1 %v5289_v5, %s4461_s13 }
 0x17e   : > { %2055 = vst.msk [vmem:[%s5545_s18 + $0x18] sm:$0xf] %vm2048_vm3, %v1965_v21 }
 0x17f   : > { %v1967_v14 = vpop.permute.xlu1 %1966  ;;  %2438 = vrot.lane.b32.xlu0 %v4117_v30, %s4463_s15 }
 0x180   : > { %2056 = vst.msk [vmem:[%s5545_s18 + $0x1c] sm:$0xf] %vm2048_vm3, %v1967_v14  ;;  %v4115_v14 = vpack.c.bf16 %v5293_v61, %v5293_v61  ;;  %v4100_v61 = vpack.c.bf16 %v5296_v49, %v5296_v49 }
 0x181   : > { %v1961_v20 = vpop.permute.xlu0 %1960  ;;  %2440 = vrot.lane.b32.xlu1 %v4118_v54, %s4463_s15 }
 0x182   : > { %2053 = vst.msk [vmem:[%s5545_s18 + $0x10] sm:$0xf] %vm2048_vm3, %v1961_v20  ;;  %v4116_v20 = vpack.c.bf16 %v5306_v22, %v5306_v22  ;;  %v4099_v22 = vpack.c.bf16 %v5282_v32, %v5282_v32 }
 0x183   : > { %v1963_v56 = vpop.permute.xlu1 %1962  ;;  %1728 = vrot.lane.b32.xlu0 %v5282_v32, %s4461_s13  ;;  %v4122_v32 = vpack.c.bf16 %v5355_v28, %v5355_v28 }
 0x184   : > { %2054 = vst.msk [vmem:[%s5545_s18 + $0x14] sm:$0xf] %vm2048_vm3, %v1963_v56  ;;  %v4101_v56 = vpack.c.bf16 %v5277_v33, %v5277_v33 }
 0x185   : > { %v5603_v21 = vpop.permute.xlu0 %1492  ;;  %1730 = vrot.lane.b32.xlu1 %v5296_v49, %s4461_s13 }
 0x187   : > { %v5609_v30 = vpop.permute.xlu1 %1494  ;;  %2434 = vrot.lane.b32.xlu0 %v4115_v14, %s4463_s15 }
 0x189   : > { %v5614_v54 = vpop.permute.xlu0 %1488  ;;  %2436 = vrot.lane.b32.xlu1 %v4116_v20, %s4463_s15 }
 0x18b   : > { %v5619_v11 = vpop.permute.xlu1 %1490  ;;  %2406 = vrot.lane.b32.xlu0 %v4101_v56, %s4463_s15 }
 0x18d   : > { %v1973_v14 = vpop.permute.xlu0 %1972  ;;  %2408 = vrot.lane.b32.xlu1 %v4102_v42, %s4463_s15 }
 0x18e   : > { %2059 = vst.msk [vmem:[%s5545_s18 + $0x28] sm:$0xf] %vm2048_vm3, %v1973_v14 }
 0x18f   : > { %v1975_v20 = vpop.permute.xlu1 %1974  ;;  %2402 = vrot.lane.b32.xlu0 %v4099_v22, %s4463_s15 }
 0x190   : > { %2060 = vst.msk [vmem:[%s5545_s18 + $0x2c] sm:$0xf] %vm2048_vm3, %v1975_v20 }
 0x191   : > { %v1969_v56 = vpop.permute.xlu0 %1968  ;;  %2404 = vrot.lane.b32.xlu1 %v4100_v61, %s4463_s15 }
 0x192   : > { %2057 = vst.msk [vmem:[%s5545_s18 + $0x20] sm:$0xf] %vm2048_vm3, %v1969_v56 }
 0x193   : > { %v1971_v42 = vpop.permute.xlu1 %1970  ;;  %1772 = vrot.lane.b32.xlu0 %v5343_v43, %s4461_s13 }
 0x194   : > { %2058 = vst.msk [vmem:[%s5545_s18 + $0x24] sm:$0xf] %vm2048_vm3, %v1971_v42  ;;  %v4121_v42 = vpack.c.bf16 %v5343_v43, %v5343_v43  ;;  %v4106_v43 = vpack.c.bf16 %v5346_v38, %v5346_v38 }
 0x195   : > { %v5641_v14 = vpop.permute.xlu0 %1500  ;;  %1774 = vrot.lane.b32.xlu1 %v5355_v28, %s4461_s13 }
 0x197   : > { %v5645_v22 = vpop.permute.xlu1 %1502  ;;  %1768 = vrot.lane.b32.xlu0 %v5348_v17, %s4461_s13 }
 0x199   : > { %v5649_v61 = vpop.permute.xlu0 %1496  ;;  %1770 = vrot.lane.b32.xlu1 %v5361_v53, %s4461_s13 }
 0x19b   : > { %v5653_v20 = vpop.permute.xlu1 %1498  ;;  %1740 = vrot.lane.b32.xlu0 %v5323_v58, %s4461_s13 }
 0x19d   : > { %v1981_v56 = vpop.permute.xlu0 %1980  ;;  %1742 = vrot.lane.b32.xlu1 %v5346_v38, %s4461_s13  ;;  %v4126_v38 = vpack.c.bf16 %v5411_v47, %v5411_v47 }
 0x19e   : > { %2063 = vst.msk [vmem:[%s5545_s18 + $0x38] sm:$0xf] %vm2048_vm3, %v1981_v56 }
 0x19f   : > { %v1983_v49 = vpop.permute.xlu1 %1982  ;;  %2446 = vrot.lane.b32.xlu0 %v4121_v42, %s4463_s15 }
 0x1a0   : > { %2064 = vst.msk [vmem:[%s5545_s18 + $0x3c] sm:$0xf] %vm2048_vm3, %v1983_v49  ;;  %v4119_v49 = vpack.c.bf16 %v5348_v17, %v5348_v17  ;;  %v4104_v17 = vpack.c.bf16 %v5351_v2, %v5351_v2 }
 0x1a1   : > { %v1977_v5 = vpop.permute.xlu0 %1976  ;;  %2448 = vrot.lane.b32.xlu1 %v4122_v32, %s4463_s15  ;;  %v4120_v32 = vpack.c.bf16 %v5361_v53, %v5361_v53  ;;  %v4103_v53 = vpack.c.bf16 %v5338_v37, %v5338_v37 }
 0x1a2   : > { %2061 = vst.msk [vmem:[%s5545_s18 + $0x30] sm:$0xf] %vm2048_vm3, %v1977_v5 }
 0x1a3   : > { %v1979_v33 = vpop.permute.xlu1 %1978  ;;  %1736 = vrot.lane.b32.xlu0 %v5338_v37, %s4461_s13 }
 0x1a4   : > { %2062 = vst.msk [vmem:[%s5545_s18 + $0x34] sm:$0xf] %vm2048_vm3, %v1979_v33  ;;  %v4105_v33 = vpack.c.bf16 %v5323_v58, %v5323_v58 }
 0x1a5   : > { %v5675_v56 = vpop.permute.xlu0 %1508  ;;  %1738 = vrot.lane.b32.xlu1 %v5351_v2, %s4461_s13 }
 0x1a7   : > { %v5681_v42 = vpop.permute.xlu1 %1510  ;;  %2442 = vrot.lane.b32.xlu0 %v4119_v49, %s4463_s15 }
 0x1a9   : > { %v5686_v5 = vpop.permute.xlu0 %1504  ;;  %2444 = vrot.lane.b32.xlu1 %v4120_v32, %s4463_s15 }
 0x1ab   : > { %v5691_v28 = vpop.permute.xlu1 %1506  ;;  %2414 = vrot.lane.b32.xlu0 %v4105_v33, %s4463_s15 }
 0x1ad   : > { %v1989_v49 = vpop.permute.xlu0 %1988  ;;  %2416 = vrot.lane.b32.xlu1 %v4106_v43, %s4463_s15 }
 0x1ae   : > { %2067 = vst.msk [vmem:[%s5545_s18 + $0x48] sm:$0xf] %vm2048_vm3, %v1989_v49 }
 0x1af   : > { %v1991_v32 = vpop.permute.xlu1 %1990  ;;  %2410 = vrot.lane.b32.xlu0 %v4103_v53, %s4463_s15 }
 0x1b0   : > { %2068 = vst.msk [vmem:[%s5545_s18 + $0x4c] sm:$0xf] %vm2048_vm3, %v1991_v32 }
 0x1b1   : > { %v1985_v33 = vpop.permute.xlu0 %1984  ;;  %2412 = vrot.lane.b32.xlu1 %v4104_v17, %s4463_s15 }
 0x1b2   : > { %2065 = vst.msk [vmem:[%s5545_s18 + $0x40] sm:$0xf] %vm2048_vm3, %v1985_v33 }
 0x1b3   : > { %v1987_v43 = vpop.permute.xlu1 %1986  ;;  %1780 = vrot.lane.b32.xlu0 %v5394_v16, %s4461_s13 }
 0x1b4   : > { %2066 = vst.msk [vmem:[%s5545_s18 + $0x44] sm:$0xf] %vm2048_vm3, %v1987_v43  ;;  %v4125_v43 = vpack.c.bf16 %v5394_v16, %v5394_v16  ;;  %v4110_v16 = vpack.c.bf16 %v5397_v57, %v5397_v57 }
 0x1b5   : > { %v5713_v49 = vpop.permute.xlu0 %1516  ;;  %1782 = vrot.lane.b32.xlu1 %v5411_v47, %s4461_s13 }
 0x1b7   : > { %v5717_v53 = vpop.permute.xlu1 %1518  ;;  %1776 = vrot.lane.b32.xlu0 %v5401_v25, %s4461_s13 }
 0x1b9   : > { %v5721_v17 = vpop.permute.xlu0 %1512  ;;  %1778 = vrot.lane.b32.xlu1 %v5417_v41, %s4461_s13 }
 0x1bb   : > { %v5725_v32 = vpop.permute.xlu1 %1514  ;;  %1748 = vrot.lane.b32.xlu0 %v5379_v18, %s4461_s13 }
 0x1bd   : > { %v1997_v33 = vpop.permute.xlu0 %1996  ;;  %1750 = vrot.lane.b32.xlu1 %v5397_v57, %s4461_s13  ;;  %v4130_v57 = vpack.c.bf16 %v5467_v3, %v5467_v3 }
 0x1be   : > { %2071 = vst.msk [vmem:[%s5545_s18 + $0x58] sm:$0xf] %vm2048_vm3, %v1997_v33 }
 0x1bf   : > { %v1999_v2 = vpop.permute.xlu1 %1998  ;;  %2454 = vrot.lane.b32.xlu0 %v4125_v43, %s4463_s15 }
 0x1c0   : > { %2072 = vst.msk [vmem:[%s5545_s18 + $0x5c] sm:$0xf] %vm2048_vm3, %v1999_v2  ;;  %v4123_v2 = vpack.c.bf16 %v5401_v25, %v5401_v25  ;;  %v4108_v25 = vpack.c.bf16 %v5404_v31, %v5404_v31 }
 0x1c1   : > { %v1993_v58 = vpop.permute.xlu0 %1992  ;;  %2456 = vrot.lane.b32.xlu1 %v4126_v38, %s4463_s15  ;;  %v4124_v38 = vpack.c.bf16 %v5417_v41, %v5417_v41  ;;  %v4107_v41 = vpack.c.bf16 %v5390_v34, %v5390_v34 }
 0x1c2   : > { %2069 = vst.msk [vmem:[%s5545_s18 + $0x50] sm:$0xf] %vm2048_vm3, %v1993_v58 }
 0x1c3   : > { %v1995_v37 = vpop.permute.xlu1 %1994  ;;  %1744 = vrot.lane.b32.xlu0 %v5390_v34, %s4461_s13 }
 0x1c4   : > { %2070 = vst.msk [vmem:[%s5545_s18 + $0x54] sm:$0xf] %vm2048_vm3, %v1995_v37  ;;  %v4109_v37 = vpack.c.bf16 %v5379_v18, %v5379_v18 }
 0x1c5   : > { %v5747_v33 = vpop.permute.xlu0 %1524  ;;  %1746 = vrot.lane.b32.xlu1 %v5404_v31, %s4461_s13 }
 0x1c7   : > { %v5753_v43 = vpop.permute.xlu1 %1526  ;;  %2450 = vrot.lane.b32.xlu0 %v4123_v2, %s4463_s15 }
 0x1c9   : > { %v5758_v58 = vpop.permute.xlu0 %1520  ;;  %2452 = vrot.lane.b32.xlu1 %v4124_v38, %s4463_s15 }
 0x1cb   : > { %v5763_v47 = vpop.permute.xlu1 %1522  ;;  %2422 = vrot.lane.b32.xlu0 %v4109_v37, %s4463_s15 }
 0x1cd   : > { %v2005_v2 = vpop.permute.xlu0 %2004  ;;  %2424 = vrot.lane.b32.xlu1 %v4110_v16, %s4463_s15 }
 0x1ce   : > { %2075 = vst.msk [vmem:[%s5545_s18 + $0x68] sm:$0xf] %vm2048_vm3, %v2005_v2 }
 0x1cf   : > { %v2007_v38 = vpop.permute.xlu1 %2006  ;;  %2418 = vrot.lane.b32.xlu0 %v4107_v41, %s4463_s15 }
 0x1d0   : > { %2076 = vst.msk [vmem:[%s5545_s18 + $0x6c] sm:$0xf] %vm2048_vm3, %v2007_v38 }
 0x1d1   : > { %v2001_v37 = vpop.permute.xlu0 %2000  ;;  %2420 = vrot.lane.b32.xlu1 %v4108_v25, %s4463_s15 }
 0x1d2   : > { %2073 = vst.msk [vmem:[%s5545_s18 + $0x60] sm:$0xf] %vm2048_vm3, %v2001_v37 }
 0x1d3   : > { %v2003_v16 = vpop.permute.xlu1 %2002  ;;  %1788 = vrot.lane.b32.xlu0 %v5449_v36, %s4461_s13 }
 0x1d4   : > { %2074 = vst.msk [vmem:[%s5545_s18 + $0x64] sm:$0xf] %vm2048_vm3, %v2003_v16  ;;  %v4129_v16 = vpack.c.bf16 %v5449_v36, %v5449_v36  ;;  %v1410_v36 = vmul.f32 %v4998_v15, %v4920_v29  ;;  %v4111_v29 = vpack.c.bf16 %v5440_v10, %v5440_v10 }
 0x1d5   : > { %v5785_v2 = vpop.permute.xlu0 %1532  ;;  %1790 = vrot.lane.b32.xlu1 %v5467_v3, %s4461_s13 }
 0x1d7   : > { %v5789_v41 = vpop.permute.xlu1 %1534  ;;  %1784 = vrot.lane.b32.xlu0 %v5460_v6, %s4461_s13 }
 0x1d9   : > { %v5793_v25 = vpop.permute.xlu0 %1528  ;;  %1786 = vrot.lane.b32.xlu1 %v5471_v8, %s4461_s13 }
 0x1db   : > { %v5797_v38 = vpop.permute.xlu1 %1530  ;;  %1756 = vrot.lane.b32.xlu0 %v5435_v26, %s4461_s13 }
 0x1dd   : > { %v2013_v37 = vpop.permute.xlu0 %2012  ;;  %1758 = vrot.lane.b32.xlu1 %v5452_v1, %s4461_s13 }
 0x1de   : > { %2079 = vst.msk [vmem:[%s5545_s18 + $0x78] sm:$0xf] %vm2048_vm3, %v2013_v37 }
 0x1df   : > { %v2015_v31 = vpop.permute.xlu1 %2014  ;;  %2462 = vrot.lane.b32.xlu0 %v4129_v16, %s4463_s15  ;;  %v4127_v16 = vpack.c.bf16 %v5460_v6, %v5460_v6  ;;  %v5843_v6 = vadd.f32 %v5526_v55, %v1410_v36  ;;  %v1409_v55 = vmul.f32 %v5019_v23, %v4930_v44 }
 0x1e0   : > { %2080 = vst.msk [vmem:[%s5545_s18 + $0x7c] sm:$0xf] %vm2048_vm3, %v2015_v31  ;;  %v4128_v31 = vpack.c.bf16 %v5471_v8, %v5471_v8  ;;  %v4114_v8 = vpack.c.bf16 %v5452_v1, %v5452_v1 }
 0x1e1   : > { %v2009_v18 = vpop.permute.xlu0 %2008  ;;  %2464 = vrot.lane.b32.xlu1 %v4130_v57, %s4463_s15  ;;  %7779 = vst [vmem:[#allocation128_spill] sm:$0xff] %v5843_v6  ;;  %v4069_v36 = vpack.c.bf16 %v5843_v6, %v5843_v6 }
 0x1e2   : > { %2077 = vst.msk [vmem:[%s5545_s18 + $0x70] sm:$0xf] %vm2048_vm3, %v2009_v18 }
 0x1e3   : > { %v2011_v34 = vpop.permute.xlu1 %2010  ;;  %1752 = vrot.lane.b32.xlu0 %v5440_v10, %s4461_s13 }
 0x1e4   : > { %2078 = vst.msk [vmem:[%s5545_s18 + $0x74] sm:$0xf] %vm2048_vm3, %v2011_v34  ;;  %v4113_v34 = vpack.c.bf16 %v5435_v26, %v5435_v26 }
 0x1e5   : > { %v5819_v37 = vpop.permute.xlu0 %1764  ;;  %1754 = vrot.lane.b32.xlu1 %v5463_v12, %s4461_s13 }
 0x1e7   : > { %v5827_v57 = vpop.permute.xlu1 %1766  ;;  %2458 = vrot.lane.b32.xlu0 %v4127_v16, %s4463_s15  ;;  %v1411_v16 = vmul.f32 %v5029_v27, %v4959_v62  ;;  %v4112_v62 = vpack.c.bf16 %v5463_v12, %v5463_v12 }
 0x1e9   : > { %v5830_v18 = vpop.permute.xlu0 %1760  ;;  %2460 = vrot.lane.b32.xlu1 %v4128_v31, %s4463_s15  ;;  %v5853_v26 = vadd.f32 %v5530_v46, %v1411_v16  ;;  %v5875_v16 = vadd.f32 %v5547_v50, %v1409_v55  ;;  %v7789_v55 = vld [vmem:[#allocation26_spill] sm:$0xff] }
 0x1eb   : > { %v5837_v3 = vpop.permute.xlu1 %1762  ;;  %2430 = vrot.lane.b32.xlu0 %v4113_v34, %s4463_s15  ;;  %7780 = vst [vmem:[#allocation129_spill] sm:$0xff] %v5853_v26  ;;  %v1408_v34 = vmul.f32 %v4986_v9, %v4926_v40  ;;  %v4070_v40 = vpack.c.bf16 %v5853_v26, %v5853_v26  ;;  %7783 = vst [vmem:[#allocation132_spill] sm:$0xff] %v5875_v16  ;;  %v4068_v50 = vpack.c.bf16 %v5875_v16, %v5875_v16 }
 0x1ed   : > { %v5847_v31 = vpop.permute.xlu0 %1732  ;;  %2432 = vrot.lane.b32.xlu1 %v4114_v8, %s4463_s15  ;;  %v5865_v8 = vadd.f32 %v5534_v24, %v1408_v34  ;;  %v7786_v34 = vld [vmem:[#allocation36_spill] sm:$0xff] }
 0x1ef   : > { %v5857_v1 = vpop.permute.xlu1 %1734  ;;  %2426 = vrot.lane.b32.xlu0 %v4111_v29, %s4463_s15  ;;  %7781 = vst [vmem:[#allocation130_spill] sm:$0xff] %v5865_v8  ;;  %v1414_v29 = vmul.f32 %v5081_v51, %v4963_v63  ;;  %v4067_v44 = vpack.c.bf16 %v5865_v8, %v5865_v8 }
 0x1f1   : > { %v5869_v46 = vpop.permute.xlu0 %2438  ;;  %2428 = vrot.lane.b32.xlu1 %v4112_v62, %s4463_s15  ;;  %v5885_v24 = vadd.f32 %v5569_v60, %v1414_v29  ;;  %v1415_v62 = vmul.f32 %v7786_v34, %v4996_v13  ;;  %v7792_v29 = vld [vmem:[#allocation29_spill] sm:$0xff] }
 0x1f2   : > { %7782 = vst [vmem:[#allocation131_spill] sm:$0xff] %v5869_v46 }
 0x1f3   : > { %v5879_v6 = vpop.permute.xlu1 %2440  ;;  %2181 = vrot.lane.b32.xlu0 %v4069_v36, %s4463_s15  ;;  %7785 = vst [vmem:[#allocation134_spill] sm:$0xff] %v5885_v24  ;;  %v5895_v63 = vadd.f32 %v5573_v39, %v1415_v62  ;;  %v7788_v36 = vld [vmem:[#allocation11_spill] sm:$0xff]  ;;  %v4073_v13 = vpack.c.bf16 %v5885_v24, %v5885_v24 }
 0x1f4   : > { %7784 = vst [vmem:[#allocation133_spill] sm:$0xff] %v5879_v6  ;;  %v1412_v6 = vmul.f32 %v7789_v55, %v7788_v36  ;;  %v7796_v36 = vld [vmem:[#allocation49_spill] sm:$0xff] }
 0x1f5   : > { %v5889_v46 = vpop.permute.xlu0 %1728  ;;  %2183 = vrot.lane.b32.xlu1 %v4070_v40, %s4463_s15  ;;  %7787 = vst [vmem:[#allocation36_spill] sm:$0xff] %v5895_v63  ;;  %v7791_v40 = vld [vmem:[#allocation12_spill] sm:$0xff]  ;;  %v4074_v39 = vpack.c.bf16 %v5895_v63, %v5895_v63 }
 0x1f6   : > { %v5905_v60 = vadd.f32 %v5577_v7, %v1412_v6  ;;  %v1413_v8 = vmul.f32 %v7792_v29, %v7791_v40  ;;  %v7800_v40 = vld [vmem:[#allocation52_spill] sm:$0xff] }
 0x1f7   : > { %v5899_v26 = vpop.permute.xlu1 %1730  ;;  %2177 = vrot.lane.b32.xlu0 %v4067_v44, %s4463_s15  ;;  %v7795_v44 = vld [vmem:[#allocation17_spill] sm:$0xff] }
 0x1f8   : > { %7790 = vst [vmem:[#allocation11_spill] sm:$0xff] %v5905_v60  ;;  %v5915_v62 = vadd.f32 %v5581_v4, %v1413_v8  ;;  %v1418_v12 = vmul.f32 %v7796_v36, %v7795_v44  ;;  %v4071_v6 = vpack.c.bf16 %v5905_v60, %v5905_v60  ;;  %v7804_v44 = vld [vmem:[#allocation41_spill] sm:$0xff] }
 0x1f9   : > { %v5909_v16 = vpop.permute.xlu0 %2434  ;;  %2179 = vrot.lane.b32.xlu1 %v4068_v50, %s4463_s15  ;;  %v7799_v50 = vld [vmem:[#allocation24_spill] sm:$0xff] }
 0x1fa   : > { %7793 = vst [vmem:[#allocation26_spill] sm:$0xff] %v5909_v16  ;;  %7794 = vst [vmem:[#allocation12_spill] sm:$0xff] %v5915_v62  ;;  %v5925_v7 = vadd.f32 %v5603_v21, %v1418_v12  ;;  %v1419_v16 = vmul.f32 %v7800_v40, %v7799_v50  ;;  %v4072_v4 = vpack.c.bf16 %v5915_v62, %v5915_v62  ;;  %v7808_v50 = vld [vmem:[#allocation44_spill] sm:$0xff] }
 0x1fb   : > { %v5919_v24 = vpop.permute.xlu1 %2436  ;;  %2189 = vrot.lane.b32.xlu0 %v4073_v13, %s4463_s15  ;;  %v7803_v13 = vld [vmem:[#allocation18_spill] sm:$0xff] }
 0x1fc   : > { %7797 = vst [vmem:[#allocation29_spill] sm:$0xff] %v5919_v24  ;;  %7798 = vst [vmem:[#allocation17_spill] sm:$0xff] %v5925_v7  ;;  %v5935_v8 = vadd.f32 %v5609_v30, %v1419_v16  ;;  %v1416_v24 = vmul.f32 %v7804_v44, %v7803_v13  ;;  %v4077_v12 = vpack.c.bf16 %v5925_v7, %v5925_v7  ;;  %v7812_v13 = vld [vmem:[#allocation65_spill] sm:$0xff] }
 0x1fd   : > { %v5929_v63 = vpop.permute.xlu0 %2406  ;;  %2191 = vrot.lane.b32.xlu1 %v4074_v39, %s4463_s15  ;;  %v7807_v39 = vld [vmem:[#allocation19_spill] sm:$0xff] }
 0x1fe   : > { %7801 = vst [vmem:[#allocation49_spill] sm:$0xff] %v5929_v63  ;;  %7802 = vst [vmem:[#allocation24_spill] sm:$0xff] %v5935_v8  ;;  %v5945_v21 = vadd.f32 %v5614_v54, %v1416_v24  ;;  %v1417_v63 = vmul.f32 %v7808_v50, %v7807_v39  ;;  %v4078_v30 = vpack.c.bf16 %v5935_v8, %v5935_v8  ;;  %v7816_v39 = vld [vmem:[#allocation69_spill] sm:$0xff] }
 0x1ff   : > { %v5939_v60 = vpop.permute.xlu1 %2408  ;;  %2185 = vrot.lane.b32.xlu0 %v4071_v6, %s4463_s15  ;;  %v7811_v6 = vld [vmem:[#allocation25_spill] sm:$0xff] }
 0x200   : > { %7805 = vst [vmem:[#allocation18_spill] sm:$0xff] %v5939_v60  ;;  %7806 = vst [vmem:[#allocation135_spill] sm:$0xff] %v5945_v21  ;;  %v5955_v16 = vadd.f32 %v5619_v11, %v1417_v63  ;;  %v1422_v60 = vmul.f32 %v7812_v13, %v7811_v6  ;;  %v4075_v54 = vpack.c.bf16 %v5945_v21, %v5945_v21  ;;  %v7819_v6 = vld [vmem:[#allocation57_spill] sm:$0xff] }
 0x201   : > { %v5949_v62 = vpop.permute.xlu0 %2402  ;;  %2187 = vrot.lane.b32.xlu1 %v4072_v4, %s4463_s15  ;;  %v7815_v4 = vld [vmem:[#allocation34_spill] sm:$0xff] }
 0x202   : > { %7809 = vst [vmem:[#allocation19_spill] sm:$0xff] %v5949_v62  ;;  %7810 = vst [vmem:[#allocation136_spill] sm:$0xff] %v5955_v16  ;;  %v5965_v24 = vadd.f32 %v5641_v14, %v1422_v60  ;;  %v1423_v62 = vmul.f32 %v7816_v39, %v7815_v4  ;;  %v4076_v11 = vpack.c.bf16 %v5955_v16, %v5955_v16  ;;  %v7822_v4 = vld [vmem:[#allocation60_spill] sm:$0xff] }
 0x203   : > { %v5959_v7 = vpop.permute.xlu1 %2404  ;;  %2197 = vrot.lane.b32.xlu0 %v4077_v12, %s4463_s15  ;;  %v7818_v12 = vld [vmem:[#allocation27_spill] sm:$0xff] }
 0x204   : > { %7813 = vst [vmem:[#allocation25_spill] sm:$0xff] %v5959_v7  ;;  %7814 = vst [vmem:[#allocation137_spill] sm:$0xff] %v5965_v24  ;;  %v5975_v63 = vadd.f32 %v5645_v22, %v1423_v62  ;;  %v1420_v7 = vmul.f32 %v7819_v6, %v7818_v12  ;;  %v4081_v14 = vpack.c.bf16 %v5965_v24, %v5965_v24  ;;  %v7825_v12 = vld [vmem:[#allocation82_spill] sm:$0xff] }
 0x205   : > { %v5969_v8 = vpop.permute.xlu0 %1772  ;;  %2199 = vrot.lane.b32.xlu1 %v4078_v30, %s4463_s15  ;;  %v7821_v30 = vld [vmem:[#allocation28_spill] sm:$0xff] }
 0x206   : > { %7817 = vst [vmem:[#allocation34_spill] sm:$0xff] %v5975_v63  ;;  %v5985_v60 = vadd.f32 %v5649_v61, %v1420_v7  ;;  %v1421_v39 = vmul.f32 %v7822_v4, %v7821_v30  ;;  %v4082_v22 = vpack.c.bf16 %v5975_v63, %v5975_v63  ;;  %v7828_v30 = vld [vmem:[#allocation87_spill] sm:$0xff] }
 0x207   : > { %v5979_v21 = vpop.permute.xlu1 %1774  ;;  %2193 = vrot.lane.b32.xlu0 %v4075_v54, %s4463_s15  ;;  %v7824_v54 = vld [vmem:[#allocation35_spill] sm:$0xff] }
 0x208   : > { %7820 = vst [vmem:[#allocation27_spill] sm:$0xff] %v5985_v60  ;;  %v5995_v62 = vadd.f32 %v5653_v20, %v1421_v39  ;;  %v1426_v6 = vmul.f32 %v7825_v12, %v7824_v54  ;;  %v4079_v61 = vpack.c.bf16 %v5985_v60, %v5985_v60  ;;  %v7831_v54 = vld [vmem:[#allocation73_spill] sm:$0xff] }
 0x209   : > { %v5989_v16 = vpop.permute.xlu0 %1768  ;;  %2195 = vrot.lane.b32.xlu1 %v4076_v11, %s4463_s15  ;;  %v7827_v11 = vld [vmem:[#allocation45_spill] sm:$0xff] }
 0x20a   : > { %7823 = vst [vmem:[#allocation28_spill] sm:$0xff] %v5995_v62  ;;  %v6005_v7 = vadd.f32 %v5675_v56, %v1426_v6  ;;  %v1427_v4 = vmul.f32 %v7828_v30, %v7827_v11  ;;  %v4080_v20 = vpack.c.bf16 %v5995_v62, %v5995_v62  ;;  %v7834_v11 = vld [vmem:[#allocation77_spill] sm:$0xff] }
 0x20b   : > { %v5999_v24 = vpop.permute.xlu1 %1770  ;;  %2205 = vrot.lane.b32.xlu0 %v4081_v14, %s4463_s15  ;;  %v7830_v14 = vld [vmem:[#allocation37_spill] sm:$0xff] }
 0x20c   : > { %7826 = vst [vmem:[#allocation35_spill] sm:$0xff] %v6005_v7  ;;  %v6015_v39 = vadd.f32 %v5681_v42, %v1427_v4  ;;  %v1424_v13 = vmul.f32 %v7831_v54, %v7830_v14  ;;  %v4085_v56 = vpack.c.bf16 %v6005_v7, %v6005_v7  ;;  %v7838_v14 = vld [vmem:[#allocation105_spill] sm:$0xff] }
 0x20d   : > { %v6009_v63 = vpop.permute.xlu0 %1740  ;;  %2207 = vrot.lane.b32.xlu1 %v4082_v22, %s4463_s15  ;;  %v7833_v22 = vld [vmem:[#allocation38_spill] sm:$0xff] }
 0x20e   : > { %7829 = vst [vmem:[#allocation82_spill] sm:$0xff] %v6015_v39  ;;  %v6025_v6 = vadd.f32 %v5686_v5, %v1424_v13  ;;  %v1425_v50 = vmul.f32 %v7834_v11, %v7833_v22  ;;  %v4086_v42 = vpack.c.bf16 %v6015_v39, %v6015_v39  ;;  %v7842_v22 = vld [vmem:[#allocation109_spill] sm:$0xff] }
 0x20f   : > { %v6019_v60 = vpop.permute.xlu1 %1742  ;;  %2201 = vrot.lane.b32.xlu0 %v4079_v61, %s4463_s15  ;;  %v7837_v61 = vld [vmem:[#allocation46_spill] sm:$0xff] }
 0x210   : > { %7832 = vst [vmem:[#allocation45_spill] sm:$0xff] %v6025_v6  ;;  %v6035_v4 = vadd.f32 %v5691_v28, %v1425_v50  ;;  %v1430_v44 = vmul.f32 %v7838_v14, %v7837_v61  ;;  %v4083_v5 = vpack.c.bf16 %v6025_v6, %v6025_v6  ;;  %v7845_v61 = vld [vmem:[#allocation94_spill] sm:$0xff] }
 0x211   : > { %v6029_v62 = vpop.permute.xlu0 %2446  ;;  %2203 = vrot.lane.b32.xlu1 %v4080_v20, %s4463_s15  ;;  %v7841_v20 = vld [vmem:[#allocation55_spill] sm:$0xff] }
 0x212   : > { %7835 = vst [vmem:[#allocation87_spill] sm:$0xff] %v6029_v62  ;;  %7836 = vst [vmem:[#allocation37_spill] sm:$0xff] %v6035_v4  ;;  %v6045_v13 = vadd.f32 %v5713_v49, %v1430_v44  ;;  %v1431_v62 = vmul.f32 %v7842_v22, %v7841_v20  ;;  %v4084_v28 = vpack.c.bf16 %v6035_v4, %v6035_v4  ;;  %v7848_v20 = vld [vmem:[#allocation97_spill] sm:$0xff] }
 0x213   : > { %v6039_v7 = vpop.permute.xlu1 %2448  ;;  %2213 = vrot.lane.b32.xlu0 %v4085_v56, %s4463_s15  ;;  %v7844_v56 = vld [vmem:[#allocation47_spill] sm:$0xff] }
 0x214   : > { %7839 = vst [vmem:[#allocation73_spill] sm:$0xff] %v6039_v7  ;;  %7840 = vst [vmem:[#allocation38_spill] sm:$0xff] %v6045_v13  ;;  %v6055_v50 = vadd.f32 %v5717_v53, %v1431_v62  ;;  %v1428_v7 = vmul.f32 %v7845_v61, %v7844_v56  ;;  %v4089_v49 = vpack.c.bf16 %v6045_v13, %v6045_v13 }
 0x215   : > { %v6049_v39 = vpop.permute.xlu0 %1736  ;;  %2215 = vrot.lane.b32.xlu1 %v4086_v42, %s4463_s15  ;;  %v7847_v42 = vld [vmem:[#allocation48_spill] sm:$0xff] }
 0x216   : > { %7843 = vst [vmem:[#allocation77_spill] sm:$0xff] %v6055_v50  ;;  %v6065_v44 = vadd.f32 %v5721_v17, %v1428_v7  ;;  %v1429_v40 = vmul.f32 %v7848_v20, %v7847_v42  ;;  %v4090_v53 = vpack.c.bf16 %v6055_v50, %v6055_v50 }
 0x217   : > { %v6059_v6 = vpop.permute.xlu1 %1738  ;;  %2209 = vrot.lane.b32.xlu0 %v4083_v5, %s4463_s15  ;;  %v7851_v5 = vld [vmem:[#allocation56_spill] sm:$0xff] }
 0x218   : > { %7846 = vst [vmem:[#allocation46_spill] sm:$0xff] %v6065_v44  ;;  %v6075_v62 = vadd.f32 %v5725_v32, %v1429_v40  ;;  %v1434_v56 = vmul.f32 %v5480_v19, %v7851_v5  ;;  %v4087_v17 = vpack.c.bf16 %v6065_v44, %v6065_v44 }
 0x219   : > { %v6069_v4 = vpop.permute.xlu0 %2442  ;;  %2211 = vrot.lane.b32.xlu1 %v4084_v28, %s4463_s15  ;;  %v7854_v28 = vld [vmem:[#allocation66_spill] sm:$0xff] }
 0x21a   : > { %7849 = vst [vmem:[#allocation105_spill] sm:$0xff] %v6069_v4  ;;  %7850 = vst [vmem:[#allocation55_spill] sm:$0xff] %v6075_v62  ;;  %v6085_v7 = vadd.f32 %v5747_v33, %v1434_v56  ;;  %v1435_v42 = vmul.f32 %v5490_v35, %v7854_v28  ;;  %v4088_v32 = vpack.c.bf16 %v6075_v62, %v6075_v62  ;;  %v7859_v28 = vld [vmem:[#allocation119_spill] sm:$0xff] }
 0x21b   : > { %v6079_v13 = vpop.permute.xlu1 %2444  ;;  %2221 = vrot.lane.b32.xlu0 %v4089_v49, %s4463_s15  ;;  %v7856_v49 = vld [vmem:[#allocation58_spill] sm:$0xff] }
 0x21c   : > { %7852 = vst [vmem:[#allocation109_spill] sm:$0xff] %v6079_v13  ;;  %7853 = vst [vmem:[#allocation47_spill] sm:$0xff] %v6085_v7  ;;  %v6095_v40 = vadd.f32 %v5753_v43, %v1435_v42  ;;  %v1432_v5 = vmul.f32 %v5437_v0, %v7856_v49  ;;  %v4093_v33 = vpack.c.bf16 %v6085_v7, %v6085_v7 }
 0x21d   : > { %v6089_v50 = vpop.permute.xlu0 %2414  ;;  %2223 = vrot.lane.b32.xlu1 %v4090_v53, %s4463_s15  ;;  %v7858_v53 = vld [vmem:[#allocation59_spill] sm:$0xff] }
 0x21e   : > { %7855 = vst [vmem:[#allocation94_spill] sm:$0xff] %v6095_v40  ;;  %v6105_v56 = vadd.f32 %v5758_v58, %v1432_v5  ;;  %v1433_v13 = vmul.f32 %v7859_v28, %v7858_v53  ;;  %v4094_v43 = vpack.c.bf16 %v6095_v40, %v6095_v40 }
 0x21f   : > { %v6099_v44 = vpop.permute.xlu1 %2416  ;;  %2217 = vrot.lane.b32.xlu0 %v4087_v17, %s4463_s15  ;;  %v7862_v17 = vld [vmem:[#allocation67_spill] sm:$0xff] }
 0x220   : > { %7857 = vst [vmem:[#allocation48_spill] sm:$0xff] %v6105_v56  ;;  %v6115_v42 = vadd.f32 %v5763_v47, %v1433_v13  ;;  %v1438_v49 = vmul.f32 %v5519_v45, %v7862_v17  ;;  %v4091_v58 = vpack.c.bf16 %v6105_v56, %v6105_v56 }
 0x221   : > { %v6109_v62 = vpop.permute.xlu0 %2410  ;;  %2219 = vrot.lane.b32.xlu1 %v4088_v32, %s4463_s15  ;;  %v7865_v32 = vld [vmem:[#allocation68_spill] sm:$0xff] }
 0x222   : > { %7860 = vst [vmem:[#allocation97_spill] sm:$0xff] %v6109_v62  ;;  %7861 = vst [vmem:[#allocation56_spill] sm:$0xff] %v6115_v42  ;;  %v6125_v5 = vadd.f32 %v5785_v2, %v1438_v49  ;;  %v1439_v53 = vmul.f32 %v5522_v48, %v7865_v32  ;;  %v4092_v47 = vpack.c.bf16 %v6115_v42, %v6115_v42  ;;  %v7881_v62 = vld [vmem:[#allocation79_spill] sm:$0xff] }
 0x223   : > { %v6119_v7 = vpop.permute.xlu1 %2412  ;;  %2229 = vrot.lane.b32.xlu0 %v4093_v33, %s4463_s15  ;;  %v7867_v33 = vld [vmem:[#allocation70_spill] sm:$0xff] }
 0x224   : > { %7863 = vst [vmem:[#allocation66_spill] sm:$0xff] %v6119_v7  ;;  %7864 = vst [vmem:[#allocation58_spill] sm:$0xff] %v6125_v5  ;;  %v6135_v13 = vadd.f32 %v5789_v41, %v1439_v53  ;;  %v1436_v17 = vmul.f32 %v5506_v59, %v7867_v33  ;;  %v4097_v2 = vpack.c.bf16 %v6125_v5, %v6125_v5 }
 0x225   : > { %v6129_v40 = vpop.permute.xlu0 %1780  ;;  %2231 = vrot.lane.b32.xlu1 %v4094_v43, %s4463_s15  ;;  %v7869_v43 = vld [vmem:[#allocation71_spill] sm:$0xff] }
 0x226   : > { %7866 = vst [vmem:[#allocation59_spill] sm:$0xff] %v6135_v13  ;;  %v6145_v49 = vadd.f32 %v5793_v25, %v1436_v17  ;;  %v1437_v32 = vmul.f32 %v5511_v52, %v7869_v43  ;;  %v4098_v41 = vpack.c.bf16 %v6135_v13, %v6135_v13  ;;  %v7872_v25 = vld [vmem:[#allocation72_spill] sm:$0xff] }
 0x227   : > { %v6139_v56 = vpop.permute.xlu1 %1782  ;;  %2225 = vrot.lane.b32.xlu0 %v4091_v58, %s4463_s15  ;;  %v7871_v58 = vld [vmem:[#allocation83_spill] sm:$0xff]  ;;  %v1602_v17 = vrot.slane %v7872_v25, 1  ;;  %v7873_v43 = vld [vmem:[#allocation76_spill] sm:$0xff]  ;;  %v7878_v25 = vld [vmem:[#allocation85_spill] sm:$0xff] }
 0x228   : > { %7868 = vst [vmem:[#allocation119_spill] sm:$0xff] %v6145_v49  ;;  %v6155_v53 = vadd.f32 %v5797_v38, %v1437_v32  ;;  %v1682_v33 = vmul.f32 %v7871_v58, %v7825_v12  ;;  %v1603_v4 = vrot.slane %v7873_v43, 1  ;;  %v7875_v38 = vld [vmem:[#allocation96_spill] sm:$0xff]  ;;  %v1601_v58 = vrot.slane %v7881_v62, 1 }
 0x229   : > { %v6149_v42 = vpop.permute.xlu0 %1776  ;;  %2227 = vrot.lane.b32.xlu1 %v4092_v47, %s4463_s15  ;;  %v4095_v47 = vpack.c.bf16 %v6145_v49, %v6145_v49  ;;  %v1683_v32 = vmul.f32 %v7875_v38, %v7828_v30  ;;  %v7876_v12 = vld [vmem:[#allocation88_spill] sm:$0xff]  ;;  %v1680_v49 = vmul.f32 %v7878_v25, %v7831_v54  ;;  %v7880_v38 = vld [vmem:[#allocation74_spill] sm:$0xff] }
 0x22a   : > { %7870 = vst [vmem:[#allocation67_spill] sm:$0xff] %v6155_v53  ;;  %v6167_v7 = vadd.f32 %v5819_v37, %v1682_v33  ;;  %v1660_v33 = vsel %vm1215_vm2, %v1602_v17, %v1603_v4 }
 0x22b   : > { %v6159_v5 = vpop.permute.xlu1 %1778  ;;  %2237 = vrot.lane.b32.xlu0 %v4097_v2, %s4463_s15  ;;  %v4096_v2 = vpack.c.bf16 %v6155_v53, %v6155_v53  ;;  %v6178_v43 = vadd.f32 %v5827_v57, %v1683_v32  ;;  %v6192_v57 = vadd.f32 %v5830_v18, %v1680_v49  ;;  %v7882_v32 = vld [vmem:[#allocation86_spill] sm:$0xff]  ;;  %v1666_v18 = vmul.f32 %v1660_v33, %v4998_v15 }
 0x22c   : > { %7874 = vst [vmem:[#allocation68_spill] sm:$0xff] %v6167_v7  ;;  %v4149_v53 = vpack.c.bf16 %v6167_v7, %v6167_v7  ;;  %v1681_v54 = vmul.f32 %v7882_v32, %v7834_v11  ;;  %v7884_v11 = vrot.slane %v7880_v38, 1  ;;  %v1661_v15 = vsel %vm1215_vm2, %v1601_v58, %v1602_v17 }
 0x22d   : > { %v6171_v13 = vpop.permute.xlu0 %1748  ;;  %2239 = vrot.lane.b32.xlu1 %v4098_v41, %s4463_s15  ;;  %7877 = vst [vmem:[#allocation70_spill] sm:$0xff] %v6178_v43  ;;  %v4150_v62 = vpack.c.bf16 %v6178_v43, %v6178_v43  ;;  %v6219_v32 = vadd.f32 %v5847_v31, %v1666_v18 }
 0x22e   : > { %v6206_v7 = vadd.f32 %v5837_v3, %v1681_v54 }
 0x22f   : > { %v6182_v37 = vpop.permute.xlu1 %1750  ;;  %2233 = vrot.lane.b32.xlu0 %v4095_v47, %s4463_s15  ;;  %v7883_v47 = vrot.slane %v7876_v12, 1 }
 0x231   : > { %v6196_v25 = vpop.permute.xlu0 %2454  ;;  %2235 = vrot.lane.b32.xlu1 %v4096_v2, %s4463_s15  ;;  %v1659_v41 = vsel %vm1215_vm2, %v1603_v4, %v7883_v47  ;;  %v1662_v2 = vsel %vm1215_vm2, %v7884_v11, %v1601_v58  ;;  %v4147_v4 = vpack.c.bf16 %v6192_v57, %v6192_v57  ;;  %v7885_v58 = vld [vmem:[#allocation98_spill] sm:$0xff] }
 0x232   : > { %v1667_v3 = vmul.f32 %v1659_v41, %v5029_v27  ;;  %v1664_v47 = vmul.f32 %v1662_v2, %v4986_v9  ;;  %v4133_v27 = vpack.c.bf16 %v6219_v32, %v6219_v32  ;;  %v1686_v41 = vmul.f32 %v7885_v58, %v7838_v14  ;;  %v7889_v14 = vld [vmem:[#allocation102_spill] sm:$0xff] }
 0x233   : > { %v6209_v49 = vpop.permute.xlu1 %2456  ;;  %2663 = vrot.lane.b32.xlu0 %v4149_v53, %s4464_s22  ;;  %v4148_v53 = vpack.c.bf16 %v6206_v7, %v6206_v7 }
 0x234   : > { %v6230_v33 = vadd.f32 %v5857_v1, %v1667_v3  ;;  %v6239_v31 = vadd.f32 %v5889_v46, %v1664_v47  ;;  %v7886_v46 = vld [vmem:[#allocation84_spill] sm:$0xff] }
 0x235   : > { %v6222_v54 = vpop.permute.xlu0 %1744  ;;  %2665 = vrot.lane.b32.xlu1 %v4150_v62, %s4464_s22  ;;  %v1665_v62 = vmul.f32 %v1661_v15, %v5019_v23  ;;  %v1606_v2 = vrot.slane %v7886_v46, 1  ;;  %v7887_v23 = vld [vmem:[#allocation90_spill] sm:$0xff]  ;;  %v6260_v15 = vadd.f32 %v5969_v8, %v1686_v41  ;;  %v7892_v41 = vld [vmem:[#allocation92_spill] sm:$0xff] }
 0x236   : > { %v4134_v1 = vpack.c.bf16 %v6230_v33, %v6230_v33  ;;  %v4131_v3 = vpack.c.bf16 %v6239_v31, %v6239_v31 }
 0x237   : > { %v6233_v11 = vpop.permute.xlu1 %1746  ;;  %2659 = vrot.lane.b32.xlu0 %v4147_v4, %s4464_s22  ;;  %v6248_v9 = vadd.f32 %v5899_v26, %v1665_v62  ;;  %v1607_v4 = vrot.slane %v7887_v23, 1  ;;  %v7888_v26 = vld [vmem:[#allocation111_spill] sm:$0xff]  ;;  %v7891_v23 = vld [vmem:[#allocation100_spill] sm:$0xff] }
 0x238   : > { %v1684_v46 = vmul.f32 %v7891_v23, %v7845_v61  ;;  %v7894_v61 = vrot.slane %v7889_v14, 1 }
 0x239   : > { %v6242_v17 = vpop.permute.xlu0 %2450  ;;  %2661 = vrot.lane.b32.xlu1 %v4148_v53, %s4464_s22  ;;  %v1687_v53 = vmul.f32 %v7888_v26, %v7842_v22  ;;  %v1656_v22 = vsel %vm1215_vm2, %v1606_v2, %v1607_v4  ;;  %v4153_v26 = vpack.c.bf16 %v6260_v15, %v6260_v15 }
 0x23a   : > { %v6284_v62 = vadd.f32 %v5989_v16, %v1684_v46  ;;  %v1655_v23 = vsel %vm1215_vm2, %v1607_v4, %v7894_v61  ;;  %v1670_v16 = vmul.f32 %v1656_v22, %v5081_v51 }
 0x23b   : > { %v6252_v18 = vpop.permute.xlu1 %2452  ;;  %2631 = vrot.lane.b32.xlu0 %v4133_v27, %s4464_s22  ;;  %v4132_v27 = vpack.c.bf16 %v6248_v9, %v6248_v9  ;;  %v6271_v58 = vadd.f32 %v5979_v21, %v1687_v53  ;;  %v7893_v21 = vld [vmem:[#allocation101_spill] sm:$0xff] }
 0x23c   : > { %v1685_v53 = vmul.f32 %v7893_v21, %v7848_v20  ;;  %v7895_v20 = vrot.slane %v7876_v12, 1  ;;  %v4151_v4 = vpack.c.bf16 %v6284_v62, %v6284_v62  ;;  %v6311_v21 = vadd.f32 %v6009_v63, %v1670_v16 }
 0x23d   : > { %v6264_v47 = vpop.permute.xlu0 %2422  ;;  %2633 = vrot.lane.b32.xlu1 %v4134_v1, %s4464_s22  ;;  %7890 = vst [vmem:[#allocation71_spill] sm:$0xff] %v6271_v58  ;;  %v1605_v1 = vrot.slane %v7892_v41, 1 }
 0x23e   : > { %v6298_v41 = vadd.f32 %v5999_v24, %v1685_v53  ;;  %v1671_v24 = vmul.f32 %v1655_v23, %v7786_v34  ;;  %v4137_v34 = vpack.c.bf16 %v6311_v21, %v6311_v21  ;;  %v7896_v23 = vld [vmem:[#allocation112_spill] sm:$0xff] }
 0x23f   : > { %v6275_v8 = vpop.permute.xlu1 %2424  ;;  %2627 = vrot.lane.b32.xlu0 %v4131_v3, %s4464_s22  ;;  %v4154_v3 = vpack.c.bf16 %v6271_v58, %v6271_v58  ;;  %v1657_v51 = vsel %vm1215_vm2, %v1605_v1, %v1606_v2 }
 0x240   : > { %v4152_v22 = vpack.c.bf16 %v6298_v41, %v6298_v41  ;;  %v1669_v2 = vmul.f32 %v1657_v51, %v7792_v29 }
 0x241   : > { %v6288_v43 = vpop.permute.xlu0 %2418  ;;  %2629 = vrot.lane.b32.xlu1 %v4132_v27, %s4464_s22  ;;  %v1658_v27 = vsel %vm1215_vm2, %v7895_v20, %v1605_v1 }
 0x242   : > { %v1668_v61 = vmul.f32 %v1658_v27, %v7789_v55  ;;  %v6338_v55 = vadd.f32 %v6059_v6, %v1669_v2  ;;  %v7897_v27 = vld [vmem:[#allocation99_spill] sm:$0xff] }
 0x243   : > { %v6301_v46 = vpop.permute.xlu1 %2420  ;;  %2671 = vrot.lane.b32.xlu0 %v4153_v26, %s4464_s22  ;;  %v6322_v26 = vadd.f32 %v6019_v60, %v1671_v24 }
 0x244   : > { %v6331_v63 = vadd.f32 %v6049_v39, %v1668_v61  ;;  %v1610_v39 = vrot.slane %v7897_v27, 1 }
 0x245   : > { %v6314_v53 = vpop.permute.xlu0 %1788  ;;  %2673 = vrot.lane.b32.xlu1 %v4154_v3, %s4464_s22  ;;  %v4138_v60 = vpack.c.bf16 %v6322_v26, %v6322_v26  ;;  %v1690_v3 = vmul.f32 %v7896_v23, %v5480_v19  ;;  %v1612_v19 = vrot.slane %v5440_v10, 1  ;;  %v7902_v23 = vld [vmem:[#allocation115_spill] sm:$0xff] }
 0x246   : > { %v4135_v29 = vpack.c.bf16 %v6331_v63, %v6331_v63 }
 0x247   : > { %v6325_v20 = vpop.permute.xlu1 %1790  ;;  %2667 = vrot.lane.b32.xlu0 %v4151_v4, %s4464_s22  ;;  %v7898_v4 = vld [vmem:[#allocation104_spill] sm:$0xff]  ;;  %v6348_v51 = vadd.f32 %v6129_v40, %v1690_v3  ;;  %v7903_v3 = vld [vmem:[#allocation107_spill] sm:$0xff] }
 0x248   : > { %v1611_v24 = vrot.slane %v7898_v4, 1  ;;  %v1688_v4 = vmul.f32 %v7902_v23, %v5437_v0 }
 0x249   : > { %v1785_v1 = vpop.permute.xlu0 %1784  ;;  %2669 = vrot.lane.b32.xlu1 %v4152_v22, %s4464_s22  ;;  %7899 = vst [vmem:[#allocation83_spill] sm:$0xff] %v6348_v51  ;;  %v7900_v22 = vld [vmem:[#allocation124_spill] sm:$0xff] }
 0x24a   : > { %v1691_v6 = vmul.f32 %v7900_v22, %v5490_v35  ;;  %v1652_v35 = vsel %vm1215_vm2, %v1610_v39, %v1611_v24  ;;  %v1609_v22 = vrot.slane %v7903_v3, 1  ;;  %v6368_v10 = vadd.f32 %v6149_v42, %v1688_v4 }
 0x24b   : > { %v1787_v16 = vpop.permute.xlu1 %1786  ;;  %2639 = vrot.lane.b32.xlu0 %v4137_v34, %s4464_s22  ;;  %v4136_v34 = vpack.c.bf16 %v6338_v55, %v6338_v55  ;;  %v1651_v0 = vsel %vm1215_vm2, %v1611_v24, %v1612_v19  ;;  %v1674_v3 = vmul.f32 %v1652_v35, %v7796_v36 }
 0x24c   : > { %v6357_v2 = vadd.f32 %v6139_v56, %v1691_v6  ;;  %7904 = vst [vmem:[#allocation88_spill] sm:$0xff] %v6368_v10  ;;  %v7905_v56 = vld [vmem:[#allocation118_spill] sm:$0xff]  ;;  %v4155_v24 = vpack.c.bf16 %v6368_v10, %v6368_v10  ;;  %v1653_v36 = vsel %vm1215_vm2, %v1609_v22, %v1610_v39  ;;  %v7918_v10 = vld [vmem:[#allocation65_spill] sm:$0xff] }
 0x24d   : > { %v1757_v61 = vpop.permute.xlu0 %1756  ;;  %2641 = vrot.lane.b32.xlu1 %v4138_v60, %s4464_s22  ;;  %v4157_v60 = vpack.c.bf16 %v6348_v51, %v6348_v51  ;;  %v1689_v6 = vmul.f32 %v7905_v56, %v7859_v28  ;;  %v7907_v28 = vrot.slane %v7889_v14, 1  ;;  %v7908_v56 = vld [vmem:[#allocation52_spill] sm:$0xff] }
 0x24e   : > { %7901 = vst [vmem:[#allocation96_spill] sm:$0xff] %v6357_v2 }
 0x24f   : > { %2635 = vrot.lane.b32.xlu0 %v4135_v29, %s4464_s22  ;;  %v1759_v40 = vpop.permute.xlu1 %1758  ;;  %v4158_v29 = vpack.c.bf16 %v6357_v2, %v6357_v2  ;;  %v6380_v23 = vadd.f32 %v6159_v5, %v1689_v6  ;;  %v1654_v4 = vsel %vm1215_vm2, %v7907_v28, %v1609_v22  ;;  %v1675_v5 = vmul.f32 %v1651_v0, %v7908_v56  ;;  %v7909_v28 = vld [vmem:[#allocation41_spill] sm:$0xff]  ;;  %v7912_v22 = vld [vmem:[#allocation44_spill] sm:$0xff] }
 0x250   : > { %v1672_v2 = vmul.f32 %v1654_v4, %v7909_v28  ;;  %v7911_v0 = vld [vmem:[#allocation117_spill] sm:$0xff]  ;;  %v1673_v51 = vmul.f32 %v1653_v36, %v7912_v22 }
 0x251   : > { %v6372_v27 = vpop.permute.xlu0 %2462  ;;  %2637 = vrot.lane.b32.xlu1 %v4136_v34, %s4464_s22  ;;  %7906 = vst [vmem:[#allocation85_spill] sm:$0xff] %v6380_v23  ;;  %v6393_v34 = vadd.f32 %v6171_v13, %v1674_v3  ;;  %v4156_v35 = vpack.c.bf16 %v6380_v23, %v6380_v23  ;;  %v7910_v3 = vld [vmem:[#allocation113_spill] sm:$0xff]  ;;  %v1615_v56 = vrot.slane %v7911_v0, 1 }
 0x252   : > { %v1614_v14 = vrot.slane %v7910_v3, 1  ;;  %v6411_v39 = vadd.f32 %v6222_v54, %v1672_v2  ;;  %v6420_v4 = vadd.f32 %v6233_v11, %v1673_v51  ;;  %v7914_v2 = vld [vmem:[#allocation121_spill] sm:$0xff]  ;;  %v7915_v11 = vld [vmem:[#allocation127_spill] sm:$0xff] }
 0x253   : > { %2679 = vrot.lane.b32.xlu0 %v4157_v60, %s4464_s22  ;;  %v6384_v42 = vpop.permute.xlu1 %2464  ;;  %v6402_v60 = vadd.f32 %v6182_v37, %v1675_v5  ;;  %v1613_v36 = vrot.slane %v7914_v2, 1  ;;  %v1693_v51 = vmul.f32 %v7915_v11, %v5511_v52 }
 0x254   : > { %v1648_v54 = vsel %vm1215_vm2, %v1614_v14, %v1615_v56  ;;  %v4140_v3 = vpack.c.bf16 %v6420_v4, %v6420_v4 }
 0x255   : > { %v1753_v6 = vpop.permute.xlu0 %1752  ;;  %2681 = vrot.lane.b32.xlu1 %v4158_v29, %s4464_s22  ;;  %v4141_v29 = vpack.c.bf16 %v6393_v34, %v6393_v34  ;;  %v4142_v37 = vpack.c.bf16 %v6402_v60, %v6402_v60  ;;  %v6445_v2 = vadd.f32 %v1787_v16, %v1693_v51  ;;  %v1650_v52 = vsel %vm1215_vm2, %v1612_v19, %v1613_v36  ;;  %v7920_v19 = vld [vmem:[#allocation57_spill] sm:$0xff] }
 0x257   : > { %2675 = vrot.lane.b32.xlu0 %v4155_v24, %s4464_s22  ;;  %v1755_v13 = vpop.permute.xlu1 %1754  ;;  %v7913_v24 = vld [vmem:[#allocation126_spill] sm:$0xff]  ;;  %v4160_v16 = vpack.c.bf16 %v6445_v2, %v6445_v2 }
 0x258   : > { %v1692_v5 = vmul.f32 %v7913_v24, %v5506_v59  ;;  %v7916_v59 = vld [vmem:[#allocation78_spill] sm:$0xff] }
 0x259   : > { %v6414_v23 = vpop.permute.xlu0 %2458  ;;  %2677 = vrot.lane.b32.xlu1 %v4156_v35, %s4464_s22  ;;  %v4139_v35 = vpack.c.bf16 %v6411_v39, %v6411_v39 }
 0x25a   : > { %v6432_v22 = vadd.f32 %v1785_v1, %v1692_v5  ;;  %v1678_v1 = vmul.f32 %v1648_v54, %v7918_v10  ;;  %v1649_v10 = vsel %vm1215_vm2, %v1613_v36, %v1614_v14  ;;  %v7921_v14 = vld [vmem:[#allocation60_spill] sm:$0xff] }
 0x25b   : > { %2647 = vrot.lane.b32.xlu0 %v4141_v29, %s4464_s22  ;;  %v6425_v28 = vpop.permute.xlu1 %2460  ;;  %v7917_v29 = vrot.slane %v7916_v59, 1  ;;  %v1677_v36 = vmul.f32 %v1649_v10, %v7921_v14 }
 0x25c   : > { %v6455_v11 = vadd.f32 %v1757_v61, %v1678_v1  ;;  %v7923_v1 = vld [vmem:[#allocation122_spill] sm:$0xff] }
 0x25d   : > { %v6436_v0 = vpop.permute.xlu0 %2430  ;;  %2649 = vrot.lane.b32.xlu1 %v4142_v37, %s4464_s22  ;;  %v1647_v24 = vsel %vm1215_vm2, %v1615_v56, %v7917_v29  ;;  %v4159_v37 = vpack.c.bf16 %v6432_v22, %v6432_v22  ;;  %v7919_v56 = vld [vmem:[#allocation69_spill] sm:$0xff]  ;;  %v6489_v10 = vadd.f32 %v1755_v13, %v1677_v36  ;;  %v7928_v36 = vld [vmem:[#allocation19_spill] sm:$0xff] }
 0x25e   : > { %v1679_v29 = vmul.f32 %v1647_v24, %v7919_v56  ;;  %v7925_v56 = vld [vmem:[#allocation125_spill] sm:$0xff] }
 0x25f   : > { %2643 = vrot.lane.b32.xlu0 %v4139_v35, %s4464_s22  ;;  %v6449_v5 = vpop.permute.xlu1 %2432  ;;  %v1676_v35 = vmul.f32 %v1650_v52, %v7920_v19  ;;  %v7924_v52 = vrot.slane %v7923_v1, 1  ;;  %v7926_v19 = vld [vmem:[#allocation49_spill] sm:$0xff] }
 0x260   : > { %v6465_v54 = vadd.f32 %v1759_v40, %v1679_v29  ;;  %v7922_v40 = vrot.slane %v7880_v38, 1 }
 0x261   : > { %v6458_v58 = vpop.permute.xlu0 %2426  ;;  %2645 = vrot.lane.b32.xlu1 %v4140_v3, %s4464_s22  ;;  %v4145_v3 = vpack.c.bf16 %v6455_v11, %v6455_v11  ;;  %v6473_v51 = vadd.f32 %v1753_v6, %v1676_v35  ;;  %v1694_v6 = vmul.f32 %v7925_v56, %v5519_v45 }
 0x262   : > { %v4146_v29 = vpack.c.bf16 %v6465_v54, %v6465_v54 }
 0x263   : > { %2683 = vrot.lane.b32.xlu0 %v4159_v37, %s4464_s22  ;;  %v6469_v61 = vpop.permute.xlu1 %2428  ;;  %v1663_v37 = vsel %vm1215_vm2, %v7924_v52, %v7922_v40  ;;  %v6498_v30 = vadd.f32 %v6314_v53, %v1694_v6  ;;  %v4143_v13 = vpack.c.bf16 %v6473_v51, %v6473_v51 }
 0x264   : > { %v1695_v45 = vmul.f32 %v1663_v37, %v5522_v48  ;;  %v4144_v48 = vpack.c.bf16 %v6489_v10, %v6489_v10 }
 0x265   : > { %v2182_v24 = vpop.permute.xlu0 %2181  ;;  %2685 = vrot.lane.b32.xlu1 %v4160_v16, %s4464_s22 }
 0x266   : > { %2276 = vst.msk [vmem:[%s5545_s18 + $0x8] sm:$0xf] %vm2273_vm4, %v2182_v24  ;;  %v6510_v53 = vadd.f32 %v6325_v20, %v1695_v45  ;;  %v4161_v24 = vpack.c.bf16 %v6498_v30, %v6498_v30  ;;  %v7929_v20 = vld [vmem:[#allocation25_spill] sm:$0xff] }
 0x267   : > { %2655 = vrot.lane.b32.xlu0 %v4145_v3, %s4464_s22  ;;  %v2184_v16 = vpop.permute.xlu1 %2183  ;;  %2501 = vst.msk [vmem:[%s5545_s18 + $0x8] sm:$0xf] %vm2498_vm5, %v7926_v19  ;;  %v7927_v3 = vld [vmem:[#allocation18_spill] sm:$0xff]  ;;  %v7932_v19 = vld [vmem:[#allocation132_spill] sm:$0xff] }
 0x268   : > { %2277 = vst.msk [vmem:[%s5545_s18 + $0xc] sm:$0xf] %vm2273_vm4, %v2184_v16  ;;  %v4162_v52 = vpack.c.bf16 %v6510_v53, %v6510_v53  ;;  %v7931_v16 = vld [vmem:[#allocation97_spill] sm:$0xff] }
 0x269   : > { %v2178_v35 = vpop.permute.xlu0 %2177  ;;  %2657 = vrot.lane.b32.xlu1 %v4146_v29, %s4464_s22  ;;  %2502 = vst.msk [vmem:[%s5545_s18 + $0xc] sm:$0xf] %vm2498_vm5, %v7927_v3  ;;  %v7930_v29 = vld [vmem:[#allocation130_spill] sm:$0xff]  ;;  %v7935_v3 = vld [vmem:[#allocation129_spill] sm:$0xff] }
 0x26a   : > { %2274 = vst.msk [vmem:[%s5545_s18] sm:$0xf] %vm2273_vm4, %v2178_v35 }
 0x26b   : > { %v2180_v14 = vpop.permute.xlu1 %2179  ;;  %2651 = vrot.lane.b32.xlu0 %v4143_v13, %s4464_s22  ;;  %2499 = vst.msk [vmem:[%s5545_s18] sm:$0xf] %vm2498_vm5, %v7928_v36  ;;  %v7934_v13 = vld [vmem:[#allocation128_spill] sm:$0xff] }
 0x26c   : > { %2275 = vst.msk [vmem:[%s5545_s18 + $0x4] sm:$0xf] %vm2273_vm4, %v2180_v14  ;;  %v7936_v14 = vld [vmem:[#allocation11_spill] sm:$0xff]  ;;  %v7937_v36 = vld [vmem:[#allocation12_spill] sm:$0xff] }
 0x26d   : > { %v2190_v40 = vpop.permute.xlu0 %2189  ;;  %2653 = vrot.lane.b32.xlu1 %v4144_v48, %s4464_s22  ;;  %2500 = vst.msk [vmem:[%s5545_s18 + $0x4] sm:$0xf] %vm2498_vm5, %v7929_v20  ;;  %v7940_v20 = vld [vmem:[#allocation135_spill] sm:$0xff] }
 0x26e   : > { %2280 = vst.msk [vmem:[%s5545_s18 + $0x18] sm:$0xf] %vm2273_vm4, %v2190_v40  ;;  %v7939_v40 = vld [vmem:[#allocation36_spill] sm:$0xff] }
 0x26f   : > { %v2192_v37 = vpop.permute.xlu1 %2191  ;;  %2687 = vrot.lane.b32.xlu0 %v4161_v24, %s4464_s22  ;;  %2505 = vst.msk [vmem:[%s5545_s18 + $0x18] sm:$0xf] %vm2498_vm5, %v6089_v50  ;;  %v7938_v24 = vld [vmem:[#allocation134_spill] sm:$0xff] }
 0x270   : > { %2281 = vst.msk [vmem:[%s5545_s18 + $0x1c] sm:$0xf] %vm2273_vm4, %v2192_v37  ;;  %v7942_v37 = vld [vmem:[#allocation17_spill] sm:$0xff] }
 0x271   : > { %v2186_v56 = vpop.permute.xlu0 %2185  ;;  %2689 = vrot.lane.b32.xlu1 %v4162_v52, %s4464_s22  ;;  %2506 = vst.msk [vmem:[%s5545_s18 + $0x1c] sm:$0xf] %vm2498_vm5, %v6099_v44  ;;  %v7933_v44 = vld [vmem:[#allocation66_spill] sm:$0xff]  ;;  %v7941_v52 = vld [vmem:[#allocation136_spill] sm:$0xff] }
 0x272   : > { %2278 = vst.msk [vmem:[%s5545_s18 + $0x10] sm:$0xf] %vm2273_vm4, %v2186_v56 }
 0x273   : > { %v2188_v6 = vpop.permute.xlu1 %2187  ;;  %2788 = vrot.lane.b32.xlu0 %v7930_v29, %s4463_s15  ;;  %2503 = vst.msk [vmem:[%s5545_s18 + $0x10] sm:$0xf] %vm2498_vm5, %v7931_v16 }
 0x274   : > { %2279 = vst.msk [vmem:[%s5545_s18 + $0x14] sm:$0xf] %vm2273_vm4, %v2188_v6  ;;  %v7944_v6 = vld [vmem:[#allocation24_spill] sm:$0xff] }
 0x275   : > { %v2198_v50 = vpop.permute.xlu0 %2197  ;;  %2790 = vrot.lane.b32.xlu1 %v7932_v19, %s4463_s15  ;;  %2504 = vst.msk [vmem:[%s5545_s18 + $0x14] sm:$0xf] %vm2498_vm5, %v7933_v44  ;;  %v7947_v44 = vld [vmem:[#allocation26_spill] sm:$0xff] }
 0x276   : > { %2284 = vst.msk [vmem:[%s5545_s18 + $0x28] sm:$0xf] %vm2273_vm4, %v2198_v50  ;;  %v7946_v50 = vld [vmem:[#allocation27_spill] sm:$0xff] }
 0x277   : > { %v2200_v45 = vpop.permute.xlu1 %2199  ;;  %2792 = vrot.lane.b32.xlu0 %v7934_v13, %s4463_s15  ;;  %2509 = vst.msk [vmem:[%s5545_s18 + $0x28] sm:$0xf] %vm2498_vm5, %v6264_v47 }
 0x278   : > { %2285 = vst.msk [vmem:[%s5545_s18 + $0x2c] sm:$0xf] %vm2273_vm4, %v2200_v45 }
 0x279   : > { %v2194_v35 = vpop.permute.xlu0 %2193  ;;  %2794 = vrot.lane.b32.xlu1 %v7935_v3, %s4463_s15  ;;  %2510 = vst.msk [vmem:[%s5545_s18 + $0x2c] sm:$0xf] %vm2498_vm5, %v6275_v8 }
 0x27a   : > { %2282 = vst.msk [vmem:[%s5545_s18 + $0x20] sm:$0xf] %vm2273_vm4, %v2194_v35  ;;  %v7948_v35 = vld [vmem:[#allocation28_spill] sm:$0xff] }
 0x27b   : > { %v2196_v48 = vpop.permute.xlu1 %2195  ;;  %2796 = vrot.lane.b32.xlu0 %v7936_v14, %s4463_s15  ;;  %2507 = vst.msk [vmem:[%s5545_s18 + $0x20] sm:$0xf] %vm2498_vm5, %v6288_v43 }
 0x27c   : > { %2283 = vst.msk [vmem:[%s5545_s18 + $0x24] sm:$0xf] %vm2273_vm4, %v2196_v48  ;;  %v7949_v48 = vld [vmem:[#allocation29_spill] sm:$0xff] }
 0x27d   : > { %v2206_v47 = vpop.permute.xlu0 %2205  ;;  %2798 = vrot.lane.b32.xlu1 %v7937_v36, %s4463_s15  ;;  %2508 = vst.msk [vmem:[%s5545_s18 + $0x24] sm:$0xf] %vm2498_vm5, %v6301_v46 }
 0x27e   : > { %2288 = vst.msk [vmem:[%s5545_s18 + $0x38] sm:$0xf] %vm2273_vm4, %v2206_v47 }
 0x27f   : > { %v2208_v8 = vpop.permute.xlu1 %2207  ;;  %2800 = vrot.lane.b32.xlu0 %v7938_v24, %s4463_s15  ;;  %2513 = vst.msk [vmem:[%s5545_s18 + $0x38] sm:$0xf] %vm2498_vm5, %v6436_v0 }
 0x280   : > { %2289 = vst.msk [vmem:[%s5545_s18 + $0x3c] sm:$0xf] %vm2273_vm4, %v2208_v8  ;;  %v7950_v8 = vld [vmem:[#allocation137_spill] sm:$0xff] }
 0x281   : > { %v2202_v43 = vpop.permute.xlu0 %2201  ;;  %2802 = vrot.lane.b32.xlu1 %v7939_v40, %s4463_s15  ;;  %2514 = vst.msk [vmem:[%s5545_s18 + $0x3c] sm:$0xf] %vm2498_vm5, %v6449_v5 }
 0x282   : > { %2286 = vst.msk [vmem:[%s5545_s18 + $0x30] sm:$0xf] %vm2273_vm4, %v2202_v43  ;;  %v7951_v43 = vld [vmem:[#allocation87_spill] sm:$0xff] }
 0x283   : > { %v2204_v46 = vpop.permute.xlu1 %2203  ;;  %2804 = vrot.lane.b32.xlu0 %v7940_v20, %s4463_s15  ;;  %2511 = vst.msk [vmem:[%s5545_s18 + $0x30] sm:$0xf] %vm2498_vm5, %v6458_v58  ;;  %v7943_v58 = vld [vmem:[#allocation131_spill] sm:$0xff] }
 0x284   : > { %2287 = vst.msk [vmem:[%s5545_s18 + $0x34] sm:$0xf] %vm2273_vm4, %v2204_v46 }
 0x285   : > { %v2214_v0 = vpop.permute.xlu0 %2213  ;;  %2806 = vrot.lane.b32.xlu1 %v7941_v52, %s4463_s15  ;;  %2512 = vst.msk [vmem:[%s5545_s18 + $0x34] sm:$0xf] %vm2498_vm5, %v6469_v61  ;;  %v7945_v61 = vld [vmem:[#allocation133_spill] sm:$0xff] }
 0x286   : > { %2292 = vst.msk [vmem:[%s5545_s18 + $0x48] sm:$0xf] %vm2273_vm4, %v2214_v0  ;;  %v7952_v0 = vld [vmem:[#allocation34_spill] sm:$0xff] }
 0x287   : > { %v2216_v5 = vpop.permute.xlu1 %2215  ;;  %2808 = vrot.lane.b32.xlu0 %v7942_v37, %s4463_s15  ;;  %2517 = vst.msk [vmem:[%s5545_s18 + $0x48] sm:$0xf] %vm2498_vm5, %v7943_v58 }
 0x288   : > { %2293 = vst.msk [vmem:[%s5545_s18 + $0x4c] sm:$0xf] %vm2273_vm4, %v2216_v5  ;;  %v7953_v5 = vld [vmem:[#allocation73_spill] sm:$0xff] }
 0x289   : > { %v2210_v56 = vpop.permute.xlu0 %2209  ;;  %2810 = vrot.lane.b32.xlu1 %v7944_v6, %s4463_s15  ;;  %2518 = vst.msk [vmem:[%s5545_s18 + $0x4c] sm:$0xf] %vm2498_vm5, %v7945_v61  ;;  %v7955_v61 = vld [vmem:[#allocation105_spill] sm:$0xff] }
 0x28a   : > { %2290 = vst.msk [vmem:[%s5545_s18 + $0x40] sm:$0xf] %vm2273_vm4, %v2210_v56  ;;  %v7954_v56 = vld [vmem:[#allocation45_spill] sm:$0xff] }
 0x28b   : > { %v2212_v16 = vpop.permute.xlu1 %2211  ;;  %2812 = vrot.lane.b32.xlu0 %v7946_v50, %s4463_s15  ;;  %2515 = vst.msk [vmem:[%s5545_s18 + $0x40] sm:$0xf] %vm2498_vm5, %v7947_v44  ;;  %v7956_v44 = vld [vmem:[#allocation37_spill] sm:$0xff] }
 0x28c   : > { %2291 = vst.msk [vmem:[%s5545_s18 + $0x44] sm:$0xf] %vm2273_vm4, %v2212_v16 }
 0x28d   : > { %v2222_v45 = vpop.permute.xlu0 %2221  ;;  %2814 = vrot.lane.b32.xlu1 %v7948_v35, %s4463_s15  ;;  %2516 = vst.msk [vmem:[%s5545_s18 + $0x44] sm:$0xf] %vm2498_vm5, %v7949_v48 }
 0x28e   : > { %2296 = vst.msk [vmem:[%s5545_s18 + $0x58] sm:$0xf] %vm2273_vm4, %v2222_v45  ;;  %v7957_v45 = vld [vmem:[#allocation109_spill] sm:$0xff] }
 0x28f   : > { %v2224_v47 = vpop.permute.xlu1 %2223  ;;  %2816 = vrot.lane.b32.xlu0 %v7950_v8, %s4463_s15  ;;  %2521 = vst.msk [vmem:[%s5545_s18 + $0x58] sm:$0xf] %vm2498_vm5, %v7951_v43 }
 0x290   : > { %2297 = vst.msk [vmem:[%s5545_s18 + $0x5c] sm:$0xf] %vm2273_vm4, %v2224_v47  ;;  %v7958_v47 = vld [vmem:[#allocation35_spill] sm:$0xff] }
 0x291   : > { %v2218_v46 = vpop.permute.xlu0 %2217  ;;  %2818 = vrot.lane.b32.xlu1 %v7952_v0, %s4463_s15  ;;  %2522 = vst.msk [vmem:[%s5545_s18 + $0x5c] sm:$0xf] %vm2498_vm5, %v7953_v5 }
 0x292   : > { %2294 = vst.msk [vmem:[%s5545_s18 + $0x50] sm:$0xf] %vm2273_vm4, %v2218_v46  ;;  %v7959_v46 = vld [vmem:[#allocation82_spill] sm:$0xff] }
 0x293   : > { %v2220_v58 = vpop.permute.xlu1 %2219  ;;  %2820 = vrot.lane.b32.xlu0 %v7954_v56, %s4463_s15  ;;  %2519 = vst.msk [vmem:[%s5545_s18 + $0x50] sm:$0xf] %vm2498_vm5, %v7955_v61  ;;  %v7961_v61 = vld [vmem:[#allocation55_spill] sm:$0xff] }
 0x294   : > { %2295 = vst.msk [vmem:[%s5545_s18 + $0x54] sm:$0xf] %vm2273_vm4, %v2220_v58  ;;  %v7960_v58 = vld [vmem:[#allocation46_spill] sm:$0xff] }
 0x295   : > { %v2230_v16 = vpop.permute.xlu0 %2229  ;;  %2822 = vrot.lane.b32.xlu1 %v7956_v44, %s4463_s15  ;;  %2520 = vst.msk [vmem:[%s5545_s18 + $0x54] sm:$0xf] %vm2498_vm5, %v7957_v45  ;;  %v7963_v45 = vld [vmem:[#allocation77_spill] sm:$0xff] }
 0x296   : > { %2300 = vst.msk [vmem:[%s5545_s18 + $0x68] sm:$0xf] %vm2273_vm4, %v2230_v16  ;;  %v7962_v16 = vld [vmem:[#allocation38_spill] sm:$0xff] }
 0x297   : > { %v2232_v48 = vpop.permute.xlu1 %2231  ;;  %2824 = vrot.lane.b32.xlu0 %v7958_v47, %s4463_s15  ;;  %2525 = vst.msk [vmem:[%s5545_s18 + $0x68] sm:$0xf] %vm2498_vm5, %v6196_v25 }
 0x298   : > { %2301 = vst.msk [vmem:[%s5545_s18 + $0x6c] sm:$0xf] %vm2273_vm4, %v2232_v48  ;;  %v7964_v48 = vld [vmem:[#allocation48_spill] sm:$0xff] }
 0x299   : > { %v2226_v43 = vpop.permute.xlu0 %2225  ;;  %2826 = vrot.lane.b32.xlu1 %v7959_v46, %s4463_s15  ;;  %2526 = vst.msk [vmem:[%s5545_s18 + $0x6c] sm:$0xf] %vm2498_vm5, %v6209_v49 }
 0x29a   : > { %2298 = vst.msk [vmem:[%s5545_s18 + $0x60] sm:$0xf] %vm2273_vm4, %v2226_v43 }
 0x29b   : > { %v2228_v5 = vpop.permute.xlu1 %2227  ;;  %2828 = vrot.lane.b32.xlu0 %v7960_v58, %s4463_s15  ;;  %2523 = vst.msk [vmem:[%s5545_s18 + $0x60] sm:$0xf] %vm2498_vm5, %v6242_v17 }
 0x29c   : > { %2299 = vst.msk [vmem:[%s5545_s18 + $0x64] sm:$0xf] %vm2273_vm4, %v2228_v5  ;;  %v7966_v5 = vld [vmem:[#allocation47_spill] sm:$0xff] }
 0x29d   : > { %v2238_v25 = vpop.permute.xlu0 %2237  ;;  %2830 = vrot.lane.b32.xlu1 %v7961_v61, %s4463_s15  ;;  %2524 = vst.msk [vmem:[%s5545_s18 + $0x64] sm:$0xf] %vm2498_vm5, %v6252_v18 }
 0x29e   : > { %2304 = vst.msk [vmem:[%s5545_s18 + $0x78] sm:$0xf] %vm2273_vm4, %v2238_v25  ;;  %v7967_v25 = vld [vmem:[#allocation94_spill] sm:$0xff] }
 0x29f   : > { %v2240_v49 = vpop.permute.xlu1 %2239  ;;  %2832 = vrot.lane.b32.xlu0 %v7962_v16, %s4463_s15  ;;  %2529 = vst.msk [vmem:[%s5545_s18 + $0x78] sm:$0xf] %vm2498_vm5, %v6372_v27 }
 0x2a0   : > { %2305 = vst.msk [vmem:[%s5545_s18 + $0x7c] sm:$0xf] %vm2273_vm4, %v2240_v49  ;;  %v7968_v49 = vld [vmem:[#allocation119_spill] sm:$0xff] }
 0x2a1   : > { %v2234_v17 = vpop.permute.xlu0 %2233  ;;  %2834 = vrot.lane.b32.xlu1 %v7963_v45, %s4463_s15  ;;  %2530 = vst.msk [vmem:[%s5545_s18 + $0x7c] sm:$0xf] %vm2498_vm5, %v6384_v42  ;;  %v7965_v42 = vld [vmem:[#allocation56_spill] sm:$0xff] }
 0x2a2   : > { %2302 = vst.msk [vmem:[%s5545_s18 + $0x70] sm:$0xf] %vm2273_vm4, %v2234_v17  ;;  %v3210_v17 = vmul.f32 %v7930_v29, %v7930_v29 }
 0x2a3   : > { %v2236_v18 = vpop.permute.xlu1 %2235  ;;  %2836 = vrot.lane.b32.xlu0 %v7964_v48, %s4463_s15  ;;  %2527 = vst.msk [vmem:[%s5545_s18 + $0x70] sm:$0xf] %vm2498_vm5, %v6414_v23 }
 0x2a4   : > { %2303 = vst.msk [vmem:[%s5545_s18 + $0x74] sm:$0xf] %vm2273_vm4, %v2236_v18 }
 0x2a5   : > { %v2664_v27 = vpop.permute.xlu0 %2663  ;;  %2528 = vst.msk [vmem:[%s5545_s18 + $0x74] sm:$0xf] %vm2498_vm5, %v6425_v28  ;;  %2838 = vrot.lane.b32.xlu1 %v7965_v42, %s4463_s15 }
 0x2a6   : > { %2742 = vst.msk [vmem:[%s5545_s18 + $0x48] sm:$0xf] %vm2723_vm6, %v2664_v27  ;;  %v7969_v27 = vld [vmem:[#allocation67_spill] sm:$0xff] }
 0x2a7   : > { %v2666_v43 = vpop.permute.xlu1 %2665  ;;  %2840 = vrot.lane.b32.xlu0 %v7966_v5, %s4463_s15 }
 0x2a8   : > { %2743 = vst.msk [vmem:[%s5545_s18 + $0x4c] sm:$0xf] %vm2723_vm6, %v2666_v43  ;;  %v3211_v43 = vmul.f32 %v7932_v19, %v7932_v19 }
 0x2a9   : > { %v2660_v23 = vpop.permute.xlu0 %2659  ;;  %2842 = vrot.lane.b32.xlu1 %v7967_v25, %s4463_s15 }
 0x2aa   : > { %2740 = vst.msk [vmem:[%s5545_s18 + $0x40] sm:$0xf] %vm2723_vm6, %v2660_v23 }
 0x2ab   : > { %v2662_v28 = vpop.permute.xlu1 %2661  ;;  %2844 = vrot.lane.b32.xlu0 %v7968_v49, %s4463_s15 }
 0x2ac   : > { %2741 = vst.msk [vmem:[%s5545_s18 + $0x44] sm:$0xf] %vm2723_vm6, %v2662_v28  ;;  %v3212_v28 = vmul.f32 %v7934_v13, %v7934_v13  ;;  %v3213_v13 = vmul.f32 %v7935_v3, %v7935_v3 }
 0x2ad   : > { %v2632_v18 = vpop.permute.xlu0 %2631  ;;  %2846 = vrot.lane.b32.xlu1 %v7969_v27, %s4463_s15 }
 0x2ae   : > { %2726 = vst.msk [vmem:[%s5545_s18 + $0x8] sm:$0xf] %vm2723_vm6, %v2632_v18 }
 0x2af   : > { %v2634_v23 = vpop.permute.xlu1 %2633  ;;  %3274 = vrot.lane.b32.xlu0 %v3210_v17, %s4463_s15 }
 0x2b0   : > { %2727 = vst.msk [vmem:[%s5545_s18 + $0xc] sm:$0xf] %vm2723_vm6, %v2634_v23 }
 0x2b1   : > { %v2628_v29 = vpop.permute.xlu0 %2627  ;;  %3276 = vrot.lane.b32.xlu1 %v3211_v43, %s4463_s15  ;;  %v3467_v43 = vmul.f32 %v6248_v9, %v6248_v9 }
 0x2b2   : > { %2724 = vst.msk [vmem:[%s5545_s18] sm:$0xf] %vm2723_vm6, %v2628_v29 }
 0x2b3   : > { %v2630_v1 = vpop.permute.xlu1 %2629  ;;  %3278 = vrot.lane.b32.xlu0 %v3212_v28, %s4463_s15 }
 0x2b4   : > { %2725 = vst.msk [vmem:[%s5545_s18 + $0x4] sm:$0xf] %vm2723_vm6, %v2630_v1  ;;  %v3466_v1 = vmul.f32 %v6239_v31, %v6239_v31 }
 0x2b5   : > { %v2672_v19 = vpop.permute.xlu0 %2671  ;;  %2980 = vrot.lane.b32.xlu1 %v6239_v31, %s4463_s15  ;;  %v3214_v31 = vmul.f32 %v7936_v14, %v7936_v14  ;;  %v3215_v14 = vmul.f32 %v7937_v36, %v7937_v36  ;;  %v3216_v36 = vmul.f32 %v7938_v24, %v7938_v24  ;;  %v3217_v24 = vmul.f32 %v7939_v40, %v7939_v40 }
 0x2b6   : > { %2746 = vst.msk [vmem:[%s5545_s18 + $0x58] sm:$0xf] %vm2723_vm6, %v2672_v19  ;;  %v3218_v40 = vmul.f32 %v7940_v20, %v7940_v20  ;;  %v3219_v20 = vmul.f32 %v7941_v52, %v7941_v52  ;;  %v3220_v52 = vmul.f32 %v7942_v37, %v7942_v37  ;;  %v3221_v37 = vmul.f32 %v7944_v6, %v7944_v6 }
 0x2b7   : > { %v2674_v17 = vpop.permute.xlu1 %2673  ;;  %2982 = vrot.lane.b32.xlu0 %v6248_v9, %s4463_s15  ;;  %v3468_v9 = vmul.f32 %v6219_v32, %v6219_v32 }
 0x2b8   : > { %2747 = vst.msk [vmem:[%s5545_s18 + $0x5c] sm:$0xf] %vm2723_vm6, %v2674_v17 }
 0x2b9   : > { %v2668_v18 = vpop.permute.xlu0 %2667  ;;  %3280 = vrot.lane.b32.xlu1 %v3213_v13, %s4463_s15 }
 0x2ba   : > { %2744 = vst.msk [vmem:[%s5545_s18 + $0x50] sm:$0xf] %vm2723_vm6, %v2668_v18 }
 0x2bb   : > { %v2670_v3 = vpop.permute.xlu1 %2669  ;;  %3530 = vrot.lane.b32.xlu0 %v3466_v1, %s4463_s15 }
 0x2bc   : > { %2745 = vst.msk [vmem:[%s5545_s18 + $0x54] sm:$0xf] %vm2723_vm6, %v2670_v3 }
 0x2bd   : > { %v2640_v23 = vpop.permute.xlu0 %2639  ;;  %3532 = vrot.lane.b32.xlu1 %v3467_v43, %s4463_s15 }
 0x2be   : > { %2730 = vst.msk [vmem:[%s5545_s18 + $0x18] sm:$0xf] %vm2723_vm6, %v2640_v23 }
 0x2bf   : > { %v2642_v28 = vpop.permute.xlu1 %2641  ;;  %2984 = vrot.lane.b32.xlu0 %v6219_v32, %s4463_s15  ;;  %v3469_v32 = vmul.f32 %v6230_v33, %v6230_v33 }
 0x2c0   : > { %2731 = vst.msk [vmem:[%s5545_s18 + $0x1c] sm:$0xf] %vm2723_vm6, %v2642_v28 }
 0x2c1   : > { %v2636_v29 = vpop.permute.xlu0 %2635  ;;  %3282 = vrot.lane.b32.xlu1 %v3214_v31, %s4463_s15 }
 0x2c2   : > { %2728 = vst.msk [vmem:[%s5545_s18 + $0x10] sm:$0xf] %vm2723_vm6, %v2636_v29 }
 0x2c3   : > { %v2638_v19 = vpop.permute.xlu1 %2637  ;;  %3534 = vrot.lane.b32.xlu0 %v3468_v9, %s4463_s15 }
 0x2c4   : > { %2729 = vst.msk [vmem:[%s5545_s18 + $0x14] sm:$0xf] %vm2723_vm6, %v2638_v19 }
 0x2c5   : > { %v2680_v13 = vpop.permute.xlu0 %2679  ;;  %2986 = vrot.lane.b32.xlu1 %v6230_v33, %s4463_s15  ;;  %v3470_v33 = vmul.f32 %v6331_v63, %v6331_v63 }
 0x2c6   : > { %2750 = vst.msk [vmem:[%s5545_s18 + $0x68] sm:$0xf] %vm2723_vm6, %v2680_v13 }
 0x2c7   : > { %v2682_v17 = vpop.permute.xlu1 %2681  ;;  %3284 = vrot.lane.b32.xlu0 %v3215_v14, %s4463_s15 }
 0x2c8   : > { %2751 = vst.msk [vmem:[%s5545_s18 + $0x6c] sm:$0xf] %vm2723_vm6, %v2682_v17 }
 0x2c9   : > { %v2676_v1 = vpop.permute.xlu0 %2675  ;;  %3536 = vrot.lane.b32.xlu1 %v3469_v32, %s4463_s15 }
 0x2ca   : > { %2748 = vst.msk [vmem:[%s5545_s18 + $0x60] sm:$0xf] %vm2723_vm6, %v2676_v1 }
 0x2cb   : > { %v2678_v18 = vpop.permute.xlu1 %2677  ;;  %2988 = vrot.lane.b32.xlu0 %v6331_v63, %s4463_s15  ;;  %v3471_v63 = vmul.f32 %v6338_v55, %v6338_v55 }
 0x2cc   : > { %2749 = vst.msk [vmem:[%s5545_s18 + $0x64] sm:$0xf] %vm2723_vm6, %v2678_v18 }
 0x2cd   : > { %v2648_v43 = vpop.permute.xlu0 %2647  ;;  %3286 = vrot.lane.b32.xlu1 %v3216_v36, %s4463_s15 }
 0x2ce   : > { %2734 = vst.msk [vmem:[%s5545_s18 + $0x28] sm:$0xf] %vm2723_vm6, %v2648_v43 }
 0x2cf   : > { %v2650_v3 = vpop.permute.xlu1 %2649  ;;  %3538 = vrot.lane.b32.xlu0 %v3470_v33, %s4463_s15  ;;  %v3475_v33 = vmul.f32 %v6420_v4, %v6420_v4 }
 0x2d0   : > { %2735 = vst.msk [vmem:[%s5545_s18 + $0x2c] sm:$0xf] %vm2723_vm6, %v2650_v3  ;;  %v3222_v3 = vmul.f32 %v7946_v50, %v7946_v50 }
 0x2d1   : > { %v2644_v23 = vpop.permute.xlu0 %2643  ;;  %2990 = vrot.lane.b32.xlu1 %v6338_v55, %s4463_s15  ;;  %v3472_v55 = vmul.f32 %v6311_v21, %v6311_v21 }
 0x2d2   : > { %2732 = vst.msk [vmem:[%s5545_s18 + $0x20] sm:$0xf] %vm2723_vm6, %v2644_v23 }
 0x2d3   : > { %v2646_v31 = vpop.permute.xlu1 %2645  ;;  %3288 = vrot.lane.b32.xlu0 %v3217_v24, %s4463_s15  ;;  %v3476_v24 = vmul.f32 %v6393_v34, %v6393_v34 }
 0x2d4   : > { %2733 = vst.msk [vmem:[%s5545_s18 + $0x24] sm:$0xf] %vm2723_vm6, %v2646_v31  ;;  %v3477_v31 = vmul.f32 %v6402_v60, %v6402_v60 }
 0x2d5   : > { %v2684_v28 = vpop.permute.xlu0 %2683  ;;  %3540 = vrot.lane.b32.xlu1 %v3471_v63, %s4463_s15  ;;  %v3223_v63 = vmul.f32 %v7948_v35, %v7948_v35 }
 0x2d6   : > { %2752 = vst.msk [vmem:[%s5545_s18 + $0x70] sm:$0xf] %vm2723_vm6, %v2684_v28 }
 0x2d7   : > { %v2686_v9 = vpop.permute.xlu1 %2685  ;;  %2992 = vrot.lane.b32.xlu0 %v6311_v21, %s4463_s15  ;;  %v3473_v21 = vmul.f32 %v6322_v26, %v6322_v26 }
 0x2d8   : > { %2753 = vst.msk [vmem:[%s5545_s18 + $0x74] sm:$0xf] %vm2723_vm6, %v2686_v9  ;;  %v3478_v9 = vmul.f32 %v6473_v51, %v6473_v51 }
 0x2d9   : > { %v2656_v29 = vpop.permute.xlu0 %2655  ;;  %3290 = vrot.lane.b32.xlu1 %v3218_v40, %s4463_s15  ;;  %v3224_v40 = vmul.f32 %v7950_v8, %v7950_v8 }
 0x2da   : > { %2738 = vst.msk [vmem:[%s5545_s18 + $0x38] sm:$0xf] %vm2723_vm6, %v2656_v29  ;;  %v3225_v29 = vmul.f32 %v7952_v0, %v7952_v0  ;;  %v3226_v0 = vmul.f32 %v7954_v56, %v7954_v56 }
 0x2db   : > { %v2658_v19 = vpop.permute.xlu1 %2657  ;;  %3542 = vrot.lane.b32.xlu0 %v3472_v55, %s4463_s15 }
 0x2dc   : > { %2739 = vst.msk [vmem:[%s5545_s18 + $0x3c] sm:$0xf] %vm2723_vm6, %v2658_v19  ;;  %v3479_v19 = vmul.f32 %v6489_v10, %v6489_v10 }
 0x2dd   : > { %v2652_v14 = vpop.permute.xlu0 %2651  ;;  %2994 = vrot.lane.b32.xlu1 %v6322_v26, %s4463_s15  ;;  %v3474_v26 = vmul.f32 %v6411_v39, %v6411_v39 }
 0x2de   : > { %2736 = vst.msk [vmem:[%s5545_s18 + $0x30] sm:$0xf] %vm2723_vm6, %v2652_v14  ;;  %v7970_v14 = vld [vmem:[#allocation31_spill] sm:$0xff] }
 0x2df   : > { %3292 = vrot.lane.b32.xlu0 %v3219_v20, %s4463_s15  ;;  %v2654_v13 = vpop.permute.xlu1 %2653 }
 0x2e0   : > { %2737 = vst.msk [vmem:[%s5545_s18 + $0x34] sm:$0xf] %vm2723_vm6, %v2654_v13 }
 0x2e1   : > { %v2688_v32 = vpop.permute.xlu0 %2687  ;;  %3544 = vrot.lane.b32.xlu1 %v3473_v21, %s4463_s15 }
 0x2e2   : > { %2754 = vst.msk [vmem:[%s5545_s18 + $0x78] sm:$0xf] %vm2723_vm6, %v2688_v32  ;;  %v7971_v32 = vld [vmem:[#allocation33_spill] sm:$0xff] }
 0x2e3   : > { %2996 = vrot.lane.b32.xlu0 %v6411_v39, %s4463_s15  ;;  %v2690_v17 = vpop.permute.xlu1 %2689 }
 0x2e4   : > { %2755 = vst.msk [vmem:[%s5545_s18 + $0x7c] sm:$0xf] %vm2723_vm6, %v2690_v17  ;;  %v3480_v17 = vmul.f32 %v6455_v11, %v6455_v11 }
 0x2e5   : > { %v6870_v1 = vpop.permute.xlu0 %2788  ;;  %3294 = vrot.lane.b32.xlu1 %v3220_v52, %s4463_s15 }
 0x2e7   : > { %3546 = vrot.lane.b32.xlu0 %v3474_v26, %s4463_s15  ;;  %v6874_v36 = vpop.permute.xlu1 %2790 }
 0x2e9   : > { %v6878_v18 = vpop.permute.xlu0 %2792  ;;  %2998 = vrot.lane.b32.xlu1 %v6420_v4, %s4463_s15 }
 0x2eb   : > { %3296 = vrot.lane.b32.xlu0 %v3221_v37, %s4463_s15  ;;  %v6885_v39 = vpop.permute.xlu1 %2794  ;;  %v7972_v37 = vld [vmem:[#allocation30_spill] sm:$0xff] }
 0x2ed   : > { %v6887_v43 = vpop.permute.xlu0 %2796  ;;  %3548 = vrot.lane.b32.xlu1 %v3475_v33, %s4463_s15 }
 0x2ef   : > { %3000 = vrot.lane.b32.xlu0 %v6393_v34, %s4463_s15  ;;  %v6894_v6 = vpop.permute.xlu1 %2798 }
 0x2f1   : > { %v6898_v4 = vpop.permute.xlu0 %2800  ;;  %3298 = vrot.lane.b32.xlu1 %v3222_v3, %s4463_s15  ;;  %v7973_v3 = vld [vmem:[#allocation81_spill] sm:$0xff] }
 0x2f3   : > { %3550 = vrot.lane.b32.xlu0 %v3476_v24, %s4463_s15  ;;  %v6902_v23 = vpop.permute.xlu1 %2802 }
 0x2f5   : > { %v6906_v50 = vpop.permute.xlu0 %2804  ;;  %3002 = vrot.lane.b32.xlu1 %v6402_v60, %s4463_s15 }
 0x2f7   : > { %3300 = vrot.lane.b32.xlu0 %v3223_v63, %s4463_s15  ;;  %v6913_v34 = vpop.permute.xlu1 %2806  ;;  %v7974_v63 = vld [vmem:[#allocation32_spill] sm:$0xff] }
 0x2f9   : > { %v6915_v28 = vpop.permute.xlu0 %2808  ;;  %3552 = vrot.lane.b32.xlu1 %v3477_v31, %s4463_s15 }
 0x2fb   : > { %3004 = vrot.lane.b32.xlu0 %v6473_v51, %s4463_s15  ;;  %v6922_v35 = vpop.permute.xlu1 %2810 }
 0x2fd   : > { %v6926_v60 = vpop.permute.xlu0 %2812  ;;  %3302 = vrot.lane.b32.xlu1 %v3224_v40, %s4463_s15  ;;  %v7975_v40 = vld [vmem:[#allocation75_spill] sm:$0xff] }
 0x2ff   : > { %3554 = vrot.lane.b32.xlu0 %v3478_v9, %s4463_s15  ;;  %v6930_v55 = vpop.permute.xlu1 %2814 }
 0x301   : > { %v6934_v8 = vpop.permute.xlu0 %2816  ;;  %3006 = vrot.lane.b32.xlu1 %v6489_v10, %s4463_s15 }
 0x303   : > { %3304 = vrot.lane.b32.xlu0 %v3225_v29, %s4463_s15  ;;  %v6941_v51 = vpop.permute.xlu1 %2818  ;;  %v3227_v29 = vmul.f32 %v7956_v44, %v7956_v44 }
 0x305   : > { %v2821_v20 = vpop.permute.xlu0 %2820  ;;  %3556 = vrot.lane.b32.xlu1 %v3479_v19, %s4463_s15  ;;  %v7977_v19 = vld [vmem:[#allocation40_spill] sm:$0xff] }
 0x306   : > { %v2900_v21 = vadd.f32 %v2821_v20, %v7970_v14 }
 0x307   : > { %3008 = vrot.lane.b32.xlu0 %v6455_v11, %s4463_s15  ;;  %v2823_v13 = vpop.permute.xlu1 %2822 }
 0x308   : > { %v2901_v52 = vadd.f32 %v2823_v13, %v7971_v32  ;;  %v6951_v10 = vadd.f32 %v2900_v21, %v7916_v59  ;;  %v7978_v21 = vld [vmem:[#allocation80_spill] sm:$0xff]  ;;  %v3481_v13 = vmul.f32 %v6465_v54, %v6465_v54 }
 0x309   : > { %v2825_v26 = vpop.permute.xlu0 %2824  ;;  %3306 = vrot.lane.b32.xlu1 %v3226_v0, %s4463_s15 }
 0x30a   : > { %v2902_v33 = vadd.f32 %v7972_v37, %v2825_v26  ;;  %v6958_v24 = vadd.f32 %v2901_v52, %v7973_v3 }
 0x30b   : > { %3558 = vrot.lane.b32.xlu0 %v3480_v17, %s4463_s15  ;;  %v2827_v56 = vpop.permute.xlu1 %2826  ;;  %v7980_v17 = vld [vmem:[#allocation43_spill] sm:$0xff] }
 0x30c   : > { %v2903_v31 = vadd.f32 %v7974_v63, %v2827_v56  ;;  %v6963_v9 = vadd.f32 %v7975_v40, %v2902_v33  ;;  %v7981_v33 = vld [vmem:[#allocation91_spill] sm:$0xff] }
 0x30d   : > { %v2829_v11 = vpop.permute.xlu0 %2828  ;;  %3010 = vrot.lane.b32.xlu1 %v6465_v54, %s4463_s15 }
 0x30e   : > { %7976 = vst [vmem:[#allocation2_spill] sm:$0xff] %v6963_v9  ;;  %v2904_v20 = vadd.f32 %v2829_v11, %v7977_v19  ;;  %v6971_v0 = vadd.f32 %v7978_v21, %v2903_v31  ;;  %v7983_v9 = vld [vmem:[#allocation39_spill] sm:$0xff]  ;;  %v3228_v31 = vmul.f32 %v7958_v47, %v7958_v47 }
 0x30f   : > { %3308 = vrot.lane.b32.xlu0 %v3227_v29, %s4463_s15  ;;  %v2831_v52 = vpop.permute.xlu1 %2830  ;;  %v7984_v11 = vld [vmem:[#allocation95_spill] sm:$0xff]  ;;  %v7986_v29 = vld [vmem:[#allocation42_spill] sm:$0xff] }
 0x310   : > { %7979 = vst [vmem:[#allocation74_spill] sm:$0xff] %v6971_v0  ;;  %v2905_v26 = vadd.f32 %v2831_v52, %v7980_v17  ;;  %v6978_v56 = vadd.f32 %v2904_v20, %v7981_v33  ;;  %v7987_v17 = vld [vmem:[#allocation89_spill] sm:$0xff] }
 0x311   : > { %v2833_v44 = vpop.permute.xlu0 %2832  ;;  %3560 = vrot.lane.b32.xlu1 %v3481_v13, %s4463_s15  ;;  %v3482_v13 = vmul.f32 %v6192_v57, %v6192_v57 }
 0x312   : > { %7982 = vst [vmem:[#allocation86_spill] sm:$0xff] %v6978_v56  ;;  %v2906_v63 = vadd.f32 %v7983_v9, %v2833_v44  ;;  %v6983_v19 = vadd.f32 %v2905_v26, %v7984_v11  ;;  %v7989_v26 = vld [vmem:[#allocation51_spill] sm:$0xff]  ;;  %v7992_v11 = vld [vmem:[#allocation54_spill] sm:$0xff] }
 0x313   : > { %3012 = vrot.lane.b32.xlu0 %v6192_v57, %s4463_s15  ;;  %v2835_v54 = vpop.permute.xlu1 %2834 }
 0x314   : > { %7985 = vst [vmem:[#allocation98_spill] sm:$0xff] %v6983_v19  ;;  %v2907_v52 = vadd.f32 %v7986_v29, %v2835_v54  ;;  %v6991_v20 = vadd.f32 %v7987_v17, %v2906_v63  ;;  %v7990_v19 = vld [vmem:[#allocation93_spill] sm:$0xff]  ;;  %v7993_v54 = vld [vmem:[#allocation106_spill] sm:$0xff]  ;;  %v3229_v63 = vmul.f32 %v7959_v46, %v7959_v46 }
 0x315   : > { %v2837_v56 = vpop.permute.xlu0 %2836  ;;  %3310 = vrot.lane.b32.xlu1 %v3228_v31, %s4463_s15  ;;  %v7995_v31 = vld [vmem:[#allocation50_spill] sm:$0xff] }
 0x316   : > { %7988 = vst [vmem:[#allocation111_spill] sm:$0xff] %v6991_v20  ;;  %v2908_v44 = vadd.f32 %v2837_v56, %v7989_v26  ;;  %v6998_v9 = vadd.f32 %v7990_v19, %v2907_v52  ;;  %v7996_v26 = vld [vmem:[#allocation110_spill] sm:$0xff]  ;;  %v8015_v19 = vld [vmem:[#allocation5_spill] sm:$0xff] }
 0x317   : > { %3562 = vrot.lane.b32.xlu0 %v3482_v13, %s4463_s15  ;;  %v2839_v47 = vpop.permute.xlu1 %2838  ;;  %v3483_v13 = vmul.f32 %v6206_v7, %v6206_v7 }
 0x318   : > { %7991 = vst [vmem:[#allocation100_spill] sm:$0xff] %v6998_v9  ;;  %v2909_v0 = vadd.f32 %v2839_v47, %v7992_v11  ;;  %v7003_v29 = vadd.f32 %v2908_v44, %v7993_v54  ;;  %v7998_v44 = vld [vmem:[#allocation53_spill] sm:$0xff]  ;;  %v7999_v11 = vld [vmem:[#allocation103_spill] sm:$0xff]  ;;  %v8001_v54 = vld [vmem:[#allocation62_spill] sm:$0xff] }
 0x319   : > { %v2841_v57 = vpop.permute.xlu0 %2840  ;;  %3014 = vrot.lane.b32.xlu1 %v6206_v7, %s4463_s15  ;;  %v8004_v7 = vld [vmem:[#allocation68_spill] sm:$0xff] }
 0x31a   : > { %7994 = vst [vmem:[#allocation101_spill] sm:$0xff] %v7003_v29  ;;  %v2910_v56 = vadd.f32 %v7995_v31, %v2841_v57  ;;  %v7011_v52 = vadd.f32 %v2909_v0, %v7996_v26  ;;  %v8002_v57 = vld [vmem:[#allocation108_spill] sm:$0xff]  ;;  %v3230_v0 = vmul.f32 %v7960_v58, %v7960_v58 }
 0x31b   : > { %3312 = vrot.lane.b32.xlu0 %v3229_v63, %s4463_s15  ;;  %v2843_v47 = vpop.permute.xlu1 %2842 }
 0x31c   : > { %7997 = vst [vmem:[#allocation112_spill] sm:$0xff] %v7011_v52  ;;  %v2911_v29 = vadd.f32 %v7998_v44, %v2843_v47  ;;  %v7018_v9 = vadd.f32 %v7999_v11, %v2910_v56  ;;  %v8005_v52 = vld [vmem:[#allocation64_spill] sm:$0xff] }
 0x31d   : > { %v2845_v46 = vpop.permute.xlu0 %2844  ;;  %3564 = vrot.lane.b32.xlu1 %v3483_v13, %s4463_s15  ;;  %v8006_v44 = vld [vmem:[#allocation120_spill] sm:$0xff]  ;;  %v3484_v13 = vmul.f32 %v8004_v7, %v8004_v7 }
 0x31e   : > { %8000 = vst [vmem:[#allocation124_spill] sm:$0xff] %v7018_v9  ;;  %v2912_v20 = vadd.f32 %v2845_v46, %v8001_v54  ;;  %v7023_v31 = vadd.f32 %v8002_v57, %v2911_v29  ;;  %v8008_v29 = vld [vmem:[#allocation4_spill] sm:$0xff]  ;;  %v8010_v54 = vld [vmem:[#allocation123_spill] sm:$0xff] }
 0x31f   : > { %3016 = vrot.lane.b32.xlu0 %v8004_v7, %s4463_s15  ;;  %v2847_v63 = vpop.permute.xlu1 %2846  ;;  %v2884_v46 = vadd.f32 %v6870_v1, %v8008_v29  ;;  %v8012_v7 = vld [vmem:[#allocation3_spill] sm:$0xff] }
 0x320   : > { %8003 = vst [vmem:[#allocation115_spill] sm:$0xff] %v7023_v31  ;;  %v2913_v47 = vadd.f32 %v2847_v63, %v8005_v52  ;;  %v7031_v56 = vadd.f32 %v2912_v20, %v8006_v44  ;;  %v8009_v31 = vld [vmem:[#allocation6_spill] sm:$0xff]  ;;  %v3180_v52 = vmul.f32 %v8012_v7, %v8012_v7 }
 0x321   : > { %v3275_v9 = vpop.permute.xlu0 %3274  ;;  %3314 = vrot.lane.b32.xlu1 %v3230_v0, %s4463_s15  ;;  %v3179_v58 = vmul.f32 %v8009_v31, %v8009_v31  ;;  %v2885_v20 = vadd.f32 %v6874_v36, %v8009_v31  ;;  %v3231_v0 = vmul.f32 %v7961_v61, %v7961_v61  ;;  %v8013_v44 = vld [vmem:[#allocation70_spill] sm:$0xff] }
 0x322   : > { %8007 = vst [vmem:[#allocation118_spill] sm:$0xff] %v7031_v56  ;;  %v7041_v57 = vadd.f32 %v2913_v47, %v8010_v54  ;;  %v3178_v47 = vmul.f32 %v8008_v29, %v8008_v29  ;;  %v3485_v36 = vmul.f32 %v8013_v44, %v8013_v44  ;;  %v8014_v54 = vld [vmem:[#allocation79_spill] sm:$0xff]  ;;  %v3402_v29 = vmul.f32 %v7880_v38, %v7880_v38 }
 0x323   : > { %3566 = vrot.lane.b32.xlu0 %v3484_v13, %s4463_s15  ;;  %v3277_v63 = vpop.permute.xlu1 %3276  ;;  %v2916_v13 = vadd.f32 %v2884_v46, %v7880_v38  ;;  %v2917_v61 = vadd.f32 %v2885_v20, %v8014_v54  ;;  %v3403_v20 = vmul.f32 %v8014_v54, %v8014_v54  ;;  %v3486_v38 = vmul.f32 %v6284_v62, %v6284_v62  ;;  %v8016_v54 = vld [vmem:[#allocation72_spill] sm:$0xff] }
 0x324   : > { %8011 = vst [vmem:[#allocation52_spill] sm:$0xff] %v7041_v57  ;;  %v3371_v56 = vadd.f32 %v3277_v63, %v3179_v58  ;;  %v3370_v58 = vadd.f32 %v3275_v9, %v3178_v47  ;;  %v2886_v9 = vadd.f32 %v8012_v7, %v6878_v18 }
 0x325   : > { %v3279_v1 = vpop.permute.xlu0 %3278  ;;  %3018 = vrot.lane.b32.xlu1 %v8013_v44, %s4463_s15  ;;  %v3232_v44 = vmul.f32 %v7962_v16, %v7962_v16 }
 0x326   : > { %v3372_v57 = vadd.f32 %v3279_v1, %v3180_v52  ;;  %v3181_v52 = vmul.f32 %v8015_v19, %v8015_v19  ;;  %v3434_v47 = vadd.f32 %v3402_v29, %v3370_v58  ;;  %v3435_v7 = vadd.f32 %v3403_v20, %v3371_v56 }
 0x327   : > { %3316 = vrot.lane.b32.xlu0 %v3231_v0, %s4463_s15  ;;  %v2981_v31 = vpop.permute.xlu1 %2980  ;;  %v2887_v56 = vadd.f32 %v8015_v19, %v6885_v39  ;;  %v8018_v19 = vld [vmem:[#allocation76_spill] sm:$0xff] }
 0x328   : > { %v3076_v63 = vadd.f32 %v2981_v31, %v2916_v13 }
 0x329   : > { %v2983_v11 = vpop.permute.xlu0 %2982  ;;  %3568 = vrot.lane.b32.xlu1 %v3485_v36, %s4463_s15 }
 0x32a   : > { %v3077_v26 = vadd.f32 %v2983_v11, %v2917_v61  ;;  %v3109_v11 = vsel %vm3108_vm7, %v3076_v63, 0.0  ;;  %v2918_v61 = vadd.f32 %v2886_v9, %v8016_v54 }
 0x32b   : > { %3020 = vrot.lane.b32.xlu0 %v6284_v62, %s4463_s15  ;;  %v3281_v46 = vpop.permute.xlu1 %3280  ;;  %v8017_v62 = vld [vmem:[#allocation8_spill] sm:$0xff] }
 0x32c   : > { %v3110_v0 = vsel %vm3108_vm7, %v3077_v26, 0.0  ;;  %v3373_v1 = vadd.f32 %v3281_v46, %v3181_v52  ;;  %v3233_v26 = vmul.f32 %v7963_v45, %v7963_v45  ;;  %v3182_v58 = vmul.f32 %v8017_v62, %v8017_v62 }
 0x32d   : > { %v3111_v16 = vadd.f32 %v3110_v0, %v3109_v11  ;;  %v3531_v13 = vpop.permute.xlu0 %3530  ;;  %3318 = vrot.lane.b32.xlu1 %v3232_v44, %s4463_s15  ;;  %v3404_v52 = vmul.f32 %v8016_v54, %v8016_v54  ;;  %v3487_v45 = vmul.f32 %v6298_v41, %v6298_v41 }
 0x32e   : > { %v3626_v18 = vadd.f32 %v3531_v13, %v3434_v47 }
 0x32f   : > { %3570 = vrot.lane.b32.xlu0 %v3486_v38, %s4463_s15  ;;  %v3533_v36 = vpop.permute.xlu1 %3532  ;;  %v3436_v47 = vadd.f32 %v3404_v52, %v3372_v57  ;;  %v2888_v57 = vadd.f32 %v6887_v43, %v8017_v62 }
 0x330   : > { %v3627_v31 = vadd.f32 %v3533_v36, %v3435_v7  ;;  %v3658_v29 = vsel %vm3108_vm7, %v3626_v18, 0.0  ;;  %v2919_v18 = vadd.f32 %v2887_v56, %v8018_v19  ;;  %v3234_v7 = vmul.f32 %v7964_v48, %v7964_v48  ;;  %v8019_v36 = vld [vmem:[#allocation10_spill] sm:$0xff] }
 0x331   : > { %v2985_v63 = vpop.permute.xlu0 %2984  ;;  %3022 = vrot.lane.b32.xlu1 %v6298_v41, %s4463_s15 }
 0x332   : > { %v3659_v44 = vsel %vm3108_vm7, %v3627_v31, 0.0  ;;  %v3078_v9 = vadd.f32 %v2985_v63, %v2918_v61  ;;  %v3183_v31 = vmul.f32 %v8019_v36, %v8019_v36  ;;  %v3405_v61 = vmul.f32 %v8018_v19, %v8018_v19 }
 0x333   : > { %v3660_v46 = vadd.f32 %v3659_v44, %v3658_v29  ;;  %3320 = vrot.lane.b32.xlu0 %v3233_v26, %s4463_s15  ;;  %v3283_v20 = vpop.permute.xlu1 %3282  ;;  %v3488_v26 = vmul.f32 %v6260_v15, %v6260_v15  ;;  %v2920_v44 = vadd.f32 %v2888_v57, %v7876_v12 }
 0x334   : > { %v3112_v11 = vsel %vm3108_vm7, %v3078_v9, 0.0  ;;  %v3374_v0 = vadd.f32 %v3283_v20, %v3182_v58  ;;  %v3437_v56 = vadd.f32 %v3405_v61, %v3373_v1  ;;  %v3235_v9 = vmul.f32 %v7965_v42, %v7965_v42  ;;  %v8024_v61 = vld [vmem:[#allocation9_spill] sm:$0xff] }
 0x335   : > { %v3113_v38 = vadd.f32 %v3112_v11, %v3111_v16  ;;  %v3535_v13 = vpop.permute.xlu0 %3534  ;;  %3572 = vrot.lane.b32.xlu1 %v3487_v45, %s4463_s15  ;;  %v2889_v1 = vadd.f32 %v6894_v6, %v8019_v36  ;;  %v8022_v36 = vld [vmem:[#allocation92_spill] sm:$0xff] }
 0x336   : > { %v3628_v39 = vadd.f32 %v3535_v13, %v3436_v47 }
 0x337   : > { %3024 = vrot.lane.b32.xlu0 %v6260_v15, %s4463_s15  ;;  %v2987_v41 = vpop.permute.xlu1 %2986  ;;  %v8020_v15 = vld [vmem:[#allocation71_spill] sm:$0xff]  ;;  %v2921_v57 = vadd.f32 %v2889_v1, %v8022_v36 }
 0x338   : > { %v3661_v16 = vsel %vm3108_vm7, %v3628_v39, 0.0  ;;  %v3079_v54 = vadd.f32 %v2987_v41, %v2919_v18  ;;  %v3489_v13 = vmul.f32 %v8020_v15, %v8020_v15 }
 0x339   : > { %v3662_v48 = vadd.f32 %v3661_v16, %v3660_v46  ;;  %v3285_v63 = vpop.permute.xlu0 %3284  ;;  %3322 = vrot.lane.b32.xlu1 %v3234_v7, %s4463_s15  ;;  %v8021_v46 = vld [vmem:[#allocation7_spill] sm:$0xff]  ;;  %v8023_v16 = vld [vmem:[#allocation88_spill] sm:$0xff] }
 0x33a   : > { %v3114_v58 = vsel %vm3108_vm7, %v3079_v54, 0.0  ;;  %v3375_v52 = vadd.f32 %v3285_v63, %v3183_v31  ;;  %v3184_v20 = vmul.f32 %v8021_v46, %v8021_v46 }
 0x33b   : > { %v3115_v29 = vadd.f32 %v3114_v58, %v3113_v38  ;;  %3574 = vrot.lane.b32.xlu0 %v3488_v26, %s4463_s15  ;;  %v3537_v43 = vpop.permute.xlu1 %3536  ;;  %v3406_v38 = vmul.f32 %v7876_v12, %v7876_v12  ;;  %v3236_v12 = vmul.f32 %v7966_v5, %v7966_v5  ;;  %v3185_v26 = vmul.f32 %v8024_v61, %v8024_v61 }
 0x33c   : > { %v3629_v62 = vadd.f32 %v3537_v43, %v3437_v56  ;;  %v3407_v58 = vmul.f32 %v8022_v36, %v8022_v36  ;;  %v3490_v56 = vmul.f32 %v8023_v16, %v8023_v16 }
 0x33d   : > { %v2989_v45 = vpop.permute.xlu0 %2988  ;;  %3026 = vrot.lane.b32.xlu1 %v8020_v15, %s4463_s15  ;;  %v3438_v7 = vadd.f32 %v3406_v38, %v3374_v0  ;;  %v2890_v0 = vadd.f32 %v8021_v46, %v6898_v4  ;;  %v8025_v15 = vld [vmem:[#allocation84_spill] sm:$0xff] }
 0x33e   : > { %v3663_v11 = vsel %vm3108_vm7, %v3629_v62, 0.0  ;;  %v3080_v47 = vadd.f32 %v2989_v45, %v2920_v44  ;;  %v3439_v44 = vadd.f32 %v3407_v58, %v3375_v52  ;;  %v2891_v52 = vadd.f32 %v8024_v61, %v6902_v23  ;;  %v8029_v61 = vld [vmem:[#allocation83_spill] sm:$0xff] }
 0x33f   : > { %v3664_v42 = vadd.f32 %v3663_v11, %v3662_v48  ;;  %3324 = vrot.lane.b32.xlu0 %v3235_v9, %s4463_s15  ;;  %v3287_v39 = vpop.permute.xlu1 %3286  ;;  %v2922_v46 = vadd.f32 %v2890_v0, %v8025_v15  ;;  %v8026_v11 = vld [vmem:[#allocation85_spill] sm:$0xff]  ;;  %v8030_v0 = vld [vmem:[#allocation16_spill] sm:$0xff] }
 0x340   : > { %v3116_v19 = vsel %vm3108_vm7, %v3080_v47, 0.0  ;;  %v3376_v18 = vadd.f32 %v3287_v39, %v3184_v20  ;;  %v3237_v20 = vmul.f32 %v7967_v25, %v7967_v25  ;;  %v8027_v47 = vld [vmem:[#allocation14_spill] sm:$0xff]  ;;  %v3408_v39 = vmul.f32 %v8025_v15, %v8025_v15 }
 0x341   : > { %v3117_v41 = vadd.f32 %v3116_v19, %v3115_v29  ;;  %v3539_v31 = vpop.permute.xlu0 %3538  ;;  %3576 = vrot.lane.b32.xlu1 %v3489_v13, %s4463_s15  ;;  %v3186_v38 = vmul.f32 %v8027_v47, %v8027_v47  ;;  %v3491_v19 = vmul.f32 %v8026_v11, %v8026_v11  ;;  %v8031_v15 = vld [vmem:[#allocation102_spill] sm:$0xff] }
 0x342   : > { %v3630_v6 = vadd.f32 %v3539_v31, %v3438_v7 }
 0x343   : > { %3028 = vrot.lane.b32.xlu0 %v8023_v16, %s4463_s15  ;;  %v2991_v54 = vpop.permute.xlu1 %2990 }
 0x344   : > { %v3665_v48 = vsel %vm3108_vm7, %v3630_v6, 0.0  ;;  %v3081_v63 = vadd.f32 %v2991_v54, %v2921_v57  ;;  %v3440_v6 = vadd.f32 %v3408_v39, %v3376_v18  ;;  %v3238_v54 = vmul.f32 %v7968_v49, %v7968_v49 }
 0x345   : > { %v3666_v5 = vadd.f32 %v3665_v48, %v3664_v42  ;;  %v3289_v29 = vpop.permute.xlu0 %3288  ;;  %3326 = vrot.lane.b32.xlu1 %v3236_v12, %s4463_s15  ;;  %v8028_v12 = vld [vmem:[#allocation90_spill] sm:$0xff]  ;;  %v3187_v48 = vmul.f32 %v8030_v0, %v8030_v0  ;;  %v2892_v18 = vadd.f32 %v6906_v50, %v8027_v47  ;;  %v8033_v47 = vld [vmem:[#allocation13_spill] sm:$0xff] }
 0x346   : > { %v3118_v43 = vsel %vm3108_vm7, %v3081_v63, 0.0  ;;  %v3377_v62 = vadd.f32 %v3289_v29, %v3185_v26  ;;  %v2923_v16 = vadd.f32 %v2891_v52, %v8028_v12 }
 0x347   : > { %v3119_v9 = vadd.f32 %v3118_v43, %v3117_v41  ;;  %3578 = vrot.lane.b32.xlu0 %v3490_v56, %s4463_s15  ;;  %v3541_v4 = vpop.permute.xlu1 %3540  ;;  %v3409_v56 = vmul.f32 %v8028_v12, %v8028_v12  ;;  %v8035_v12 = vld [vmem:[#allocation58_spill] sm:$0xff] }
 0x348   : > { %v3631_v45 = vadd.f32 %v3541_v4, %v3439_v44 }
 0x349   : > { %v2993_v1 = vpop.permute.xlu0 %2992  ;;  %3030 = vrot.lane.b32.xlu1 %v8026_v11, %s4463_s15  ;;  %v8032_v11 = vld [vmem:[#allocation96_spill] sm:$0xff] }
 0x34a   : > { %v3667_v13 = vsel %vm3108_vm7, %v3631_v45, 0.0  ;;  %v3082_v42 = vadd.f32 %v2993_v1, %v2922_v46  ;;  %v2924_v46 = vadd.f32 %v2892_v18, %v8031_v15  ;;  %v3493_v39 = vmul.f32 %v8032_v11, %v8032_v11 }
 0x34b   : > { %v3668_v25 = vadd.f32 %v3667_v13, %v3666_v5  ;;  %3328 = vrot.lane.b32.xlu0 %v3237_v20, %s4463_s15  ;;  %v3291_v7 = vpop.permute.xlu1 %3290  ;;  %v3492_v5 = vmul.f32 %v8029_v61, %v8029_v61  ;;  %v3239_v20 = vmul.f32 %v7969_v27, %v7969_v27  ;;  %v3240_v18 = vmul.f32 %v8035_v12, %v8035_v12 }
 0x34c   : > { %v3120_v41 = vsel %vm3108_vm7, %v3082_v42, 0.0  ;;  %v3378_v31 = vadd.f32 %v3291_v7, %v3186_v38  ;;  %v3188_v38 = vmul.f32 %v8033_v47, %v8033_v47  ;;  %v3410_v42 = vmul.f32 %v8031_v15, %v8031_v15  ;;  %v8038_v15 = vld [vmem:[#allocation21_spill] sm:$0xff] }
 0x34d   : > { %v3121_v36 = vadd.f32 %v3120_v41, %v3119_v9  ;;  %v3543_v57 = vpop.permute.xlu0 %3542  ;;  %3580 = vrot.lane.b32.xlu1 %v3491_v19, %s4463_s15  ;;  %v3441_v9 = vadd.f32 %v3409_v56, %v3377_v62  ;;  %v2893_v62 = vadd.f32 %v6913_v34, %v8030_v0 }
 0x34e   : > { %v3632_v23 = vadd.f32 %v3543_v57, %v3440_v6  ;;  %v3442_v41 = vadd.f32 %v3410_v42, %v3378_v31  ;;  %v8034_v57 = vld [vmem:[#allocation107_spill] sm:$0xff] }
 0x34f   : > { %3032 = vrot.lane.b32.xlu0 %v8029_v61, %s4463_s15  ;;  %v2995_v26 = vpop.permute.xlu1 %2994 }
 0x350   : > { %v3669_v63 = vsel %vm3108_vm7, %v3632_v23, 0.0  ;;  %v3083_v58 = vadd.f32 %v2995_v26, %v2923_v16  ;;  %v2925_v23 = vadd.f32 %v2893_v62, %v8034_v57  ;;  %v2894_v26 = vadd.f32 %v8033_v47, %v6915_v28  ;;  %v8039_v47 = vld [vmem:[#allocation59_spill] sm:$0xff] }
 0x351   : > { %v3670_v49 = vadd.f32 %v3669_v63, %v3668_v25  ;;  %v3293_v29 = vpop.permute.xlu0 %3292  ;;  %3330 = vrot.lane.b32.xlu1 %v3238_v54, %s4463_s15  ;;  %v8036_v54 = vld [vmem:[#allocation15_spill] sm:$0xff]  ;;  %v3494_v28 = vmul.f32 %v6432_v22, %v6432_v22  ;;  %v3241_v42 = vmul.f32 %v8039_v47, %v8039_v47 }
 0x352   : > { %v3122_v43 = vsel %vm3108_vm7, %v3083_v58, 0.0  ;;  %v3379_v44 = vadd.f32 %v3293_v29, %v3187_v48  ;;  %v3189_v61 = vmul.f32 %v8036_v54, %v8036_v54  ;;  %v3411_v48 = vmul.f32 %v8034_v57, %v8034_v57 }
 0x353   : > { %v3123_v4 = vadd.f32 %v3122_v43, %v3121_v36  ;;  %3582 = vrot.lane.b32.xlu0 %v3492_v5, %s4463_s15  ;;  %v3545_v50 = vpop.permute.xlu1 %3544 }
 0x354   : > { %v3633_v45 = vadd.f32 %v3545_v50, %v3441_v9 }
 0x355   : > { %v2997_v1 = vpop.permute.xlu0 %2996  ;;  %3034 = vrot.lane.b32.xlu1 %v8032_v11, %s4463_s15 }
 0x356   : > { %v3671_v52 = vsel %vm3108_vm7, %v3633_v45, 0.0  ;;  %v3084_v13 = vadd.f32 %v2997_v1, %v2924_v46  ;;  %v3190_v46 = vmul.f32 %v8038_v15, %v8038_v15 }
 0x357   : > { %v3672_v27 = vadd.f32 %v3671_v52, %v3670_v49  ;;  %3332 = vrot.lane.b32.xlu0 %v3239_v20, %s4463_s15  ;;  %v3295_v19 = vpop.permute.xlu1 %3294  ;;  %v3443_v49 = vadd.f32 %v3411_v48, %v3379_v44  ;;  %v2895_v20 = vadd.f32 %v8036_v54, %v6922_v35 }
 0x358   : > { %v3124_v25 = vsel %vm3108_vm7, %v3084_v13, 0.0  ;;  %v3380_v7 = vadd.f32 %v3295_v19, %v3188_v38  ;;  %v8040_v19 = vld [vmem:[#allocation104_spill] sm:$0xff] }
 0x359   : > { %v3125_v6 = vadd.f32 %v3124_v25, %v3123_v4  ;;  %v3547_v36 = vpop.permute.xlu0 %3546  ;;  %3584 = vrot.lane.b32.xlu1 %v3493_v39, %s4463_s15  ;;  %v8037_v4 = vld [vmem:[#allocation99_spill] sm:$0xff]  ;;  %v2927_v25 = vadd.f32 %v2895_v20, %v8040_v19 }
 0x35a   : > { %v3634_v34 = vadd.f32 %v3547_v36, %v3442_v41  ;;  %v2926_v50 = vadd.f32 %v2894_v26, %v8037_v4  ;;  %v3495_v41 = vmul.f32 %v6445_v2, %v6445_v2  ;;  %v8041_v36 = vld [vmem:[#allocation23_spill] sm:$0xff] }
 0x35b   : > { %2848 = vrot.lane.b32.xlu0 %v8035_v12, %s4463_s15  ;;  %v2999_v16 = vpop.permute.xlu1 %2998  ;;  %v3413_v12 = vmul.f32 %v8040_v19, %v8040_v19 }
 0x35c   : > { %v3673_v0 = vsel %vm3108_vm7, %v3634_v34, 0.0  ;;  %v3085_v31 = vadd.f32 %v2999_v16, %v2925_v23  ;;  %v2896_v34 = vadd.f32 %v6926_v60, %v8038_v15 }
 0x35d   : > { %v3674_v63 = vadd.f32 %v3673_v0, %v3672_v27  ;;  %v3297_v58 = vpop.permute.xlu0 %3296  ;;  %3036 = vrot.lane.b32.xlu1 %v6432_v22, %s4463_s15  ;;  %v3412_v22 = vmul.f32 %v8037_v4, %v8037_v4  ;;  %v3496_v0 = vmul.f32 %v6498_v30, %v6498_v30 }
 0x35e   : > { %v3126_v56 = vsel %vm3108_vm7, %v3085_v31, 0.0  ;;  %v3381_v5 = vadd.f32 %v3297_v58, %v3189_v61 }
 0x35f   : > { %v3127_v29 = vadd.f32 %v3126_v56, %v3125_v6  ;;  %3334 = vrot.lane.b32.xlu0 %v3240_v18, %s4463_s15  ;;  %v3549_v43 = vpop.permute.xlu1 %3548  ;;  %v3444_v13 = vadd.f32 %v3412_v22, %v3380_v7  ;;  %v3191_v7 = vmul.f32 %v8041_v36, %v8041_v36  ;;  %v8042_v18 = vld [vmem:[#allocation114_spill] sm:$0xff]  ;;  %v8043_v56 = vld [vmem:[#allocation20_spill] sm:$0xff] }
 0x360   : > { %v3635_v9 = vadd.f32 %v3549_v43, %v3443_v49  ;;  %v3445_v26 = vadd.f32 %v3413_v12, %v3381_v5  ;;  %v3192_v49 = vmul.f32 %v8043_v56, %v8043_v56  ;;  %v2897_v5 = vadd.f32 %v6930_v55, %v8041_v36 }
 0x361   : > { %v3001_v45 = vpop.permute.xlu0 %3000  ;;  %3586 = vrot.lane.b32.xlu1 %v3494_v28, %s4463_s15  ;;  %v3414_v43 = vmul.f32 %v8042_v18, %v8042_v18 }
 0x362   : > { %v3675_v44 = vsel %vm3108_vm7, %v3635_v9, 0.0  ;;  %v3086_v1 = vadd.f32 %v3001_v45, %v2926_v50 }
 0x363   : > { %v3676_v11 = vadd.f32 %v3675_v44, %v3674_v63  ;;  %2850 = vrot.lane.b32.xlu0 %v8039_v47, %s4463_s15  ;;  %v3299_v38 = vpop.permute.xlu1 %3298  ;;  %v2928_v63 = vadd.f32 %v2896_v34, %v8042_v18  ;;  %v8044_v44 = vld [vmem:[#allocation121_spill] sm:$0xff] }
 0x364   : > { %v3128_v62 = vsel %vm3108_vm7, %v3086_v1, 0.0  ;;  %v3382_v52 = vadd.f32 %v3299_v38, %v3190_v46  ;;  %v2929_v1 = vadd.f32 %v2897_v5, %v8044_v44  ;;  %v2898_v38 = vadd.f32 %v8043_v56, %v6934_v8 }
 0x365   : > { %v3129_v39 = vadd.f32 %v3128_v62, %v3127_v29  ;;  %v3551_v35 = vpop.permute.xlu0 %3550  ;;  %3038 = vrot.lane.b32.xlu1 %v6445_v2, %s4463_s15  ;;  %v3194_v8 = vmul.f32 %v7970_v14, %v7970_v14 }
 0x366   : > { %v3636_v27 = vadd.f32 %v3551_v35, %v3444_v13  ;;  %v3446_v15 = vadd.f32 %v3414_v43, %v3382_v52  ;;  %v3415_v52 = vmul.f32 %v8044_v44, %v8044_v44 }
 0x367   : > { %3336 = vrot.lane.b32.xlu0 %v3241_v42, %s4463_s15  ;;  %v3003_v6 = vpop.permute.xlu1 %3002 }
 0x368   : > { %v3677_v57 = vsel %vm3108_vm7, %v3636_v27, 0.0  ;;  %v3087_v23 = vadd.f32 %v3003_v6, %v2927_v25  ;;  %v8046_v6 = vld [vmem:[#allocation113_spill] sm:$0xff] }
 0x369   : > { %v3678_v16 = vadd.f32 %v3677_v57, %v3676_v11  ;;  %v3301_v54 = vpop.permute.xlu0 %3300  ;;  %3588 = vrot.lane.b32.xlu1 %v3495_v41, %s4463_s15  ;;  %v8045_v11 = vld [vmem:[#allocation22_spill] sm:$0xff]  ;;  %v2930_v36 = vadd.f32 %v2898_v38, %v8046_v6  ;;  %v3416_v12 = vmul.f32 %v8046_v6, %v8046_v6 }
 0x36a   : > { %v3130_v2 = vsel %vm3108_vm7, %v3087_v23, 0.0  ;;  %v3383_v61 = vadd.f32 %v3301_v54, %v3191_v7  ;;  %v3193_v47 = vmul.f32 %v8045_v11, %v8045_v11  ;;  %v2899_v34 = vadd.f32 %v8045_v11, %v6941_v51 }
 0x36b   : > { %v3131_v31 = vadd.f32 %v3130_v2, %v3129_v39  ;;  %3040 = vrot.lane.b32.xlu0 %v6498_v30, %s4463_s15  ;;  %v3553_v60 = vpop.permute.xlu1 %3552  ;;  %v3497_v30 = vmul.f32 %v6510_v53, %v6510_v53 }
 0x36c   : > { %v3637_v48 = vadd.f32 %v3553_v60, %v3445_v26  ;;  %v3447_v27 = vadd.f32 %v3415_v52, %v3383_v61 }
 0x36d   : > { %v3005_v58 = vpop.permute.xlu0 %3004  ;;  %3590 = vrot.lane.b32.xlu1 %v3496_v0, %s4463_s15  ;;  %v3418_v0 = vmul.f32 %v7916_v59, %v7916_v59 }
 0x36e   : > { %v3679_v28 = vsel %vm3108_vm7, %v3637_v48, 0.0  ;;  %v3088_v29 = vadd.f32 %v3005_v58, %v2928_v63  ;;  %v8047_v48 = vld [vmem:[#allocation117_spill] sm:$0xff] }
 0x36f   : > { %v3680_v9 = vadd.f32 %v3679_v28, %v3678_v16  ;;  %3042 = vrot.lane.b32.xlu0 %v6510_v53, %s4463_s15  ;;  %v3303_v4 = vpop.permute.xlu1 %3302  ;;  %v2931_v51 = vadd.f32 %v2899_v34, %v8047_v48  ;;  %v3417_v5 = vmul.f32 %v8047_v48, %v8047_v48  ;;  %v8049_v34 = vld [vmem:[#allocation2_spill] sm:$0xff] }
 0x370   : > { %v3132_v50 = vsel %vm3108_vm7, %v3088_v29, 0.0  ;;  %v3384_v45 = vadd.f32 %v3303_v4, %v3192_v49  ;;  %v3195_v49 = vmul.f32 %v7971_v32, %v7971_v32  ;;  %v8051_v48 = vld [vmem:[#allocation74_spill] sm:$0xff] }
 0x371   : > { %v3133_v46 = vadd.f32 %v3132_v50, %v3131_v31  ;;  %v3555_v55 = vpop.permute.xlu0 %3554  ;;  %3592 = vrot.lane.b32.xlu1 %v3497_v30, %s4463_s15 }
 0x372   : > { %v3638_v20 = vadd.f32 %v3555_v55, %v3446_v15  ;;  %v3448_v26 = vadd.f32 %v3416_v12, %v3384_v45 }
 0x373   : > { %v3007_v22 = vpop.permute.xlu1 %3006 }
 0x374   : > { %v3681_v53 = vsel %vm3108_vm7, %v3638_v20, 0.0  ;;  %v3089_v62 = vadd.f32 %v3007_v22, %v2929_v1  ;;  %v3196_v20 = vmul.f32 %v7972_v37, %v7972_v37 }
 0x375   : > { %v3682_v13 = vadd.f32 %v3681_v53, %v3680_v9  ;;  %v3305_v42 = vpop.permute.xlu0 %3304  ;;  %v3419_v9 = vmul.f32 %v7973_v3, %v7973_v3  ;;  %v3420_v3 = vmul.f32 %v7975_v40, %v7975_v40  ;;  %v3421_v40 = vmul.f32 %v7978_v21, %v7978_v21 }
 0x376   : > { %v3134_v39 = vsel %vm3108_vm7, %v3089_v62, 0.0  ;;  %v3385_v35 = vadd.f32 %v3305_v42, %v3193_v47  ;;  %v8048_v42 = vld [vmem:[#allocation32_spill] sm:$0xff]  ;;  %v3422_v21 = vmul.f32 %v7981_v33, %v7981_v33 }
 0x377   : > { %v3135_v19 = vadd.f32 %v3134_v39, %v3133_v46  ;;  %v3557_v25 = vpop.permute.xlu1 %3556  ;;  %v3197_v37 = vmul.f32 %v8048_v42, %v8048_v42 }
 0x378   : > { %v3639_v41 = vadd.f32 %v3557_v25, %v3447_v27  ;;  %v3449_v30 = vadd.f32 %v3417_v5, %v3385_v35 }
 0x379   : > { %v3009_v7 = vpop.permute.xlu0 %3008 }
 0x37a   : > { %v3683_v57 = vsel %vm3108_vm7, %v3639_v41, 0.0  ;;  %v3090_v23 = vadd.f32 %v3009_v7, %v2930_v36 }
 0x37b   : > { %v3684_v16 = vadd.f32 %v3683_v57, %v3682_v13  ;;  %v3307_v54 = vpop.permute.xlu1 %3306  ;;  %v8050_v57 = vld [vmem:[#allocation40_spill] sm:$0xff] }
 0x37c   : > { %v3136_v2 = vsel %vm3108_vm7, %v3090_v23, 0.0  ;;  %v3386_v61 = vadd.f32 %v3307_v54, %v3194_v8  ;;  %v3198_v23 = vmul.f32 %v8050_v57, %v8050_v57 }
 0x37d   : > { %v3137_v31 = vadd.f32 %v3136_v2, %v3135_v19  ;;  %v3559_v14 = vpop.permute.xlu0 %3558 }
 0x37e   : > { %v3640_v60 = vadd.f32 %v3559_v14, %v3448_v26  ;;  %v3450_v18 = vadd.f32 %v3418_v0, %v3386_v61 }
 0x37f   : > { %v3011_v63 = vpop.permute.xlu1 %3010 }
 0x380   : > { %v3685_v58 = vsel %vm3108_vm7, %v3640_v60, 0.0  ;;  %v3091_v56 = vadd.f32 %v3011_v63, %v2931_v51 }
 0x381   : > { %v3686_v28 = vadd.f32 %v3685_v58, %v3684_v16  ;;  %v3309_v29 = vpop.permute.xlu0 %3308 }
 0x382   : > { %v3138_v59 = vsel %vm3108_vm7, %v3091_v56, 0.0  ;;  %v3387_v43 = vadd.f32 %v3309_v29, %v3195_v49 }
 0x383   : > { %v3139_v4 = vadd.f32 %v3138_v59, %v3137_v31  ;;  %v3561_v50 = vpop.permute.xlu1 %3560 }
 0x384   : > { %v3641_v45 = vadd.f32 %v3561_v50, %v3449_v30  ;;  %v3451_v15 = vadd.f32 %v3419_v9, %v3387_v43  ;;  %v8054_v50 = vld [vmem:[#allocation86_spill] sm:$0xff] }
 0x385   : > { %v3013_v46 = vpop.permute.xlu0 %3012 }
 0x386   : > { %v3687_v55 = vsel %vm3108_vm7, %v3641_v45, 0.0  ;;  %v3092_v32 = vadd.f32 %v3013_v46, %v6951_v10 }
 0x387   : > { %v3688_v44 = vadd.f32 %v3687_v55, %v3686_v28  ;;  %v3311_v1 = vpop.permute.xlu1 %3310  ;;  %v8053_v28 = vld [vmem:[#allocation95_spill] sm:$0xff] }
 0x388   : > { %v3140_v22 = vsel %vm3108_vm7, %v3092_v32, 0.0  ;;  %v3388_v11 = vadd.f32 %v3311_v1, %v3196_v20  ;;  %v3423_v33 = vmul.f32 %v8053_v28, %v8053_v28  ;;  %v3424_v1 = vmul.f32 %v7987_v17, %v7987_v17 }
 0x389   : > { %v3141_v47 = vadd.f32 %v3140_v22, %v3139_v4  ;;  %v3563_v38 = vpop.permute.xlu0 %3562 }
 0x38a   : > { %v3642_v53 = vadd.f32 %v3563_v38, %v3450_v18  ;;  %v3452_v62 = vadd.f32 %v3420_v3, %v3388_v11  ;;  %v8052_v18 = vld [vmem:[#allocation43_spill] sm:$0xff] }
 0x38b   : > { %v3015_v52 = vpop.permute.xlu1 %3014  ;;  %v3199_v63 = vmul.f32 %v8052_v18, %v8052_v18 }
 0x38c   : > { %v3689_v13 = vsel %vm3108_vm7, %v3642_v53, 0.0  ;;  %v3093_v10 = vadd.f32 %v3015_v52, %v6958_v24 }
 0x38d   : > { %v3690_v39 = vadd.f32 %v3689_v13, %v3688_v44  ;;  %v3313_v35 = vpop.permute.xlu0 %3312  ;;  %v8057_v13 = vld [vmem:[#allocation42_spill] sm:$0xff] }
 0x38e   : > { %v3142_v27 = vsel %vm3108_vm7, %v3093_v10, 0.0  ;;  %v3389_v19 = vadd.f32 %v3313_v35, %v3197_v37  ;;  %v3201_v10 = vmul.f32 %v8057_v13, %v8057_v13  ;;  %v8069_v13 = vld [vmem:[#allocation53_spill] sm:$0xff] }
 0x38f   : > { %v3143_v25 = vadd.f32 %v3142_v27, %v3141_v47  ;;  %v3565_v41 = vpop.permute.xlu1 %3564  ;;  %v8058_v27 = vld [vmem:[#allocation93_spill] sm:$0xff] }
 0x390   : > { %v3643_v6 = vadd.f32 %v3565_v41, %v3451_v15  ;;  %v3453_v36 = vadd.f32 %v3421_v40, %v3389_v19  ;;  %v8055_v15 = vld [vmem:[#allocation39_spill] sm:$0xff]  ;;  %v3425_v17 = vmul.f32 %v8058_v27, %v8058_v27  ;;  %v8070_v27 = vld [vmem:[#allocation108_spill] sm:$0xff] }
 0x391   : > { %v3017_v7 = vpop.permute.xlu0 %3016  ;;  %v3200_v46 = vmul.f32 %v8055_v15, %v8055_v15 }
 0x392   : > { %v3691_v8 = vsel %vm3108_vm7, %v3643_v6, 0.0  ;;  %v3094_v24 = vadd.f32 %v3017_v7, %v8049_v34  ;;  %v8059_v7 = vld [vmem:[#allocation111_spill] sm:$0xff] }
 0x393   : > { %v3692_v12 = vadd.f32 %v3691_v8, %v3690_v39  ;;  %v3315_v16 = vpop.permute.xlu1 %3314  ;;  %v8060_v34 = vld [vmem:[#allocation51_spill] sm:$0xff] }
 0x394   : > { %v3144_v54 = vsel %vm3108_vm7, %v3094_v24, 0.0  ;;  %v3390_v2 = vadd.f32 %v3315_v16, %v3198_v23  ;;  %v3202_v24 = vmul.f32 %v8060_v34, %v8060_v34  ;;  %v8072_v34 = vld [vmem:[#allocation62_spill] sm:$0xff] }
 0x395   : > { %v3145_v61 = vadd.f32 %v3144_v54, %v3143_v25  ;;  %v3567_v26 = vpop.permute.xlu0 %3566  ;;  %v8061_v54 = vld [vmem:[#allocation106_spill] sm:$0xff] }
 0x396   : > { %v3644_v0 = vadd.f32 %v3567_v26, %v3452_v62  ;;  %v3454_v31 = vadd.f32 %v3422_v21, %v3390_v2  ;;  %v8056_v62 = vld [vmem:[#allocation98_spill] sm:$0xff]  ;;  %v3426_v2 = vmul.f32 %v8061_v54, %v8061_v54  ;;  %v8073_v54 = vld [vmem:[#allocation120_spill] sm:$0xff] }
 0x397   : > { %v3019_v14 = vpop.permute.xlu1 %3018 }
 0x398   : > { %v3693_v60 = vsel %vm3108_vm7, %v3644_v0, 0.0  ;;  %v3095_v51 = vadd.f32 %v3019_v14, %v8051_v48 }
 0x399   : > { %v3694_v58 = vadd.f32 %v3693_v60, %v3692_v12  ;;  %v3317_v56 = vpop.permute.xlu0 %3316  ;;  %v8062_v60 = vld [vmem:[#allocation100_spill] sm:$0xff] }
 0x39a   : > { %v3146_v49 = vsel %vm3108_vm7, %v3095_v51, 0.0  ;;  %v3391_v5 = vadd.f32 %v3317_v56, %v3199_v63  ;;  %v8063_v51 = vld [vmem:[#allocation54_spill] sm:$0xff] }
 0x39b   : > { %v3147_v29 = vadd.f32 %v3146_v49, %v3145_v61  ;;  %v3569_v59 = vpop.permute.xlu1 %3568  ;;  %v3203_v18 = vmul.f32 %v8063_v51, %v8063_v51  ;;  %v8075_v51 = vld [vmem:[#allocation64_spill] sm:$0xff] }
 0x39c   : > { %v3645_v43 = vadd.f32 %v3569_v59, %v3453_v36  ;;  %v3455_v30 = vadd.f32 %v3423_v33, %v3391_v5  ;;  %v8064_v5 = vld [vmem:[#allocation110_spill] sm:$0xff] }
 0x39d   : > { %v3021_v9 = vpop.permute.xlu0 %3020  ;;  %v3427_v28 = vmul.f32 %v8064_v5, %v8064_v5  ;;  %v8076_v5 = vld [vmem:[#allocation123_spill] sm:$0xff] }
 0x39e   : > { %v3695_v4 = vsel %vm3108_vm7, %v3645_v43, 0.0  ;;  %v3096_v45 = vadd.f32 %v3021_v9, %v8054_v50 }
 0x39f   : > { %v3696_v55 = vadd.f32 %v3695_v4, %v3694_v58  ;;  %v3319_v32 = vpop.permute.xlu1 %3318  ;;  %v8065_v4 = vld [vmem:[#allocation101_spill] sm:$0xff] }
 0x3a0   : > { %v3148_v20 = vsel %vm3108_vm7, %v3096_v45, 0.0  ;;  %v3392_v44 = vadd.f32 %v3319_v32, %v3200_v46  ;;  %v8066_v45 = vld [vmem:[#allocation50_spill] sm:$0xff] }
 0x3a1   : > { %v3149_v22 = vadd.f32 %v3148_v20, %v3147_v29  ;;  %v3571_v11 = vpop.permute.xlu0 %3570  ;;  %v3204_v15 = vmul.f32 %v8066_v45, %v8066_v45 }
 0x3a2   : > { %v3646_v3 = vadd.f32 %v3571_v11, %v3454_v31  ;;  %v3456_v47 = vadd.f32 %v3424_v1, %v3392_v44  ;;  %v8067_v44 = vld [vmem:[#allocation103_spill] sm:$0xff] }
 0x3a3   : > { %v3023_v38 = vpop.permute.xlu1 %3022  ;;  %v3428_v1 = vmul.f32 %v8067_v44, %v8067_v44 }
 0x3a4   : > { %v3697_v53 = vsel %vm3108_vm7, %v3646_v3, 0.0  ;;  %v3097_v52 = vadd.f32 %v3023_v38, %v8056_v62  ;;  %v8068_v62 = vld [vmem:[#allocation112_spill] sm:$0xff] }
 0x3a5   : > { %v3698_v42 = vadd.f32 %v3697_v53, %v3696_v55  ;;  %v3321_v37 = vpop.permute.xlu0 %3320 }
 0x3a6   : > { %v3150_v39 = vsel %vm3108_vm7, %v3097_v52, 0.0  ;;  %v3393_v35 = vadd.f32 %v3321_v37, %v3201_v10  ;;  %v3205_v10 = vmul.f32 %v8069_v13, %v8069_v13 }
 0x3a7   : > { %v3151_v19 = vadd.f32 %v3150_v39, %v3149_v22  ;;  %v3573_v40 = vpop.permute.xlu1 %3572 }
 0x3a8   : > { %v3647_v25 = vadd.f32 %v3573_v40, %v3455_v30  ;;  %v3457_v41 = vadd.f32 %v3425_v17, %v3393_v35  ;;  %v3429_v17 = vmul.f32 %v8070_v27, %v8070_v27 }
 0x3a9   : > { %v3025_v6 = vpop.permute.xlu0 %3024 }
 0x3aa   : > { %v3699_v36 = vsel %vm3108_vm7, %v3647_v25, 0.0  ;;  %v3098_v8 = vadd.f32 %v3025_v6, %v8059_v7  ;;  %v8071_v7 = vld [vmem:[#allocation124_spill] sm:$0xff] }
 0x3ab   : > { %v3700_v57 = vadd.f32 %v3699_v36, %v3698_v42  ;;  %v3323_v23 = vpop.permute.xlu1 %3322 }
 0x3ac   : > { %v3152_v12 = vsel %vm3108_vm7, %v3098_v8, 0.0  ;;  %v3394_v16 = vadd.f32 %v3323_v23, %v3202_v24  ;;  %v3206_v24 = vmul.f32 %v8072_v34, %v8072_v34 }
 0x3ad   : > { %v3153_v21 = vadd.f32 %v3152_v12, %v3151_v19  ;;  %v3575_v61 = vpop.permute.xlu0 %3574 }
 0x3ae   : > { %v3648_v26 = vadd.f32 %v3575_v61, %v3456_v47  ;;  %v3458_v0 = vadd.f32 %v3426_v2, %v3394_v16  ;;  %v3430_v2 = vmul.f32 %v8073_v54, %v8073_v54 }
 0x3af   : > { %v3027_v31 = vpop.permute.xlu1 %3026 }
 0x3b0   : > { %v3701_v14 = vsel %vm3108_vm7, %v3648_v26, 0.0  ;;  %v3099_v48 = vadd.f32 %v3027_v31, %v8062_v60  ;;  %v8074_v60 = vld [vmem:[#allocation115_spill] sm:$0xff] }
 0x3b1   : > { %v3702_v63 = vadd.f32 %v3701_v14, %v3700_v57  ;;  %v3325_v58 = vpop.permute.xlu0 %3324 }
 0x3b2   : > { %v3154_v56 = vsel %vm3108_vm7, %v3099_v48, 0.0  ;;  %v3395_v49 = vadd.f32 %v3325_v58, %v3203_v18  ;;  %v3207_v18 = vmul.f32 %v8075_v51, %v8075_v51 }
 0x3b3   : > { %v3155_v33 = vadd.f32 %v3154_v56, %v3153_v21  ;;  %v3577_v29 = vpop.permute.xlu1 %3576 }
 0x3b4   : > { %v3649_v59 = vadd.f32 %v3577_v29, %v3457_v41  ;;  %v3459_v43 = vadd.f32 %v3427_v28, %v3395_v49  ;;  %v3431_v28 = vmul.f32 %v8076_v5, %v8076_v5 }
 0x3b5   : > { %v3029_v30 = vpop.permute.xlu0 %3028 }
 0x3b6   : > { %v3703_v9 = vsel %vm3108_vm7, %v3649_v59, 0.0  ;;  %v3100_v50 = vadd.f32 %v3029_v30, %v8065_v4  ;;  %v8077_v4 = vld [vmem:[#allocation61_spill] sm:$0xff] }
 0x3b7   : > { %v3704_v46 = vadd.f32 %v3703_v9, %v3702_v63  ;;  %v3327_v55 = vpop.permute.xlu1 %3326 }
 0x3b8   : > { %v3156_v32 = vsel %vm3108_vm7, %v3100_v50, 0.0  ;;  %v3396_v20 = vadd.f32 %v3327_v55, %v3204_v15 }
 0x3b9   : > { %v3157_v22 = vadd.f32 %v3156_v32, %v3155_v33  ;;  %v3579_v11 = vpop.permute.xlu0 %3578  ;;  %v3208_v32 = vmul.f32 %v8077_v4, %v8077_v4 }
 0x3ba   : > { %v3650_v3 = vadd.f32 %v3579_v11, %v3458_v0  ;;  %v3460_v47 = vadd.f32 %v3428_v1, %v3396_v20  ;;  %v8079_v20 = vld [vmem:[#allocation116_spill] sm:$0xff] }
 0x3bb   : > { %v3031_v38 = vpop.permute.xlu1 %3030 }
 0x3bc   : > { %v3705_v53 = vsel %vm3108_vm7, %v3650_v3, 0.0  ;;  %v3101_v52 = vadd.f32 %v3031_v38, %v8068_v62  ;;  %v3432_v3 = vmul.f32 %v8079_v20, %v8079_v20 }
 0x3bd   : > { %v3706_v42 = vadd.f32 %v3705_v53, %v3704_v46  ;;  %v3329_v37 = vpop.permute.xlu0 %3328  ;;  %v8078_v46 = vld [vmem:[#allocation118_spill] sm:$0xff] }
 0x3be   : > { %v3158_v39 = vsel %vm3108_vm7, %v3101_v52, 0.0  ;;  %v3397_v35 = vadd.f32 %v3329_v37, %v3205_v10  ;;  %v8080_v10 = vld [vmem:[#allocation63_spill] sm:$0xff] }
 0x3bf   : > { %v3159_v19 = vadd.f32 %v3158_v39, %v3157_v22  ;;  %v3581_v40 = vpop.permute.xlu1 %3580 }
 0x3c0   : > { %v3651_v25 = vadd.f32 %v3581_v40, %v3459_v43  ;;  %v3461_v41 = vadd.f32 %v3429_v17, %v3397_v35  ;;  %v8081_v35 = vld [vmem:[#allocation52_spill] sm:$0xff]  ;;  %v3209_v17 = vmul.f32 %v8080_v10, %v8080_v10 }
 0x3c1   : > { %v3033_v6 = vpop.permute.xlu0 %3032 }
 0x3c2   : > { %v3707_v36 = vsel %vm3108_vm7, %v3651_v25, 0.0  ;;  %v3102_v8 = vadd.f32 %v3033_v6, %v8071_v7 }
 0x3c3   : > { %v3708_v57 = vadd.f32 %v3707_v36, %v3706_v42  ;;  %v3331_v23 = vpop.permute.xlu1 %3330 }
 0x3c4   : > { %v3160_v12 = vsel %vm3108_vm7, %v3102_v8, 0.0  ;;  %v3398_v16 = vadd.f32 %v3331_v23, %v3206_v24 }
 0x3c5   : > { %v3161_v21 = vadd.f32 %v3160_v12, %v3159_v19  ;;  %v3583_v61 = vpop.permute.xlu0 %3582  ;;  %v8082_v19 = vld [vmem:[#allocation122_spill] sm:$0xff] }
 0x3c6   : > { %v3652_v26 = vadd.f32 %v3583_v61, %v3460_v47  ;;  %v3462_v0 = vadd.f32 %v3430_v2, %v3398_v16  ;;  %v3433_v36 = vmul.f32 %v8082_v19, %v8082_v19 }
 0x3c7   : > { %v3035_v31 = vpop.permute.xlu1 %3034 }
 0x3c8   : > { %v3709_v14 = vsel %vm3108_vm7, %v3652_v26, 0.0  ;;  %v3103_v48 = vadd.f32 %v3035_v31, %v8074_v60 }
 0x3c9   : > { %v3710_v63 = vadd.f32 %v3709_v14, %v3708_v57  ;;  %v3333_v58 = vpop.permute.xlu0 %3332 }
 0x3ca   : > { %v3162_v56 = vsel %vm3108_vm7, %v3103_v48, 0.0  ;;  %v3399_v49 = vadd.f32 %v3333_v58, %v3207_v18 }
 0x3cb   : > { %v3163_v33 = vadd.f32 %v3162_v56, %v3161_v21  ;;  %v3585_v29 = vpop.permute.xlu1 %3584 }
 0x3cc   : > { %v3653_v59 = vadd.f32 %v3585_v29, %v3461_v41  ;;  %v3463_v43 = vadd.f32 %v3431_v28, %v3399_v49 }
 0x3cd   : > { %v2849_v30 = vpop.permute.xlu0 %2848 }
 0x3ce   : > { %v3711_v9 = vsel %vm3108_vm7, %v3653_v59, 0.0  ;;  %v2914_v50 = vadd.f32 %v8077_v4, %v2849_v30 }
 0x3cf   : > { %v3712_v45 = vadd.f32 %v3711_v9, %v3710_v63  ;;  %v3037_v15 = vpop.permute.xlu1 %3036 }
 0x3d0   : > { %v3104_v55 = vadd.f32 %v3037_v15, %v8078_v46  ;;  %v2946_v44 = vadd.f32 %v8079_v20, %v2914_v50 }
 0x3d1   : > { %v3335_v1 = vpop.permute.xlu0 %3334 }
 0x3d2   : > { %v3164_v22 = vsel %vm3108_vm7, %v3104_v55, 0.0  ;;  %v3400_v11 = vadd.f32 %v3335_v1, %v3208_v32 }
 0x3d3   : > { %v3165_v47 = vadd.f32 %v3164_v22, %v3163_v33  ;;  %v3587_v38 = vpop.permute.xlu1 %3586 }
 0x3d4   : > { %v3654_v53 = vadd.f32 %v3587_v38, %v3462_v0  ;;  %v3464_v62 = vadd.f32 %v3432_v3, %v3400_v11 }
 0x3d5   : > { %v2851_v52 = vpop.permute.xlu0 %2850 }
 0x3d6   : > { %v3713_v13 = vsel %vm3108_vm7, %v3654_v53, 0.0  ;;  %v2915_v42 = vadd.f32 %v8080_v10, %v2851_v52 }
 0x3d7   : > { %v3714_v37 = vadd.f32 %v3713_v13, %v3712_v45  ;;  %v3039_v39 = vpop.permute.xlu1 %3038 }
 0x3d8   : > { %v3105_v27 = vadd.f32 %v3039_v39, %v8081_v35  ;;  %v2947_v40 = vadd.f32 %v8082_v19, %v2915_v42 }
 0x3d9   : > { %v3337_v25 = vpop.permute.xlu0 %3336 }
 0x3da   : > { %v3166_v41 = vsel %vm3108_vm7, %v3105_v27, 0.0  ;;  %v3401_v6 = vadd.f32 %v3337_v25, %v3209_v17 }
 0x3db   : > { %v3167_v7 = vadd.f32 %v3166_v41, %v3165_v47  ;;  %v3589_v8 = vpop.permute.xlu1 %3588 }
 0x3dc   : > { %v3655_v34 = vadd.f32 %v3589_v8, %v3463_v43  ;;  %v3465_v24 = vadd.f32 %v3433_v36, %v3401_v6 }
 0x3dd   : > { %v3041_v57 = vpop.permute.xlu0 %3040 }
 0x3de   : > { %v3715_v23 = vsel %vm3108_vm7, %v3655_v34, 0.0  ;;  %v3106_v12 = vadd.f32 %v3041_v57, %v2946_v44 }
 0x3df   : > { %v3716_v16 = vadd.f32 %v3715_v23, %v3714_v37  ;;  %v3591_v54 = vpop.permute.xlu1 %3590 }
 0x3e0   : > { %v3168_v2 = vsel %vm3108_vm7, %v3106_v12, 0.0  ;;  %v3656_v21 = vadd.f32 %v3591_v54, %v3464_v62 }
 0x3e1   : > { %v3169_v61 = vadd.f32 %v3168_v2, %v3167_v7  ;;  %v3043_v26 = vpop.permute.xlu0 %3042 }
 0x3e2   : > { %v3717_v0 = vsel %vm3108_vm7, %v3656_v21, 0.0  ;;  %v3107_v31 = vadd.f32 %v3043_v26, %v2947_v40 }
 0x3e3   : > { %v3718_v14 = vadd.f32 %v3717_v0, %v3716_v16  ;;  %v3593_v60 = vpop.permute.xlu1 %3592 }
 0x3e4   : > { %v3170_v48 = vsel %vm3108_vm7, %v3107_v31, 0.0  ;;  %v3657_v51 = vadd.f32 %v3593_v60, %v3465_v24 }
 0x3e5   : > { %v3171_v18 = vadd.f32 %v3170_v48, %v3169_v61 }
 0x3e6   : > { %v3719_v63 = vsel %vm3108_vm7, %v3657_v51, 0.0 }
 0x3e7   : > { %v3172_v58 = vrot.slane %v3171_v18, 4  ;;  %v3720_v56 = vadd.f32 %v3719_v63, %v3718_v14 }
 0x3e9   : > { %v3173_v49 = vadd.f32 %v3172_v58, %v3171_v18  ;;  %v3721_v5 = vrot.slane %v3720_v56, 4 }
 0x3eb   : > { %v3174_v28 = vrot.slane %v3173_v49, 2  ;;  %v3722_v33 = vadd.f32 %v3721_v5, %v3720_v56 }
 0x3ed   : > { %v3175_v29 = vadd.f32 %v3174_v28, %v3173_v49  ;;  %v3723_v59 = vrot.slane %v3722_v33, 2 }
 0x3ef   : > { %v3176_v43 = vrot.slane %v3175_v29, 1  ;;  %v3724_v30 = vadd.f32 %v3723_v59, %v3722_v33 }
 0x3f1   : > { %v3725_v9 = vrot.slane %v3724_v30, 1  ;;  %v3177_v4 = vadd.f32 %v3176_v43, %v3175_v29 }
 0x3f3   : > { %v3726_v50 = vadd.f32 %v3725_v9, %v3724_v30 }
 0x3f5   : > { %v3728_v45 = vsel %vm3727_vm8, %v3177_v4, %v3726_v50 }
 0x3f6   : > { %3730 = vrot.lane.b32.xlu0 %v3728_v45, %s4462_s14 }
 0x468   : > { %v3731_v15 = vpop.permute.xlu0 %3730 }
 0x469   : > { %3734 = vst.msk [vmem:[%s396_s17] sm:$0x3] %vm3733_vm9, %v3731_v15 }
 0x46a PF: > { %s20_s30 = sadd.s32 1, %s4458_s30  }
 0x46b   : > { %p17_p7 = scmp.ge.s32.totalorder %s20_s30, 6  }
 0x46d   :  { %19 = sbr.rel (!%p17_p7) target bundleno = 1 (0x1), region = 97 }

// kernel: decoder_block.6
= control target key start
LH: loop header
LB: loop body
LE: loop exit
PB: predicated region body
PF: predicated region fallthrough
CT: control target
= control target key end

     0   :  { %vm746_vm0 = vcmask 130048   ;;  %vm1996_vm1 = vcmask 257024   ;;  %vm2125_vm2 = vcmask 261120   ;;  %vm2776_vm3 = vcmask 1040384   ;;  %s5463_s3 = inlined_call_operand.vmem [shape: bf16[16,32], index: 3, kind: input, shape index: {}]   ;;  %s5464_s0 = inlined_call_operand.vmem [shape: bf16[1024,16], index: 0, kind: input, shape index: {}]   ;;  %s5465_s1 = inlined_call_operand.vmem [shape: f32[1,16], index: 1, kind: input, shape index: {}]   ;;  %s5466_s2 = inlined_call_operand.vmem [shape: f32[1,16], index: 2, kind: input, shape index: {}]   ;;  %s5467_s4 = inlined_call_operand.vmem [shape: bf16[1024,32], index: 4, kind: output, shape index: {0}]   ;;  %s5468_s5 = inlined_call_operand.vmem [shape: f32[1,2,32], index: 5, kind: output, shape index: {1}]  }
   0x1   :  { %v3627_v0 = vld [vmem:[%s5463_s3] sm:$0xff]   ;;  %v3367_v5 = vld [vmem:[%s5464_s0 + $0x8] sm:$0xff]   ;;  %v3368_v6 = vld [vmem:[%s5464_s0 + $0x10] sm:$0xff]   ;;  %vm2778_vm4 = vcmask 254976  }
   0x2   :  { %v3112_v1 = vld [vmem:[%s5464_s0] sm:$0xff]   ;;  %3495 = vmatprep.subr.bf16.mxu0 %v3627_v0  ;;  %v3369_v7 = vld [vmem:[%s5464_s0 + $0x18] sm:$0xff]   ;;  %3625 = vmatprep.subr.bf16.mxu1 %v3627_v0  ;;  %v3117_v9 = vunpack.c.l.bf16 %v3367_v5  ;;  %v3118_v10 = vunpack.c.h.bf16 %v3367_v5  ;;  %v3121_v11 = vunpack.c.l.bf16 %v3368_v6  ;;  %v3122_v12 = vunpack.c.h.bf16 %v3368_v6  ;;  %v3371_v34 = vld [vmem:[%s5464_s0 + $0x28] sm:$0xff]  }
   0x3   :  { %v3669_v2 = vld [vmem:[%s5465_s1] ss:$0 sm:$0xff]  ;;  %v3113_v3 = vunpack.c.l.bf16 %v3112_v1  ;;  %v3114_v4 = vunpack.c.h.bf16 %v3112_v1  ;;  %3496 = vmatpush3.bf16.msra.mxu0 %v3627_v0  ;;  %3626 = vmatpush3.bf16.msra.mxu1 %v3627_v0  ;;  %v3125_v15 = vunpack.c.l.bf16 %v3369_v7  ;;  %v3126_v16 = vunpack.c.h.bf16 %v3369_v7  ;;  %v3372_v39 = vld [vmem:[%s5464_s0 + $0x30] sm:$0xff]   ;;  %v3373_v54 = vld [vmem:[%s5464_s0 + $0x38] sm:$0xff]  }
   0x4   :  { %v3683_v8 = vld [vmem:[%s5466_s2] ss:$0 sm:$0xff]  ;;  %v285_v17 = vmul.f32 %v3117_v9, %v3669_v2  ;;  %v286_v18 = vmul.f32 %v3118_v10, %v3669_v2  ;;  %v287_v19 = vmul.f32 %v3121_v11, %v3669_v2  ;;  %v288_v20 = vmul.f32 %v3122_v12, %v3669_v2 }
   0x5   :  { %v283_v13 = vmul.f32 %v3113_v3, %v3669_v2  ;;  %v284_v14 = vmul.f32 %v3114_v4, %v3669_v2  ;;  %v289_v23 = vmul.f32 %v3125_v15, %v3669_v2  ;;  %v290_v24 = vmul.f32 %v3126_v16, %v3669_v2  ;;  %v3370_v29 = vld [vmem:[%s5464_s0 + $0x20] sm:$0xff]  }
   0x6   :  { %v420_v25 = vadd.f32 %v3683_v8, %v285_v17  ;;  %v421_v26 = vadd.f32 %v3683_v8, %v286_v18  ;;  %v422_v27 = vadd.f32 %v3683_v8, %v287_v19  ;;  %v423_v28 = vadd.f32 %v3683_v8, %v288_v20  ;;  %v3374_v60 = vld [vmem:[%s5464_s0 + $0x40] sm:$0xff]   ;;  %v3375_v19 = vld [vmem:[%s5464_s0 + $0x48] sm:$0xff]   ;;  %v3376_v20 = vld [vmem:[%s5464_s0 + $0x50] sm:$0xff]  }
   0x7   :  { %v418_v21 = vadd.f32 %v3683_v8, %v283_v13  ;;  %v419_v22 = vadd.f32 %v3683_v8, %v284_v14  ;;  %v424_v32 = vadd.f32 %v3683_v8, %v289_v23  ;;  %v425_v33 = vadd.f32 %v3683_v8, %v290_v24 }
   0x8   :  { %v548_v35 = vmax.f32 %v420_v25, 0.0  ;;  %v549_v36 = vmax.f32 %v421_v26, 0.0  ;;  %v550_v37 = vmax.f32 %v422_v27, 0.0  ;;  %v551_v38 = vmax.f32 %v423_v28, 0.0 }
   0x9   :  { %v546_v30 = vmax.f32 %v418_v21, 0.0  ;;  %v547_v31 = vmax.f32 %v419_v22, 0.0  ;;  %v3129_v41 = vunpack.c.l.bf16 %v3370_v29  ;;  %v3130_v44 = vunpack.c.h.bf16 %v3370_v29 }
   0xa   :  { %v675_v42 = vpack.c.bf16 %v549_v36, %v548_v35  ;;  %v676_v43 = vpack.c.bf16 %v551_v38, %v550_v37  ;;  %v3133_v45 = vunpack.c.l.bf16 %v3371_v34  ;;  %v552_v46 = vmax.f32 %v424_v32, 0.0  ;;  %v3377_v36 = vld [vmem:[%s5464_s0 + $0x58] sm:$0xff]  }
   0xb   :  { %v674_v40 = vpack.c.bf16 %v547_v31, %v546_v30  ;;  %v291_v47 = vmul.f32 %v3129_v41, %v3669_v2  ;;  %v3134_v48 = vunpack.c.h.bf16 %v3371_v34  ;;  %v3137_v49 = vunpack.c.l.bf16 %v3372_v39 }
   0xc   :  { %v553_v50 = vmax.f32 %v425_v33, 0.0  ;;  %v292_v51 = vmul.f32 %v3130_v44, %v3669_v2  ;;  %v293_v52 = vmul.f32 %v3133_v45, %v3669_v2  ;;  %v3138_v53 = vunpack.c.h.bf16 %v3372_v39 }
   0xd   :  { %3497 = vmatprep.mubr.msk.bf16.mxu0 %vm746_vm0, %v674_v40  ;;  %v426_v55 = vadd.f32 %v3683_v8, %v291_v47  ;;  %v294_v56 = vmul.f32 %v3134_v48, %v3669_v2  ;;  %v295_v57 = vmul.f32 %v3137_v49, %v3669_v2  ;;  %v3141_v62 = vunpack.c.l.bf16 %v3373_v54  ;;  %v3378_v40 = vld [vmem:[%s5464_s0 + $0x60] sm:$0xff]  }
   0xe   :  { %3498 = vmatmul.mubr.msk.bf16.vlgmr.msra.gmra.mrb[0].mxu0 %vm746_vm0, %v675_v42  ;;  %v427_v58 = vadd.f32 %v3683_v8, %v292_v51  ;;  %v296_v59 = vmul.f32 %v3138_v53, %v3669_v2  ;;  %v3142_v63 = vunpack.c.h.bf16 %v3373_v54  ;;  %v677_v0 = vpack.c.bf16 %v553_v50, %v552_v46 }
   0xf   :  { %3501 = vmatprep.mubr.msk.bf16.mxu0 %vm746_vm0, %v676_v43  ;;  %v554_v61 = vmax.f32 %v426_v55, 0.0  ;;  %v428_v3 = vadd.f32 %v3683_v8, %v293_v52  ;;  %v429_v4 = vadd.f32 %v3683_v8, %v294_v56  ;;  %v430_v5 = vadd.f32 %v3683_v8, %v295_v57  ;;  %v3379_v43 = vld [vmem:[%s5464_s0 + $0x68] sm:$0xff]  }
  0x10   :  { %v555_v1 = vmax.f32 %v427_v58, 0.0  ;;  %v431_v6 = vadd.f32 %v3683_v8, %v296_v59  ;;  %v3145_v7 = vunpack.c.l.bf16 %v3374_v60  ;;  %v3146_v10 = vunpack.c.h.bf16 %v3374_v60  ;;  %v3380_v58 = vld [vmem:[%s5464_s0 + $0x70] sm:$0xff]   ;;  %v3381_v59 = vld [vmem:[%s5464_s0 + $0x78] sm:$0xff]  }
  0x11   :  { %v297_v11 = vmul.f32 %v3141_v62, %v3669_v2  ;;  %v298_v12 = vmul.f32 %v3142_v63, %v3669_v2  ;;  %v556_v13 = vmax.f32 %v428_v3, 0.0  ;;  %v557_v14 = vmax.f32 %v429_v4, 0.0 }
  0x12   :  { %v678_v9 = vpack.c.bf16 %v555_v1, %v554_v61  ;;  %v558_v15 = vmax.f32 %v430_v5, 0.0  ;;  %v559_v16 = vmax.f32 %v431_v6, 0.0  ;;  %v299_v17 = vmul.f32 %v3145_v7, %v3669_v2 }
  0x13   :  { %v300_v18 = vmul.f32 %v3146_v10, %v3669_v2  ;;  %v432_v21 = vadd.f32 %v3683_v8, %v297_v11  ;;  %v433_v22 = vadd.f32 %v3683_v8, %v298_v12  ;;  %v679_v23 = vpack.c.bf16 %v557_v14, %v556_v13  ;;  %v3382_v13 = vld [vmem:[%s5464_s0 + $0x80] sm:$0xff]  }
  0x14   :  { %v3149_v24 = vunpack.c.l.bf16 %v3375_v19  ;;  %v3150_v25 = vunpack.c.h.bf16 %v3375_v19  ;;  %v3153_v26 = vunpack.c.l.bf16 %v3376_v20  ;;  %v680_v27 = vpack.c.bf16 %v559_v16, %v558_v15 }
  0x15   :  { %v434_v28 = vadd.f32 %v3683_v8, %v299_v17  ;;  %v435_v29 = vadd.f32 %v3683_v8, %v300_v18  ;;  %v3154_v30 = vunpack.c.h.bf16 %v3376_v20  ;;  %v560_v31 = vmax.f32 %v432_v21, 0.0 }
  0x16   :  { %3502 = vmatmul.mubr.msk.bf16.gmra.mrb[4].mxu0 %vm746_vm0, %v677_v0  ;;  %v561_v32 = vmax.f32 %v433_v22, 0.0  ;;  %v301_v33 = vmul.f32 %v3149_v24, %v3669_v2  ;;  %v302_v34 = vmul.f32 %v3150_v25, %v3669_v2  ;;  %v303_v35 = vmul.f32 %v3153_v26, %v3669_v2 }
  0x17   :  { %3505 = vmatprep.mubr.msk.bf16.mxu0 %vm746_vm0, %v678_v9  ;;  %v562_v37 = vmax.f32 %v434_v28, 0.0  ;;  %v563_v38 = vmax.f32 %v435_v29, 0.0  ;;  %v304_v39 = vmul.f32 %v3154_v30, %v3669_v2  ;;  %v3157_v42 = vunpack.c.l.bf16 %v3377_v36 }
  0x18   :  { %v681_v41 = vpack.c.bf16 %v561_v32, %v560_v31  ;;  %v436_v44 = vadd.f32 %v3683_v8, %v301_v33  ;;  %v437_v45 = vadd.f32 %v3683_v8, %v302_v34  ;;  %v438_v46 = vadd.f32 %v3683_v8, %v303_v35 }
  0x19   :  { %v3158_v47 = vunpack.c.h.bf16 %v3377_v36  ;;  %v682_v48 = vpack.c.bf16 %v563_v38, %v562_v37  ;;  %v439_v49 = vadd.f32 %v3683_v8, %v304_v39  ;;  %v3161_v50 = vunpack.c.l.bf16 %v3378_v40  ;;  %v3383_v36 = vld [vmem:[%s5464_s0 + $0x88] sm:$0xff]   ;;  %v3384_v37 = vld [vmem:[%s5464_s0 + $0x90] sm:$0xff]   ;;  %v3385_v39 = vld [vmem:[%s5464_s0 + $0x98] sm:$0xff]  }
  0x1a   :  { %v3162_v51 = vunpack.c.h.bf16 %v3378_v40  ;;  %v3165_v52 = vunpack.c.l.bf16 %v3379_v43  ;;  %v3166_v53 = vunpack.c.h.bf16 %v3379_v43  ;;  %v564_v54 = vmax.f32 %v436_v44, 0.0  ;;  %v3386_v44 = vld [vmem:[%s5464_s0 + $0xa0] sm:$0xff]  }
  0x1b   :  { %v565_v55 = vmax.f32 %v437_v45, 0.0  ;;  %v305_v56 = vmul.f32 %v3157_v42, %v3669_v2  ;;  %v306_v57 = vmul.f32 %v3158_v47, %v3669_v2  ;;  %v566_v60 = vmax.f32 %v438_v46, 0.0  ;;  %v3387_v45 = vld [vmem:[%s5464_s0 + $0xa8] sm:$0xff]  }
  0x1c   :  { %v567_v61 = vmax.f32 %v439_v49, 0.0  ;;  %v307_v62 = vmul.f32 %v3161_v50, %v3669_v2  ;;  %v308_v63 = vmul.f32 %v3162_v51, %v3669_v2  ;;  %v309_v0 = vmul.f32 %v3165_v52, %v3669_v2  ;;  %v3388_v50 = vld [vmem:[%s5464_s0 + $0xb0] sm:$0xff]  }
  0x1d   :  { %v310_v1 = vmul.f32 %v3166_v53, %v3669_v2  ;;  %v3169_v3 = vunpack.c.l.bf16 %v3380_v58  ;;  %v3170_v4 = vunpack.c.h.bf16 %v3380_v58  ;;  %v3173_v5 = vunpack.c.l.bf16 %v3381_v59 }
  0x1e   :  { %3506 = vmatmul.mubr.msk.bf16.gmra.mrb[8].mxu0 %vm746_vm0, %v679_v23  ;;  %v683_v6 = vpack.c.bf16 %v565_v55, %v564_v54  ;;  %v440_v7 = vadd.f32 %v3683_v8, %v305_v56  ;;  %v441_v9 = vadd.f32 %v3683_v8, %v306_v57  ;;  %v684_v10 = vpack.c.bf16 %v567_v61, %v566_v60 }
  0x1f   :  { %3509 = vmatprep.mubr.msk.bf16.mxu0 %vm746_vm0, %v680_v27  ;;  %v442_v11 = vadd.f32 %v3683_v8, %v307_v62  ;;  %v443_v12 = vadd.f32 %v3683_v8, %v308_v63  ;;  %v444_v14 = vadd.f32 %v3683_v8, %v309_v0  ;;  %v445_v15 = vadd.f32 %v3683_v8, %v310_v1 }
  0x20   :  { %v311_v16 = vmul.f32 %v3169_v3, %v3669_v2  ;;  %v312_v17 = vmul.f32 %v3170_v4, %v3669_v2  ;;  %v3174_v18 = vunpack.c.h.bf16 %v3381_v59  ;;  %v313_v19 = vmul.f32 %v3173_v5, %v3669_v2  ;;  %v3389_v4 = vld [vmem:[%s5464_s0 + $0xb8] sm:$0xff]  }
  0x21   :  { %v568_v20 = vmax.f32 %v440_v7, 0.0  ;;  %v569_v21 = vmax.f32 %v441_v9, 0.0  ;;  %v3177_v22 = vunpack.c.l.bf16 %v3382_v13  ;;  %v570_v23 = vmax.f32 %v442_v11, 0.0 }
  0x22   :  { %v571_v24 = vmax.f32 %v443_v12, 0.0  ;;  %v3178_v25 = vunpack.c.h.bf16 %v3382_v13  ;;  %v572_v26 = vmax.f32 %v444_v14, 0.0  ;;  %v573_v27 = vmax.f32 %v445_v15, 0.0 }
  0x23   :  { %v446_v28 = vadd.f32 %v3683_v8, %v311_v16  ;;  %v447_v29 = vadd.f32 %v3683_v8, %v312_v17  ;;  %v314_v30 = vmul.f32 %v3174_v18, %v3669_v2  ;;  %v448_v31 = vadd.f32 %v3683_v8, %v313_v19 }
  0x24   :  { %v685_v32 = vpack.c.bf16 %v569_v21, %v568_v20  ;;  %v315_v33 = vmul.f32 %v3177_v22, %v3669_v2  ;;  %v686_v34 = vpack.c.bf16 %v571_v24, %v570_v23  ;;  %v316_v35 = vmul.f32 %v3178_v25, %v3669_v2  ;;  %v3390_v22 = vld [vmem:[%s5464_s0 + $0xc0] sm:$0xff]  }
  0x25   :  { %v687_v38 = vpack.c.bf16 %v573_v27, %v572_v26  ;;  %v574_v40 = vmax.f32 %v446_v28, 0.0  ;;  %v449_v42 = vadd.f32 %v3683_v8, %v314_v30  ;;  %v576_v43 = vmax.f32 %v448_v31, 0.0 }
  0x26   :  { %3510 = vmatmul.mubr.msk.bf16.gmra.mrb[12].mxu0 %vm746_vm0, %v681_v41  ;;  %v575_v41 = vmax.f32 %v447_v29, 0.0  ;;  %v450_v46 = vadd.f32 %v3683_v8, %v315_v33  ;;  %v3181_v47 = vunpack.c.l.bf16 %v3383_v36  ;;  %v3185_v49 = vunpack.c.l.bf16 %v3384_v37 }
  0x27   :  { %3513 = vmatprep.mubr.msk.bf16.mxu0 %vm746_vm0, %v682_v48  ;;  %v3182_v48 = vunpack.c.h.bf16 %v3383_v36  ;;  %v451_v51 = vadd.f32 %v3683_v8, %v316_v35  ;;  %v3186_v52 = vunpack.c.h.bf16 %v3384_v37  ;;  %v3189_v53 = vunpack.c.l.bf16 %v3385_v39 }
  0x28   :  { %v3190_v54 = vunpack.c.h.bf16 %v3385_v39  ;;  %v3193_v55 = vunpack.c.l.bf16 %v3386_v44  ;;  %v3194_v56 = vunpack.c.h.bf16 %v3386_v44  ;;  %v3197_v57 = vunpack.c.l.bf16 %v3387_v45 }
  0x29   :  { %v3198_v58 = vunpack.c.h.bf16 %v3387_v45  ;;  %v688_v59 = vpack.c.bf16 %v575_v41, %v574_v40  ;;  %v577_v60 = vmax.f32 %v449_v42, 0.0  ;;  %v3201_v61 = vunpack.c.l.bf16 %v3388_v50 }
  0x2a   :  { %v3202_v62 = vunpack.c.h.bf16 %v3388_v50  ;;  %v578_v63 = vmax.f32 %v450_v46, 0.0  ;;  %v317_v0 = vmul.f32 %v3181_v47, %v3669_v2  ;;  %v318_v1 = vmul.f32 %v3182_v48, %v3669_v2  ;;  %v3391_v47 = vld [vmem:[%s5464_s0 + $0xc8] sm:$0xff]  }
  0x2b   :  { %v319_v3 = vmul.f32 %v3185_v49, %v3669_v2  ;;  %v579_v5 = vmax.f32 %v451_v51, 0.0  ;;  %v321_v7 = vmul.f32 %v3189_v53, %v3669_v2  ;;  %v322_v9 = vmul.f32 %v3190_v54, %v3669_v2 }
  0x2c   :  { %v324_v11 = vmul.f32 %v3194_v56, %v3669_v2  ;;  %v325_v12 = vmul.f32 %v3197_v57, %v3669_v2  ;;  %v326_v13 = vmul.f32 %v3198_v58, %v3669_v2  ;;  %v689_v14 = vpack.c.bf16 %v577_v60, %v576_v43  ;;  %v3876_v58 = vld [vmem:[%s5464_s0 + $0xd0] sm:$0xff]  }
  0x2d   :  { %v327_v15 = vmul.f32 %v3201_v61, %v3669_v2  ;;  %v328_v16 = vmul.f32 %v3202_v62, %v3669_v2  ;;  %v3205_v17 = vunpack.c.l.bf16 %v3389_v4  ;;  %v452_v18 = vadd.f32 %v3683_v8, %v317_v0 }
  0x2e   :  { %3514 = vmatmul.mubr.msk.bf16.gmra.mrb[16].mxu0 %vm746_vm0, %v683_v6  ;;  %v320_v6 = vmul.f32 %v3186_v52, %v3669_v2  ;;  %v453_v19 = vadd.f32 %v3683_v8, %v318_v1  ;;  %v454_v20 = vadd.f32 %v3683_v8, %v319_v3  ;;  %v3206_v21 = vunpack.c.h.bf16 %v3389_v4  ;;  %v3398_v52 = vld [vmem:[%s5464_s0 + $0x100] sm:$0xff]  }
  0x2f   :  { %3517 = vmatprep.mubr.msk.bf16.mxu0 %vm746_vm0, %v684_v10  ;;  %v323_v10 = vmul.f32 %v3193_v55, %v3669_v2  ;;  %v690_v23 = vpack.c.bf16 %v579_v5, %v578_v63  ;;  %v456_v25 = vadd.f32 %v3683_v8, %v321_v7  ;;  %v457_v26 = vadd.f32 %v3683_v8, %v322_v9  ;;  %v3399_v63 = vld [vmem:[%s5464_s0 + $0x108] sm:$0xff]   ;;  %v3400_v5 = vld [vmem:[%s5464_s0 + $0x110] sm:$0xff]  }
  0x30   :  { %v455_v24 = vadd.f32 %v3683_v8, %v320_v6  ;;  %v459_v28 = vadd.f32 %v3683_v8, %v324_v11  ;;  %v460_v29 = vadd.f32 %v3683_v8, %v325_v12  ;;  %v461_v30 = vadd.f32 %v3683_v8, %v326_v13 }
  0x31   :  { %v458_v27 = vadd.f32 %v3683_v8, %v323_v10  ;;  %v462_v31 = vadd.f32 %v3683_v8, %v327_v15  ;;  %v329_v33 = vmul.f32 %v3205_v17, %v3669_v2  ;;  %v580_v35 = vmax.f32 %v452_v18, 0.0  ;;  %v3401_v15 = vld [vmem:[%s5464_s0 + $0x118] sm:$0xff]  }
  0x32   :  { %v581_v36 = vmax.f32 %v453_v19, 0.0  ;;  %v582_v37 = vmax.f32 %v454_v20, 0.0  ;;  %v583_v39 = vmax.f32 %v455_v24, 0.0  ;;  %v584_v40 = vmax.f32 %v456_v25, 0.0 }
  0x33   :  { %v585_v41 = vmax.f32 %v457_v26, 0.0  ;;  %v3210_v42 = vunpack.c.h.bf16 %v3390_v22  ;;  %v586_v43 = vmax.f32 %v458_v27, 0.0  ;;  %v587_v44 = vmax.f32 %v459_v28, 0.0  ;;  %v3402_v28 = vld [vmem:[%s5464_s0 + $0x120] sm:$0xff]  }
  0x34   :  { %v588_v45 = vmax.f32 %v460_v29, 0.0  ;;  %v589_v46 = vmax.f32 %v461_v30, 0.0  ;;  %v590_v48 = vmax.f32 %v462_v31, 0.0  ;;  %v3861_v50 = vadd.f32 %v3683_v8, %v329_v33 }
  0x35   :  { %v691_v54 = vpack.c.bf16 %v581_v36, %v580_v35  ;;  %v692_v55 = vpack.c.bf16 %v583_v39, %v582_v37  ;;  %v332_v56 = vmul.f32 %v3210_v42, %v3669_v2  ;;  %v3213_v57 = vunpack.c.l.bf16 %v3391_v47  ;;  %v3403_v37 = vld [vmem:[%s5464_s0 + $0x128] sm:$0xff]  }
  0x36   :  { %3518 = vmatmul.mubr.msk.bf16.gmra.mrb[20].mxu0 %vm746_vm0, %v685_v32  ;;  %v463_v32 = vadd.f32 %v3683_v8, %v328_v16  ;;  %v3880_v60 = vpack.c.bf16 %v587_v44, %v586_v43  ;;  %v3882_v61 = vpack.c.bf16 %v589_v46, %v588_v45  ;;  %v3241_v62 = vunpack.c.l.bf16 %v3398_v52 }
  0x37   :  { %3521 = vmatprep.mubr.msk.bf16.mxu0 %vm746_vm0, %v686_v34  ;;  %v3209_v34 = vunpack.c.l.bf16 %v3390_v22  ;;  %v592_v1 = vmax.f32 %v3861_v50, 0.0  ;;  %v3242_v4 = vunpack.c.h.bf16 %v3398_v52  ;;  %v3214_v7 = vunpack.c.h.bf16 %v3391_v47  ;;  %v3943_v52 = vld [vmem:[%s5464_s0 + $0xd8] sm:$0xff]  }
  0x38   :  { %v591_v49 = vmax.f32 %v463_v32, 0.0  ;;  %v3217_v9 = vunpack.c.l.bf16 %v3876_v58  ;;  %v347_v10 = vmul.f32 %v3241_v62, %v3669_v2  ;;  %v3900_v11 = vadd.f32 %v3683_v8, %v332_v56 }
  0x39   :  { %v331_v51 = vmul.f32 %v3209_v34, %v3669_v2  ;;  %v3903_v12 = vmul.f32 %v3213_v57, %v3669_v2  ;;  %v348_v13 = vmul.f32 %v3242_v4, %v3669_v2  ;;  %v3218_v16 = vunpack.c.h.bf16 %v3876_v58 }
  0x3a   :  { %v3887_v0 = vpack.c.bf16 %v591_v49, %v590_v48  ;;  %v482_v17 = vadd.f32 %v3683_v8, %v347_v10  ;;  %v3246_v18 = vunpack.c.h.bf16 %v3399_v63  ;;  %v3249_v19 = vunpack.c.l.bf16 %v3400_v5 }
  0x3b   :  { %v3891_v3 = vadd.f32 %v3683_v8, %v331_v51  ;;  %v3253_v27 = vunpack.c.l.bf16 %v3401_v15  ;;  %v3922_v29 = vmul.f32 %v3214_v7, %v3669_v2  ;;  %v3254_v35 = vunpack.c.h.bf16 %v3401_v15  ;;  %v3404_v51 = vld [vmem:[%s5464_s0 + $0x130] sm:$0xff]   ;;  %v3405_v15 = vld [vmem:[%s5464_s0 + $0x138] sm:$0xff]  }
  0x3c   :  { %v610_v24 = vmax.f32 %v482_v17, 0.0  ;;  %v350_v25 = vmul.f32 %v3246_v18, %v3669_v2  ;;  %v351_v26 = vmul.f32 %v3249_v19, %v3669_v2  ;;  %v3258_v47 = vunpack.c.h.bf16 %v3402_v28 }
  0x3d   :  { %v594_v20 = vmax.f32 %v3891_v3, 0.0  ;;  %v353_v36 = vmul.f32 %v3253_v27, %v3669_v2  ;;  %v354_v44 = vmul.f32 %v3254_v35, %v3669_v2  ;;  %v3261_v49 = vunpack.c.l.bf16 %v3403_v37  ;;  %v3407_v3 = vld [vmem:[%s5464_s0 + $0x148] sm:$0xff]  }
  0x3e   :  { %3522 = vmatmul.mubr.msk.bf16.gmra.mrb[24].mxu0 %vm746_vm0, %v687_v38  ;;  %v330_v38 = vmul.f32 %v3206_v21, %v3669_v2  ;;  %v483_v21 = vadd.f32 %v3683_v8, %v348_v13  ;;  %v485_v33 = vadd.f32 %v3683_v8, %v350_v25  ;;  %v486_v34 = vadd.f32 %v3683_v8, %v351_v26 }
  0x3f   :  { %3525 = vmatprep.mubr.msk.bf16.mxu0 %vm746_vm0, %v688_v59  ;;  %v3878_v59 = vpack.c.bf16 %v585_v41, %v584_v40  ;;  %v3257_v41 = vunpack.c.l.bf16 %v3402_v28  ;;  %v488_v45 = vadd.f32 %v3683_v8, %v353_v36  ;;  %v3262_v57 = vunpack.c.h.bf16 %v3403_v37 }
  0x40   :  { %v3869_v53 = vadd.f32 %v3683_v8, %v330_v38  ;;  %v611_v30 = vmax.f32 %v483_v21, 0.0  ;;  %v613_v42 = vmax.f32 %v485_v33, 0.0  ;;  %v614_v43 = vmax.f32 %v486_v34, 0.0 }
  0x41   :  { %v355_v48 = vmul.f32 %v3257_v41, %v3669_v2  ;;  %v616_v56 = vmax.f32 %v488_v45, 0.0  ;;  %v358_v10 = vmul.f32 %v3262_v57, %v3669_v2  ;;  %v3265_v13 = vunpack.c.l.bf16 %v3404_v51 }
  0x42   :  { %v593_v6 = vmax.f32 %v3869_v53, 0.0  ;;  %v706_v38 = vpack.c.bf16 %v611_v30, %v610_v24  ;;  %v335_v17 = vmul.f32 %v3217_v9, %v3669_v2  ;;  %v3221_v18 = vunpack.c.l.bf16 %v3943_v52 }
  0x43   :  { %v490_v4 = vadd.f32 %v3683_v8, %v355_v48  ;;  %v595_v21 = vmax.f32 %v3900_v11, 0.0  ;;  %v493_v26 = vadd.f32 %v3683_v8, %v358_v10  ;;  %v3269_v27 = vunpack.c.l.bf16 %v3405_v15 }
  0x44   :  { %3561 = vmatprep.mubr.msk.bf16.mxu1 %vm746_vm0, %v706_v38  ;;  %v336_v11 = vmul.f32 %v3218_v16, %v3669_v2  ;;  %v3270_v30 = vunpack.c.h.bf16 %v3405_v15  ;;  %v697_v35 = vpack.c.bf16 %v593_v6, %v592_v1  ;;  %v469_v36 = vadd.f32 %v3683_v8, %v3922_v29  ;;  %v3394_v38 = vld [vmem:[%s5464_s0 + $0xe0] sm:$0xff]  }
  0x45   :  { %v618_v19 = vmax.f32 %v490_v4, 0.0  ;;  %v470_v58 = vadd.f32 %v3683_v8, %v335_v17  ;;  %v3222_v16 = vunpack.c.h.bf16 %v3943_v52  ;;  %v337_v37 = vmul.f32 %v3221_v18, %v3669_v2 }
  0x46   :  { %3526 = vmatmul.mubr.msk.bf16.gmra.mrb[28].mxu0 %vm746_vm0, %v689_v14  ;;  %v3245_v14 = vunpack.c.l.bf16 %v3399_v63  ;;  %v356_v63 = vmul.f32 %v3258_v47, %v3669_v2  ;;  %v361_v50 = vmul.f32 %v3269_v27, %v3669_v2  ;;  %v698_v53 = vpack.c.bf16 %v595_v21, %v594_v20  ;;  %v3408_v20 = vld [vmem:[%s5464_s0 + $0x150] sm:$0xff]  }
  0x47   :  { %3529 = vmatprep.mubr.msk.bf16.mxu0 %vm746_vm0, %v690_v23  ;;  %v3250_v23 = vunpack.c.h.bf16 %v3400_v5  ;;  %v357_v5 = vmul.f32 %v3261_v49, %v3669_v2  ;;  %v471_v6 = vadd.f32 %v3683_v8, %v336_v11  ;;  %v362_v29 = vmul.f32 %v3270_v30, %v3669_v2  ;;  %v3395_v49 = vld [vmem:[%s5464_s0 + $0xe8] sm:$0xff]  }
  0x48   :  { %v349_v22 = vmul.f32 %v3245_v14, %v3669_v2  ;;  %v3266_v14 = vunpack.c.h.bf16 %v3404_v51  ;;  %v598_v45 = vmax.f32 %v470_v58, 0.0  ;;  %v4010_v47 = vadd.f32 %v3683_v8, %v337_v37 }
  0x49   :  { %v352_v32 = vmul.f32 %v3250_v23, %v3669_v2  ;;  %v359_v23 = vmul.f32 %v3265_v13, %v3669_v2  ;;  %v492_v25 = vadd.f32 %v3683_v8, %v357_v5  ;;  %v3226_v48 = vunpack.c.h.bf16 %v3394_v38 }
  0x4a   :  { %v484_v31 = vadd.f32 %v3683_v8, %v349_v22  ;;  %v468_v22 = vadd.f32 %v3683_v8, %v3903_v12  ;;  %v360_v24 = vmul.f32 %v3266_v14, %v3669_v2  ;;  %v496_v52 = vadd.f32 %v3683_v8, %v361_v50 }
  0x4b   :  { %v487_v40 = vadd.f32 %v3683_v8, %v352_v32  ;;  %v494_v12 = vadd.f32 %v3683_v8, %v359_v23  ;;  %v3281_v57 = vunpack.c.l.bf16 %v3408_v20  ;;  %v3282_v5 = vunpack.c.h.bf16 %v3408_v20 }
  0x4c   :  { %v612_v39 = vmax.f32 %v484_v31, 0.0  ;;  %v495_v32 = vadd.f32 %v3683_v8, %v360_v24  ;;  %v596_v1 = vmax.f32 %v468_v22, 0.0  ;;  %v599_v10 = vmax.f32 %v471_v6, 0.0 }
  0x4d   :  { %v615_v46 = vmax.f32 %v487_v40, 0.0  ;;  %v621_v40 = vmax.f32 %v493_v26, 0.0  ;;  %v622_v41 = vmax.f32 %v494_v12, 0.0  ;;  %v3229_v14 = vunpack.c.l.bf16 %v3395_v49 }
  0x4e   :  { %3530 = vmatmul.mubr.msk.bf16.gmra.mrb[32].mxu0 %vm746_vm0, %v691_v54  ;;  %v707_v54 = vpack.c.bf16 %v613_v42, %v612_v39  ;;  %v620_v39 = vmax.f32 %v492_v25, 0.0  ;;  %v623_v42 = vmax.f32 %v495_v32, 0.0  ;;  %v600_v17 = vmax.f32 %v4010_v47, 0.0 }
  0x4f   :  { %3533 = vmatprep.mubr.msk.bf16.mxu0 %vm746_vm0, %v692_v55  ;;  %v489_v55 = vadd.f32 %v3683_v8, %v354_v44  ;;  %v708_v62 = vpack.c.bf16 %v615_v46, %v614_v43  ;;  %v597_v44 = vmax.f32 %v469_v36, 0.0  ;;  %v3225_v46 = vunpack.c.l.bf16 %v3394_v38  ;;  %v3397_v38 = vld [vmem:[%s5464_s0 + $0xf8] sm:$0xff]  }
  0x50   :  { %3562 = vmatmul.mubr.msk.bf16.vlgmr.msra.gmra.mrb[0].mxu1 %vm746_vm0, %v707_v54  ;;  %v711_v51 = vpack.c.bf16 %v621_v40, %v620_v39  ;;  %v497_v54 = vadd.f32 %v3683_v8, %v362_v29  ;;  %v340_v18 = vmul.f32 %v3226_v48, %v3669_v2  ;;  %v367_v24 = vmul.f32 %v3281_v57, %v3669_v2 }
  0x51   :  { %v617_v7 = vmax.f32 %v489_v55, 0.0  ;;  %3565 = vmatprep.mubr.msk.bf16.mxu1 %vm746_vm0, %v708_v62  ;;  %v3277_v55 = vunpack.c.l.bf16 %v3407_v3  ;;  %v712_v62 = vpack.c.bf16 %v623_v42, %v622_v41  ;;  %v339_v13 = vmul.f32 %v3225_v46, %v3669_v2 }
  0x52   :  { %v625_v21 = vmax.f32 %v497_v54, 0.0  ;;  %v368_v27 = vmul.f32 %v3282_v5, %v3669_v2  ;;  %v700_v11 = vpack.c.bf16 %v599_v10, %v598_v45  ;;  %v341_v12 = vmul.f32 %v3229_v14, %v3669_v2 }
  0x53   :  { %v709_v28 = vpack.c.bf16 %v617_v7, %v616_v56  ;;  %v3278_v56 = vunpack.c.h.bf16 %v3407_v3  ;;  %v699_v7 = vpack.c.bf16 %v597_v44, %v596_v1  ;;  %v365_v22 = vmul.f32 %v3277_v55, %v3669_v2 }
  0x54   :  { %v475_v32 = vadd.f32 %v3683_v8, %v340_v18  ;;  %v502_v37 = vadd.f32 %v3683_v8, %v367_v24  ;;  %v503_v40 = vadd.f32 %v3683_v8, %v368_v27  ;;  %v476_v20 = vadd.f32 %v3683_v8, %v341_v12 }
  0x55   :  { %v366_v23 = vmul.f32 %v3278_v56, %v3669_v2  ;;  %v500_v58 = vadd.f32 %v3683_v8, %v365_v22  ;;  %v3237_v44 = vunpack.c.l.bf16 %v3397_v38  ;;  %v3238_v57 = vunpack.c.h.bf16 %v3397_v38 }
  0x56   :  { %3534 = vmatmul.mubr.msk.bf16.gmra.mrb[36].mxu0 %vm746_vm0, %v3878_v59  ;;  %v491_v59 = vadd.f32 %v3683_v8, %v356_v63  ;;  %v603_v42 = vmax.f32 %v475_v32, 0.0  ;;  %v630_v46 = vmax.f32 %v502_v37, 0.0  ;;  %v631_v47 = vmax.f32 %v503_v40, 0.0 }
  0x57   :  { %3537 = vmatprep.mubr.msk.bf16.mxu0 %vm746_vm0, %v3880_v60  ;;  %v3406_v60 = vld [vmem:[%s5464_s0 + $0x140] sm:$0xff]   ;;  %v628_v45 = vmax.f32 %v500_v58, 0.0  ;;  %v345_v22 = vmul.f32 %v3237_v44, %v3669_v2 }
  0x58   :  { %v619_v9 = vmax.f32 %v491_v59, 0.0  ;;  %v3273_v33 = vunpack.c.l.bf16 %v3406_v60  ;;  %v3274_v34 = vunpack.c.h.bf16 %v3406_v60  ;;  %3566 = vmatmul.mubr.msk.bf16.gmra.mrb[4].mxu1 %vm746_vm0, %v709_v28  ;;  %v3396_v59 = vld [vmem:[%s5464_s0 + $0xf0] sm:$0xff]   ;;  %v3409_v60 = vld [vmem:[%s5464_s0 + $0x158] sm:$0xff]   ;;  %v474_v28 = vadd.f32 %v3683_v8, %v339_v13 }
  0x59   :  { %v3233_v30 = vunpack.c.l.bf16 %v3396_v59 }
  0x5a   :  { %v710_v31 = vpack.c.bf16 %v619_v9, %v618_v19  ;;  %v363_v43 = vmul.f32 %v3273_v33, %v3669_v2  ;;  %v624_v19 = vmax.f32 %v496_v52, 0.0  ;;  %v3230_v9 = vunpack.c.h.bf16 %v3395_v49  ;;  %v3412_v52 = vld [vmem:[%s5464_s0 + $0x170] sm:$0xff]  }
  0x5b   :  { %v3234_v33 = vunpack.c.h.bf16 %v3396_v59  ;;  %v602_v6 = vmax.f32 %v474_v28, 0.0  ;;  %v343_v41 = vmul.f32 %v3233_v30, %v3669_v2  ;;  %v3297_v14 = vunpack.c.l.bf16 %v3412_v52  ;;  %v3413_v28 = vld [vmem:[%s5464_s0 + $0x178] sm:$0xff]  }
  0x5c   :  { %3569 = vmatprep.mubr.msk.bf16.mxu1 %vm746_vm0, %v710_v31  ;;  %v498_v63 = vadd.f32 %v3683_v8, %v363_v43  ;;  %v3410_v31 = vld [vmem:[%s5464_s0 + $0x160] sm:$0xff]   ;;  %v713_v36 = vpack.c.bf16 %v625_v21, %v624_v19  ;;  %v342_v29 = vmul.f32 %v3230_v9, %v3669_v2  ;;  %v3298_v59 = vunpack.c.h.bf16 %v3412_v52 }
  0x5d   :  { %v3289_v50 = vunpack.c.l.bf16 %v3410_v31  ;;  %v344_v43 = vmul.f32 %v3234_v33, %v3669_v2  ;;  %v478_v56 = vadd.f32 %v3683_v8, %v343_v41  ;;  %v604_v19 = vmax.f32 %v476_v20, 0.0  ;;  %v4100_v41 = vld [vmem:[%s5465_s1] ss:$0 sm:$0xff] }
  0x5e   :  { %3538 = vmatmul.mubr.msk.bf16.gmra.mrb[40].mxu0 %vm746_vm0, %v3882_v61  ;;  %v364_v61 = vmul.f32 %v3274_v34, %v3669_v2  ;;  %v626_v25 = vmax.f32 %v498_v63, 0.0  ;;  %v3285_v34 = vunpack.c.l.bf16 %v3409_v60  ;;  %v477_v55 = vadd.f32 %v3683_v8, %v342_v29 }
  0x5f   :  { %3541 = vmatprep.mubr.msk.bf16.mxu0 %vm746_vm0, %v3887_v0  ;;  %v338_v0 = vmul.f32 %v3222_v16, %v3669_v2  ;;  %v501_v16 = vadd.f32 %v3683_v8, %v366_v23  ;;  %v371_v48 = vmul.f32 %v3289_v50, %v3669_v2  ;;  %v479_v63 = vadd.f32 %v3683_v8, %v344_v43 }
  0x60   :  { %v499_v4 = vadd.f32 %v3683_v8, %v364_v61  ;;  %3570 = vmatmul.mubr.msk.bf16.gmra.mrb[8].mxu1 %vm746_vm0, %v711_v51  ;;  %v369_v61 = vmul.f32 %v3285_v34, %v3669_v2  ;;  %v3411_v51 = vld [vmem:[%s5464_s0 + $0x168] sm:$0xff]   ;;  %v605_v21 = vmax.f32 %v477_v55, 0.0  ;;  %v346_v23 = vmul.f32 %v3238_v57, %v3669_v2  ;;  %v3414_v34 = vld [vmem:[%s5464_s0 + $0x180] sm:$0xff]  }
  0x61   :  { %v473_v15 = vadd.f32 %v3683_v8, %v338_v0  ;;  %3573 = vmatprep.mubr.msk.bf16.mxu1 %vm746_vm0, %v712_v62  ;;  %v629_v0 = vmax.f32 %v501_v16, 0.0  ;;  %v702_v62 = vpack.c.bf16 %v603_v42, %v602_v6  ;;  %v3293_v10 = vunpack.c.l.bf16 %v3411_v51 }
  0x62   :  { %v627_v26 = vmax.f32 %v499_v4, 0.0  ;;  %v504_v4 = vadd.f32 %v3683_v8, %v369_v61  ;;  %v3294_v13 = vunpack.c.h.bf16 %v3411_v51  ;;  %v506_v18 = vadd.f32 %v3683_v8, %v371_v48  ;;  %v4119_v48 = vld [vmem:[%s5466_s2] ss:$0 sm:$0xff] }
  0x63   :  { %v601_v1 = vmax.f32 %v473_v15, 0.0  ;;  %v716_v15 = vpack.c.bf16 %v631_v47, %v630_v46  ;;  %v606_v24 = vmax.f32 %v478_v56, 0.0  ;;  %v703_v32 = vpack.c.bf16 %v605_v21, %v604_v19  ;;  %v3416_v46 = vld [vmem:[%s5464_s0 + $0x190] sm:$0xff]   ;;  %v3418_v19 = vld [vmem:[%s5464_s0 + $0x1a0] sm:$0xff]  }
  0x64   :  { %v714_v39 = vpack.c.bf16 %v627_v26, %v626_v25  ;;  %v632_v9 = vmax.f32 %v504_v4, 0.0  ;;  %v373_v26 = vmul.f32 %v3293_v10, %v3669_v2  ;;  %v374_v27 = vmul.f32 %v3294_v13, %v3669_v2 }
  0x65   :  { %v701_v54 = vpack.c.bf16 %v601_v1, %v600_v17  ;;  %v634_v12 = vmax.f32 %v506_v18, 0.0  ;;  %v480_v33 = vadd.f32 %v3683_v8, %v345_v22  ;;  %v3301_v16 = vunpack.c.l.bf16 %v3413_v28  ;;  %v3417_v18 = vld [vmem:[%s5464_s0 + $0x198] sm:$0xff]  }
  0x66   :  { %3542 = vmatmul.mubr.msk.bf16.gmra.mrb[44].mxu0 %vm746_vm0, %v697_v35  ;;  %v3286_v35 = vunpack.c.h.bf16 %v3409_v60  ;;  %v607_v60 = vmax.f32 %v479_v63, 0.0  ;;  %v508_v37 = vadd.f32 %v3683_v8, %v373_v26  ;;  %v509_v38 = vadd.f32 %v3683_v8, %v374_v27 }
  0x67   :  { %3545 = vmatprep.mubr.msk.bf16.mxu0 %vm746_vm0, %v698_v53  ;;  %v3290_v53 = vunpack.c.h.bf16 %v3410_v31  ;;  %v376_v31 = vmul.f32 %v3298_v59, %v3669_v2  ;;  %v3302_v40 = vunpack.c.h.bf16 %v3413_v28  ;;  %v3306_v1 = vunpack.c.h.bf16 %v3414_v34 }
  0x68   :  { %v370_v3 = vmul.f32 %v3286_v35, %v3669_v2  ;;  %3574 = vmatmul.mubr.msk.bf16.gmra.mrb[12].mxu1 %vm746_vm0, %v713_v36  ;;  %v704_v35 = vpack.c.bf16 %v607_v60, %v606_v24  ;;  %v481_v36 = vadd.f32 %v3683_v8, %v346_v23  ;;  %v608_v6 = vmax.f32 %v480_v33, 0.0 }
  0x69   :  { %3577 = vmatprep.mubr.msk.bf16.mxu1 %vm746_vm0, %v714_v39  ;;  %v372_v49 = vmul.f32 %v3290_v53, %v3669_v2  ;;  %v511_v50 = vadd.f32 %v3683_v8, %v376_v31  ;;  %v3305_v53 = vunpack.c.l.bf16 %v3414_v34  ;;  %v377_v42 = vmul.f32 %v4100_v41, %v3301_v16 }
  0x6a   :  { %v505_v5 = vadd.f32 %v3683_v8, %v370_v3  ;;  %v609_v29 = vmax.f32 %v481_v36, 0.0  ;;  %v636_v43 = vmax.f32 %v508_v37, 0.0  ;;  %v637_v61 = vmax.f32 %v509_v38, 0.0  ;;  %v3419_v36 = vld [vmem:[%s5464_s0 + $0x1a8] sm:$0xff]  }
  0x6b   :  { %v507_v17 = vadd.f32 %v3683_v8, %v372_v49  ;;  %v378_v3 = vmul.f32 %v4100_v41, %v3302_v40  ;;  %v639_v44 = vmax.f32 %v511_v50, 0.0  ;;  %v512_v49 = vadd.f32 %v4119_v48, %v377_v42 }
  0x6c   :  { %v633_v25 = vmax.f32 %v505_v5, 0.0  ;;  %v705_v47 = vpack.c.bf16 %v609_v29, %v608_v6  ;;  %v3313_v56 = vunpack.c.l.bf16 %v3416_v46  ;;  %v3314_v57 = vunpack.c.h.bf16 %v3416_v46 }
  0x6d   :  { %v635_v30 = vmax.f32 %v507_v17, 0.0  ;;  %v513_v55 = vadd.f32 %v4119_v48, %v378_v3  ;;  %v640_v10 = vmax.f32 %v512_v49, 0.0  ;;  %v3317_v23 = vunpack.c.l.bf16 %v3417_v18  ;;  %v3421_v3 = vld [vmem:[%s5464_s0 + $0x1b8] sm:$0xff]  }
  0x6e   :  { %3546 = vmatmul.mubr.msk.bf16.gmra.mrb[48].mxu0 %vm746_vm0, %v699_v7  ;;  %v715_v7 = vpack.c.bf16 %v629_v0, %v628_v45  ;;  %v717_v58 = vpack.c.bf16 %v633_v25, %v632_v9  ;;  %v379_v45 = vmul.f32 %v4100_v41, %v3305_v53  ;;  %v380_v0 = vmul.f32 %v4100_v41, %v3306_v1 }
  0x6f   :  { %3549 = vmatprep.mubr.msk.bf16.mxu0 %vm746_vm0, %v700_v11  ;;  %v375_v11 = vmul.f32 %v3297_v14, %v3669_v2  ;;  %v718_v2 = vpack.c.bf16 %v635_v30, %v634_v12  ;;  %v641_v13 = vmax.f32 %v513_v55, 0.0  ;;  %v383_v14 = vmul.f32 %v4100_v41, %v3313_v56 }
  0x70   :  { %3578 = vmatmul.mubr.msk.bf16.gmra.mrb[16].mxu1 %vm746_vm0, %v715_v7  ;;  %v514_v63 = vadd.f32 %v4119_v48, %v379_v45  ;;  %v515_v4 = vadd.f32 %v4119_v48, %v380_v0  ;;  %v3318_v25 = vunpack.c.h.bf16 %v3417_v18  ;;  %v3321_v27 = vunpack.c.l.bf16 %v3418_v19  ;;  %v3422_v0 = vld [vmem:[%s5464_s0 + $0x1c0] sm:$0xff]  }
  0x71   :  { %3581 = vmatprep.mubr.msk.bf16.mxu1 %vm746_vm0, %v716_v15  ;;  %v510_v39 = vadd.f32 %v3683_v8, %v375_v11  ;;  %v3415_v8 = vld [vmem:[%s5464_s0 + $0x188] sm:$0xff]   ;;  %v384_v15 = vmul.f32 %v4100_v41, %v3314_v57  ;;  %v721_v24 = vpack.c.bf16 %v641_v13, %v640_v10  ;;  %v518_v60 = vadd.f32 %v4119_v48, %v383_v14 }
  0x72   :  { %v3309_v51 = vunpack.c.l.bf16 %v3415_v8  ;;  %v3310_v52 = vunpack.c.h.bf16 %v3415_v8  ;;  %v642_v17 = vmax.f32 %v514_v63, 0.0  ;;  %v643_v59 = vmax.f32 %v515_v4, 0.0  ;;  %v3423_v10 = vld [vmem:[%s5464_s0 + $0x1c8] sm:$0xff]  }
  0x73   :  { %v638_v20 = vmax.f32 %v510_v39, 0.0  ;;  %v519_v9 = vadd.f32 %v4119_v48, %v384_v15  ;;  %v3322_v11 = vunpack.c.h.bf16 %v3418_v19  ;;  %v385_v30 = vmul.f32 %v4100_v41, %v3317_v23 }
  0x74   :  { %v381_v5 = vmul.f32 %v4100_v41, %v3309_v51  ;;  %v382_v7 = vmul.f32 %v4100_v41, %v3310_v52  ;;  %v722_v26 = vpack.c.bf16 %v643_v59, %v642_v17  ;;  %v646_v31 = vmax.f32 %v518_v60, 0.0  ;;  %v3424_v17 = vld [vmem:[%s5464_s0 + $0x1d0] sm:$0xff]  }
  0x75   :  { %v386_v33 = vmul.f32 %v4100_v41, %v3318_v25  ;;  %v387_v34 = vmul.f32 %v4100_v41, %v3321_v27  ;;  %v520_v37 = vadd.f32 %v4119_v48, %v385_v30  ;;  %v3325_v40 = vunpack.c.l.bf16 %v3419_v36 }
  0x76   :  { %3550 = vmatmul.mubr.msk.bf16.gmra.mrb[52].mxu0 %vm746_vm0, %v701_v54  ;;  %v719_v54 = vpack.c.bf16 %v637_v61, %v636_v43  ;;  %v516_v21 = vadd.f32 %v4119_v48, %v381_v5  ;;  %v517_v22 = vadd.f32 %v4119_v48, %v382_v7  ;;  %v3333_v46 = vunpack.c.l.bf16 %v3421_v3 }
  0x77   :  { %3553 = vmatprep.mubr.msk.bf16.mxu0 %vm746_vm0, %v702_v62  ;;  %v720_v62 = vpack.c.bf16 %v639_v44, %v638_v20  ;;  %v521_v39 = vadd.f32 %v4119_v48, %v386_v33  ;;  %v522_v50 = vadd.f32 %v4119_v48, %v387_v34  ;;  %v648_v29 = vmax.f32 %v520_v37, 0.0 }
  0x78   :  { %3582 = vmatmul.mubr.msk.bf16.gmra.mrb[20].mxu1 %vm746_vm0, %v717_v58  ;;  %v644_v28 = vmax.f32 %v516_v21, 0.0  ;;  %v645_v12 = vmax.f32 %v517_v22, 0.0  ;;  %v3420_v58 = vld [vmem:[%s5464_s0 + $0x1b0] sm:$0xff]   ;;  %v389_v43 = vmul.f32 %v4100_v41, %v3325_v40  ;;  %v393_v63 = vmul.f32 %v4100_v41, %v3333_v46 }
  0x79   :  { %3585 = vmatprep.mubr.msk.bf16.mxu1 %vm746_vm0, %v718_v2  ;;  %v3326_v2 = vunpack.c.h.bf16 %v3419_v36  ;;  %v3329_v1 = vunpack.c.l.bf16 %v3420_v58  ;;  %v3330_v6 = vunpack.c.h.bf16 %v3420_v58  ;;  %v649_v42 = vmax.f32 %v521_v39, 0.0 }
  0x7a   :  { %v723_v16 = vpack.c.bf16 %v645_v12, %v644_v28  ;;  %v650_v8 = vmax.f32 %v522_v50, 0.0  ;;  %v524_v51 = vadd.f32 %v4119_v48, %v389_v43  ;;  %v528_v59 = vadd.f32 %v4119_v48, %v393_v63 }
  0x7b   :  { %v390_v61 = vmul.f32 %v4100_v41, %v3326_v2  ;;  %v391_v44 = vmul.f32 %v4100_v41, %v3329_v1  ;;  %v392_v45 = vmul.f32 %v4100_v41, %v3330_v6  ;;  %v725_v49 = vpack.c.bf16 %v649_v42, %v648_v29 }
  0x7c   :  { %v652_v5 = vmax.f32 %v524_v51, 0.0  ;;  %v3341_v21 = vunpack.c.l.bf16 %v3423_v10  ;;  %v3342_v23 = vunpack.c.h.bf16 %v3423_v10  ;;  %v3346_v60 = vunpack.c.h.bf16 %v3424_v17 }
  0x7d   :  { %v525_v52 = vadd.f32 %v4119_v48, %v390_v61  ;;  %v526_v56 = vadd.f32 %v4119_v48, %v391_v44  ;;  %v527_v57 = vadd.f32 %v4119_v48, %v392_v45  ;;  %v656_v27 = vmax.f32 %v528_v59, 0.0  ;;  %v3428_v44 = vld [vmem:[%s5464_s0 + $0x1f0] sm:$0xff]  }
  0x7e   :  { %3554 = vmatmul.mubr.msk.bf16.gmra.mrb[56].mxu0 %vm746_vm0, %v703_v32  ;;  %v647_v32 = vmax.f32 %v519_v9, 0.0  ;;  %v397_v28 = vmul.f32 %v4100_v41, %v3341_v21  ;;  %v398_v12 = vmul.f32 %v4100_v41, %v3342_v23 }
  0x7f   :  { %3557 = vmatprep.mubr.msk.bf16.mxu0 %vm746_vm0, %v704_v35  ;;  %v388_v35 = vmul.f32 %v4100_v41, %v3322_v11  ;;  %v653_v7 = vmax.f32 %v525_v52, 0.0  ;;  %v654_v13 = vmax.f32 %v526_v56, 0.0  ;;  %v655_v14 = vmax.f32 %v527_v57, 0.0 }
  0x80   :  { %3586 = vmatmul.mubr.msk.bf16.gmra.mrb[24].mxu1 %vm746_vm0, %v719_v54  ;;  %v724_v38 = vpack.c.bf16 %v647_v32, %v646_v31  ;;  %v3337_v54 = vunpack.c.l.bf16 %v3422_v0  ;;  %v400_v31 = vmul.f32 %v4100_v41, %v3346_v60  ;;  %v3425_v32 = vld [vmem:[%s5464_s0 + $0x1d8] sm:$0xff]   ;;  %v532_v58 = vadd.f32 %v4119_v48, %v397_v28 }
  0x81   :  { %3589 = vmatprep.mubr.msk.bf16.mxu1 %vm746_vm0, %v720_v62  ;;  %v523_v53 = vadd.f32 %v4119_v48, %v388_v35  ;;  %v3338_v62 = vunpack.c.h.bf16 %v3422_v0  ;;  %v727_v22 = vpack.c.bf16 %v653_v7, %v652_v5  ;;  %v728_v9 = vpack.c.bf16 %v655_v14, %v654_v13  ;;  %v3426_v35 = vld [vmem:[%s5464_s0 + $0x1e0] sm:$0xff]   ;;  %v3429_v14 = vld [vmem:[%s5464_s0 + $0x1f8] sm:$0xff]  }
  0x82   :  { %v395_v15 = vmul.f32 %v4100_v41, %v3337_v54  ;;  %v533_v37 = vadd.f32 %v4119_v48, %v398_v12  ;;  %v535_v39 = vadd.f32 %v4119_v48, %v400_v31  ;;  %v3350_v40 = vunpack.c.h.bf16 %v3425_v32 }
  0x83   :  { %v651_v20 = vmax.f32 %v523_v53, 0.0  ;;  %v396_v18 = vmul.f32 %v4100_v41, %v3338_v62  ;;  %v3353_v50 = vunpack.c.l.bf16 %v3426_v35  ;;  %v3354_v53 = vunpack.c.h.bf16 %v3426_v35 }
  0x84   :  { %v530_v25 = vadd.f32 %v4119_v48, %v395_v15  ;;  %v660_v1 = vmax.f32 %v532_v58, 0.0  ;;  %v661_v29 = vmax.f32 %v533_v37, 0.0  ;;  %v663_v43 = vmax.f32 %v535_v39, 0.0 }
  0x85   :  { %v726_v55 = vpack.c.bf16 %v651_v20, %v650_v8  ;;  %v402_v61 = vmul.f32 %v4100_v41, %v3350_v40  ;;  %v403_v8 = vmul.f32 %v4100_v41, %v3353_v50  ;;  %v404_v20 = vmul.f32 %v4100_v41, %v3354_v53 }
  0x86   :  { %3558 = vmatmul.mubr.msk.bf16.gmra.mrb[60].mxu0 %vm746_vm0, %v705_v47  ;;  %v3334_v47 = vunpack.c.h.bf16 %v3421_v3  ;;  %v658_v33 = vmax.f32 %v530_v25, 0.0  ;;  %v3427_v3 = vld [vmem:[%s5464_s0 + $0x1e8] sm:$0xff]   ;;  %v731_v46 = vpack.c.bf16 %v661_v29, %v660_v1  ;;  %v3362_v56 = vunpack.c.h.bf16 %v3428_v44 }
  0x87   :  { %v3357_v0 = vunpack.c.l.bf16 %v3427_v3  ;;  %v3358_v51 = vunpack.c.h.bf16 %v3427_v3  ;;  %v538_v52 = vadd.f32 %v4119_v48, %v403_v8  ;;  %v539_v54 = vadd.f32 %v4119_v48, %v404_v20 }
  0x88   :  { %3590 = vmatmul.mubr.msk.bf16.gmra.mrb[28].mxu1 %vm746_vm0, %v721_v24  ;;  %v394_v4 = vmul.f32 %v4100_v41, %v3334_v47  ;;  %v3345_v24 = vunpack.c.l.bf16 %v3424_v17  ;;  %v408_v13 = vmul.f32 %v4100_v41, %v3362_v56  ;;  %v3365_v59 = vunpack.c.l.bf16 %v3429_v14 }
  0x89   :  { %3593 = vmatprep.mubr.msk.bf16.mxu1 %vm746_vm0, %v722_v26  ;;  %v531_v26 = vadd.f32 %v4119_v48, %v396_v18  ;;  %v405_v57 = vmul.f32 %v4100_v41, %v3357_v0  ;;  %v666_v5 = vmax.f32 %v538_v52, 0.0  ;;  %v667_v7 = vmax.f32 %v539_v54, 0.0 }
  0x8a   :  { %v529_v19 = vadd.f32 %v4119_v48, %v394_v4  ;;  %v399_v30 = vmul.f32 %v4100_v41, %v3345_v24  ;;  %v406_v4 = vmul.f32 %v4100_v41, %v3358_v51  ;;  %v543_v23 = vadd.f32 %v4119_v48, %v408_v13 }
  0x8b   :  { %v659_v34 = vmax.f32 %v531_v26, 0.0  ;;  %v540_v15 = vadd.f32 %v4119_v48, %v405_v57  ;;  %v734_v21 = vpack.c.bf16 %v667_v7, %v666_v5 }
  0x8c   :  { %v657_v11 = vmax.f32 %v529_v19, 0.0  ;;  %v541_v17 = vadd.f32 %v4119_v48, %v406_v4  ;;  %v3366_v19 = vunpack.c.h.bf16 %v3429_v14 }
  0x8d   :  { %v730_v2 = vpack.c.bf16 %v659_v34, %v658_v33  ;;  %v668_v24 = vmax.f32 %v540_v15, 0.0 }
  0x8e   :  { %v729_v36 = vpack.c.bf16 %v657_v11, %v656_v27  ;;  %v669_v60 = vmax.f32 %v541_v17, 0.0  ;;  %v410_v25 = vmul.f32 %v4100_v41, %v3366_v19  ;;  %v671_v27 = vmax.f32 %v543_v23, 0.0 }
  0x90   :  { %3594 = vmatmul.mubr.msk.bf16.gmra.mrb[32].mxu1 %vm746_vm0, %v723_v16  ;;  %v3349_v16 = vunpack.c.l.bf16 %v3425_v32  ;;  %v735_v11 = vpack.c.bf16 %v669_v60, %v668_v24  ;;  %v545_v12 = vadd.f32 %v4119_v48, %v410_v25 }
  0x91   :  { %3597 = vmatprep.mubr.msk.bf16.mxu1 %vm746_vm0, %v724_v38  ;;  %v534_v38 = vadd.f32 %v4119_v48, %v399_v30 }
  0x92   :  { %v401_v6 = vmul.f32 %v4100_v41, %v3349_v16  ;;  %v673_v32 = vmax.f32 %v545_v12, 0.0 }
  0x93   :  { %v662_v42 = vmax.f32 %v534_v38, 0.0 }
  0x94   :  { %v536_v45 = vadd.f32 %v4119_v48, %v401_v6 }
  0x95   :  { %v732_v47 = vpack.c.bf16 %v663_v43, %v662_v42 }
  0x96   :  { %v664_v62 = vmax.f32 %v536_v45, 0.0 }
  0x98   :  { %3598 = vmatmul.mubr.msk.bf16.gmra.mrb[36].mxu1 %vm746_vm0, %v725_v49  ;;  %v537_v49 = vadd.f32 %v4119_v48, %v402_v61 }
  0x99   :  { %3601 = vmatprep.mubr.msk.bf16.mxu1 %vm746_vm0, %v726_v55  ;;  %v3361_v55 = vunpack.c.l.bf16 %v3428_v44 }
  0x9a   :  { %v665_v63 = vmax.f32 %v537_v49, 0.0 }
  0x9b   :  { %v407_v10 = vmul.f32 %v4100_v41, %v3361_v55 }
  0x9c   :  { %v733_v18 = vpack.c.bf16 %v665_v63, %v664_v62 }
  0xa0   :  { %3602 = vmatmul.mubr.msk.bf16.gmra.mrb[40].mxu1 %vm746_vm0, %v727_v22  ;;  %v542_v22 = vadd.f32 %v4119_v48, %v407_v10 }
  0xa1   :  { %3605 = vmatprep.mubr.msk.bf16.mxu1 %vm746_vm0, %v728_v9  ;;  %v409_v9 = vmul.f32 %v4100_v41, %v3365_v59 }
  0xa2   :  { %v670_v26 = vmax.f32 %v542_v22, 0.0 }
  0xa3   :  { %v544_v28 = vadd.f32 %v4119_v48, %v409_v9 }
  0xa4   :  { %v736_v30 = vpack.c.bf16 %v671_v27, %v670_v26 }
  0xa5   :  { %v672_v31 = vmax.f32 %v544_v28, 0.0 }
  0xa7   :  { %v737_v33 = vpack.c.bf16 %v673_v32, %v672_v31 }
  0xa8   :  { %3606 = vmatmul.mubr.msk.bf16.gmra.mrb[44].mxu1 %vm746_vm0, %v729_v36 }
  0xa9   :  { %3609 = vmatprep.mubr.msk.bf16.mxu1 %vm746_vm0, %v730_v2 }
  0xb0   :  { %3610 = vmatmul.mubr.msk.bf16.gmra.mrb[48].mxu1 %vm746_vm0, %v731_v46 }
  0xb1   :  { %3613 = vmatprep.mubr.msk.bf16.mxu1 %vm746_vm0, %v732_v47 }
  0xb8   :  { %3614 = vmatmul.mubr.msk.bf16.gmra.mrb[52].mxu1 %vm746_vm0, %v733_v18 }
  0xb9   :  { %3617 = vmatprep.mubr.msk.bf16.mxu1 %vm746_vm0, %v734_v21 }
  0xc0   :  { %3618 = vmatmul.mubr.msk.bf16.gmra.mrb[56].mxu1 %vm746_vm0, %v735_v11 }
  0xc1   :  { %3621 = vmatprep.mubr.msk.bf16.mxu1 %vm746_vm0, %v736_v30 }
  0xc8   :  { %3622 = vmatmul.mubr.msk.bf16.gmra.mrb[60].mxu1 %vm746_vm0, %v737_v33 }
  0xe1   :  { %v3499_v41 = vpop.f32.mrb[0].mxu0 }
  0xe2   :  { %v2985_v34 = vpack.c.bf16 %v3499_v41, %v3499_v41  ;;  %v973_v35 = vpop.f32.mrb[1].mxu0  ;;  %v2389_v48 = vmul.f32 %v3499_v41, %v3499_v41  ;;  %v2129_v6 = vsel %vm2125_vm2, %v3499_v41, 0.0 }
  0xe3   :  { %v2983_v36 = vpack.c.bf16 %v973_v35, %v973_v35  ;;  %v2387_v58 = vmul.f32 %v973_v35, %v973_v35  ;;  %v3500_v16 = vpop.f32.mrb[2].mxu0  ;;  %v2126_v39 = vsel %vm2125_vm2, %v973_v35, 0.0 }
  0xe4   :  { %1999 = vst.msk [vmem:[%s5467_s4 + $0x8] sm:$0xf] %vm1996_vm1, %v2985_v34  ;;  %v2986_v37 = vpack.c.bf16 %v3500_v16, %v3500_v16  ;;  %v976_v38 = vpop.f32.mrb[3].mxu0  ;;  %v2390_v53 = vmul.f32 %v3500_v16, %v3500_v16  ;;  %v2518_v3 = vsel %vm2125_vm2, %v2389_v48, 0.0  ;;  %v2131_v20 = vsel %vm2125_vm2, %v3500_v16, 0.0 }
  0xe5   :  { %1997 = vst.msk [vmem:[%s5467_s4] sm:$0xf] %vm1996_vm1, %v2983_v36  ;;  %v2984_v40 = vpack.c.bf16 %v976_v38, %v976_v38  ;;  %v2127_v2 = vsel %vm2125_vm2, %v976_v38, 0.0  ;;  %v2388_v50 = vmul.f32 %v976_v38, %v976_v38  ;;  %v2515_v29 = vsel %vm2125_vm2, %v2387_v58, 0.0 }
  0xe6   :  { %2000 = vst.msk [vmem:[%s5467_s4 + $0xc] sm:$0xf] %vm1996_vm1, %v2986_v37  ;;  %v2128_v1 = vadd.f32 %v2127_v2, %v2126_v39  ;;  %v2520_v44 = vsel %vm2125_vm2, %v2390_v53, 0.0 }
  0xe7   :  { %1998 = vst.msk [vmem:[%s5467_s4 + $0x4] sm:$0xf] %vm1996_vm1, %v2984_v40  ;;  %v2516_v42 = vsel %vm2125_vm2, %v2388_v50, 0.0 }
  0xe8   :  { %v2130_v43 = vadd.f32 %v2129_v6, %v2128_v1  ;;  %v2517_v61 = vadd.f32 %v2516_v42, %v2515_v29 }
  0xe9   :  { %v3503_v8 = vpop.f32.mrb[4].mxu0 }
  0xea   :  { %v2519_v45 = vadd.f32 %v2518_v3, %v2517_v61  ;;  %v2989_v0 = vpack.c.bf16 %v3503_v8, %v3503_v8  ;;  %v989_v46 = vpop.f32.mrb[5].mxu0  ;;  %v2132_v49 = vadd.f32 %v2131_v20, %v2130_v43  ;;  %v2393_v5 = vmul.f32 %v3503_v8, %v3503_v8 }
  0xeb   :  { %v2987_v47 = vpack.c.bf16 %v989_v46, %v989_v46  ;;  %v2133_v51 = vsel %vm2125_vm2, %v989_v46, 0.0  ;;  %v2391_v52 = vmul.f32 %v989_v46, %v989_v46  ;;  %v3504_v54 = vpop.f32.mrb[6].mxu0  ;;  %v2137_v15 = vsel %vm2125_vm2, %v3503_v8, 0.0 }
  0xec   :  { %2003 = vst.msk [vmem:[%s5467_s4 + $0x18] sm:$0xf] %vm1996_vm1, %v2989_v0  ;;  %v2521_v55 = vadd.f32 %v2520_v44, %v2519_v45  ;;  %v2990_v56 = vpack.c.bf16 %v3504_v54, %v3504_v54  ;;  %v992_v57 = vpop.f32.mrb[7].mxu0  ;;  %v2134_v62 = vadd.f32 %v2133_v51, %v2132_v49  ;;  %v2394_v18 = vmul.f32 %v3504_v54, %v3504_v54 }
  0xed   :  { %2001 = vst.msk [vmem:[%s5467_s4 + $0x10] sm:$0xf] %vm1996_vm1, %v2987_v47  ;;  %v2522_v63 = vsel %vm2125_vm2, %v2391_v52, 0.0  ;;  %v2988_v4 = vpack.c.bf16 %v992_v57, %v992_v57  ;;  %v2135_v10 = vsel %vm2125_vm2, %v992_v57, 0.0  ;;  %v2392_v13 = vmul.f32 %v992_v57, %v992_v57 }
  0xee   :  { %v2523_v7 = vadd.f32 %v2522_v63, %v2521_v55  ;;  %2004 = vst.msk [vmem:[%s5467_s4 + $0x1c] sm:$0xf] %vm1996_vm1, %v2990_v56  ;;  %v2136_v14 = vadd.f32 %v2135_v10, %v2134_v62  ;;  %v2526_v22 = vsel %vm2125_vm2, %v2393_v5, 0.0  ;;  %v2139_v23 = vsel %vm2125_vm2, %v3504_v54, 0.0 }
  0xef   :  { %2002 = vst.msk [vmem:[%s5467_s4 + $0x14] sm:$0xf] %vm1996_vm1, %v2988_v4  ;;  %v2524_v17 = vsel %vm2125_vm2, %v2392_v13, 0.0  ;;  %v2528_v28 = vsel %vm2125_vm2, %v2394_v18, 0.0 }
  0xf0   :  { %v2138_v59 = vadd.f32 %v2137_v15, %v2136_v14  ;;  %v2525_v19 = vadd.f32 %v2524_v17, %v2523_v7 }
  0xf1   :  { %v3507_v21 = vpop.f32.mrb[8].mxu0 }
  0xf2   :  { %v2993_v24 = vpack.c.bf16 %v3507_v21, %v3507_v21  ;;  %v1005_v60 = vpop.f32.mrb[9].mxu0  ;;  %v2527_v9 = vadd.f32 %v2526_v22, %v2525_v19  ;;  %v2140_v26 = vadd.f32 %v2139_v23, %v2138_v59  ;;  %v2397_v34 = vmul.f32 %v3507_v21, %v3507_v21 }
  0xf3   :  { %v2991_v25 = vpack.c.bf16 %v1005_v60, %v1005_v60  ;;  %v2141_v27 = vsel %vm2125_vm2, %v1005_v60, 0.0  ;;  %v3508_v11 = vpop.f32.mrb[10].mxu0  ;;  %v2395_v12 = vmul.f32 %v1005_v60, %v1005_v60  ;;  %v2145_v37 = vsel %vm2125_vm2, %v3507_v21, 0.0 }
  0xf4   :  { %2007 = vst.msk [vmem:[%s5467_s4 + $0x28] sm:$0xf] %vm1996_vm1, %v2993_v24  ;;  %v2994_v30 = vpack.c.bf16 %v3508_v11, %v3508_v11  ;;  %v1008_v31 = vpop.f32.mrb[11].mxu0  ;;  %v2142_v32 = vadd.f32 %v2141_v27, %v2140_v26  ;;  %v2529_v33 = vadd.f32 %v2528_v28, %v2527_v9  ;;  %v2398_v38 = vmul.f32 %v3508_v11, %v3508_v11 }
  0xf5   :  { %2005 = vst.msk [vmem:[%s5467_s4 + $0x20] sm:$0xf] %vm1996_vm1, %v2991_v25  ;;  %v2992_v41 = vpack.c.bf16 %v1008_v31, %v1008_v31  ;;  %v2530_v35 = vsel %vm2125_vm2, %v2395_v12, 0.0  ;;  %v2143_v36 = vsel %vm2125_vm2, %v1008_v31, 0.0  ;;  %v2396_v58 = vmul.f32 %v1008_v31, %v1008_v31 }
  0xf6   :  { %2008 = vst.msk [vmem:[%s5467_s4 + $0x2c] sm:$0xf] %vm1996_vm1, %v2994_v30  ;;  %v2531_v16 = vadd.f32 %v2530_v35, %v2529_v33  ;;  %v2144_v48 = vadd.f32 %v2143_v36, %v2142_v32  ;;  %v2534_v53 = vsel %vm2125_vm2, %v2397_v34, 0.0  ;;  %v2147_v1 = vsel %vm2125_vm2, %v3508_v11, 0.0 }
  0xf7   :  { %2006 = vst.msk [vmem:[%s5467_s4 + $0x24] sm:$0xf] %vm1996_vm1, %v2992_v41  ;;  %v2532_v39 = vsel %vm2125_vm2, %v2396_v58, 0.0  ;;  %v2536_v20 = vsel %vm2125_vm2, %v2398_v38, 0.0 }
  0xf8   :  { %v2146_v40 = vadd.f32 %v2145_v37, %v2144_v48  ;;  %v2533_v2 = vadd.f32 %v2532_v39, %v2531_v16 }
  0xf9   :  { %v3511_v50 = vpop.f32.mrb[12].mxu0 }
  0xfa   :  { %v2997_v6 = vpack.c.bf16 %v3511_v50, %v3511_v50  ;;  %v1021_v29 = vpop.f32.mrb[13].mxu0  ;;  %v2535_v42 = vadd.f32 %v2534_v53, %v2533_v2  ;;  %v2148_v61 = vadd.f32 %v2147_v1, %v2146_v40  ;;  %v2401_v51 = vmul.f32 %v3511_v50, %v3511_v50 }
  0xfb   :  { %v2995_v43 = vpack.c.bf16 %v1021_v29, %v1021_v29  ;;  %v2149_v3 = vsel %vm2125_vm2, %v1021_v29, 0.0  ;;  %v3512_v8 = vpop.f32.mrb[14].mxu0  ;;  %v2399_v44 = vmul.f32 %v1021_v29, %v1021_v29  ;;  %v2153_v62 = vsel %vm2125_vm2, %v3511_v50, 0.0 }
  0xfc   :  { %2011 = vst.msk [vmem:[%s5467_s4 + $0x38] sm:$0xf] %vm1996_vm1, %v2997_v6  ;;  %v2998_v45 = vpack.c.bf16 %v3512_v8, %v3512_v8  ;;  %v1024_v0 = vpop.f32.mrb[15].mxu0  ;;  %v2150_v46 = vadd.f32 %v2149_v3, %v2148_v61  ;;  %v2537_v47 = vadd.f32 %v2536_v20, %v2535_v42  ;;  %v2402_v63 = vmul.f32 %v3512_v8, %v3512_v8 }
  0xfd   :  { %2009 = vst.msk [vmem:[%s5467_s4 + $0x30] sm:$0xf] %vm1996_vm1, %v2995_v43  ;;  %v2996_v49 = vpack.c.bf16 %v1024_v0, %v1024_v0  ;;  %v2538_v52 = vsel %vm2125_vm2, %v2399_v44, 0.0  ;;  %v2151_v54 = vsel %vm2125_vm2, %v1024_v0, 0.0  ;;  %v2400_v55 = vmul.f32 %v1024_v0, %v1024_v0 }
  0xfe   :  { %2012 = vst.msk [vmem:[%s5467_s4 + $0x3c] sm:$0xf] %vm1996_vm1, %v2998_v45  ;;  %v2539_v56 = vadd.f32 %v2538_v52, %v2537_v47  ;;  %v2152_v57 = vadd.f32 %v2151_v54, %v2150_v46  ;;  %v2542_v13 = vsel %vm2125_vm2, %v2401_v51, 0.0  ;;  %v2155_v14 = vsel %vm2125_vm2, %v3512_v8, 0.0 }
  0xff   :  { %2010 = vst.msk [vmem:[%s5467_s4 + $0x34] sm:$0xf] %vm1996_vm1, %v2996_v49  ;;  %v2540_v4 = vsel %vm2125_vm2, %v2400_v55, 0.0  ;;  %v2544_v23 = vsel %vm2125_vm2, %v2402_v63, 0.0 }
 0x100   :  { %v2154_v5 = vadd.f32 %v2153_v62, %v2152_v57  ;;  %v2541_v7 = vadd.f32 %v2540_v4, %v2539_v56 }
 0x101   :  { %v3515_v10 = vpop.f32.mrb[16].mxu0 }
 0x102   :  { %v3001_v15 = vpack.c.bf16 %v3515_v10, %v3515_v10  ;;  %v1037_v18 = vpop.f32.mrb[17].mxu0  ;;  %v2543_v17 = vadd.f32 %v2542_v13, %v2541_v7  ;;  %v2156_v19 = vadd.f32 %v2155_v14, %v2154_v5  ;;  %v2405_v11 = vmul.f32 %v3515_v10, %v3515_v10 }
 0x103   :  { %v2999_v59 = vpack.c.bf16 %v1037_v18, %v1037_v18  ;;  %v2157_v21 = vsel %vm2125_vm2, %v1037_v18, 0.0  ;;  %v3516_v22 = vpop.f32.mrb[18].mxu0  ;;  %v2403_v24 = vmul.f32 %v1037_v18, %v1037_v18  ;;  %v2161_v33 = vsel %vm2125_vm2, %v3515_v10, 0.0 }
 0x104   :  { %2015 = vst.msk [vmem:[%s5467_s4 + $0x48] sm:$0xf] %vm1996_vm1, %v3001_v15  ;;  %v3002_v60 = vpack.c.bf16 %v3516_v22, %v3516_v22  ;;  %v1040_v9 = vpop.f32.mrb[19].mxu0  ;;  %v2158_v25 = vadd.f32 %v2157_v21, %v2156_v19  ;;  %v2545_v26 = vadd.f32 %v2544_v23, %v2543_v17  ;;  %v2406_v41 = vmul.f32 %v3516_v22, %v3516_v22 }
 0x105   :  { %2013 = vst.msk [vmem:[%s5467_s4 + $0x40] sm:$0xf] %vm1996_vm1, %v2999_v59  ;;  %v3000_v27 = vpack.c.bf16 %v1040_v9, %v1040_v9  ;;  %v2546_v28 = vsel %vm2125_vm2, %v2403_v24, 0.0  ;;  %v2159_v12 = vsel %vm2125_vm2, %v1040_v9, 0.0  ;;  %v2404_v30 = vmul.f32 %v1040_v9, %v1040_v9 }
 0x106   :  { %2016 = vst.msk [vmem:[%s5467_s4 + $0x4c] sm:$0xf] %vm1996_vm1, %v3002_v60  ;;  %v2547_v31 = vadd.f32 %v2546_v28, %v2545_v26  ;;  %v2160_v32 = vadd.f32 %v2159_v12, %v2158_v25  ;;  %v2550_v16 = vsel %vm2125_vm2, %v2405_v11, 0.0  ;;  %v2163_v48 = vsel %vm2125_vm2, %v3516_v22, 0.0 }
 0x107   :  { %2014 = vst.msk [vmem:[%s5467_s4 + $0x44] sm:$0xf] %vm1996_vm1, %v3000_v27  ;;  %v2548_v34 = vsel %vm2125_vm2, %v2404_v30, 0.0  ;;  %v2552_v1 = vsel %vm2125_vm2, %v2406_v41, 0.0 }
 0x108   :  { %v2162_v35 = vadd.f32 %v2161_v33, %v2160_v32  ;;  %v2549_v36 = vadd.f32 %v2548_v34, %v2547_v31 }
 0x109   :  { %v3519_v58 = vpop.f32.mrb[20].mxu0 }
 0x10a   :  { %v3005_v37 = vpack.c.bf16 %v3519_v58, %v3519_v58  ;;  %v1053_v38 = vpop.f32.mrb[21].mxu0  ;;  %v2551_v39 = vadd.f32 %v2550_v16, %v2549_v36  ;;  %v2164_v2 = vadd.f32 %v2163_v48, %v2162_v35  ;;  %v2409_v8 = vmul.f32 %v3519_v58, %v3519_v58 }
 0x10b   :  { %v3003_v40 = vpack.c.bf16 %v1053_v38, %v1053_v38  ;;  %v2165_v50 = vsel %vm2125_vm2, %v1053_v38, 0.0  ;;  %v3520_v53 = vpop.f32.mrb[22].mxu0  ;;  %v2407_v6 = vmul.f32 %v1053_v38, %v1053_v38  ;;  %v2169_v47 = vsel %vm2125_vm2, %v3519_v58, 0.0 }
 0x10c   :  { %2019 = vst.msk [vmem:[%s5467_s4 + $0x58] sm:$0xf] %vm1996_vm1, %v3005_v37  ;;  %v3006_v29 = vpack.c.bf16 %v3520_v53, %v3520_v53  ;;  %v1056_v42 = vpop.f32.mrb[23].mxu0  ;;  %v2166_v43 = vadd.f32 %v2165_v50, %v2164_v2  ;;  %v2553_v61 = vadd.f32 %v2552_v1, %v2551_v39  ;;  %v2410_v49 = vmul.f32 %v3520_v53, %v3520_v53 }
 0x10d   :  { %2017 = vst.msk [vmem:[%s5467_s4 + $0x50] sm:$0xf] %vm1996_vm1, %v3003_v40  ;;  %v3004_v3 = vpack.c.bf16 %v1056_v42, %v1056_v42  ;;  %v2554_v20 = vsel %vm2125_vm2, %v2407_v6, 0.0  ;;  %v2167_v44 = vsel %vm2125_vm2, %v1056_v42, 0.0  ;;  %v2408_v45 = vmul.f32 %v1056_v42, %v1056_v42 }
 0x10e   :  { %2020 = vst.msk [vmem:[%s5467_s4 + $0x5c] sm:$0xf] %vm1996_vm1, %v3006_v29  ;;  %v2555_v0 = vadd.f32 %v2554_v20, %v2553_v61  ;;  %v2168_v46 = vadd.f32 %v2167_v44, %v2166_v43  ;;  %v2558_v56 = vsel %vm2125_vm2, %v2409_v8, 0.0  ;;  %v2171_v57 = vsel %vm2125_vm2, %v3520_v53, 0.0 }
 0x10f   :  { %2018 = vst.msk [vmem:[%s5467_s4 + $0x54] sm:$0xf] %vm1996_vm1, %v3004_v3  ;;  %v2556_v51 = vsel %vm2125_vm2, %v2408_v45, 0.0  ;;  %v2560_v14 = vsel %vm2125_vm2, %v2410_v49, 0.0 }
 0x110   :  { %v2170_v52 = vadd.f32 %v2169_v47, %v2168_v46  ;;  %v2557_v54 = vadd.f32 %v2556_v51, %v2555_v0 }
 0x111   :  { %v3523_v55 = vpop.f32.mrb[24].mxu0 }
 0x112   :  { %v3009_v62 = vpack.c.bf16 %v3523_v55, %v3523_v55  ;;  %v1069_v63 = vpop.f32.mrb[25].mxu0  ;;  %v2559_v4 = vadd.f32 %v2558_v56, %v2557_v54  ;;  %v2172_v7 = vadd.f32 %v2171_v57, %v2170_v52  ;;  %v2413_v22 = vmul.f32 %v3523_v55, %v3523_v55 }
 0x113   :  { %v3007_v5 = vpack.c.bf16 %v1069_v63, %v1069_v63  ;;  %v2173_v10 = vsel %vm2125_vm2, %v1069_v63, 0.0  ;;  %v3524_v13 = vpop.f32.mrb[26].mxu0  ;;  %v2411_v15 = vmul.f32 %v1069_v63, %v1069_v63  ;;  %v2177_v26 = vsel %vm2125_vm2, %v3523_v55, 0.0 }
 0x114   :  { %2023 = vst.msk [vmem:[%s5467_s4 + $0x68] sm:$0xf] %vm1996_vm1, %v3009_v62  ;;  %v3010_v18 = vpack.c.bf16 %v3524_v13, %v3524_v13  ;;  %v1072_v17 = vpop.f32.mrb[27].mxu0  ;;  %v2174_v59 = vadd.f32 %v2173_v10, %v2172_v7  ;;  %v2561_v19 = vadd.f32 %v2560_v14, %v2559_v4  ;;  %v2414_v27 = vmul.f32 %v3524_v13, %v3524_v13 }
 0x115   :  { %2021 = vst.msk [vmem:[%s5467_s4 + $0x60] sm:$0xf] %vm1996_vm1, %v3007_v5  ;;  %v3008_v21 = vpack.c.bf16 %v1072_v17, %v1072_v17  ;;  %v2562_v23 = vsel %vm2125_vm2, %v2411_v15, 0.0  ;;  %v2175_v24 = vsel %vm2125_vm2, %v1072_v17, 0.0  ;;  %v2412_v60 = vmul.f32 %v1072_v17, %v1072_v17 }
 0x116   :  { %2024 = vst.msk [vmem:[%s5467_s4 + $0x6c] sm:$0xf] %vm1996_vm1, %v3010_v18  ;;  %v2563_v9 = vadd.f32 %v2562_v23, %v2561_v19  ;;  %v2176_v25 = vadd.f32 %v2175_v24, %v2174_v59  ;;  %v2566_v31 = vsel %vm2125_vm2, %v2413_v22, 0.0  ;;  %v2179_v32 = vsel %vm2125_vm2, %v3524_v13, 0.0 }
 0x117   :  { %2022 = vst.msk [vmem:[%s5467_s4 + $0x64] sm:$0xf] %vm1996_vm1, %v3008_v21  ;;  %v2564_v11 = vsel %vm2125_vm2, %v2412_v60, 0.0  ;;  %v2568_v48 = vsel %vm2125_vm2, %v2414_v27, 0.0 }
 0x118   :  { %v2178_v28 = vadd.f32 %v2177_v26, %v2176_v25  ;;  %v2565_v12 = vadd.f32 %v2564_v11, %v2563_v9 }
 0x119   :  { %v3527_v30 = vpop.f32.mrb[28].mxu0 }
 0x11a   :  { %v3013_v33 = vpack.c.bf16 %v3527_v30, %v3527_v30  ;;  %v1085_v41 = vpop.f32.mrb[29].mxu0  ;;  %v2567_v34 = vadd.f32 %v2566_v31, %v2565_v12  ;;  %v2180_v36 = vadd.f32 %v2179_v32, %v2178_v28  ;;  %v2417_v53 = vmul.f32 %v3527_v30, %v3527_v30 }
 0x11b   :  { %v3011_v35 = vpack.c.bf16 %v1085_v41, %v1085_v41  ;;  %v2181_v58 = vsel %vm2125_vm2, %v1085_v41, 0.0  ;;  %v3528_v16 = vpop.f32.mrb[30].mxu0  ;;  %v2415_v37 = vmul.f32 %v1085_v41, %v1085_v41  ;;  %v2185_v61 = vsel %vm2125_vm2, %v3527_v30, 0.0 }
 0x11c   :  { %2027 = vst.msk [vmem:[%s5467_s4 + $0x78] sm:$0xf] %vm1996_vm1, %v3013_v33  ;;  %v3014_v38 = vpack.c.bf16 %v3528_v16, %v3528_v16  ;;  %v1088_v39 = vpop.f32.mrb[31].mxu0  ;;  %v2182_v40 = vadd.f32 %v2181_v58, %v2180_v36  ;;  %v2569_v2 = vadd.f32 %v2568_v48, %v2567_v34  ;;  %v2418_v3 = vmul.f32 %v3528_v16, %v3528_v16 }
 0x11d   :  { %2025 = vst.msk [vmem:[%s5467_s4 + $0x70] sm:$0xf] %vm1996_vm1, %v3011_v35  ;;  %v3012_v50 = vpack.c.bf16 %v1088_v39, %v1088_v39  ;;  %v2570_v1 = vsel %vm2125_vm2, %v2415_v37, 0.0  ;;  %v2183_v6 = vsel %vm2125_vm2, %v1088_v39, 0.0  ;;  %v2416_v29 = vmul.f32 %v1088_v39, %v1088_v39 }
 0x11e   :  { %2028 = vst.msk [vmem:[%s5467_s4 + $0x7c] sm:$0xf] %vm1996_vm1, %v3014_v38  ;;  %v2571_v42 = vadd.f32 %v2570_v1, %v2569_v2  ;;  %v2184_v43 = vadd.f32 %v2183_v6, %v2182_v40  ;;  %v2574_v0 = vsel %vm2125_vm2, %v2417_v53, 0.0  ;;  %v2187_v46 = vsel %vm2125_vm2, %v3528_v16, 0.0 }
 0x11f   :  { %2026 = vst.msk [vmem:[%s5467_s4 + $0x74] sm:$0xf] %vm1996_vm1, %v3012_v50  ;;  %v2572_v8 = vsel %vm2125_vm2, %v2416_v29, 0.0  ;;  %v2576_v57 = vsel %vm2125_vm2, %v2418_v3, 0.0 }
 0x120   :  { %v2186_v20 = vadd.f32 %v2185_v61, %v2184_v43  ;;  %v2573_v44 = vadd.f32 %v2572_v8, %v2571_v42 }
 0x121   :  { %v3531_v45 = vpop.f32.mrb[32].mxu0 }
 0x122   :  { %v3017_v47 = vpack.c.bf16 %v3531_v45, %v3531_v45  ;;  %v1101_v49 = vpop.f32.mrb[33].mxu0  ;;  %v2575_v51 = vadd.f32 %v2574_v0, %v2573_v44  ;;  %v2188_v54 = vadd.f32 %v2187_v46, %v2186_v20  ;;  %v2421_v13 = vmul.f32 %v3531_v45, %v3531_v45 }
 0x123   :  { %v3015_v52 = vpack.c.bf16 %v1101_v49, %v1101_v49  ;;  %v2189_v55 = vsel %vm2125_vm2, %v1101_v49, 0.0  ;;  %v3532_v56 = vpop.f32.mrb[34].mxu0  ;;  %v2419_v62 = vmul.f32 %v1101_v49, %v1101_v49  ;;  %v2193_v19 = vsel %vm2125_vm2, %v3531_v45, 0.0  ;;  %v4457_v9 = vpop.f32.mrb[0].mxu1 }
 0x124   :  { %2031 = vst.msk [vmem:[%s5467_s4 + $0x88] sm:$0xf] %vm1996_vm1, %v3017_v47  ;;  %v3018_v63 = vpack.c.bf16 %v3532_v56, %v3532_v56  ;;  %v1104_v4 = vpop.f32.mrb[35].mxu0  ;;  %v2190_v5 = vadd.f32 %v2189_v55, %v2188_v54  ;;  %v2577_v7 = vadd.f32 %v2576_v57, %v2575_v51  ;;  %v2422_v21 = vmul.f32 %v3532_v56, %v3532_v56  ;;  %v4463_v12 = vpop.f32.mrb[1].mxu1 }
 0x125   :  { %2029 = vst.msk [vmem:[%s5467_s4 + $0x80] sm:$0xf] %vm1996_vm1, %v3015_v52  ;;  %v3016_v10 = vpack.c.bf16 %v1104_v4, %v1104_v4  ;;  %v2578_v14 = vsel %vm2125_vm2, %v2419_v62, 0.0  ;;  %v2191_v15 = vsel %vm2125_vm2, %v1104_v4, 0.0  ;;  %v2420_v18 = vmul.f32 %v1104_v4, %v1104_v4  ;;  %v4466_v34 = vpop.f32.mrb[2].mxu1 }
 0x126   :  { %2032 = vst.msk [vmem:[%s5467_s4 + $0x8c] sm:$0xf] %vm1996_vm1, %v3018_v63  ;;  %v2579_v17 = vadd.f32 %v2578_v14, %v2577_v7  ;;  %v2192_v59 = vadd.f32 %v2191_v15, %v2190_v5  ;;  %v2582_v25 = vsel %vm2125_vm2, %v2421_v13, 0.0  ;;  %v2195_v26 = vsel %vm2125_vm2, %v3532_v56, 0.0  ;;  %v4477_v48 = vpop.f32.mrb[3].mxu1 }
 0x127   :  { %2030 = vst.msk [vmem:[%s5467_s4 + $0x84] sm:$0xf] %vm1996_vm1, %v3016_v10  ;;  %v2580_v22 = vsel %vm2125_vm2, %v2420_v18, 0.0  ;;  %v3049_v28 = vpack.c.bf16 %v4457_v9, %v4457_v9  ;;  %v2584_v35 = vsel %vm2125_vm2, %v2422_v21, 0.0  ;;  %v3047_v61 = vpack.c.bf16 %v4463_v12, %v4463_v12 }
 0x128   :  { %v2194_v23 = vadd.f32 %v2193_v19, %v2192_v59  ;;  %v2581_v24 = vadd.f32 %v2580_v22, %v2579_v17  ;;  %v3050_v44 = vpack.c.bf16 %v4466_v34, %v4466_v34 }
 0x129   :  { %v3535_v60 = vpop.f32.mrb[36].mxu0  ;;  %2063 = vst.msk [vmem:[%s5467_s4 + $0x108] sm:$0xf] %vm1996_vm1, %v3049_v28  ;;  %2061 = vst.msk [vmem:[%s5467_s4 + $0x100] sm:$0xf] %vm1996_vm1, %v3047_v61 }
 0x12a   :  { %v3021_v27 = vpack.c.bf16 %v3535_v60, %v3535_v60  ;;  %v1117_v11 = vpop.f32.mrb[37].mxu0  ;;  %v2583_v30 = vadd.f32 %v2582_v25, %v2581_v24  ;;  %v2196_v32 = vadd.f32 %v2195_v26, %v2194_v23  ;;  %v2425_v40 = vmul.f32 %v3535_v60, %v3535_v60  ;;  %2064 = vst.msk [vmem:[%s5467_s4 + $0x10c] sm:$0xf] %vm1996_vm1, %v3050_v44 }
 0x12b   :  { %v3019_v31 = vpack.c.bf16 %v1117_v11, %v1117_v11  ;;  %v2197_v33 = vsel %vm2125_vm2, %v1117_v11, 0.0  ;;  %v3536_v41 = vpop.f32.mrb[38].mxu0  ;;  %v2423_v36 = vmul.f32 %v1117_v11, %v1117_v11  ;;  %v2201_v29 = vsel %vm2125_vm2, %v3535_v60, 0.0  ;;  %v4499_v45 = vpop.f32.mrb[4].mxu1 }
 0x12c   :  { %2035 = vst.msk [vmem:[%s5467_s4 + $0x98] sm:$0xf] %vm1996_vm1, %v3021_v27  ;;  %v3022_v58 = vpack.c.bf16 %v3536_v41, %v3536_v41  ;;  %v1120_v16 = vpop.f32.mrb[39].mxu0  ;;  %v2198_v37 = vadd.f32 %v2197_v33, %v2196_v32  ;;  %v2585_v38 = vadd.f32 %v2584_v35, %v2583_v30  ;;  %v2426_v42 = vmul.f32 %v3536_v41, %v3536_v41  ;;  %v4507_v51 = vpop.f32.mrb[5].mxu1 }
 0x12d   :  { %2033 = vst.msk [vmem:[%s5467_s4 + $0x90] sm:$0xf] %vm1996_vm1, %v3019_v31  ;;  %v3020_v39 = vpack.c.bf16 %v1120_v16, %v1120_v16  ;;  %v2586_v2 = vsel %vm2125_vm2, %v2423_v36, 0.0  ;;  %v2199_v50 = vsel %vm2125_vm2, %v1120_v16, 0.0  ;;  %v2424_v53 = vmul.f32 %v1120_v16, %v1120_v16  ;;  %v4514_v62 = vpop.f32.mrb[6].mxu1 }
 0x12e   :  { %2036 = vst.msk [vmem:[%s5467_s4 + $0x9c] sm:$0xf] %vm1996_vm1, %v3022_v58  ;;  %v2587_v1 = vadd.f32 %v2586_v2, %v2585_v38  ;;  %v2200_v6 = vadd.f32 %v2199_v50, %v2198_v37  ;;  %v2590_v0 = vsel %vm2125_vm2, %v2425_v40, 0.0  ;;  %v2203_v46 = vsel %vm2125_vm2, %v3536_v41, 0.0  ;;  %v4521_v10 = vpop.f32.mrb[7].mxu1 }
 0x12f   :  { %2034 = vst.msk [vmem:[%s5467_s4 + $0x94] sm:$0xf] %vm1996_vm1, %v3020_v39  ;;  %v2588_v43 = vsel %vm2125_vm2, %v2424_v53, 0.0  ;;  %v2592_v63 = vsel %vm2125_vm2, %v2426_v42, 0.0  ;;  %v3048_v25 = vpack.c.bf16 %v4477_v48, %v4477_v48  ;;  %v3053_v28 = vpack.c.bf16 %v4499_v45, %v4499_v45 }
 0x130   :  { %v2202_v3 = vadd.f32 %v2201_v29, %v2200_v6  ;;  %v2589_v8 = vadd.f32 %v2588_v43, %v2587_v1 }
 0x131   :  { %v3539_v20 = vpop.f32.mrb[40].mxu0  ;;  %2062 = vst.msk [vmem:[%s5467_s4 + $0x104] sm:$0xf] %vm1996_vm1, %v3048_v25  ;;  %2067 = vst.msk [vmem:[%s5467_s4 + $0x118] sm:$0xf] %vm1996_vm1, %v3053_v28 }
 0x132   :  { %v3025_v47 = vpack.c.bf16 %v3539_v20, %v3539_v20  ;;  %v1133_v49 = vpop.f32.mrb[41].mxu0  ;;  %v2591_v52 = vadd.f32 %v2590_v0, %v2589_v8  ;;  %v2204_v55 = vadd.f32 %v2203_v46, %v2202_v3  ;;  %v2429_v18 = vmul.f32 %v3539_v20, %v3539_v20 }
 0x133   :  { %v3023_v54 = vpack.c.bf16 %v1133_v49, %v1133_v49  ;;  %v2205_v56 = vsel %vm2125_vm2, %v1133_v49, 0.0  ;;  %v3540_v57 = vpop.f32.mrb[42].mxu0  ;;  %v2427_v4 = vmul.f32 %v1133_v49, %v1133_v49  ;;  %v2209_v23 = vsel %vm2125_vm2, %v3539_v20, 0.0  ;;  %v4543_v30 = vpop.f32.mrb[8].mxu1 }
 0x134   :  { %2039 = vst.msk [vmem:[%s5467_s4 + $0xa8] sm:$0xf] %vm1996_vm1, %v3025_v47  ;;  %v3026_v5 = vpack.c.bf16 %v3540_v57, %v3540_v57  ;;  %v1136_v7 = vpop.f32.mrb[43].mxu0  ;;  %v2206_v13 = vadd.f32 %v2205_v56, %v2204_v55  ;;  %v2593_v14 = vadd.f32 %v2592_v63, %v2591_v52  ;;  %v2430_v24 = vmul.f32 %v3540_v57, %v3540_v57  ;;  %v4551_v35 = vpop.f32.mrb[9].mxu1 }
 0x135   :  { %2037 = vst.msk [vmem:[%s5467_s4 + $0xa0] sm:$0xf] %vm1996_vm1, %v3023_v54  ;;  %v3024_v15 = vpack.c.bf16 %v1136_v7, %v1136_v7  ;;  %v2594_v17 = vsel %vm2125_vm2, %v2427_v4, 0.0  ;;  %v2207_v59 = vsel %vm2125_vm2, %v1136_v7, 0.0  ;;  %v2428_v19 = vmul.f32 %v1136_v7, %v1136_v7  ;;  %v4558_v39 = vpop.f32.mrb[10].mxu1 }
 0x136   :  { %2040 = vst.msk [vmem:[%s5467_s4 + $0xac] sm:$0xf] %vm1996_vm1, %v3026_v5  ;;  %v2595_v21 = vadd.f32 %v2594_v17, %v2593_v14  ;;  %v2208_v22 = vadd.f32 %v2207_v59, %v2206_v13  ;;  %v2598_v31 = vsel %vm2125_vm2, %v2429_v18, 0.0  ;;  %v2211_v32 = vsel %vm2125_vm2, %v3540_v57, 0.0  ;;  %v4565_v1 = vpop.f32.mrb[11].mxu1 }
 0x137   :  { %2038 = vst.msk [vmem:[%s5467_s4 + $0xa4] sm:$0xf] %vm1996_vm1, %v3024_v15  ;;  %v2596_v60 = vsel %vm2125_vm2, %v2428_v19, 0.0  ;;  %v2600_v40 = vsel %vm2125_vm2, %v2430_v24, 0.0  ;;  %v3051_v49 = vpack.c.bf16 %v4507_v51, %v4507_v51  ;;  %v3054_v56 = vpack.c.bf16 %v4514_v62, %v4514_v62 }
 0x138   :  { %v2210_v26 = vadd.f32 %v2209_v23, %v2208_v22  ;;  %v2597_v27 = vadd.f32 %v2596_v60, %v2595_v21 }
 0x139   :  { %v3543_v11 = vpop.f32.mrb[44].mxu0  ;;  %2065 = vst.msk [vmem:[%s5467_s4 + $0x110] sm:$0xf] %vm1996_vm1, %v3051_v49  ;;  %2068 = vst.msk [vmem:[%s5467_s4 + $0x11c] sm:$0xf] %vm1996_vm1, %v3054_v56 }
 0x13a   :  { %v3029_v33 = vpack.c.bf16 %v3543_v11, %v3543_v11  ;;  %v1149_v41 = vpop.f32.mrb[45].mxu0  ;;  %v2599_v36 = vadd.f32 %v2598_v31, %v2597_v27  ;;  %v2212_v16 = vadd.f32 %v2211_v32, %v2210_v26  ;;  %v2433_v43 = vmul.f32 %v3543_v11, %v3543_v11 }
 0x13b   :  { %v3027_v58 = vpack.c.bf16 %v1149_v41, %v1149_v41  ;;  %v2213_v37 = vsel %vm2125_vm2, %v1149_v41, 0.0  ;;  %v3544_v38 = vpop.f32.mrb[46].mxu0  ;;  %v2431_v2 = vmul.f32 %v1149_v41, %v1149_v41  ;;  %v2217_v0 = vsel %vm2125_vm2, %v3543_v11, 0.0  ;;  %v4587_v57 = vpop.f32.mrb[12].mxu1 }
 0x13c   :  { %2043 = vst.msk [vmem:[%s5467_s4 + $0xb8] sm:$0xf] %vm1996_vm1, %v3029_v33  ;;  %v3030_v50 = vpack.c.bf16 %v3544_v38, %v3544_v38  ;;  %v1152_v53 = vpop.f32.mrb[47].mxu0  ;;  %v2214_v6 = vadd.f32 %v2213_v37, %v2212_v16  ;;  %v2601_v29 = vadd.f32 %v2600_v40, %v2599_v36  ;;  %v2434_v46 = vmul.f32 %v3544_v38, %v3544_v38  ;;  %v4595_v13 = vpop.f32.mrb[13].mxu1 }
 0x13d   :  { %2041 = vst.msk [vmem:[%s5467_s4 + $0xb0] sm:$0xf] %vm1996_vm1, %v3027_v58  ;;  %v3028_v42 = vpack.c.bf16 %v1152_v53, %v1152_v53  ;;  %v2602_v61 = vsel %vm2125_vm2, %v2431_v2, 0.0  ;;  %v2215_v3 = vsel %vm2125_vm2, %v1152_v53, 0.0  ;;  %v2432_v8 = vmul.f32 %v1152_v53, %v1152_v53  ;;  %v4602_v19 = vpop.f32.mrb[14].mxu1 }
 0x13e   :  { %2044 = vst.msk [vmem:[%s5467_s4 + $0xbc] sm:$0xf] %vm1996_vm1, %v3030_v50  ;;  %v2603_v20 = vadd.f32 %v2602_v61, %v2601_v29  ;;  %v2216_v44 = vadd.f32 %v2215_v3, %v2214_v6  ;;  %v2606_v63 = vsel %vm2125_vm2, %v2433_v43, 0.0  ;;  %v2219_v4 = vsel %vm2125_vm2, %v3544_v38, 0.0  ;;  %v4609_v60 = vpop.f32.mrb[15].mxu1 }
 0x13f   :  { %2042 = vst.msk [vmem:[%s5467_s4 + $0xb4] sm:$0xf] %vm1996_vm1, %v3028_v42  ;;  %v2604_v47 = vsel %vm2125_vm2, %v2432_v8, 0.0  ;;  %v2608_v21 = vsel %vm2125_vm2, %v2434_v46, 0.0  ;;  %v3052_v37 = vpack.c.bf16 %v4521_v10, %v4521_v10  ;;  %v3057_v50 = vpack.c.bf16 %v4543_v30, %v4543_v30 }
 0x140   :  { %v2218_v52 = vadd.f32 %v2217_v0, %v2216_v44  ;;  %v2605_v54 = vadd.f32 %v2604_v47, %v2603_v20 }
 0x141   :  { %v3547_v55 = vpop.f32.mrb[48].mxu0  ;;  %2066 = vst.msk [vmem:[%s5467_s4 + $0x114] sm:$0xf] %vm1996_vm1, %v3052_v37  ;;  %2071 = vst.msk [vmem:[%s5467_s4 + $0x128] sm:$0xf] %vm1996_vm1, %v3057_v50 }
 0x142   :  { %v3033_v5 = vpack.c.bf16 %v3547_v55, %v3547_v55  ;;  %v1165_v7 = vpop.f32.mrb[49].mxu0  ;;  %v2607_v14 = vadd.f32 %v2606_v63, %v2605_v54  ;;  %v2220_v18 = vadd.f32 %v2219_v4, %v2218_v52  ;;  %v2437_v11 = vmul.f32 %v3547_v55, %v3547_v55 }
 0x143   :  { %v3031_v15 = vpack.c.bf16 %v1165_v7, %v1165_v7  ;;  %v2221_v17 = vsel %vm2125_vm2, %v1165_v7, 0.0  ;;  %v3548_v59 = vpop.f32.mrb[50].mxu0  ;;  %v2435_v22 = vmul.f32 %v1165_v7, %v1165_v7  ;;  %v2225_v36 = vsel %vm2125_vm2, %v3547_v55, 0.0  ;;  %v4631_v53 = vpop.f32.mrb[16].mxu1 }
 0x144   :  { %2047 = vst.msk [vmem:[%s5467_s4 + $0xc8] sm:$0xf] %vm1996_vm1, %v3033_v5  ;;  %v3034_v23 = vpack.c.bf16 %v3548_v59, %v3548_v59  ;;  %v1168_v24 = vpop.f32.mrb[51].mxu0  ;;  %v2222_v25 = vadd.f32 %v2221_v17, %v2220_v18  ;;  %v2609_v26 = vadd.f32 %v2608_v21, %v2607_v14  ;;  %v2438_v58 = vmul.f32 %v3548_v59, %v3548_v59  ;;  %v4639_v61 = vpop.f32.mrb[17].mxu1 }
 0x145   :  { %2045 = vst.msk [vmem:[%s5467_s4 + $0xc0] sm:$0xf] %vm1996_vm1, %v3031_v15  ;;  %v3032_v27 = vpack.c.bf16 %v1168_v24, %v1168_v24  ;;  %v2610_v28 = vsel %vm2125_vm2, %v2435_v22, 0.0  ;;  %v2223_v31 = vsel %vm2125_vm2, %v1168_v24, 0.0  ;;  %v2436_v32 = vmul.f32 %v1168_v24, %v1168_v24  ;;  %v4646_v46 = vpop.f32.mrb[18].mxu1 }
 0x146   :  { %2048 = vst.msk [vmem:[%s5467_s4 + $0xcc] sm:$0xf] %vm1996_vm1, %v3034_v23  ;;  %v2611_v33 = vadd.f32 %v2610_v28, %v2609_v26  ;;  %v2224_v41 = vadd.f32 %v2223_v31, %v2222_v25  ;;  %v2614_v6 = vsel %vm2125_vm2, %v2437_v11, 0.0  ;;  %v2227_v29 = vsel %vm2125_vm2, %v3548_v59, 0.0  ;;  %v4653_v55 = vpop.f32.mrb[19].mxu1 }
 0x147   :  { %2046 = vst.msk [vmem:[%s5467_s4 + $0xc4] sm:$0xf] %vm1996_vm1, %v3032_v27  ;;  %v2612_v16 = vsel %vm2125_vm2, %v2436_v32, 0.0  ;;  %v2616_v47 = vsel %vm2125_vm2, %v2438_v58, 0.0  ;;  %v3055_v23 = vpack.c.bf16 %v4551_v35, %v4551_v35  ;;  %v3058_v27 = vpack.c.bf16 %v4558_v39, %v4558_v39 }
 0x148   :  { %v2226_v38 = vadd.f32 %v2225_v36, %v2224_v41  ;;  %v2613_v40 = vadd.f32 %v2612_v16, %v2611_v33 }
 0x149   :  { %v3551_v2 = vpop.f32.mrb[52].mxu0  ;;  %2069 = vst.msk [vmem:[%s5467_s4 + $0x120] sm:$0xf] %vm1996_vm1, %v3055_v23  ;;  %2072 = vst.msk [vmem:[%s5467_s4 + $0x12c] sm:$0xf] %vm1996_vm1, %v3058_v27 }
 0x14a   :  { %v3037_v42 = vpack.c.bf16 %v3551_v2, %v3551_v2  ;;  %v1181_v43 = vpop.f32.mrb[53].mxu0  ;;  %v2615_v3 = vadd.f32 %v2614_v6, %v2613_v40  ;;  %v2228_v20 = vadd.f32 %v2227_v29, %v2226_v38  ;;  %v2441_v5 = vmul.f32 %v3551_v2, %v3551_v2 }
 0x14b   :  { %v3035_v8 = vpack.c.bf16 %v1181_v43, %v1181_v43  ;;  %v2229_v44 = vsel %vm2125_vm2, %v1181_v43, 0.0  ;;  %v3552_v0 = vpop.f32.mrb[54].mxu0  ;;  %v2439_v49 = vmul.f32 %v1181_v43, %v1181_v43  ;;  %v2233_v59 = vsel %vm2125_vm2, %v3551_v2, 0.0  ;;  %v4675_v11 = vpop.f32.mrb[20].mxu1 }
 0x14c   :  { %2051 = vst.msk [vmem:[%s5467_s4 + $0xd8] sm:$0xf] %vm1996_vm1, %v3037_v42  ;;  %v3038_v52 = vpack.c.bf16 %v3552_v0, %v3552_v0  ;;  %v1184_v54 = vpop.f32.mrb[55].mxu0  ;;  %v2230_v56 = vadd.f32 %v2229_v44, %v2228_v20  ;;  %v2617_v63 = vadd.f32 %v2616_v47, %v2615_v3  ;;  %v2442_v21 = vmul.f32 %v3552_v0, %v3552_v0  ;;  %v4683_v41 = vpop.f32.mrb[21].mxu1 }
 0x14d   :  { %2049 = vst.msk [vmem:[%s5467_s4 + $0xd0] sm:$0xf] %vm1996_vm1, %v3035_v8  ;;  %v3036_v4 = vpack.c.bf16 %v1184_v54, %v1184_v54  ;;  %v2618_v7 = vsel %vm2125_vm2, %v2439_v49, 0.0  ;;  %v2231_v14 = vsel %vm2125_vm2, %v1184_v54, 0.0  ;;  %v2440_v15 = vmul.f32 %v1184_v54, %v1184_v54  ;;  %v4690_v40 = vpop.f32.mrb[22].mxu1 }
 0x14e   :  { %2052 = vst.msk [vmem:[%s5467_s4 + $0xdc] sm:$0xf] %vm1996_vm1, %v3038_v52  ;;  %v2619_v18 = vadd.f32 %v2618_v7, %v2617_v63  ;;  %v2232_v17 = vadd.f32 %v2231_v14, %v2230_v56  ;;  %v2622_v28 = vsel %vm2125_vm2, %v2441_v5, 0.0  ;;  %v2235_v31 = vsel %vm2125_vm2, %v3552_v0, 0.0  ;;  %v4697_v42 = vpop.f32.mrb[23].mxu1 }
 0x14f   :  { %2050 = vst.msk [vmem:[%s5467_s4 + $0xd4] sm:$0xf] %vm1996_vm1, %v3036_v4  ;;  %v2620_v22 = vsel %vm2125_vm2, %v2440_v15, 0.0  ;;  %v2624_v2 = vsel %vm2125_vm2, %v2442_v21, 0.0  ;;  %v3056_v4 = vpack.c.bf16 %v4565_v1, %v4565_v1  ;;  %v3061_v15 = vpack.c.bf16 %v4587_v57, %v4587_v57 }
 0x150   :  { %v2234_v24 = vadd.f32 %v2233_v59, %v2232_v17  ;;  %v2621_v25 = vadd.f32 %v2620_v22, %v2619_v18 }
 0x151   :  { %v3555_v26 = vpop.f32.mrb[56].mxu0  ;;  %2070 = vst.msk [vmem:[%s5467_s4 + $0x124] sm:$0xf] %vm1996_vm1, %v3056_v4  ;;  %2075 = vst.msk [vmem:[%s5467_s4 + $0x138] sm:$0xf] %vm1996_vm1, %v3061_v15 }
 0x152   :  { %v3041_v32 = vpack.c.bf16 %v3555_v26, %v3555_v26  ;;  %v1197_v33 = vpop.f32.mrb[57].mxu0  ;;  %v2623_v36 = vadd.f32 %v2622_v28, %v2621_v25  ;;  %v2236_v16 = vadd.f32 %v2235_v31, %v2234_v24  ;;  %v2445_v20 = vmul.f32 %v3555_v26, %v3555_v26 }
 0x153   :  { %v3039_v58 = vpack.c.bf16 %v1197_v33, %v1197_v33  ;;  %v2237_v37 = vsel %vm2125_vm2, %v1197_v33, 0.0  ;;  %v3556_v38 = vpop.f32.mrb[58].mxu0  ;;  %v2443_v50 = vmul.f32 %v1197_v33, %v1197_v33  ;;  %v2241_v54 = vsel %vm2125_vm2, %v3555_v26, 0.0  ;;  %v4719_v18 = vpop.f32.mrb[24].mxu1 }
 0x154   :  { %2055 = vst.msk [vmem:[%s5467_s4 + $0xe8] sm:$0xf] %vm1996_vm1, %v3041_v32  ;;  %v3042_v6 = vpack.c.bf16 %v3556_v38, %v3556_v38  ;;  %v1200_v29 = vpop.f32.mrb[59].mxu0  ;;  %v2238_v43 = vadd.f32 %v2237_v37, %v2236_v16  ;;  %v2625_v3 = vadd.f32 %v2624_v2, %v2623_v36  ;;  %v2446_v56 = vmul.f32 %v3556_v38, %v3556_v38  ;;  %v4727_v23 = vpop.f32.mrb[25].mxu1 }
 0x155   :  { %2053 = vst.msk [vmem:[%s5467_s4 + $0xe0] sm:$0xf] %vm1996_vm1, %v3039_v58  ;;  %v3040_v8 = vpack.c.bf16 %v1200_v29, %v1200_v29  ;;  %v2626_v44 = vsel %vm2125_vm2, %v2443_v50, 0.0  ;;  %v2239_v0 = vsel %vm2125_vm2, %v1200_v29, 0.0  ;;  %v2444_v47 = vmul.f32 %v1200_v29, %v1200_v29  ;;  %v4734_v31 = vpop.f32.mrb[26].mxu1 }
 0x156   :  { %2056 = vst.msk [vmem:[%s5467_s4 + $0xec] sm:$0xf] %vm1996_vm1, %v3042_v6  ;;  %v2627_v49 = vadd.f32 %v2626_v44, %v2625_v3  ;;  %v2240_v52 = vadd.f32 %v2239_v0, %v2238_v43  ;;  %v2630_v17 = vsel %vm2125_vm2, %v2445_v20, 0.0  ;;  %v2243_v59 = vsel %vm2125_vm2, %v3556_v38, 0.0  ;;  %v4741_v16 = vpop.f32.mrb[27].mxu1 }
 0x157   :  { %2054 = vst.msk [vmem:[%s5467_s4 + $0xe4] sm:$0xf] %vm1996_vm1, %v3040_v8  ;;  %v2628_v63 = vsel %vm2125_vm2, %v2444_v47, 0.0  ;;  %v2632_v32 = vsel %vm2125_vm2, %v2446_v56, 0.0  ;;  %v2451_v20 = vmul.f32 %v4463_v12, %v4463_v12  ;;  %v3062_v56 = vpack.c.bf16 %v4602_v19, %v4602_v19 }
 0x158   :  { %v2242_v5 = vadd.f32 %v2241_v54, %v2240_v52  ;;  %v2629_v7 = vadd.f32 %v2628_v63, %v2627_v49  ;;  %v3059_v49 = vpack.c.bf16 %v4595_v13, %v4595_v13 }
 0x159   :  { %v3559_v14 = vpop.f32.mrb[60].mxu0  ;;  %2076 = vst.msk [vmem:[%s5467_s4 + $0x13c] sm:$0xf] %vm1996_vm1, %v3062_v56 }
 0x15a   :  { %v3045_v21 = vpack.c.bf16 %v3559_v14, %v3559_v14  ;;  %v1213_v22 = vpop.f32.mrb[61].mxu0  ;;  %v2631_v24 = vadd.f32 %v2630_v17, %v2629_v7  ;;  %v2244_v26 = vadd.f32 %v2243_v59, %v2242_v5  ;;  %v2449_v50 = vmul.f32 %v3559_v14, %v3559_v14  ;;  %2073 = vst.msk [vmem:[%s5467_s4 + $0x130] sm:$0xf] %vm1996_vm1, %v3059_v49 }
 0x15b   :  { %v3043_v25 = vpack.c.bf16 %v1213_v22, %v1213_v22  ;;  %v2245_v27 = vsel %vm2125_vm2, %v1213_v22, 0.0  ;;  %v3560_v28 = vpop.f32.mrb[62].mxu0  ;;  %v2447_v33 = vmul.f32 %v1213_v22, %v1213_v22  ;;  %v2249_v44 = vsel %vm2125_vm2, %v3559_v14, 0.0  ;;  %v4765_v63 = vpop.f32.mrb[28].mxu1 }
 0x15c   :  { %2059 = vst.msk [vmem:[%s5467_s4 + $0xf8] sm:$0xf] %vm1996_vm1, %v3045_v21  ;;  %v3046_v36 = vpack.c.bf16 %v3560_v28, %v3560_v28  ;;  %v1216_v58 = vpop.f32.mrb[63].mxu0  ;;  %v2246_v37 = vadd.f32 %v2245_v27, %v2244_v26  ;;  %v2633_v38 = vadd.f32 %v2632_v32, %v2631_v24  ;;  %v2450_v0 = vmul.f32 %v3560_v28, %v3560_v28  ;;  %v4777_v15 = vpop.f32.mrb[29].mxu1 }
 0x15d   :  { %2057 = vst.msk [vmem:[%s5467_s4 + $0xf0] sm:$0xf] %vm1996_vm1, %v3043_v25  ;;  %v3044_v2 = vpack.c.bf16 %v1216_v58, %v1216_v58  ;;  %v2634_v6 = vsel %vm2125_vm2, %v2447_v33, 0.0  ;;  %v2247_v29 = vsel %vm2125_vm2, %v1216_v58, 0.0  ;;  %v2448_v43 = vmul.f32 %v1216_v58, %v1216_v58  ;;  %v4783_v21 = vpop.f32.mrb[30].mxu1 }
 0x15e   :  { %2060 = vst.msk [vmem:[%s5467_s4 + $0xfc] sm:$0xf] %vm1996_vm1, %v3046_v36  ;;  %v2635_v3 = vadd.f32 %v2634_v6, %v2633_v38  ;;  %v2248_v8 = vadd.f32 %v2247_v29, %v2246_v37  ;;  %v2638_v4 = vsel %vm2125_vm2, %v2449_v50, 0.0  ;;  %v2251_v5 = vsel %vm2125_vm2, %v3560_v28, 0.0  ;;  %v4795_v26 = vpop.f32.mrb[31].mxu1 }
 0x15f   :  { %2058 = vst.msk [vmem:[%s5467_s4 + $0xf4] sm:$0xf] %vm1996_vm1, %v3044_v2  ;;  %v2636_v47 = vsel %vm2125_vm2, %v2448_v43, 0.0  ;;  %v2253_v7 = vsel %vm2125_vm2, %v4463_v12, 0.0  ;;  %v3060_v14 = vpack.c.bf16 %v4609_v60, %v4609_v60  ;;  %v2640_v12 = vsel %vm2125_vm2, %v2450_v0, 0.0 }
 0x160   :  { %v2250_v52 = vadd.f32 %v2249_v44, %v2248_v8  ;;  %v2637_v54 = vadd.f32 %v2636_v47, %v2635_v3  ;;  %v2642_v22 = vsel %vm2125_vm2, %v2451_v20, 0.0  ;;  %v2452_v24 = vmul.f32 %v4477_v48, %v4477_v48 }
 0x161   :  { %2074 = vst.msk [vmem:[%s5467_s4 + $0x134] sm:$0xf] %vm1996_vm1, %v3060_v14  ;;  %v3065_v25 = vpack.c.bf16 %v4631_v53, %v4631_v53  ;;  %v3063_v32 = vpack.c.bf16 %v4639_v61, %v4639_v61  ;;  %v2453_v33 = vmul.f32 %v4457_v9, %v4457_v9  ;;  %v2255_v36 = vsel %vm2125_vm2, %v4477_v48, 0.0 }
 0x162   :  { %v2252_v17 = vadd.f32 %v2251_v5, %v2250_v52  ;;  %v2639_v59 = vadd.f32 %v2638_v4, %v2637_v54  ;;  %v3066_v58 = vpack.c.bf16 %v4646_v46, %v4646_v46  ;;  %v2257_v37 = vsel %vm2125_vm2, %v4457_v9, 0.0 }
 0x163   :  { %2079 = vst.msk [vmem:[%s5467_s4 + $0x148] sm:$0xf] %vm1996_vm1, %v3065_v25  ;;  %2077 = vst.msk [vmem:[%s5467_s4 + $0x140] sm:$0xf] %vm1996_vm1, %v3063_v32  ;;  %v2454_v48 = vmul.f32 %v4466_v34, %v4466_v34  ;;  %v2644_v50 = vsel %vm2125_vm2, %v2452_v24, 0.0  ;;  %v2455_v6 = vmul.f32 %v4507_v51, %v4507_v51  ;;  %v3064_v9 = vpack.c.bf16 %v4653_v55, %v4653_v55  ;;  %v4828_v8 = vpop.f32.mrb[32].mxu1 }
 0x164   :  { %v2641_v27 = vadd.f32 %v2640_v12, %v2639_v59  ;;  %v2254_v28 = vadd.f32 %v2253_v7, %v2252_v17  ;;  %2080 = vst.msk [vmem:[%s5467_s4 + $0x14c] sm:$0xf] %vm1996_vm1, %v3066_v58  ;;  %v3069_v3 = vpack.c.bf16 %v4675_v11, %v4675_v11  ;;  %v2646_v20 = vsel %vm2125_vm2, %v2453_v33, 0.0  ;;  %v4841_v49 = vpop.f32.mrb[33].mxu1 }
 0x165   :  { %v2259_v44 = vsel %vm2125_vm2, %v4466_v34, 0.0  ;;  %v2261_v0 = vsel %vm2125_vm2, %v4507_v51, 0.0  ;;  %2078 = vst.msk [vmem:[%s5467_s4 + $0x144] sm:$0xf] %vm1996_vm1, %v3064_v9  ;;  %v3067_v47 = vpack.c.bf16 %v4683_v41, %v4683_v41  ;;  %v4847_v34 = vpop.f32.mrb[34].mxu1  ;;  %v2648_v51 = vsel %vm2125_vm2, %v2454_v48, 0.0 }
 0x166   :  { %v2643_v38 = vadd.f32 %v2642_v22, %v2641_v27  ;;  %v2256_v2 = vadd.f32 %v2255_v36, %v2254_v28  ;;  %2083 = vst.msk [vmem:[%s5467_s4 + $0x158] sm:$0xf] %vm1996_vm1, %v3069_v3  ;;  %v2650_v56 = vsel %vm2125_vm2, %v2455_v6, 0.0  ;;  %v2456_v4 = vmul.f32 %v4521_v10, %v4521_v10  ;;  %v4859_v7 = vpop.f32.mrb[35].mxu1 }
 0x167   :  { %2081 = vst.msk [vmem:[%s5467_s4 + $0x150] sm:$0xf] %vm1996_vm1, %v3067_v47  ;;  %v3070_v5 = vpack.c.bf16 %v4690_v40, %v4690_v40  ;;  %v3068_v59 = vpack.c.bf16 %v4697_v42, %v4697_v42  ;;  %v2457_v12 = vmul.f32 %v4499_v45, %v4499_v45  ;;  %v2263_v22 = vsel %vm2125_vm2, %v4521_v10, 0.0 }
 0x168   :  { %v2258_v29 = vadd.f32 %v2257_v37, %v2256_v2  ;;  %v2645_v43 = vadd.f32 %v2644_v50, %v2643_v38  ;;  %v3073_v24 = vpack.c.bf16 %v4719_v18, %v4719_v18  ;;  %v2265_v25 = vsel %vm2125_vm2, %v4499_v45, 0.0 }
 0x169   :  { %2084 = vst.msk [vmem:[%s5467_s4 + $0x15c] sm:$0xf] %vm1996_vm1, %v3070_v5  ;;  %2082 = vst.msk [vmem:[%s5467_s4 + $0x154] sm:$0xf] %vm1996_vm1, %v3068_v59  ;;  %v2458_v10 = vmul.f32 %v4514_v62, %v4514_v62  ;;  %v2652_v32 = vsel %vm2125_vm2, %v2456_v4, 0.0  ;;  %v2459_v33 = vmul.f32 %v4551_v35, %v4551_v35  ;;  %v3071_v45 = vpack.c.bf16 %v4727_v23, %v4727_v23 }
 0x16a   :  { %v2647_v52 = vadd.f32 %v2646_v20, %v2645_v43  ;;  %v2260_v54 = vadd.f32 %v2259_v44, %v2258_v29  ;;  %2087 = vst.msk [vmem:[%s5467_s4 + $0x168] sm:$0xf] %vm1996_vm1, %v3073_v24  ;;  %v3074_v37 = vpack.c.bf16 %v4734_v31, %v4734_v31  ;;  %v2654_v2 = vsel %vm2125_vm2, %v2457_v12, 0.0 }
 0x16b   :  { %v4892_v38 = vpop.f32.mrb[36].mxu1  ;;  %v2267_v48 = vsel %vm2125_vm2, %v4514_v62, 0.0  ;;  %v2269_v50 = vsel %vm2125_vm2, %v4551_v35, 0.0  ;;  %2085 = vst.msk [vmem:[%s5467_s4 + $0x160] sm:$0xf] %vm1996_vm1, %v3071_v45  ;;  %v3072_v6 = vpack.c.bf16 %v4741_v16, %v4741_v16  ;;  %v2656_v35 = vsel %vm2125_vm2, %v2458_v10, 0.0 }
 0x16c   :  { %v2262_v14 = vadd.f32 %v2261_v0, %v2260_v54  ;;  %v2649_v17 = vadd.f32 %v2648_v51, %v2647_v52  ;;  %v4905_v9 = vpop.f32.mrb[37].mxu1  ;;  %2088 = vst.msk [vmem:[%s5467_s4 + $0x16c] sm:$0xf] %vm1996_vm1, %v3074_v37  ;;  %v2658_v3 = vsel %vm2125_vm2, %v2459_v33, 0.0  ;;  %v2460_v20 = vmul.f32 %v4565_v1, %v4565_v1 }
 0x16d   :  { %v4911_v62 = vpop.f32.mrb[38].mxu1  ;;  %2086 = vst.msk [vmem:[%s5467_s4 + $0x164] sm:$0xf] %vm1996_vm1, %v3072_v6  ;;  %v3077_v44 = vpack.c.bf16 %v4765_v63, %v4765_v63  ;;  %v3075_v54 = vpack.c.bf16 %v4777_v15, %v4777_v15  ;;  %v2461_v51 = vmul.f32 %v4543_v30, %v4543_v30  ;;  %v3078_v4 = vpack.c.bf16 %v4783_v21, %v4783_v21 }
 0x16e   :  { %v2651_v27 = vadd.f32 %v2650_v56, %v2649_v17  ;;  %v2264_v28 = vadd.f32 %v2263_v22, %v2262_v14  ;;  %v4923_v0 = vpop.f32.mrb[39].mxu1  ;;  %v2271_v56 = vsel %vm2125_vm2, %v4565_v1, 0.0  ;;  %v2273_v5 = vsel %vm2125_vm2, %v4543_v30, 0.0 }
 0x16f   :  { %2091 = vst.msk [vmem:[%s5467_s4 + $0x178] sm:$0xf] %vm1996_vm1, %v3077_v44  ;;  %2089 = vst.msk [vmem:[%s5467_s4 + $0x170] sm:$0xf] %vm1996_vm1, %v3075_v54  ;;  %v2462_v1 = vmul.f32 %v4558_v39, %v4558_v39  ;;  %v2660_v59 = vsel %vm2125_vm2, %v2460_v20, 0.0  ;;  %v2463_v12 = vmul.f32 %v4595_v13, %v4595_v13  ;;  %v3076_v30 = vpack.c.bf16 %v4795_v26, %v4795_v26 }
 0x170   :  { %v2266_v36 = vadd.f32 %v2265_v25, %v2264_v28  ;;  %v2653_v58 = vadd.f32 %v2652_v32, %v2651_v27  ;;  %2092 = vst.msk [vmem:[%s5467_s4 + $0x17c] sm:$0xf] %vm1996_vm1, %v3078_v4  ;;  %v3081_v25 = vpack.c.bf16 %v4828_v8, %v4828_v8  ;;  %v2662_v28 = vsel %vm2125_vm2, %v2461_v51, 0.0 }
 0x171   :  { %v2275_v10 = vsel %vm2125_vm2, %v4558_v39, 0.0  ;;  %v2277_v32 = vsel %vm2125_vm2, %v4595_v13, 0.0  ;;  %2090 = vst.msk [vmem:[%s5467_s4 + $0x174] sm:$0xf] %vm1996_vm1, %v3076_v30  ;;  %v3079_v33 = vpack.c.bf16 %v4841_v49, %v4841_v49  ;;  %v2664_v13 = vsel %vm2125_vm2, %v2462_v1, 0.0 }
 0x172   :  { %v2655_v29 = vadd.f32 %v2654_v2, %v2653_v58  ;;  %v2268_v43 = vadd.f32 %v2267_v48, %v2266_v36  ;;  %2095 = vst.msk [vmem:[%s5467_s4 + $0x188] sm:$0xf] %vm1996_vm1, %v3081_v25  ;;  %v2666_v37 = vsel %vm2125_vm2, %v2463_v12, 0.0  ;;  %v2464_v2 = vmul.f32 %v4609_v60, %v4609_v60 }
 0x173   :  { %v4956_v27 = vpop.f32.mrb[40].mxu1  ;;  %2093 = vst.msk [vmem:[%s5467_s4 + $0x180] sm:$0xf] %vm1996_vm1, %v3079_v33  ;;  %v3082_v48 = vpack.c.bf16 %v4847_v34, %v4847_v34  ;;  %v3085_v20 = vpack.c.bf16 %v4892_v38, %v4892_v38  ;;  %v2281_v44 = vsel %vm2125_vm2, %v4587_v57, 0.0  ;;  %v2467_v51 = vmul.f32 %v4639_v61, %v4639_v61 }
 0x174   :  { %v2270_v47 = vadd.f32 %v2269_v50, %v2268_v43  ;;  %v2657_v52 = vadd.f32 %v2656_v35, %v2655_v29  ;;  %v4969_v45 = vpop.f32.mrb[41].mxu1  ;;  %v3080_v43 = vpack.c.bf16 %v4859_v7, %v4859_v7  ;;  %v2465_v35 = vmul.f32 %v4587_v57, %v4587_v57 }
 0x175   :  { %v4975_v39 = vpop.f32.mrb[42].mxu1  ;;  %2096 = vst.msk [vmem:[%s5467_s4 + $0x18c] sm:$0xf] %vm1996_vm1, %v3082_v48  ;;  %v2668_v54 = vsel %vm2125_vm2, %v2464_v2, 0.0  ;;  %2099 = vst.msk [vmem:[%s5467_s4 + $0x198] sm:$0xf] %vm1996_vm1, %v3085_v20  ;;  %v3083_v57 = vpack.c.bf16 %v4905_v9, %v4905_v9  ;;  %v3084_v12 = vpack.c.bf16 %v4923_v0, %v4923_v0 }
 0x176   :  { %v2659_v14 = vadd.f32 %v2658_v3, %v2657_v52  ;;  %v2272_v17 = vadd.f32 %v2271_v56, %v2270_v47  ;;  %v4987_v50 = vpop.f32.mrb[43].mxu1  ;;  %v2279_v3 = vsel %vm2125_vm2, %v4609_v60, 0.0  ;;  %2094 = vst.msk [vmem:[%s5467_s4 + $0x184] sm:$0xf] %vm1996_vm1, %v3080_v43  ;;  %v2466_v60 = vmul.f32 %v4602_v19, %v4602_v19 }
 0x177   :  { %v2283_v1 = vsel %vm2125_vm2, %v4602_v19, 0.0  ;;  %2097 = vst.msk [vmem:[%s5467_s4 + $0x190] sm:$0xf] %vm1996_vm1, %v3083_v57  ;;  %v2674_v25 = vsel %vm2125_vm2, %v2467_v51, 0.0  ;;  %2098 = vst.msk [vmem:[%s5467_s4 + $0x194] sm:$0xf] %vm1996_vm1, %v3084_v12  ;;  %v3090_v2 = vpack.c.bf16 %v4975_v39, %v4975_v39 }
 0x178   :  { %v2274_v22 = vadd.f32 %v2273_v5, %v2272_v17  ;;  %v2661_v24 = vadd.f32 %v2660_v59, %v2659_v14  ;;  %v3086_v5 = vpack.c.bf16 %v4911_v62, %v4911_v62  ;;  %v2670_v17 = vsel %vm2125_vm2, %v2465_v35, 0.0 }
 0x179   :  { %v2285_v59 = vsel %vm2125_vm2, %v4639_v61, 0.0  ;;  %v2672_v61 = vsel %vm2125_vm2, %v2466_v60, 0.0  ;;  %v2289_v48 = vsel %vm2125_vm2, %v4631_v53, 0.0  ;;  %v2471_v35 = vmul.f32 %v4683_v41, %v4683_v41  ;;  %2104 = vst.msk [vmem:[%s5467_s4 + $0x1ac] sm:$0xf] %vm1996_vm1, %v3090_v2 }
 0x17a   :  { %v2663_v36 = vadd.f32 %v2662_v28, %v2661_v24  ;;  %v2276_v58 = vadd.f32 %v2275_v10, %v2274_v22  ;;  %2100 = vst.msk [vmem:[%s5467_s4 + $0x19c] sm:$0xf] %vm1996_vm1, %v3086_v5  ;;  %v2468_v28 = vmul.f32 %v4653_v55, %v4653_v55  ;;  %v3089_v10 = vpack.c.bf16 %v4956_v27, %v4956_v27 }
 0x17b   :  { %v5020_v14 = vpop.f32.mrb[44].mxu1  ;;  %v2291_v60 = vsel %vm2125_vm2, %v4646_v46, 0.0  ;;  %v2682_v5 = vsel %vm2125_vm2, %v2471_v35, 0.0 }
 0x17c   :  { %v2278_v6 = vadd.f32 %v2277_v32, %v2276_v58  ;;  %v2665_v29 = vadd.f32 %v2664_v13, %v2663_v36  ;;  %v5033_v30 = vpop.f32.mrb[45].mxu1  ;;  %v3087_v58 = vpack.c.bf16 %v4969_v45, %v4969_v45  ;;  %v2469_v13 = vmul.f32 %v4631_v53, %v4631_v53  ;;  %2103 = vst.msk [vmem:[%s5467_s4 + $0x1a8] sm:$0xf] %vm1996_vm1, %v3089_v10 }
 0x17d   :  { %v5039_v19 = vpop.f32.mrb[46].mxu1  ;;  %v2676_v43 = vsel %vm2125_vm2, %v2468_v28, 0.0  ;;  %v3088_v53 = vpack.c.bf16 %v4987_v50, %v4987_v50  ;;  %v3091_v51 = vpack.c.bf16 %v5033_v30, %v5033_v30  ;;  %v2297_v10 = vsel %vm2125_vm2, %v4675_v11, 0.0 }
 0x17e   :  { %v2667_v47 = vadd.f32 %v2666_v37, %v2665_v29  ;;  %v2280_v52 = vadd.f32 %v2279_v3, %v2278_v6  ;;  %v5051_v32 = vpop.f32.mrb[47].mxu1  ;;  %v2287_v37 = vsel %vm2125_vm2, %v4653_v55, 0.0  ;;  %2101 = vst.msk [vmem:[%s5467_s4 + $0x1a0] sm:$0xf] %vm1996_vm1, %v3087_v58  ;;  %v2470_v55 = vmul.f32 %v4646_v46, %v4646_v46 }
 0x17f   :  { %2102 = vst.msk [vmem:[%s5467_s4 + $0x1a4] sm:$0xf] %vm1996_vm1, %v3088_v53  ;;  %2105 = vst.msk [vmem:[%s5467_s4 + $0x1b0] sm:$0xf] %vm1996_vm1, %v3091_v51 }
 0x180   :  { %v2282_v56 = vadd.f32 %v2281_v44, %v2280_v52  ;;  %v2669_v4 = vadd.f32 %v2668_v54, %v2667_v47  ;;  %v3093_v44 = vpack.c.bf16 %v5020_v14, %v5020_v14  ;;  %v2678_v52 = vsel %vm2125_vm2, %v2469_v13, 0.0 }
 0x181   :  { %v2293_v54 = vsel %vm2125_vm2, %v4683_v41, 0.0  ;;  %v2680_v41 = vsel %vm2125_vm2, %v2470_v55, 0.0  ;;  %v2475_v13 = vmul.f32 %v4727_v23, %v4727_v23  ;;  %v2299_v55 = vsel %vm2125_vm2, %v4690_v40, 0.0 }
 0x182   :  { %v2671_v22 = vadd.f32 %v2670_v17, %v2669_v4  ;;  %v2284_v24 = vadd.f32 %v2283_v1, %v2282_v56  ;;  %2107 = vst.msk [vmem:[%s5467_s4 + $0x1b8] sm:$0xf] %vm1996_vm1, %v3093_v44  ;;  %v2472_v17 = vmul.f32 %v4697_v42, %v4697_v42  ;;  %v3094_v1 = vpack.c.bf16 %v5039_v19, %v5039_v19 }
 0x183   :  { %v5084_v47 = vpop.f32.mrb[48].mxu1  ;;  %v2690_v44 = vsel %vm2125_vm2, %v2475_v13, 0.0 }
 0x184   :  { %v2286_v33 = vadd.f32 %v2285_v59, %v2284_v24  ;;  %v2673_v36 = vadd.f32 %v2672_v61, %v2671_v22  ;;  %v5097_v57 = vpop.f32.mrb[49].mxu1  ;;  %v3092_v24 = vpack.c.bf16 %v5051_v32, %v5051_v32  ;;  %v2473_v61 = vmul.f32 %v4675_v11, %v4675_v11  ;;  %2108 = vst.msk [vmem:[%s5467_s4 + $0x1bc] sm:$0xf] %vm1996_vm1, %v3094_v1 }
 0x185   :  { %v5103_v46 = vpop.f32.mrb[50].mxu1  ;;  %v3097_v28 = vpack.c.bf16 %v5084_v47, %v5084_v47  ;;  %v2684_v58 = vsel %vm2125_vm2, %v2472_v17, 0.0  ;;  %v3095_v11 = vpack.c.bf16 %v5097_v57, %v5097_v57  ;;  %v2305_v1 = vsel %vm2125_vm2, %v4719_v18, 0.0 }
 0x186   :  { %v2675_v6 = vadd.f32 %v2674_v25, %v2673_v36  ;;  %v2288_v29 = vadd.f32 %v2287_v37, %v2286_v33  ;;  %v5115_v59 = vpop.f32.mrb[51].mxu1  ;;  %v2295_v25 = vsel %vm2125_vm2, %v4697_v42, 0.0  ;;  %2106 = vst.msk [vmem:[%s5467_s4 + $0x1b4] sm:$0xf] %vm1996_vm1, %v3092_v24  ;;  %v2474_v42 = vmul.f32 %v4690_v40, %v4690_v40 }
 0x187   :  { %2111 = vst.msk [vmem:[%s5467_s4 + $0x1c8] sm:$0xf] %vm1996_vm1, %v3097_v28  ;;  %2109 = vst.msk [vmem:[%s5467_s4 + $0x1c0] sm:$0xf] %vm1996_vm1, %v3095_v11  ;;  %v3096_v35 = vpack.c.bf16 %v5115_v59, %v5115_v59 }
 0x188   :  { %v2290_v3 = vadd.f32 %v2289_v48, %v2288_v29  ;;  %v2677_v20 = vadd.f32 %v2676_v43, %v2675_v6  ;;  %v3098_v48 = vpack.c.bf16 %v5103_v46, %v5103_v46  ;;  %v2686_v29 = vsel %vm2125_vm2, %v2473_v61, 0.0 }
 0x189   :  { %v2301_v43 = vsel %vm2125_vm2, %v4727_v23, 0.0  ;;  %v2688_v23 = vsel %vm2125_vm2, %v2474_v42, 0.0  ;;  %2110 = vst.msk [vmem:[%s5467_s4 + $0x1c4] sm:$0xf] %vm1996_vm1, %v3096_v35  ;;  %v2479_v61 = vmul.f32 %v4777_v15, %v4777_v15  ;;  %v2309_v42 = vsel %vm2125_vm2, %v4777_v15, 0.0 }
 0x18a   :  { %v2679_v56 = vadd.f32 %v2678_v52, %v2677_v20  ;;  %v2292_v4 = vadd.f32 %v2291_v60, %v2290_v3  ;;  %2112 = vst.msk [vmem:[%s5467_s4 + $0x1cc] sm:$0xf] %vm1996_vm1, %v3098_v48  ;;  %v2476_v52 = vmul.f32 %v4741_v16, %v4741_v16 }
 0x18b   :  { %v5148_v6 = vpop.f32.mrb[52].mxu1  ;;  %v2698_v15 = vsel %vm2125_vm2, %v2479_v61, 0.0 }
 0x18c   :  { %v2294_v12 = vadd.f32 %v2293_v54, %v2292_v4  ;;  %v2681_v22 = vadd.f32 %v2680_v41, %v2679_v56  ;;  %v5161_v53 = vpop.f32.mrb[53].mxu1  ;;  %v3101_v60 = vpack.c.bf16 %v5148_v6, %v5148_v6  ;;  %v2477_v41 = vmul.f32 %v4719_v18, %v4719_v18 }
 0x18d   :  { %v5167_v40 = vpop.f32.mrb[54].mxu1  ;;  %v3099_v4 = vpack.c.bf16 %v5161_v53, %v5161_v53  ;;  %v2692_v24 = vsel %vm2125_vm2, %v2476_v52, 0.0 }
 0x18e   :  { %v2683_v33 = vadd.f32 %v2682_v5, %v2681_v22  ;;  %v2296_v36 = vadd.f32 %v2295_v25, %v2294_v12  ;;  %v5179_v54 = vpop.f32.mrb[55].mxu1  ;;  %v2303_v5 = vsel %vm2125_vm2, %v4741_v16, 0.0  ;;  %2115 = vst.msk [vmem:[%s5467_s4 + $0x1d8] sm:$0xf] %vm1996_vm1, %v3101_v60  ;;  %v3102_v17 = vpack.c.bf16 %v5167_v40, %v5167_v40 }
 0x18f   :  { %2113 = vst.msk [vmem:[%s5467_s4 + $0x1d0] sm:$0xf] %vm1996_vm1, %v3099_v4  ;;  %v2478_v16 = vmul.f32 %v4734_v31, %v4734_v31  ;;  %v3100_v18 = vpack.c.bf16 %v5179_v54, %v5179_v54  ;;  %v2483_v4 = vmul.f32 %v4841_v49, %v4841_v49 }
 0x190   :  { %v2298_v37 = vadd.f32 %v2297_v10, %v2296_v36  ;;  %v2685_v2 = vadd.f32 %v2684_v58, %v2683_v33  ;;  %2116 = vst.msk [vmem:[%s5467_s4 + $0x1dc] sm:$0xf] %vm1996_vm1, %v3102_v17  ;;  %v2694_v33 = vsel %vm2125_vm2, %v2477_v41, 0.0  ;;  %v2307_v36 = vsel %vm2125_vm2, %v4734_v31, 0.0 }
 0x191   :  { %2114 = vst.msk [vmem:[%s5467_s4 + $0x1d4] sm:$0xf] %vm1996_vm1, %v3100_v18  ;;  %v2696_v31 = vsel %vm2125_vm2, %v2478_v16, 0.0 }
 0x192   :  { %v2687_v3 = vadd.f32 %v2686_v29, %v2685_v2  ;;  %v2300_v20 = vadd.f32 %v2299_v55, %v2298_v37  ;;  %v2480_v29 = vmul.f32 %v4795_v26, %v4795_v26 }
 0x193   :  { %v5210_v10 = vpop.f32.mrb[56].mxu1 }
 0x194   :  { %v2302_v51 = vadd.f32 %v2301_v43, %v2300_v20  ;;  %v2689_v56 = vadd.f32 %v2688_v23, %v2687_v3  ;;  %v3105_v58 = vpack.c.bf16 %v5210_v10, %v5210_v10  ;;  %v5223_v13 = vpop.f32.mrb[57].mxu1  ;;  %v2481_v23 = vmul.f32 %v4765_v63, %v4765_v63 }
 0x195   :  { %v3103_v2 = vpack.c.bf16 %v5223_v13, %v5223_v13  ;;  %v5227_v48 = vpop.f32.mrb[58].mxu1 }
 0x196   :  { %v2691_v12 = vadd.f32 %v2690_v44, %v2689_v56  ;;  %v2304_v22 = vadd.f32 %v2303_v5, %v2302_v51  ;;  %2119 = vst.msk [vmem:[%s5467_s4 + $0x1e8] sm:$0xf] %vm1996_vm1, %v3105_v58  ;;  %v3106_v55 = vpack.c.bf16 %v5227_v48, %v5227_v48  ;;  %v5239_v43 = vpop.f32.mrb[59].mxu1  ;;  %v2311_v44 = vsel %vm2125_vm2, %v4795_v26, 0.0 }
 0x197   :  { %2117 = vst.msk [vmem:[%s5467_s4 + $0x1e0] sm:$0xf] %vm1996_vm1, %v3103_v2  ;;  %v3104_v20 = vpack.c.bf16 %v5239_v43, %v5239_v43  ;;  %v2313_v51 = vsel %vm2125_vm2, %v4765_v63, 0.0  ;;  %v2482_v56 = vmul.f32 %v4783_v21, %v4783_v21  ;;  %v2700_v26 = vsel %vm2125_vm2, %v2480_v29, 0.0 }
 0x198   :  { %v2306_v25 = vadd.f32 %v2305_v1, %v2304_v22  ;;  %v2693_v28 = vadd.f32 %v2692_v24, %v2691_v12  ;;  %2120 = vst.msk [vmem:[%s5467_s4 + $0x1ec] sm:$0xf] %vm1996_vm1, %v3106_v55  ;;  %v2702_v1 = vsel %vm2125_vm2, %v2481_v23, 0.0  ;;  %v2315_v12 = vsel %vm2125_vm2, %v4783_v21, 0.0 }
 0x199   :  { %2118 = vst.msk [vmem:[%s5467_s4 + $0x1e4] sm:$0xf] %vm1996_vm1, %v3104_v20  ;;  %v2317_v63 = vsel %vm2125_vm2, %v4841_v49, 0.0  ;;  %v2484_v21 = vmul.f32 %v4859_v7, %v4859_v7  ;;  %v2319_v2 = vsel %vm2125_vm2, %v4859_v7, 0.0  ;;  %v2321_v29 = vsel %vm2125_vm2, %v4828_v8, 0.0 }
 0x19a   :  { %v2695_v11 = vadd.f32 %v2694_v33, %v2693_v28  ;;  %v2308_v37 = vadd.f32 %v2307_v36, %v2306_v25  ;;  %v2704_v28 = vsel %vm2125_vm2, %v2482_v56, 0.0  ;;  %v2706_v33 = vsel %vm2125_vm2, %v2483_v4, 0.0 }
 0x19b   :  { %v5266_v17 = vpop.f32.mrb[60].mxu1  ;;  %v2486_v55 = vmul.f32 %v4847_v34, %v4847_v34  ;;  %v2708_v7 = vsel %vm2125_vm2, %v2484_v21, 0.0 }
 0x19c   :  { %v2310_v35 = vadd.f32 %v2309_v42, %v2308_v37  ;;  %v2697_v3 = vadd.f32 %v2696_v31, %v2695_v11  ;;  %v3109_v22 = vpack.c.bf16 %v5266_v17, %v5266_v17  ;;  %v5275_v16 = vpop.f32.mrb[61].mxu1  ;;  %v2485_v37 = vmul.f32 %v4828_v8, %v4828_v8 }
 0x19d   :  { %v3107_v18 = vpack.c.bf16 %v5275_v16, %v5275_v16  ;;  %v5279_v25 = vpop.f32.mrb[62].mxu1 }
 0x19e   :  { %v2699_v52 = vadd.f32 %v2698_v15, %v2697_v3  ;;  %v2312_v60 = vadd.f32 %v2311_v44, %v2310_v35  ;;  %2123 = vst.msk [vmem:[%s5467_s4 + $0x1f8] sm:$0xf] %vm1996_vm1, %v3109_v22  ;;  %v3110_v49 = vpack.c.bf16 %v5279_v25, %v5279_v25  ;;  %v5291_v36 = vpop.f32.mrb[63].mxu1  ;;  %v2487_v35 = vmul.f32 %v4905_v9, %v4905_v9 }
 0x19f   :  { %2121 = vst.msk [vmem:[%s5467_s4 + $0x1f0] sm:$0xf] %vm1996_vm1, %v3107_v18  ;;  %v3108_v11 = vpack.c.bf16 %v5291_v36, %v5291_v36  ;;  %v2710_v23 = vsel %vm2125_vm2, %v2485_v37, 0.0  ;;  %v2323_v44 = vsel %vm2125_vm2, %v4847_v34, 0.0  ;;  %v2327_v34 = vsel %vm2125_vm2, %v4923_v0, 0.0 }
 0x1a0   :  { %v2314_v41 = vadd.f32 %v2313_v51, %v2312_v60  ;;  %v2701_v5 = vadd.f32 %v2700_v26, %v2699_v52  ;;  %2124 = vst.msk [vmem:[%s5467_s4 + $0x1fc] sm:$0xf] %vm1996_vm1, %v3110_v49  ;;  %v2325_v52 = vsel %vm2125_vm2, %v4905_v9, 0.0  ;;  %v2712_v51 = vsel %vm2125_vm2, %v2486_v55, 0.0 }
 0x1a1   :  { %2122 = vst.msk [vmem:[%s5467_s4 + $0x1f4] sm:$0xf] %vm1996_vm1, %v3108_v11  ;;  %v2714_v56 = vsel %vm2125_vm2, %v2487_v35, 0.0  ;;  %v2488_v26 = vmul.f32 %v4923_v0, %v4923_v0  ;;  %v2329_v9 = vsel %vm2125_vm2, %v4892_v38, 0.0  ;;  %v2331_v0 = vsel %vm2125_vm2, %v4911_v62, 0.0 }
 0x1a2   :  { %v2703_v24 = vadd.f32 %v2702_v1, %v2701_v5  ;;  %v2316_v61 = vadd.f32 %v2315_v12, %v2314_v41  ;;  %v2489_v5 = vmul.f32 %v4892_v38, %v4892_v38 }
 0x1a3   :  { %v2716_v22 = vsel %vm2125_vm2, %v2488_v26, 0.0  ;;  %v2497_v26 = vmul.f32 %v5020_v14, %v5020_v14 }
 0x1a4   :  { %v2318_v42 = vadd.f32 %v2317_v63, %v2316_v61  ;;  %v2705_v58 = vadd.f32 %v2704_v28, %v2703_v24  ;;  %v2490_v63 = vmul.f32 %v4911_v62, %v4911_v62  ;;  %v2491_v24 = vmul.f32 %v4969_v45, %v4969_v45 }
 0x1a5   :  { %v2718_v28 = vsel %vm2125_vm2, %v2489_v5, 0.0  ;;  %v2335_v62 = vsel %vm2125_vm2, %v4987_v50, 0.0  ;;  %v2498_v5 = vmul.f32 %v5039_v19, %v5039_v19 }
 0x1a6   :  { %v2707_v31 = vadd.f32 %v2706_v33, %v2705_v58  ;;  %v2320_v15 = vadd.f32 %v2319_v2, %v2318_v42  ;;  %v2333_v33 = vsel %vm2125_vm2, %v4969_v45, 0.0  ;;  %v2720_v49 = vsel %vm2125_vm2, %v2490_v63, 0.0 }
 0x1a7   :  { %v2722_v42 = vsel %vm2125_vm2, %v2491_v24, 0.0  ;;  %v2492_v58 = vmul.f32 %v4987_v50, %v4987_v50  ;;  %v2493_v2 = vmul.f32 %v4956_v27, %v4956_v27  ;;  %v2337_v45 = vsel %vm2125_vm2, %v4956_v27, 0.0 }
 0x1a8   :  { %v2322_v3 = vadd.f32 %v2321_v29, %v2320_v15  ;;  %v2709_v20 = vadd.f32 %v2708_v7, %v2707_v31  ;;  %v2494_v29 = vmul.f32 %v4975_v39, %v4975_v39  ;;  %v2495_v7 = vmul.f32 %v5033_v30, %v5033_v30 }
 0x1a9   :  { %v2724_v55 = vsel %vm2125_vm2, %v2492_v58, 0.0  ;;  %v2339_v50 = vsel %vm2125_vm2, %v4975_v39, 0.0  ;;  %v2343_v39 = vsel %vm2125_vm2, %v5051_v32, 0.0  ;;  %v2734_v63 = vsel %vm2125_vm2, %v2497_v26, 0.0 }
 0x1aa   :  { %v2711_v60 = vadd.f32 %v2710_v23, %v2709_v20  ;;  %v2324_v8 = vadd.f32 %v2323_v44, %v2322_v3  ;;  %v2726_v20 = vsel %vm2125_vm2, %v2493_v2, 0.0  ;;  %v2341_v23 = vsel %vm2125_vm2, %v5033_v30, 0.0 }
 0x1ab   :  { %v2345_v30 = vsel %vm2125_vm2, %v5020_v14, 0.0 }
 0x1ac   :  { %v2326_v4 = vadd.f32 %v2325_v52, %v2324_v8  ;;  %v2713_v41 = vadd.f32 %v2712_v51, %v2711_v60  ;;  %v2728_v52 = vsel %vm2125_vm2, %v2494_v29, 0.0  ;;  %v2730_v60 = vsel %vm2125_vm2, %v2495_v7, 0.0 }
 0x1ad   :  { %v2496_v8 = vmul.f32 %v5051_v32, %v5051_v32  ;;  %v2347_v32 = vsel %vm2125_vm2, %v5039_v19, 0.0  ;;  %v2351_v19 = vsel %vm2125_vm2, %v5115_v59, 0.0 }
 0x1ae   :  { %v2715_v1 = vadd.f32 %v2714_v56, %v2713_v41  ;;  %v2328_v12 = vadd.f32 %v2327_v34, %v2326_v4 }
 0x1af   :  { %v2732_v34 = vsel %vm2125_vm2, %v2496_v8, 0.0 }
 0x1b0   :  { %v2330_v61 = vadd.f32 %v2329_v9, %v2328_v12  ;;  %v2717_v18 = vadd.f32 %v2716_v22, %v2715_v1  ;;  %v2499_v1 = vmul.f32 %v5097_v57, %v5097_v57  ;;  %v2349_v22 = vsel %vm2125_vm2, %v5097_v57, 0.0 }
 0x1b1   :  { %v2353_v57 = vsel %vm2125_vm2, %v5084_v47, 0.0 }
 0x1b2   :  { %v2719_v21 = vadd.f32 %v2718_v28, %v2717_v18  ;;  %v2332_v38 = vadd.f32 %v2331_v0, %v2330_v61  ;;  %v2736_v61 = vsel %vm2125_vm2, %v2498_v5, 0.0  ;;  %v2738_v18 = vsel %vm2125_vm2, %v2499_v1, 0.0 }
 0x1b3   :  { %v2500_v28 = vmul.f32 %v5115_v59, %v5115_v59  ;;  %v2355_v59 = vsel %vm2125_vm2, %v5103_v46, 0.0  ;;  %v2509_v5 = vmul.f32 %v5210_v10, %v5210_v10 }
 0x1b4   :  { %v2334_v11 = vadd.f32 %v2333_v33, %v2332_v38  ;;  %v2721_v37 = vadd.f32 %v2720_v49, %v2719_v21  ;;  %v2501_v21 = vmul.f32 %v5084_v47, %v5084_v47 }
 0x1b5   :  { %v2740_v58 = vsel %vm2125_vm2, %v2500_v28, 0.0 }
 0x1b6   :  { %v2723_v31 = vadd.f32 %v2722_v42, %v2721_v37  ;;  %v2336_v15 = vadd.f32 %v2335_v62, %v2334_v11  ;;  %v2502_v42 = vmul.f32 %v5103_v46, %v5103_v46  ;;  %v2503_v11 = vmul.f32 %v5161_v53, %v5161_v53 }
 0x1b7   :  { %v2742_v62 = vsel %vm2125_vm2, %v2501_v21, 0.0  ;;  %v2359_v46 = vsel %vm2125_vm2, %v5179_v54, 0.0 }
 0x1b8   :  { %v2338_v35 = vadd.f32 %v2337_v45, %v2336_v15  ;;  %v2725_v3 = vadd.f32 %v2724_v55, %v2723_v31  ;;  %v2357_v31 = vsel %vm2125_vm2, %v5161_v53, 0.0  ;;  %v2744_v45 = vsel %vm2125_vm2, %v2502_v42, 0.0 }
 0x1b9   :  { %v2746_v29 = vsel %vm2125_vm2, %v2503_v11, 0.0  ;;  %v2504_v55 = vmul.f32 %v5179_v54, %v5179_v54  ;;  %v2361_v53 = vsel %vm2125_vm2, %v5148_v6, 0.0  ;;  %v2363_v54 = vsel %vm2125_vm2, %v5167_v40, 0.0 }
 0x1ba   :  { %v2727_v44 = vadd.f32 %v2726_v20, %v2725_v3  ;;  %v2340_v27 = vadd.f32 %v2339_v50, %v2338_v35  ;;  %v2505_v3 = vmul.f32 %v5148_v6, %v5148_v6 }
 0x1bc   :  { %v2342_v51 = vadd.f32 %v2341_v23, %v2340_v27  ;;  %v2729_v56 = vadd.f32 %v2728_v52, %v2727_v44  ;;  %v2506_v23 = vmul.f32 %v5167_v40, %v5167_v40  ;;  %v2748_v44 = vsel %vm2125_vm2, %v2504_v55, 0.0 }
 0x1bd   :  { %v2507_v27 = vmul.f32 %v5223_v13, %v5223_v13  ;;  %v2750_v8 = vsel %vm2125_vm2, %v2505_v3, 0.0  ;;  %v2367_v40 = vsel %vm2125_vm2, %v5239_v43, 0.0 }
 0x1be   :  { %v2731_v4 = vadd.f32 %v2730_v60, %v2729_v56  ;;  %v2344_v41 = vadd.f32 %v2343_v39, %v2342_v51  ;;  %v2365_v51 = vsel %vm2125_vm2, %v5223_v13, 0.0  ;;  %v2752_v26 = vsel %vm2125_vm2, %v2506_v23, 0.0 }
 0x1bf   :  { %v2754_v39 = vsel %vm2125_vm2, %v2507_v27, 0.0  ;;  %v2369_v13 = vsel %vm2125_vm2, %v5210_v10, 0.0 }
 0x1c0   :  { %v2346_v12 = vadd.f32 %v2345_v30, %v2344_v41  ;;  %v2733_v9 = vadd.f32 %v2732_v34, %v2731_v4  ;;  %v2508_v4 = vmul.f32 %v5239_v43, %v5239_v43  ;;  %v2371_v43 = vsel %vm2125_vm2, %v5227_v48, 0.0 }
 0x1c2   :  { %v2735_v24 = vadd.f32 %v2734_v63, %v2733_v9  ;;  %v2348_v14 = vadd.f32 %v2347_v32, %v2346_v12  ;;  %v2510_v12 = vmul.f32 %v5227_v48, %v5227_v48  ;;  %v2756_v9 = vsel %vm2125_vm2, %v2508_v4, 0.0 }
 0x1c3   :  { %v2511_v63 = vmul.f32 %v5275_v16, %v5275_v16  ;;  %v2375_v48 = vsel %vm2125_vm2, %v5291_v36, 0.0 }
 0x1c4   :  { %v2350_v0 = vadd.f32 %v2349_v22, %v2348_v14  ;;  %v2737_v33 = vadd.f32 %v2736_v61, %v2735_v24  ;;  %v2758_v24 = vsel %vm2125_vm2, %v2509_v5, 0.0  ;;  %v2373_v14 = vsel %vm2125_vm2, %v5275_v16, 0.0 }
 0x1c5   :  { %v2762_v28 = vsel %vm2125_vm2, %v2511_v63, 0.0  ;;  %v2377_v16 = vsel %vm2125_vm2, %v5266_v17, 0.0 }
 0x1c6   :  { %v2739_v38 = vadd.f32 %v2738_v18, %v2737_v33  ;;  %v2352_v49 = vadd.f32 %v2351_v19, %v2350_v0  ;;  %v2760_v18 = vsel %vm2125_vm2, %v2510_v12, 0.0  ;;  %v2512_v0 = vmul.f32 %v5291_v36, %v5291_v36 }
 0x1c7   :  { %v2513_v19 = vmul.f32 %v5266_v17, %v5266_v17 }
 0x1c8   :  { %v2354_v37 = vadd.f32 %v2353_v57, %v2352_v49  ;;  %v2741_v2 = vadd.f32 %v2740_v58, %v2739_v38  ;;  %v2514_v57 = vmul.f32 %v5279_v25, %v5279_v25  ;;  %v2764_v42 = vsel %vm2125_vm2, %v2512_v0, 0.0 }
 0x1ca   :  { %v2743_v15 = vadd.f32 %v2742_v62, %v2741_v2  ;;  %v2356_v47 = vadd.f32 %v2355_v59, %v2354_v37  ;;  %v2766_v37 = vsel %vm2125_vm2, %v2513_v19, 0.0  ;;  %v2379_v2 = vsel %vm2125_vm2, %v5279_v25, 0.0 }
 0x1cb   :  { %v2768_v36 = vsel %vm2125_vm2, %v2514_v57, 0.0 }
 0x1cc   :  { %v2358_v7 = vadd.f32 %v2357_v31, %v2356_v47  ;;  %v2745_v35 = vadd.f32 %v2744_v45, %v2743_v15 }
 0x1ce   :  { %v2747_v20 = vadd.f32 %v2746_v29, %v2745_v35  ;;  %v2360_v50 = vadd.f32 %v2359_v46, %v2358_v7 }
 0x1d0   :  { %v2362_v52 = vadd.f32 %v2361_v53, %v2360_v50  ;;  %v2749_v60 = vadd.f32 %v2748_v44, %v2747_v20 }
 0x1d2   :  { %v2751_v56 = vadd.f32 %v2750_v8, %v2749_v60  ;;  %v2364_v6 = vadd.f32 %v2363_v54, %v2362_v52 }
 0x1d4   :  { %v2366_v41 = vadd.f32 %v2365_v51, %v2364_v6  ;;  %v2753_v30 = vadd.f32 %v2752_v26, %v2751_v56 }
 0x1d6   :  { %v2755_v34 = vadd.f32 %v2754_v39, %v2753_v30  ;;  %v2368_v1 = vadd.f32 %v2367_v40, %v2366_v41 }
 0x1d8   :  { %v2370_v32 = vadd.f32 %v2369_v13, %v2368_v1  ;;  %v2757_v22 = vadd.f32 %v2756_v9, %v2755_v34 }
 0x1da   :  { %v2759_v61 = vadd.f32 %v2758_v24, %v2757_v22  ;;  %v2372_v10 = vadd.f32 %v2371_v43, %v2370_v32 }
 0x1dc   :  { %v2374_v33 = vadd.f32 %v2373_v14, %v2372_v10  ;;  %v2761_v21 = vadd.f32 %v2760_v18, %v2759_v61 }
 0x1de   :  { %v2763_v38 = vadd.f32 %v2762_v28, %v2761_v21  ;;  %v2376_v49 = vadd.f32 %v2375_v48, %v2374_v33 }
 0x1e0   :  { %v2378_v58 = vadd.f32 %v2377_v16, %v2376_v49  ;;  %v2765_v11 = vadd.f32 %v2764_v42, %v2763_v38 }
 0x1e2   :  { %v2380_v62 = vadd.f32 %v2379_v2, %v2378_v58  ;;  %v2767_v59 = vadd.f32 %v2766_v37, %v2765_v11 }
 0x1e4   :  { %v2381_v31 = vrot.slane %v2380_v62, 4  ;;  %v2769_v15 = vadd.f32 %v2768_v36, %v2767_v59 }
 0x1e6   :  { %v2382_v47 = vadd.f32 %v2381_v31, %v2380_v62  ;;  %v2770_v17 = vrot.slane %v2769_v15, 4 }
 0x1e8   :  { %v2383_v45 = vrot.slane %v2382_v47, 2  ;;  %v2771_v29 = vadd.f32 %v2770_v17, %v2769_v15 }
 0x1ea   :  { %v2384_v55 = vadd.f32 %v2383_v45, %v2382_v47  ;;  %v2772_v7 = vrot.slane %v2771_v29, 2 }
 0x1ec   :  { %v2385_v35 = vrot.slane %v2384_v55, 1  ;;  %v2773_v3 = vadd.f32 %v2772_v7, %v2771_v29 }
 0x1ee   :  { %v2774_v46 = vrot.slane %v2773_v3, 1  ;;  %v2386_v20 = vadd.f32 %v2385_v35, %v2384_v55 }
 0x1f0   :  { %v2775_v50 = vadd.f32 %v2774_v46, %v2773_v3 }
 0x1f2   :  { %v2777_v25 = vsel %vm2776_vm3, %v2386_v20, %v2775_v50 }
 0x1f3   :  { %2779 = vst.msk [vmem:[%s5468_s5] sm:$0x3] %vm2778_vm4, %v2777_v25 }

// kernel: decoder_block.7
= control target key start
LH: loop header
LB: loop body
LE: loop exit
PB: predicated region body
PF: predicated region fallthrough
CT: control target
= control target key end

     0   :  { %vm668_vm0 = vcmask 261120   ;;  %s2124_s0 = inlined_call_operand.vmem [shape: bf16[1024,32], index: 0, kind: input, shape index: {}]   ;;  %s2125_s1 = inlined_call_operand.vmem [shape: f32[1,32], index: 1, kind: input, shape index: {}]   ;;  %s2126_s2 = inlined_call_operand.vmem [shape: f32[1,32], index: 2, kind: input, shape index: {}]   ;;  %s2127_s3 = inlined_call_operand.vmem [shape: f32[1024,32], index: 3, kind: output, shape index: {}]  }
   0x1   :  { %v804_v0 = vld [vmem:[%s2124_s0] sm:$0xff]   ;;  %v1059_v4 = vld [vmem:[%s2124_s0 + $0x8] sm:$0xff]   ;;  %v1060_v5 = vld [vmem:[%s2124_s0 + $0x10] sm:$0xff]  }
   0x2   :  { %v1150_v1 = vld [vmem:[%s2125_s1] ss:$0 sm:$0xff]  ;;  %v805_v2 = vunpack.c.l.bf16 %v804_v0  ;;  %v806_v3 = vunpack.c.h.bf16 %v804_v0  ;;  %v1061_v6 = vld [vmem:[%s2124_s0 + $0x18] sm:$0xff]   ;;  %v809_v8 = vunpack.c.l.bf16 %v1059_v4  ;;  %v810_v9 = vunpack.c.h.bf16 %v1059_v4  ;;  %v1063_v33 = vld [vmem:[%s2124_s0 + $0x28] sm:$0xff]  }
   0x3   :  { %v1164_v7 = vld [vmem:[%s2126_s2] ss:$0 sm:$0xff]  ;;  %v813_v10 = vunpack.c.l.bf16 %v1060_v5  ;;  %v814_v11 = vunpack.c.h.bf16 %v1060_v5  ;;  %v817_v14 = vunpack.c.l.bf16 %v1061_v6  ;;  %v818_v15 = vunpack.c.h.bf16 %v1061_v6  ;;  %v1064_v34 = vld [vmem:[%s2124_s0 + $0x30] sm:$0xff]   ;;  %v1065_v39 = vld [vmem:[%s2124_s0 + $0x38] sm:$0xff]  }
   0x4   :  { %v277_v12 = vmul.f32 %v805_v2, %v1150_v1  ;;  %v278_v13 = vmul.f32 %v806_v3, %v1150_v1  ;;  %v279_v16 = vmul.f32 %v809_v8, %v1150_v1  ;;  %v280_v17 = vmul.f32 %v810_v9, %v1150_v1  ;;  %v1062_v28 = vld [vmem:[%s2124_s0 + $0x20] sm:$0xff]   ;;  %v1067_v6 = vld [vmem:[%s2124_s0 + $0x48] sm:$0xff]   ;;  %v1068_v8 = vld [vmem:[%s2124_s0 + $0x50] sm:$0xff]  }
   0x5   :  { %v281_v18 = vmul.f32 %v813_v10, %v1150_v1  ;;  %v282_v19 = vmul.f32 %v814_v11, %v1150_v1  ;;  %v283_v22 = vmul.f32 %v817_v14, %v1150_v1  ;;  %v284_v23 = vmul.f32 %v818_v15, %v1150_v1  ;;  %v1066_v0 = vld [vmem:[%s2124_s0 + $0x40] sm:$0xff]  }
   0x6   :  { %v412_v20 = vadd.f32 %v1164_v7, %v277_v12  ;;  %v413_v21 = vadd.f32 %v1164_v7, %v278_v13  ;;  %v414_v24 = vadd.f32 %v1164_v7, %v279_v16  ;;  %v415_v25 = vadd.f32 %v1164_v7, %v280_v17  ;;  %v1069_v13 = vld [vmem:[%s2124_s0 + $0x58] sm:$0xff]  }
   0x7   :  { %v416_v26 = vadd.f32 %v1164_v7, %v281_v18  ;;  %v417_v27 = vadd.f32 %v1164_v7, %v282_v19  ;;  %v418_v31 = vadd.f32 %v1164_v7, %v283_v22  ;;  %v419_v32 = vadd.f32 %v1164_v7, %v284_v23 }
   0x8   :  { %v540_v29 = vmax.f32 %v412_v20, 0.0  ;;  %v541_v30 = vmax.f32 %v413_v21, 0.0  ;;  %v542_v35 = vmax.f32 %v414_v24, 0.0  ;;  %v543_v36 = vmax.f32 %v415_v25, 0.0 }
   0x9   :  { %v544_v37 = vmax.f32 %v416_v26, 0.0  ;;  %v545_v38 = vmax.f32 %v417_v27, 0.0  ;;  %v546_v40 = vmax.f32 %v418_v31, 0.0  ;;  %v547_v41 = vmax.f32 %v419_v32, 0.0 }
   0xa   :  { %669 = vst.msk [vmem:[%s2127_s3] sm:$0xff] %vm668_vm0, %v540_v29  ;;  %670 = vst.msk [vmem:[%s2127_s3 + $0x8] sm:$0xff] %vm668_vm0, %v541_v30  ;;  %v821_v42 = vunpack.c.l.bf16 %v1062_v28  ;;  %v822_v43 = vunpack.c.h.bf16 %v1062_v28  ;;  %v825_v44 = vunpack.c.l.bf16 %v1063_v33  ;;  %v826_v45 = vunpack.c.h.bf16 %v1063_v33 }
   0xb   :  { %671 = vst.msk [vmem:[%s2127_s3 + $0x10] sm:$0xff] %vm668_vm0, %v542_v35  ;;  %672 = vst.msk [vmem:[%s2127_s3 + $0x18] sm:$0xff] %vm668_vm0, %v543_v36  ;;  %v829_v46 = vunpack.c.l.bf16 %v1064_v34  ;;  %v830_v47 = vunpack.c.h.bf16 %v1064_v34  ;;  %v833_v50 = vunpack.c.l.bf16 %v1065_v39  ;;  %v834_v51 = vunpack.c.h.bf16 %v1065_v39 }
   0xc   :  { %673 = vst.msk [vmem:[%s2127_s3 + $0x20] sm:$0xff] %vm668_vm0, %v544_v37  ;;  %674 = vst.msk [vmem:[%s2127_s3 + $0x28] sm:$0xff] %vm668_vm0, %v545_v38  ;;  %v285_v48 = vmul.f32 %v821_v42, %v1150_v1  ;;  %v286_v49 = vmul.f32 %v822_v43, %v1150_v1  ;;  %v287_v52 = vmul.f32 %v825_v44, %v1150_v1  ;;  %v837_v16 = vunpack.c.l.bf16 %v1066_v0  ;;  %v1070_v38 = vld [vmem:[%s2124_s0 + $0x60] sm:$0xff]   ;;  %v1071_v43 = vld [vmem:[%s2124_s0 + $0x68] sm:$0xff]  }
   0xd   :  { %675 = vst.msk [vmem:[%s2127_s3 + $0x30] sm:$0xff] %vm668_vm0, %v546_v40  ;;  %676 = vst.msk [vmem:[%s2127_s3 + $0x38] sm:$0xff] %vm668_vm0, %v547_v41  ;;  %v288_v53 = vmul.f32 %v826_v45, %v1150_v1  ;;  %v289_v54 = vmul.f32 %v829_v46, %v1150_v1  ;;  %v290_v55 = vmul.f32 %v830_v47, %v1150_v1  ;;  %v838_v17 = vunpack.c.h.bf16 %v1066_v0  ;;  %v1072_v44 = vld [vmem:[%s2124_s0 + $0x70] sm:$0xff]  }
   0xe   :  { %v420_v56 = vadd.f32 %v1164_v7, %v285_v48  ;;  %v421_v57 = vadd.f32 %v1164_v7, %v286_v49  ;;  %v291_v58 = vmul.f32 %v833_v50, %v1150_v1  ;;  %v292_v59 = vmul.f32 %v834_v51, %v1150_v1  ;;  %v1073_v49 = vld [vmem:[%s2124_s0 + $0x78] sm:$0xff]  }
   0xf   :  { %v422_v60 = vadd.f32 %v1164_v7, %v287_v52  ;;  %v423_v61 = vadd.f32 %v1164_v7, %v288_v53  ;;  %v424_v62 = vadd.f32 %v1164_v7, %v289_v54  ;;  %v425_v63 = vadd.f32 %v1164_v7, %v290_v55 }
  0x10   :  { %v548_v2 = vmax.f32 %v420_v56, 0.0  ;;  %v549_v3 = vmax.f32 %v421_v57, 0.0  ;;  %v426_v4 = vadd.f32 %v1164_v7, %v291_v58  ;;  %v427_v5 = vadd.f32 %v1164_v7, %v292_v59 }
  0x11   :  { %v550_v9 = vmax.f32 %v422_v60, 0.0  ;;  %v551_v10 = vmax.f32 %v423_v61, 0.0  ;;  %v552_v11 = vmax.f32 %v424_v62, 0.0  ;;  %v553_v12 = vmax.f32 %v425_v63, 0.0 }
  0x12   :  { %677 = vst.msk [vmem:[%s2127_s3 + $0x40] sm:$0xff] %vm668_vm0, %v548_v2  ;;  %678 = vst.msk [vmem:[%s2127_s3 + $0x48] sm:$0xff] %vm668_vm0, %v549_v3  ;;  %v554_v14 = vmax.f32 %v426_v4, 0.0  ;;  %v555_v15 = vmax.f32 %v427_v5, 0.0  ;;  %v841_v18 = vunpack.c.l.bf16 %v1067_v6  ;;  %v842_v19 = vunpack.c.h.bf16 %v1067_v6 }
  0x13   :  { %679 = vst.msk [vmem:[%s2127_s3 + $0x50] sm:$0xff] %vm668_vm0, %v550_v9  ;;  %680 = vst.msk [vmem:[%s2127_s3 + $0x58] sm:$0xff] %vm668_vm0, %v551_v10  ;;  %v845_v20 = vunpack.c.l.bf16 %v1068_v8  ;;  %v846_v21 = vunpack.c.h.bf16 %v1068_v8  ;;  %v293_v22 = vmul.f32 %v837_v16, %v1150_v1  ;;  %v294_v23 = vmul.f32 %v838_v17, %v1150_v1  ;;  %v1075_v17 = vld [vmem:[%s2124_s0 + $0x88] sm:$0xff]  }
  0x14   :  { %681 = vst.msk [vmem:[%s2127_s3 + $0x60] sm:$0xff] %vm668_vm0, %v552_v11  ;;  %682 = vst.msk [vmem:[%s2127_s3 + $0x68] sm:$0xff] %vm668_vm0, %v553_v12  ;;  %v849_v24 = vunpack.c.l.bf16 %v1069_v13  ;;  %v850_v25 = vunpack.c.h.bf16 %v1069_v13  ;;  %v295_v26 = vmul.f32 %v841_v18, %v1150_v1  ;;  %v296_v27 = vmul.f32 %v842_v19, %v1150_v1  ;;  %v1074_v12 = vld [vmem:[%s2124_s0 + $0x80] sm:$0xff]   ;;  %v1076_v18 = vld [vmem:[%s2124_s0 + $0x90] sm:$0xff]  }
  0x15   :  { %683 = vst.msk [vmem:[%s2127_s3 + $0x70] sm:$0xff] %vm668_vm0, %v554_v14  ;;  %684 = vst.msk [vmem:[%s2127_s3 + $0x78] sm:$0xff] %vm668_vm0, %v555_v15  ;;  %v297_v28 = vmul.f32 %v845_v20, %v1150_v1  ;;  %v298_v29 = vmul.f32 %v846_v21, %v1150_v1  ;;  %v428_v30 = vadd.f32 %v1164_v7, %v293_v22  ;;  %v853_v52 = vunpack.c.l.bf16 %v1070_v38 }
  0x16   :  { %v429_v31 = vadd.f32 %v1164_v7, %v294_v23  ;;  %v299_v32 = vmul.f32 %v849_v24, %v1150_v1  ;;  %v300_v33 = vmul.f32 %v850_v25, %v1150_v1  ;;  %v430_v34 = vadd.f32 %v1164_v7, %v295_v26  ;;  %v1077_v23 = vld [vmem:[%s2124_s0 + $0x98] sm:$0xff]  }
  0x17   :  { %v431_v35 = vadd.f32 %v1164_v7, %v296_v27  ;;  %v432_v36 = vadd.f32 %v1164_v7, %v297_v28  ;;  %v433_v37 = vadd.f32 %v1164_v7, %v298_v29  ;;  %v556_v39 = vmax.f32 %v428_v30, 0.0 }
  0x18   :  { %v557_v40 = vmax.f32 %v429_v31, 0.0  ;;  %v434_v41 = vadd.f32 %v1164_v7, %v299_v32  ;;  %v435_v42 = vadd.f32 %v1164_v7, %v300_v33  ;;  %v558_v45 = vmax.f32 %v430_v34, 0.0 }
  0x19   :  { %v559_v46 = vmax.f32 %v431_v35, 0.0  ;;  %v560_v47 = vmax.f32 %v432_v36, 0.0  ;;  %v561_v48 = vmax.f32 %v433_v37, 0.0  ;;  %685 = vst.msk [vmem:[%s2127_s3 + $0x80] sm:$0xff] %vm668_vm0, %v556_v39  ;;  %v854_v53 = vunpack.c.h.bf16 %v1070_v38 }
  0x1a   :  { %686 = vst.msk [vmem:[%s2127_s3 + $0x88] sm:$0xff] %vm668_vm0, %v557_v40  ;;  %v562_v50 = vmax.f32 %v434_v41, 0.0  ;;  %v563_v51 = vmax.f32 %v435_v42, 0.0  ;;  %687 = vst.msk [vmem:[%s2127_s3 + $0x90] sm:$0xff] %vm668_vm0, %v558_v45  ;;  %v857_v54 = vunpack.c.l.bf16 %v1071_v43  ;;  %v858_v55 = vunpack.c.h.bf16 %v1071_v43 }
  0x1b   :  { %688 = vst.msk [vmem:[%s2127_s3 + $0x98] sm:$0xff] %vm668_vm0, %v559_v46  ;;  %689 = vst.msk [vmem:[%s2127_s3 + $0xa0] sm:$0xff] %vm668_vm0, %v560_v47  ;;  %v861_v56 = vunpack.c.l.bf16 %v1072_v44  ;;  %v862_v57 = vunpack.c.h.bf16 %v1072_v44  ;;  %v301_v58 = vmul.f32 %v853_v52, %v1150_v1  ;;  %v302_v59 = vmul.f32 %v854_v53, %v1150_v1  ;;  %v1079_v53 = vld [vmem:[%s2124_s0 + $0xa8] sm:$0xff]  }
  0x1c   :  { %690 = vst.msk [vmem:[%s2127_s3 + $0xa8] sm:$0xff] %vm668_vm0, %v561_v48  ;;  %691 = vst.msk [vmem:[%s2127_s3 + $0xb0] sm:$0xff] %vm668_vm0, %v562_v50  ;;  %v865_v60 = vunpack.c.l.bf16 %v1073_v49  ;;  %v866_v61 = vunpack.c.h.bf16 %v1073_v49  ;;  %v303_v62 = vmul.f32 %v857_v54, %v1150_v1  ;;  %v304_v63 = vmul.f32 %v858_v55, %v1150_v1  ;;  %v1078_v48 = vld [vmem:[%s2124_s0 + $0xa0] sm:$0xff]   ;;  %v1080_v54 = vld [vmem:[%s2124_s0 + $0xb0] sm:$0xff]  }
  0x1d   :  { %692 = vst.msk [vmem:[%s2127_s3 + $0xb8] sm:$0xff] %vm668_vm0, %v563_v51  ;;  %v305_v0 = vmul.f32 %v861_v56, %v1150_v1  ;;  %v306_v2 = vmul.f32 %v862_v57, %v1150_v1  ;;  %v436_v3 = vadd.f32 %v1164_v7, %v301_v58  ;;  %v437_v4 = vadd.f32 %v1164_v7, %v302_v59  ;;  %v1081_v59 = vld [vmem:[%s2124_s0 + $0xb8] sm:$0xff]  }
  0x1e   :  { %v307_v5 = vmul.f32 %v865_v60, %v1150_v1  ;;  %v308_v6 = vmul.f32 %v866_v61, %v1150_v1  ;;  %v438_v8 = vadd.f32 %v1164_v7, %v303_v62  ;;  %v439_v9 = vadd.f32 %v1164_v7, %v304_v63 }
  0x1f   :  { %v440_v10 = vadd.f32 %v1164_v7, %v305_v0  ;;  %v441_v11 = vadd.f32 %v1164_v7, %v306_v2  ;;  %v564_v13 = vmax.f32 %v436_v3, 0.0  ;;  %v565_v14 = vmax.f32 %v437_v4, 0.0 }
  0x20   :  { %v442_v15 = vadd.f32 %v1164_v7, %v307_v5  ;;  %v443_v16 = vadd.f32 %v1164_v7, %v308_v6  ;;  %v566_v19 = vmax.f32 %v438_v8, 0.0  ;;  %v567_v20 = vmax.f32 %v439_v9, 0.0 }
  0x21   :  { %v568_v21 = vmax.f32 %v440_v10, 0.0  ;;  %v569_v22 = vmax.f32 %v441_v11, 0.0  ;;  %693 = vst.msk [vmem:[%s2127_s3 + $0xc0] sm:$0xff] %vm668_vm0, %v564_v13  ;;  %694 = vst.msk [vmem:[%s2127_s3 + $0xc8] sm:$0xff] %vm668_vm0, %v565_v14  ;;  %v869_v26 = vunpack.c.l.bf16 %v1074_v12  ;;  %v870_v27 = vunpack.c.h.bf16 %v1074_v12 }
  0x22   :  { %v570_v24 = vmax.f32 %v442_v15, 0.0  ;;  %v571_v25 = vmax.f32 %v443_v16, 0.0  ;;  %695 = vst.msk [vmem:[%s2127_s3 + $0xd0] sm:$0xff] %vm668_vm0, %v566_v19  ;;  %696 = vst.msk [vmem:[%s2127_s3 + $0xd8] sm:$0xff] %vm668_vm0, %v567_v20  ;;  %v873_v28 = vunpack.c.l.bf16 %v1075_v17  ;;  %v874_v29 = vunpack.c.h.bf16 %v1075_v17 }
  0x23   :  { %697 = vst.msk [vmem:[%s2127_s3 + $0xe0] sm:$0xff] %vm668_vm0, %v568_v21  ;;  %698 = vst.msk [vmem:[%s2127_s3 + $0xe8] sm:$0xff] %vm668_vm0, %v569_v22  ;;  %v877_v30 = vunpack.c.l.bf16 %v1076_v18  ;;  %v878_v31 = vunpack.c.h.bf16 %v1076_v18  ;;  %v309_v32 = vmul.f32 %v869_v26, %v1150_v1  ;;  %v310_v33 = vmul.f32 %v870_v27, %v1150_v1  ;;  %v1082_v22 = vld [vmem:[%s2124_s0 + $0xc0] sm:$0xff]   ;;  %v1083_v27 = vld [vmem:[%s2124_s0 + $0xc8] sm:$0xff]  }
  0x24   :  { %699 = vst.msk [vmem:[%s2127_s3 + $0xf0] sm:$0xff] %vm668_vm0, %v570_v24  ;;  %700 = vst.msk [vmem:[%s2127_s3 + $0xf8] sm:$0xff] %vm668_vm0, %v571_v25  ;;  %v881_v34 = vunpack.c.l.bf16 %v1077_v23  ;;  %v882_v35 = vunpack.c.h.bf16 %v1077_v23  ;;  %v311_v36 = vmul.f32 %v873_v28, %v1150_v1  ;;  %v312_v37 = vmul.f32 %v874_v29, %v1150_v1  ;;  %v1084_v28 = vld [vmem:[%s2124_s0 + $0xd0] sm:$0xff]  }
  0x25   :  { %v313_v38 = vmul.f32 %v877_v30, %v1150_v1  ;;  %v314_v39 = vmul.f32 %v878_v31, %v1150_v1  ;;  %v444_v40 = vadd.f32 %v1164_v7, %v309_v32  ;;  %v445_v41 = vadd.f32 %v1164_v7, %v310_v33  ;;  %v1085_v33 = vld [vmem:[%s2124_s0 + $0xd8] sm:$0xff]  }
  0x26   :  { %v315_v42 = vmul.f32 %v881_v34, %v1150_v1  ;;  %v316_v43 = vmul.f32 %v882_v35, %v1150_v1  ;;  %v446_v44 = vadd.f32 %v1164_v7, %v311_v36  ;;  %v447_v45 = vadd.f32 %v1164_v7, %v312_v37 }
  0x27   :  { %v448_v46 = vadd.f32 %v1164_v7, %v313_v38  ;;  %v449_v47 = vadd.f32 %v1164_v7, %v314_v39  ;;  %v572_v49 = vmax.f32 %v444_v40, 0.0  ;;  %v573_v50 = vmax.f32 %v445_v41, 0.0 }
  0x28   :  { %v450_v51 = vadd.f32 %v1164_v7, %v315_v42  ;;  %v451_v52 = vadd.f32 %v1164_v7, %v316_v43  ;;  %v574_v55 = vmax.f32 %v446_v44, 0.0  ;;  %v575_v56 = vmax.f32 %v447_v45, 0.0 }
  0x29   :  { %v576_v57 = vmax.f32 %v448_v46, 0.0  ;;  %v577_v58 = vmax.f32 %v449_v47, 0.0  ;;  %701 = vst.msk [vmem:[%s2127_s3 + $0x100] sm:$0xff] %vm668_vm0, %v572_v49  ;;  %702 = vst.msk [vmem:[%s2127_s3 + $0x108] sm:$0xff] %vm668_vm0, %v573_v50  ;;  %v885_v62 = vunpack.c.l.bf16 %v1078_v48  ;;  %v886_v63 = vunpack.c.h.bf16 %v1078_v48 }
  0x2a   :  { %v578_v60 = vmax.f32 %v450_v51, 0.0  ;;  %v579_v61 = vmax.f32 %v451_v52, 0.0  ;;  %703 = vst.msk [vmem:[%s2127_s3 + $0x110] sm:$0xff] %vm668_vm0, %v574_v55  ;;  %704 = vst.msk [vmem:[%s2127_s3 + $0x118] sm:$0xff] %vm668_vm0, %v575_v56  ;;  %v889_v0 = vunpack.c.l.bf16 %v1079_v53  ;;  %v890_v2 = vunpack.c.h.bf16 %v1079_v53 }
  0x2b   :  { %705 = vst.msk [vmem:[%s2127_s3 + $0x120] sm:$0xff] %vm668_vm0, %v576_v57  ;;  %706 = vst.msk [vmem:[%s2127_s3 + $0x128] sm:$0xff] %vm668_vm0, %v577_v58  ;;  %v893_v3 = vunpack.c.l.bf16 %v1080_v54  ;;  %v894_v4 = vunpack.c.h.bf16 %v1080_v54  ;;  %v317_v5 = vmul.f32 %v885_v62, %v1150_v1  ;;  %v318_v6 = vmul.f32 %v886_v63, %v1150_v1  ;;  %v1086_v58 = vld [vmem:[%s2124_s0 + $0xe0] sm:$0xff]   ;;  %v1087_v63 = vld [vmem:[%s2124_s0 + $0xe8] sm:$0xff]  }
  0x2c   :  { %707 = vst.msk [vmem:[%s2127_s3 + $0x130] sm:$0xff] %vm668_vm0, %v578_v60  ;;  %708 = vst.msk [vmem:[%s2127_s3 + $0x138] sm:$0xff] %vm668_vm0, %v579_v61  ;;  %v897_v8 = vunpack.c.l.bf16 %v1081_v59  ;;  %v898_v9 = vunpack.c.h.bf16 %v1081_v59  ;;  %v319_v10 = vmul.f32 %v889_v0, %v1150_v1  ;;  %v320_v11 = vmul.f32 %v890_v2, %v1150_v1  ;;  %v1088_v0 = vld [vmem:[%s2124_s0 + $0xf0] sm:$0xff]  }
  0x2d   :  { %v321_v12 = vmul.f32 %v893_v3, %v1150_v1  ;;  %v322_v13 = vmul.f32 %v894_v4, %v1150_v1  ;;  %v452_v14 = vadd.f32 %v1164_v7, %v317_v5  ;;  %v453_v15 = vadd.f32 %v1164_v7, %v318_v6  ;;  %v1089_v6 = vld [vmem:[%s2124_s0 + $0xf8] sm:$0xff]  }
  0x2e   :  { %v323_v16 = vmul.f32 %v897_v8, %v1150_v1  ;;  %v324_v17 = vmul.f32 %v898_v9, %v1150_v1  ;;  %v454_v18 = vadd.f32 %v1164_v7, %v319_v10  ;;  %v455_v19 = vadd.f32 %v1164_v7, %v320_v11 }
  0x2f   :  { %v456_v20 = vadd.f32 %v1164_v7, %v321_v12  ;;  %v457_v21 = vadd.f32 %v1164_v7, %v322_v13  ;;  %v580_v23 = vmax.f32 %v452_v14, 0.0  ;;  %v581_v24 = vmax.f32 %v453_v15, 0.0 }
  0x30   :  { %v458_v25 = vadd.f32 %v1164_v7, %v323_v16  ;;  %v459_v26 = vadd.f32 %v1164_v7, %v324_v17  ;;  %v582_v29 = vmax.f32 %v454_v18, 0.0  ;;  %v583_v30 = vmax.f32 %v455_v19, 0.0 }
  0x31   :  { %v584_v31 = vmax.f32 %v456_v20, 0.0  ;;  %v585_v32 = vmax.f32 %v457_v21, 0.0  ;;  %709 = vst.msk [vmem:[%s2127_s3 + $0x140] sm:$0xff] %vm668_vm0, %v580_v23  ;;  %710 = vst.msk [vmem:[%s2127_s3 + $0x148] sm:$0xff] %vm668_vm0, %v581_v24  ;;  %v901_v36 = vunpack.c.l.bf16 %v1082_v22  ;;  %v902_v37 = vunpack.c.h.bf16 %v1082_v22 }
  0x32   :  { %v586_v34 = vmax.f32 %v458_v25, 0.0  ;;  %v587_v35 = vmax.f32 %v459_v26, 0.0  ;;  %711 = vst.msk [vmem:[%s2127_s3 + $0x150] sm:$0xff] %vm668_vm0, %v582_v29  ;;  %712 = vst.msk [vmem:[%s2127_s3 + $0x158] sm:$0xff] %vm668_vm0, %v583_v30  ;;  %v905_v38 = vunpack.c.l.bf16 %v1083_v27  ;;  %v906_v39 = vunpack.c.h.bf16 %v1083_v27 }
  0x33   :  { %713 = vst.msk [vmem:[%s2127_s3 + $0x160] sm:$0xff] %vm668_vm0, %v584_v31  ;;  %714 = vst.msk [vmem:[%s2127_s3 + $0x168] sm:$0xff] %vm668_vm0, %v585_v32  ;;  %v909_v40 = vunpack.c.l.bf16 %v1084_v28  ;;  %v910_v41 = vunpack.c.h.bf16 %v1084_v28  ;;  %v325_v42 = vmul.f32 %v901_v36, %v1150_v1  ;;  %v326_v43 = vmul.f32 %v902_v37, %v1150_v1  ;;  %v1090_v32 = vld [vmem:[%s2124_s0 + $0x100] sm:$0xff]   ;;  %v1091_v37 = vld [vmem:[%s2124_s0 + $0x108] sm:$0xff]  }
  0x34   :  { %715 = vst.msk [vmem:[%s2127_s3 + $0x170] sm:$0xff] %vm668_vm0, %v586_v34  ;;  %716 = vst.msk [vmem:[%s2127_s3 + $0x178] sm:$0xff] %vm668_vm0, %v587_v35  ;;  %v913_v44 = vunpack.c.l.bf16 %v1085_v33  ;;  %v914_v45 = vunpack.c.h.bf16 %v1085_v33  ;;  %v327_v46 = vmul.f32 %v905_v38, %v1150_v1  ;;  %v328_v47 = vmul.f32 %v906_v39, %v1150_v1  ;;  %v1092_v38 = vld [vmem:[%s2124_s0 + $0x110] sm:$0xff]  }
  0x35   :  { %v329_v48 = vmul.f32 %v909_v40, %v1150_v1  ;;  %v330_v49 = vmul.f32 %v910_v41, %v1150_v1  ;;  %v460_v50 = vadd.f32 %v1164_v7, %v325_v42  ;;  %v461_v51 = vadd.f32 %v1164_v7, %v326_v43  ;;  %v1093_v43 = vld [vmem:[%s2124_s0 + $0x118] sm:$0xff]  }
  0x36   :  { %v331_v52 = vmul.f32 %v913_v44, %v1150_v1  ;;  %v332_v53 = vmul.f32 %v914_v45, %v1150_v1  ;;  %v462_v54 = vadd.f32 %v1164_v7, %v327_v46  ;;  %v463_v55 = vadd.f32 %v1164_v7, %v328_v47 }
  0x37   :  { %v464_v56 = vadd.f32 %v1164_v7, %v329_v48  ;;  %v465_v57 = vadd.f32 %v1164_v7, %v330_v49  ;;  %v588_v59 = vmax.f32 %v460_v50, 0.0  ;;  %v589_v60 = vmax.f32 %v461_v51, 0.0 }
  0x38   :  { %v466_v61 = vadd.f32 %v1164_v7, %v331_v52  ;;  %v467_v62 = vadd.f32 %v1164_v7, %v332_v53  ;;  %v590_v2 = vmax.f32 %v462_v54, 0.0  ;;  %v591_v3 = vmax.f32 %v463_v55, 0.0 }
  0x39   :  { %v592_v4 = vmax.f32 %v464_v56, 0.0  ;;  %v593_v5 = vmax.f32 %v465_v57, 0.0  ;;  %717 = vst.msk [vmem:[%s2127_s3 + $0x180] sm:$0xff] %vm668_vm0, %v588_v59  ;;  %718 = vst.msk [vmem:[%s2127_s3 + $0x188] sm:$0xff] %vm668_vm0, %v589_v60  ;;  %v917_v10 = vunpack.c.l.bf16 %v1086_v58  ;;  %v918_v11 = vunpack.c.h.bf16 %v1086_v58 }
  0x3a   :  { %v594_v8 = vmax.f32 %v466_v61, 0.0  ;;  %v595_v9 = vmax.f32 %v467_v62, 0.0  ;;  %719 = vst.msk [vmem:[%s2127_s3 + $0x190] sm:$0xff] %vm668_vm0, %v590_v2  ;;  %720 = vst.msk [vmem:[%s2127_s3 + $0x198] sm:$0xff] %vm668_vm0, %v591_v3  ;;  %v921_v12 = vunpack.c.l.bf16 %v1087_v63  ;;  %v922_v13 = vunpack.c.h.bf16 %v1087_v63 }
  0x3b   :  { %721 = vst.msk [vmem:[%s2127_s3 + $0x1a0] sm:$0xff] %vm668_vm0, %v592_v4  ;;  %722 = vst.msk [vmem:[%s2127_s3 + $0x1a8] sm:$0xff] %vm668_vm0, %v593_v5  ;;  %v925_v14 = vunpack.c.l.bf16 %v1088_v0  ;;  %v926_v15 = vunpack.c.h.bf16 %v1088_v0  ;;  %v333_v16 = vmul.f32 %v917_v10, %v1150_v1  ;;  %v334_v17 = vmul.f32 %v918_v11, %v1150_v1  ;;  %v1094_v5 = vld [vmem:[%s2124_s0 + $0x120] sm:$0xff]   ;;  %v1095_v11 = vld [vmem:[%s2124_s0 + $0x128] sm:$0xff]  }
  0x3c   :  { %723 = vst.msk [vmem:[%s2127_s3 + $0x1b0] sm:$0xff] %vm668_vm0, %v594_v8  ;;  %724 = vst.msk [vmem:[%s2127_s3 + $0x1b8] sm:$0xff] %vm668_vm0, %v595_v9  ;;  %v929_v18 = vunpack.c.l.bf16 %v1089_v6  ;;  %v930_v19 = vunpack.c.h.bf16 %v1089_v6  ;;  %v335_v20 = vmul.f32 %v921_v12, %v1150_v1  ;;  %v336_v21 = vmul.f32 %v922_v13, %v1150_v1  ;;  %v1096_v12 = vld [vmem:[%s2124_s0 + $0x130] sm:$0xff]  }
  0x3d   :  { %v337_v22 = vmul.f32 %v925_v14, %v1150_v1  ;;  %v338_v23 = vmul.f32 %v926_v15, %v1150_v1  ;;  %v468_v24 = vadd.f32 %v1164_v7, %v333_v16  ;;  %v469_v25 = vadd.f32 %v1164_v7, %v334_v17  ;;  %v1097_v17 = vld [vmem:[%s2124_s0 + $0x138] sm:$0xff]  }
  0x3e   :  { %v339_v26 = vmul.f32 %v929_v18, %v1150_v1  ;;  %v340_v27 = vmul.f32 %v930_v19, %v1150_v1  ;;  %v470_v28 = vadd.f32 %v1164_v7, %v335_v20  ;;  %v471_v29 = vadd.f32 %v1164_v7, %v336_v21 }
  0x3f   :  { %v472_v30 = vadd.f32 %v1164_v7, %v337_v22  ;;  %v473_v31 = vadd.f32 %v1164_v7, %v338_v23  ;;  %v596_v33 = vmax.f32 %v468_v24, 0.0  ;;  %v597_v34 = vmax.f32 %v469_v25, 0.0 }
  0x40   :  { %v474_v35 = vadd.f32 %v1164_v7, %v339_v26  ;;  %v475_v36 = vadd.f32 %v1164_v7, %v340_v27  ;;  %v598_v39 = vmax.f32 %v470_v28, 0.0  ;;  %v599_v40 = vmax.f32 %v471_v29, 0.0 }
  0x41   :  { %v600_v41 = vmax.f32 %v472_v30, 0.0  ;;  %v601_v42 = vmax.f32 %v473_v31, 0.0  ;;  %725 = vst.msk [vmem:[%s2127_s3 + $0x1c0] sm:$0xff] %vm668_vm0, %v596_v33  ;;  %726 = vst.msk [vmem:[%s2127_s3 + $0x1c8] sm:$0xff] %vm668_vm0, %v597_v34  ;;  %v933_v46 = vunpack.c.l.bf16 %v1090_v32  ;;  %v934_v47 = vunpack.c.h.bf16 %v1090_v32 }
  0x42   :  { %v602_v44 = vmax.f32 %v474_v35, 0.0  ;;  %v603_v45 = vmax.f32 %v475_v36, 0.0  ;;  %727 = vst.msk [vmem:[%s2127_s3 + $0x1d0] sm:$0xff] %vm668_vm0, %v598_v39  ;;  %728 = vst.msk [vmem:[%s2127_s3 + $0x1d8] sm:$0xff] %vm668_vm0, %v599_v40  ;;  %v937_v48 = vunpack.c.l.bf16 %v1091_v37  ;;  %v938_v49 = vunpack.c.h.bf16 %v1091_v37 }
  0x43   :  { %729 = vst.msk [vmem:[%s2127_s3 + $0x1e0] sm:$0xff] %vm668_vm0, %v600_v41  ;;  %730 = vst.msk [vmem:[%s2127_s3 + $0x1e8] sm:$0xff] %vm668_vm0, %v601_v42  ;;  %v941_v50 = vunpack.c.l.bf16 %v1092_v38  ;;  %v942_v51 = vunpack.c.h.bf16 %v1092_v38  ;;  %v341_v52 = vmul.f32 %v933_v46, %v1150_v1  ;;  %v342_v53 = vmul.f32 %v934_v47, %v1150_v1  ;;  %v1098_v42 = vld [vmem:[%s2124_s0 + $0x140] sm:$0xff]   ;;  %v1099_v47 = vld [vmem:[%s2124_s0 + $0x148] sm:$0xff]  }
  0x44   :  { %731 = vst.msk [vmem:[%s2127_s3 + $0x1f0] sm:$0xff] %vm668_vm0, %v602_v44  ;;  %732 = vst.msk [vmem:[%s2127_s3 + $0x1f8] sm:$0xff] %vm668_vm0, %v603_v45  ;;  %v945_v54 = vunpack.c.l.bf16 %v1093_v43  ;;  %v946_v55 = vunpack.c.h.bf16 %v1093_v43  ;;  %v343_v56 = vmul.f32 %v937_v48, %v1150_v1  ;;  %v344_v57 = vmul.f32 %v938_v49, %v1150_v1  ;;  %v1100_v48 = vld [vmem:[%s2124_s0 + $0x150] sm:$0xff]  }
  0x45   :  { %v345_v58 = vmul.f32 %v941_v50, %v1150_v1  ;;  %v346_v59 = vmul.f32 %v942_v51, %v1150_v1  ;;  %v476_v60 = vadd.f32 %v1164_v7, %v341_v52  ;;  %v477_v61 = vadd.f32 %v1164_v7, %v342_v53  ;;  %v1101_v53 = vld [vmem:[%s2124_s0 + $0x158] sm:$0xff]  }
  0x46   :  { %v347_v62 = vmul.f32 %v945_v54, %v1150_v1  ;;  %v348_v63 = vmul.f32 %v946_v55, %v1150_v1  ;;  %v478_v0 = vadd.f32 %v1164_v7, %v343_v56  ;;  %v479_v2 = vadd.f32 %v1164_v7, %v344_v57 }
  0x47   :  { %v480_v3 = vadd.f32 %v1164_v7, %v345_v58  ;;  %v481_v4 = vadd.f32 %v1164_v7, %v346_v59  ;;  %v604_v6 = vmax.f32 %v476_v60, 0.0  ;;  %v605_v8 = vmax.f32 %v477_v61, 0.0 }
  0x48   :  { %v482_v9 = vadd.f32 %v1164_v7, %v347_v62  ;;  %v483_v10 = vadd.f32 %v1164_v7, %v348_v63  ;;  %v606_v13 = vmax.f32 %v478_v0, 0.0  ;;  %v607_v14 = vmax.f32 %v479_v2, 0.0 }
  0x49   :  { %v608_v15 = vmax.f32 %v480_v3, 0.0  ;;  %v609_v16 = vmax.f32 %v481_v4, 0.0  ;;  %733 = vst.msk [vmem:[%s2127_s3 + $0x200] sm:$0xff] %vm668_vm0, %v604_v6  ;;  %734 = vst.msk [vmem:[%s2127_s3 + $0x208] sm:$0xff] %vm668_vm0, %v605_v8  ;;  %v949_v20 = vunpack.c.l.bf16 %v1094_v5  ;;  %v950_v21 = vunpack.c.h.bf16 %v1094_v5 }
  0x4a   :  { %v610_v18 = vmax.f32 %v482_v9, 0.0  ;;  %v611_v19 = vmax.f32 %v483_v10, 0.0  ;;  %735 = vst.msk [vmem:[%s2127_s3 + $0x210] sm:$0xff] %vm668_vm0, %v606_v13  ;;  %736 = vst.msk [vmem:[%s2127_s3 + $0x218] sm:$0xff] %vm668_vm0, %v607_v14  ;;  %v953_v22 = vunpack.c.l.bf16 %v1095_v11  ;;  %v954_v23 = vunpack.c.h.bf16 %v1095_v11 }
  0x4b   :  { %737 = vst.msk [vmem:[%s2127_s3 + $0x220] sm:$0xff] %vm668_vm0, %v608_v15  ;;  %738 = vst.msk [vmem:[%s2127_s3 + $0x228] sm:$0xff] %vm668_vm0, %v609_v16  ;;  %v957_v24 = vunpack.c.l.bf16 %v1096_v12  ;;  %v958_v25 = vunpack.c.h.bf16 %v1096_v12  ;;  %v349_v26 = vmul.f32 %v949_v20, %v1150_v1  ;;  %v350_v27 = vmul.f32 %v950_v21, %v1150_v1  ;;  %v1102_v16 = vld [vmem:[%s2124_s0 + $0x160] sm:$0xff]   ;;  %v1103_v21 = vld [vmem:[%s2124_s0 + $0x168] sm:$0xff]  }
  0x4c   :  { %739 = vst.msk [vmem:[%s2127_s3 + $0x230] sm:$0xff] %vm668_vm0, %v610_v18  ;;  %740 = vst.msk [vmem:[%s2127_s3 + $0x238] sm:$0xff] %vm668_vm0, %v611_v19  ;;  %v961_v28 = vunpack.c.l.bf16 %v1097_v17  ;;  %v962_v29 = vunpack.c.h.bf16 %v1097_v17  ;;  %v351_v30 = vmul.f32 %v953_v22, %v1150_v1  ;;  %v352_v31 = vmul.f32 %v954_v23, %v1150_v1  ;;  %v1104_v22 = vld [vmem:[%s2124_s0 + $0x170] sm:$0xff]  }
  0x4d   :  { %v353_v32 = vmul.f32 %v957_v24, %v1150_v1  ;;  %v354_v33 = vmul.f32 %v958_v25, %v1150_v1  ;;  %v484_v34 = vadd.f32 %v1164_v7, %v349_v26  ;;  %v485_v35 = vadd.f32 %v1164_v7, %v350_v27  ;;  %v1105_v27 = vld [vmem:[%s2124_s0 + $0x178] sm:$0xff]  }
  0x4e   :  { %v355_v36 = vmul.f32 %v961_v28, %v1150_v1  ;;  %v356_v37 = vmul.f32 %v962_v29, %v1150_v1  ;;  %v486_v38 = vadd.f32 %v1164_v7, %v351_v30  ;;  %v487_v39 = vadd.f32 %v1164_v7, %v352_v31 }
  0x4f   :  { %v488_v40 = vadd.f32 %v1164_v7, %v353_v32  ;;  %v489_v41 = vadd.f32 %v1164_v7, %v354_v33  ;;  %v612_v43 = vmax.f32 %v484_v34, 0.0  ;;  %v613_v44 = vmax.f32 %v485_v35, 0.0 }
  0x50   :  { %v490_v45 = vadd.f32 %v1164_v7, %v355_v36  ;;  %v491_v46 = vadd.f32 %v1164_v7, %v356_v37  ;;  %v614_v49 = vmax.f32 %v486_v38, 0.0  ;;  %v615_v50 = vmax.f32 %v487_v39, 0.0 }
  0x51   :  { %v616_v51 = vmax.f32 %v488_v40, 0.0  ;;  %v617_v52 = vmax.f32 %v489_v41, 0.0  ;;  %741 = vst.msk [vmem:[%s2127_s3 + $0x240] sm:$0xff] %vm668_vm0, %v612_v43  ;;  %742 = vst.msk [vmem:[%s2127_s3 + $0x248] sm:$0xff] %vm668_vm0, %v613_v44  ;;  %v965_v56 = vunpack.c.l.bf16 %v1098_v42  ;;  %v966_v57 = vunpack.c.h.bf16 %v1098_v42 }
  0x52   :  { %v618_v54 = vmax.f32 %v490_v45, 0.0  ;;  %v619_v55 = vmax.f32 %v491_v46, 0.0  ;;  %743 = vst.msk [vmem:[%s2127_s3 + $0x250] sm:$0xff] %vm668_vm0, %v614_v49  ;;  %744 = vst.msk [vmem:[%s2127_s3 + $0x258] sm:$0xff] %vm668_vm0, %v615_v50  ;;  %v969_v58 = vunpack.c.l.bf16 %v1099_v47  ;;  %v970_v59 = vunpack.c.h.bf16 %v1099_v47 }
  0x53   :  { %745 = vst.msk [vmem:[%s2127_s3 + $0x260] sm:$0xff] %vm668_vm0, %v616_v51  ;;  %746 = vst.msk [vmem:[%s2127_s3 + $0x268] sm:$0xff] %vm668_vm0, %v617_v52  ;;  %v973_v60 = vunpack.c.l.bf16 %v1100_v48  ;;  %v974_v61 = vunpack.c.h.bf16 %v1100_v48  ;;  %v357_v62 = vmul.f32 %v965_v56, %v1150_v1  ;;  %v358_v63 = vmul.f32 %v966_v57, %v1150_v1  ;;  %v1106_v52 = vld [vmem:[%s2124_s0 + $0x180] sm:$0xff]   ;;  %v1108_v57 = vld [vmem:[%s2124_s0 + $0x190] sm:$0xff]  }
  0x54   :  { %747 = vst.msk [vmem:[%s2127_s3 + $0x270] sm:$0xff] %vm668_vm0, %v618_v54  ;;  %748 = vst.msk [vmem:[%s2127_s3 + $0x278] sm:$0xff] %vm668_vm0, %v619_v55  ;;  %v977_v0 = vunpack.c.l.bf16 %v1101_v53  ;;  %v978_v2 = vunpack.c.h.bf16 %v1101_v53  ;;  %v359_v3 = vmul.f32 %v969_v58, %v1150_v1  ;;  %v360_v4 = vmul.f32 %v970_v59, %v1150_v1 }
  0x55   :  { %v361_v5 = vmul.f32 %v973_v60, %v1150_v1  ;;  %v362_v6 = vmul.f32 %v974_v61, %v1150_v1  ;;  %v492_v8 = vadd.f32 %v1164_v7, %v357_v62  ;;  %v493_v9 = vadd.f32 %v1164_v7, %v358_v63  ;;  %v1109_v62 = vld [vmem:[%s2124_s0 + $0x198] sm:$0xff]  }
  0x56   :  { %v363_v10 = vmul.f32 %v977_v0, %v1150_v1  ;;  %v364_v11 = vmul.f32 %v978_v2, %v1150_v1  ;;  %v494_v12 = vadd.f32 %v1164_v7, %v359_v3  ;;  %v495_v13 = vadd.f32 %v1164_v7, %v360_v4 }
  0x57   :  { %v496_v14 = vadd.f32 %v1164_v7, %v361_v5  ;;  %v497_v15 = vadd.f32 %v1164_v7, %v362_v6  ;;  %v620_v17 = vmax.f32 %v492_v8, 0.0  ;;  %v621_v18 = vmax.f32 %v493_v9, 0.0  ;;  %v1889_v8 = vld [vmem:[%s2125_s1] ss:$0 sm:$0xff] }
  0x58   :  { %v498_v19 = vadd.f32 %v1164_v7, %v363_v10  ;;  %v499_v20 = vadd.f32 %v1164_v7, %v364_v11  ;;  %v622_v23 = vmax.f32 %v494_v12, 0.0  ;;  %v623_v24 = vmax.f32 %v495_v13, 0.0 }
  0x59   :  { %v624_v25 = vmax.f32 %v496_v14, 0.0  ;;  %v625_v26 = vmax.f32 %v497_v15, 0.0  ;;  %749 = vst.msk [vmem:[%s2127_s3 + $0x280] sm:$0xff] %vm668_vm0, %v620_v17  ;;  %750 = vst.msk [vmem:[%s2127_s3 + $0x288] sm:$0xff] %vm668_vm0, %v621_v18  ;;  %v981_v30 = vunpack.c.l.bf16 %v1102_v16  ;;  %v982_v31 = vunpack.c.h.bf16 %v1102_v16  ;;  %v1900_v17 = vld [vmem:[%s2126_s2] ss:$0 sm:$0xff] }
  0x5a   :  { %v626_v28 = vmax.f32 %v498_v19, 0.0  ;;  %v627_v29 = vmax.f32 %v499_v20, 0.0  ;;  %751 = vst.msk [vmem:[%s2127_s3 + $0x290] sm:$0xff] %vm668_vm0, %v622_v23  ;;  %752 = vst.msk [vmem:[%s2127_s3 + $0x298] sm:$0xff] %vm668_vm0, %v623_v24  ;;  %v985_v32 = vunpack.c.l.bf16 %v1103_v21  ;;  %v986_v33 = vunpack.c.h.bf16 %v1103_v21 }
  0x5b   :  { %753 = vst.msk [vmem:[%s2127_s3 + $0x2a0] sm:$0xff] %vm668_vm0, %v624_v25  ;;  %754 = vst.msk [vmem:[%s2127_s3 + $0x2a8] sm:$0xff] %vm668_vm0, %v625_v26  ;;  %v989_v34 = vunpack.c.l.bf16 %v1104_v22  ;;  %v990_v35 = vunpack.c.h.bf16 %v1104_v22  ;;  %v365_v36 = vmul.f32 %v981_v30, %v1150_v1  ;;  %v366_v37 = vmul.f32 %v982_v31, %v1150_v1  ;;  %v1110_v26 = vld [vmem:[%s2124_s0 + $0x1a0] sm:$0xff]   ;;  %v1111_v31 = vld [vmem:[%s2124_s0 + $0x1a8] sm:$0xff]  }
  0x5c   :  { %755 = vst.msk [vmem:[%s2127_s3 + $0x2b0] sm:$0xff] %vm668_vm0, %v626_v28  ;;  %756 = vst.msk [vmem:[%s2127_s3 + $0x2b8] sm:$0xff] %vm668_vm0, %v627_v29  ;;  %v993_v38 = vunpack.c.l.bf16 %v1105_v27  ;;  %v994_v39 = vunpack.c.h.bf16 %v1105_v27  ;;  %v367_v40 = vmul.f32 %v985_v32, %v1150_v1  ;;  %v368_v41 = vmul.f32 %v986_v33, %v1150_v1  ;;  %v1112_v32 = vld [vmem:[%s2124_s0 + $0x1b0] sm:$0xff]  }
  0x5d   :  { %v369_v42 = vmul.f32 %v989_v34, %v1150_v1  ;;  %v370_v43 = vmul.f32 %v990_v35, %v1150_v1  ;;  %v500_v44 = vadd.f32 %v1164_v7, %v365_v36  ;;  %v501_v45 = vadd.f32 %v1164_v7, %v366_v37  ;;  %v1113_v37 = vld [vmem:[%s2124_s0 + $0x1b8] sm:$0xff]  }
  0x5e   :  { %v371_v46 = vmul.f32 %v993_v38, %v1150_v1  ;;  %v372_v47 = vmul.f32 %v994_v39, %v1150_v1  ;;  %v502_v48 = vadd.f32 %v1164_v7, %v367_v40  ;;  %v503_v49 = vadd.f32 %v1164_v7, %v368_v41  ;;  %v1107_v1 = vld [vmem:[%s2124_s0 + $0x188] sm:$0xff]  }
  0x5f   :  { %v504_v50 = vadd.f32 %v1164_v7, %v369_v42  ;;  %v505_v51 = vadd.f32 %v1164_v7, %v370_v43  ;;  %v628_v53 = vmax.f32 %v500_v44, 0.0  ;;  %v629_v54 = vmax.f32 %v501_v45, 0.0 }
  0x60   :  { %v506_v55 = vadd.f32 %v1164_v7, %v371_v46  ;;  %v507_v56 = vadd.f32 %v1164_v7, %v372_v47  ;;  %v630_v58 = vmax.f32 %v502_v48, 0.0  ;;  %v631_v59 = vmax.f32 %v503_v49, 0.0 }
  0x61   :  { %v632_v60 = vmax.f32 %v504_v50, 0.0  ;;  %v633_v61 = vmax.f32 %v505_v51, 0.0  ;;  %757 = vst.msk [vmem:[%s2127_s3 + $0x2c0] sm:$0xff] %vm668_vm0, %v628_v53  ;;  %758 = vst.msk [vmem:[%s2127_s3 + $0x2c8] sm:$0xff] %vm668_vm0, %v629_v54  ;;  %v997_v0 = vunpack.c.l.bf16 %v1106_v52  ;;  %v998_v2 = vunpack.c.h.bf16 %v1106_v52 }
  0x62   :  { %v634_v7 = vmax.f32 %v506_v55, 0.0  ;;  %v635_v63 = vmax.f32 %v507_v56, 0.0  ;;  %759 = vst.msk [vmem:[%s2127_s3 + $0x2d0] sm:$0xff] %vm668_vm0, %v630_v58  ;;  %760 = vst.msk [vmem:[%s2127_s3 + $0x2d8] sm:$0xff] %vm668_vm0, %v631_v59  ;;  %v1001_v3 = vunpack.c.l.bf16 %v1107_v1  ;;  %v1002_v4 = vunpack.c.h.bf16 %v1107_v1 }
  0x63   :  { %761 = vst.msk [vmem:[%s2127_s3 + $0x2e0] sm:$0xff] %vm668_vm0, %v632_v60  ;;  %762 = vst.msk [vmem:[%s2127_s3 + $0x2e8] sm:$0xff] %vm668_vm0, %v633_v61  ;;  %v1005_v5 = vunpack.c.l.bf16 %v1108_v57  ;;  %v1006_v6 = vunpack.c.h.bf16 %v1108_v57  ;;  %v373_v9 = vmul.f32 %v1889_v8, %v997_v0  ;;  %v374_v10 = vmul.f32 %v1889_v8, %v998_v2  ;;  %v1114_v61 = vld [vmem:[%s2124_s0 + $0x1c0] sm:$0xff]   ;;  %v1115_v2 = vld [vmem:[%s2124_s0 + $0x1c8] sm:$0xff]  }
  0x64   :  { %763 = vst.msk [vmem:[%s2127_s3 + $0x2f0] sm:$0xff] %vm668_vm0, %v634_v7  ;;  %764 = vst.msk [vmem:[%s2127_s3 + $0x2f8] sm:$0xff] %vm668_vm0, %v635_v63  ;;  %v1009_v11 = vunpack.c.l.bf16 %v1109_v62  ;;  %v1010_v12 = vunpack.c.h.bf16 %v1109_v62  ;;  %v375_v13 = vmul.f32 %v1889_v8, %v1001_v3  ;;  %v376_v14 = vmul.f32 %v1889_v8, %v1002_v4  ;;  %v1116_v3 = vld [vmem:[%s2124_s0 + $0x1d0] sm:$0xff]  }
  0x65   :  { %v377_v15 = vmul.f32 %v1889_v8, %v1005_v5  ;;  %v378_v16 = vmul.f32 %v1889_v8, %v1006_v6  ;;  %v508_v18 = vadd.f32 %v1900_v17, %v373_v9  ;;  %v509_v19 = vadd.f32 %v1900_v17, %v374_v10  ;;  %v1117_v10 = vld [vmem:[%s2124_s0 + $0x1d8] sm:$0xff]  }
  0x66   :  { %v379_v20 = vmul.f32 %v1889_v8, %v1009_v11  ;;  %v380_v21 = vmul.f32 %v1889_v8, %v1010_v12  ;;  %v510_v22 = vadd.f32 %v1900_v17, %v375_v13  ;;  %v511_v23 = vadd.f32 %v1900_v17, %v376_v14 }
  0x67   :  { %v512_v24 = vadd.f32 %v1900_v17, %v377_v15  ;;  %v513_v25 = vadd.f32 %v1900_v17, %v378_v16  ;;  %v636_v27 = vmax.f32 %v508_v18, 0.0  ;;  %v637_v28 = vmax.f32 %v509_v19, 0.0 }
  0x68   :  { %v514_v29 = vadd.f32 %v1900_v17, %v379_v20  ;;  %v515_v30 = vadd.f32 %v1900_v17, %v380_v21  ;;  %v638_v33 = vmax.f32 %v510_v22, 0.0  ;;  %v639_v34 = vmax.f32 %v511_v23, 0.0 }
  0x69   :  { %v640_v35 = vmax.f32 %v512_v24, 0.0  ;;  %v641_v36 = vmax.f32 %v513_v25, 0.0  ;;  %765 = vst.msk [vmem:[%s2127_s3 + $0x300] sm:$0xff] %vm668_vm0, %v636_v27  ;;  %766 = vst.msk [vmem:[%s2127_s3 + $0x308] sm:$0xff] %vm668_vm0, %v637_v28  ;;  %v1013_v40 = vunpack.c.l.bf16 %v1110_v26  ;;  %v1014_v41 = vunpack.c.h.bf16 %v1110_v26 }
  0x6a   :  { %v642_v38 = vmax.f32 %v514_v29, 0.0  ;;  %v643_v39 = vmax.f32 %v515_v30, 0.0  ;;  %767 = vst.msk [vmem:[%s2127_s3 + $0x310] sm:$0xff] %vm668_vm0, %v638_v33  ;;  %768 = vst.msk [vmem:[%s2127_s3 + $0x318] sm:$0xff] %vm668_vm0, %v639_v34  ;;  %v1017_v42 = vunpack.c.l.bf16 %v1111_v31  ;;  %v1018_v43 = vunpack.c.h.bf16 %v1111_v31 }
  0x6b   :  { %769 = vst.msk [vmem:[%s2127_s3 + $0x320] sm:$0xff] %vm668_vm0, %v640_v35  ;;  %770 = vst.msk [vmem:[%s2127_s3 + $0x328] sm:$0xff] %vm668_vm0, %v641_v36  ;;  %v1021_v44 = vunpack.c.l.bf16 %v1112_v32  ;;  %v1022_v45 = vunpack.c.h.bf16 %v1112_v32  ;;  %v381_v46 = vmul.f32 %v1889_v8, %v1013_v40  ;;  %v382_v47 = vmul.f32 %v1889_v8, %v1014_v41  ;;  %v1118_v36 = vld [vmem:[%s2124_s0 + $0x1e0] sm:$0xff]   ;;  %v1119_v41 = vld [vmem:[%s2124_s0 + $0x1e8] sm:$0xff]  }
  0x6c   :  { %771 = vst.msk [vmem:[%s2127_s3 + $0x330] sm:$0xff] %vm668_vm0, %v642_v38  ;;  %772 = vst.msk [vmem:[%s2127_s3 + $0x338] sm:$0xff] %vm668_vm0, %v643_v39  ;;  %v1025_v48 = vunpack.c.l.bf16 %v1113_v37  ;;  %v1026_v49 = vunpack.c.h.bf16 %v1113_v37  ;;  %v383_v50 = vmul.f32 %v1889_v8, %v1017_v42  ;;  %v384_v51 = vmul.f32 %v1889_v8, %v1018_v43  ;;  %v1120_v42 = vld [vmem:[%s2124_s0 + $0x1f0] sm:$0xff]  }
  0x6d   :  { %v385_v52 = vmul.f32 %v1889_v8, %v1021_v44  ;;  %v386_v53 = vmul.f32 %v1889_v8, %v1022_v45  ;;  %v516_v54 = vadd.f32 %v1900_v17, %v381_v46  ;;  %v517_v55 = vadd.f32 %v1900_v17, %v382_v47  ;;  %v1121_v47 = vld [vmem:[%s2124_s0 + $0x1f8] sm:$0xff]  }
  0x6e   :  { %v387_v56 = vmul.f32 %v1889_v8, %v1025_v48  ;;  %v388_v1 = vmul.f32 %v1889_v8, %v1026_v49  ;;  %v518_v57 = vadd.f32 %v1900_v17, %v383_v50  ;;  %v519_v58 = vadd.f32 %v1900_v17, %v384_v51 }
  0x6f   :  { %v520_v59 = vadd.f32 %v1900_v17, %v385_v52  ;;  %v521_v60 = vadd.f32 %v1900_v17, %v386_v53  ;;  %v644_v62 = vmax.f32 %v516_v54, 0.0  ;;  %v645_v7 = vmax.f32 %v517_v55, 0.0 }
  0x70   :  { %v522_v63 = vadd.f32 %v1900_v17, %v387_v56  ;;  %v523_v0 = vadd.f32 %v1900_v17, %v388_v1  ;;  %v646_v4 = vmax.f32 %v518_v57, 0.0  ;;  %v647_v5 = vmax.f32 %v519_v58, 0.0 }
  0x71   :  { %v648_v6 = vmax.f32 %v520_v59, 0.0  ;;  %v649_v9 = vmax.f32 %v521_v60, 0.0  ;;  %773 = vst.msk [vmem:[%s2127_s3 + $0x340] sm:$0xff] %vm668_vm0, %v644_v62  ;;  %774 = vst.msk [vmem:[%s2127_s3 + $0x348] sm:$0xff] %vm668_vm0, %v645_v7  ;;  %v1029_v13 = vunpack.c.l.bf16 %v1114_v61  ;;  %v1030_v14 = vunpack.c.h.bf16 %v1114_v61 }
  0x72   :  { %v650_v11 = vmax.f32 %v522_v63, 0.0  ;;  %v651_v12 = vmax.f32 %v523_v0, 0.0  ;;  %775 = vst.msk [vmem:[%s2127_s3 + $0x350] sm:$0xff] %vm668_vm0, %v646_v4  ;;  %776 = vst.msk [vmem:[%s2127_s3 + $0x358] sm:$0xff] %vm668_vm0, %v647_v5  ;;  %v1033_v15 = vunpack.c.l.bf16 %v1115_v2  ;;  %v1034_v16 = vunpack.c.h.bf16 %v1115_v2 }
  0x73   :  { %777 = vst.msk [vmem:[%s2127_s3 + $0x360] sm:$0xff] %vm668_vm0, %v648_v6  ;;  %778 = vst.msk [vmem:[%s2127_s3 + $0x368] sm:$0xff] %vm668_vm0, %v649_v9  ;;  %v1037_v18 = vunpack.c.l.bf16 %v1116_v3  ;;  %v1038_v19 = vunpack.c.h.bf16 %v1116_v3  ;;  %v389_v20 = vmul.f32 %v1889_v8, %v1029_v13  ;;  %v390_v21 = vmul.f32 %v1889_v8, %v1030_v14 }
  0x74   :  { %779 = vst.msk [vmem:[%s2127_s3 + $0x370] sm:$0xff] %vm668_vm0, %v650_v11  ;;  %780 = vst.msk [vmem:[%s2127_s3 + $0x378] sm:$0xff] %vm668_vm0, %v651_v12  ;;  %v1041_v22 = vunpack.c.l.bf16 %v1117_v10  ;;  %v1042_v23 = vunpack.c.h.bf16 %v1117_v10  ;;  %v391_v24 = vmul.f32 %v1889_v8, %v1033_v15  ;;  %v392_v25 = vmul.f32 %v1889_v8, %v1034_v16 }
  0x75   :  { %v393_v26 = vmul.f32 %v1889_v8, %v1037_v18  ;;  %v394_v27 = vmul.f32 %v1889_v8, %v1038_v19  ;;  %v524_v28 = vadd.f32 %v1900_v17, %v389_v20  ;;  %v525_v29 = vadd.f32 %v1900_v17, %v390_v21 }
  0x76   :  { %v395_v30 = vmul.f32 %v1889_v8, %v1041_v22  ;;  %v396_v31 = vmul.f32 %v1889_v8, %v1042_v23  ;;  %v526_v32 = vadd.f32 %v1900_v17, %v391_v24  ;;  %v527_v33 = vadd.f32 %v1900_v17, %v392_v25 }
  0x77   :  { %v528_v34 = vadd.f32 %v1900_v17, %v393_v26  ;;  %v529_v35 = vadd.f32 %v1900_v17, %v394_v27  ;;  %v652_v37 = vmax.f32 %v524_v28, 0.0  ;;  %v653_v38 = vmax.f32 %v525_v29, 0.0 }
  0x78   :  { %v530_v39 = vadd.f32 %v1900_v17, %v395_v30  ;;  %v531_v40 = vadd.f32 %v1900_v17, %v396_v31  ;;  %v654_v43 = vmax.f32 %v526_v32, 0.0  ;;  %v655_v44 = vmax.f32 %v527_v33, 0.0 }
  0x79   :  { %v656_v45 = vmax.f32 %v528_v34, 0.0  ;;  %v657_v46 = vmax.f32 %v529_v35, 0.0  ;;  %781 = vst.msk [vmem:[%s2127_s3 + $0x380] sm:$0xff] %vm668_vm0, %v652_v37  ;;  %782 = vst.msk [vmem:[%s2127_s3 + $0x388] sm:$0xff] %vm668_vm0, %v653_v38  ;;  %v1045_v50 = vunpack.c.l.bf16 %v1118_v36  ;;  %v1046_v51 = vunpack.c.h.bf16 %v1118_v36 }
  0x7a   :  { %v658_v48 = vmax.f32 %v530_v39, 0.0  ;;  %v659_v49 = vmax.f32 %v531_v40, 0.0  ;;  %783 = vst.msk [vmem:[%s2127_s3 + $0x390] sm:$0xff] %vm668_vm0, %v654_v43  ;;  %784 = vst.msk [vmem:[%s2127_s3 + $0x398] sm:$0xff] %vm668_vm0, %v655_v44  ;;  %v1049_v52 = vunpack.c.l.bf16 %v1119_v41  ;;  %v1050_v53 = vunpack.c.h.bf16 %v1119_v41 }
  0x7b   :  { %785 = vst.msk [vmem:[%s2127_s3 + $0x3a0] sm:$0xff] %vm668_vm0, %v656_v45  ;;  %786 = vst.msk [vmem:[%s2127_s3 + $0x3a8] sm:$0xff] %vm668_vm0, %v657_v46  ;;  %v1053_v54 = vunpack.c.l.bf16 %v1120_v42  ;;  %v1054_v55 = vunpack.c.h.bf16 %v1120_v42  ;;  %v397_v56 = vmul.f32 %v1889_v8, %v1045_v50  ;;  %v398_v1 = vmul.f32 %v1889_v8, %v1046_v51 }
  0x7c   :  { %787 = vst.msk [vmem:[%s2127_s3 + $0x3b0] sm:$0xff] %vm668_vm0, %v658_v48  ;;  %788 = vst.msk [vmem:[%s2127_s3 + $0x3b8] sm:$0xff] %vm668_vm0, %v659_v49  ;;  %v1057_v57 = vunpack.c.l.bf16 %v1121_v47  ;;  %v1058_v58 = vunpack.c.h.bf16 %v1121_v47  ;;  %v399_v59 = vmul.f32 %v1889_v8, %v1049_v52  ;;  %v400_v60 = vmul.f32 %v1889_v8, %v1050_v53 }
  0x7d   :  { %v401_v61 = vmul.f32 %v1889_v8, %v1053_v54  ;;  %v402_v62 = vmul.f32 %v1889_v8, %v1054_v55  ;;  %v532_v7 = vadd.f32 %v1900_v17, %v397_v56  ;;  %v533_v63 = vadd.f32 %v1900_v17, %v398_v1 }
  0x7e   :  { %v403_v0 = vmul.f32 %v1889_v8, %v1057_v57  ;;  %v404_v2 = vmul.f32 %v1889_v8, %v1058_v58  ;;  %v534_v3 = vadd.f32 %v1900_v17, %v399_v59  ;;  %v535_v4 = vadd.f32 %v1900_v17, %v400_v60 }
  0x7f   :  { %v536_v5 = vadd.f32 %v1900_v17, %v401_v61  ;;  %v537_v6 = vadd.f32 %v1900_v17, %v402_v62  ;;  %v660_v9 = vmax.f32 %v532_v7, 0.0  ;;  %v661_v10 = vmax.f32 %v533_v63, 0.0 }
  0x80   :  { %v538_v11 = vadd.f32 %v1900_v17, %v403_v0  ;;  %v539_v12 = vadd.f32 %v1900_v17, %v404_v2  ;;  %v662_v13 = vmax.f32 %v534_v3, 0.0  ;;  %v663_v14 = vmax.f32 %v535_v4, 0.0 }
  0x81   :  { %v664_v15 = vmax.f32 %v536_v5, 0.0  ;;  %v665_v16 = vmax.f32 %v537_v6, 0.0  ;;  %789 = vst.msk [vmem:[%s2127_s3 + $0x3c0] sm:$0xff] %vm668_vm0, %v660_v9  ;;  %790 = vst.msk [vmem:[%s2127_s3 + $0x3c8] sm:$0xff] %vm668_vm0, %v661_v10 }
  0x82   :  { %v666_v8 = vmax.f32 %v538_v11, 0.0  ;;  %v667_v18 = vmax.f32 %v539_v12, 0.0  ;;  %791 = vst.msk [vmem:[%s2127_s3 + $0x3d0] sm:$0xff] %vm668_vm0, %v662_v13  ;;  %792 = vst.msk [vmem:[%s2127_s3 + $0x3d8] sm:$0xff] %vm668_vm0, %v663_v14 }
  0x83   :  { %793 = vst.msk [vmem:[%s2127_s3 + $0x3e0] sm:$0xff] %vm668_vm0, %v664_v15  ;;  %794 = vst.msk [vmem:[%s2127_s3 + $0x3e8] sm:$0xff] %vm668_vm0, %v665_v16 }
  0x84   :  { %795 = vst.msk [vmem:[%s2127_s3 + $0x3f0] sm:$0xff] %vm668_vm0, %v666_v8  ;;  %796 = vst.msk [vmem:[%s2127_s3 + $0x3f8] sm:$0xff] %vm668_vm0, %v667_v18 }

</bundles_post_ra>
